<compile_context>
chip_gen: v5e
topology: v5e:2x2
jax: 0.10.0
libtpu: 0.0.40
codegen_flags: <defaults>
</compile_context>

<pallas_src>
import functools

import jax
import jax.numpy as jnp
from jax.experimental import pallas as pl
from jax.experimental.pallas import tpu as pltpu

_BN_EPS = 1e-5
_LANE = 128


def _round_up(x, m):
    return (x + m - 1) // m * m


def _fold_bn(conv_bias, gamma, beta, running_mean, running_var):
    """Fold Conv2d bias + eval-mode BatchNorm into per-channel scale/bias."""
    scale = gamma / jnp.sqrt(running_var + _BN_EPS)
    bias = (conv_bias - running_mean) * scale + beta
    return scale, bias


def _pick_nb(N, H, W, Cp, wcp, Coutp, budget_bytes=24 << 20):
    """Images per grid step, bounded by a conservative per-step VMEM budget
    (sized so double-buffered blocks + scratch fit v7x's 64 MiB VMEM)."""
    per_img = (2 * H * W * Cp * 2                    # input block (bf16, x2 buffers)
               + 2 * H * W * Coutp * 2               # output block (bf16, x2 buffers)
               + (H + 2) * W * 3 * wcp * 2           # row-halo tap scratch (bf16)
               + H * W * (6 * wcp + 2 * Coutp) * 4)  # f32 working values (estimate)
    nb = max(1, budget_bytes // max(per_img, 1))
    return int(min(N, nb))


# ----------------------------- Pallas kernel ------------------------------- #

def _bottleneck_kernel(x_ref, w1_ref, w2_ref, w3_ref, b1_ref, b2_ref, b3_ref,
                       o_ref, hal_ref):
    """NB images per grid step; all intermediates stay in VMEM."""
    NB, H, W, Cp = x_ref.shape
    wcp = w1_ref.shape[1]
    Coutp = w3_ref.shape[1]
    M = NB * H * W

    # --- conv1 (1x1, BN scale folded into weights) + bias + relu ---
    x2d = x_ref[...].reshape(M, Cp)                               # bf16
    y1 = jnp.dot(x2d, w1_ref[...], preferred_element_type=jnp.float32)
    h1 = jnp.maximum(y1 + b1_ref[...], 0.0)                       # f32 (M, wcp)
    h1_4d = h1.reshape(NB, H, W, wcp)

    # --- build the three kw taps (f32: sublane-native roll), mask the wrap ---
    col = jax.lax.broadcasted_iota(jnp.int32, (NB, H, W, wcp), 2)
    tap_l = jnp.where(col == 0, 0.0, pltpu.roll(h1_4d, shift=1, axis=2))      # kw=0
    tap_r = jnp.where(col == W - 1, 0.0, pltpu.roll(h1_4d, shift=W - 1, axis=2))  # kw=2

    # --- aligned row-halo scratch: (NB, H+2, W, 3*wcp); zero only the 2 halo
    #     rows per image, interior is fully overwritten each step ---
    zrow = jnp.zeros((NB, 1, W, 3 * wcp), jnp.bfloat16)
    hal_ref[:, 0:1, :, :] = zrow
    hal_ref[:, H + 1:H + 2, :, :] = zrow
    hal_ref[:, 1:H + 1, :, 0 * wcp:1 * wcp] = tap_l.astype(jnp.bfloat16)
    hal_ref[:, 1:H + 1, :, 1 * wcp:2 * wcp] = h1_4d.astype(jnp.bfloat16)
    hal_ref[:, 1:H + 1, :, 2 * wcp:3 * wcp] = tap_r.astype(jnp.bfloat16)

    # --- conv2 (3x3, stride=1, pad=1): 3 K-concatenated MXU dots (K = 3*wcp) ---
    c0 = hal_ref[:, 0:H, :, :].reshape(M, 3 * wcp)
    c1 = hal_ref[:, 1:H + 1, :, :].reshape(M, 3 * wcp)
    c2 = hal_ref[:, 2:H + 2, :, :].reshape(M, 3 * wcp)
    y2 = jnp.dot(c0, w2_ref[0], preferred_element_type=jnp.float32)
    y2 = y2 + jnp.dot(c1, w2_ref[1], preferred_element_type=jnp.float32)
    y2 = y2 + jnp.dot(c2, w2_ref[2], preferred_element_type=jnp.float32)
    h2 = jnp.maximum(y2 + b2_ref[...], 0.0)                       # f32 (M, wcp)

    # --- conv3 (1x1) + bias + residual add + relu ---
    y3 = jnp.dot(h2.astype(w3_ref.dtype), w3_ref[...],
                 preferred_element_type=jnp.float32)
    res = x_ref[...].reshape(M, Coutp).astype(jnp.float32)        # bf16 skip path
    y3 = y3 + b3_ref[...] + res
    o_ref[...] = (jnp.maximum(y3, 0.0)
                  .reshape(NB, H, W, Coutp).astype(o_ref.dtype))


# ------------------------------ wrapper ------------------------------------ #

def bottleneck_forward(x_nchw, params, stride=1):
    """Pallas-backed Bottleneck forward (NCHW in / NCHW out, float32)."""
    assert stride == 1, "only stride=1 / identity path implemented"
    p = params
    x = jnp.transpose(x_nchw, (0, 2, 3, 1))                       # -> NHWC
    N, H, W, Cin = x.shape
    wc = p["w2"].shape[0]
    Cout = p["w3"].shape[0]
    assert Cin == Cout, "identity path requires in_channels == out_channels"

    Cp = _round_up(Cin, _LANE)
    wcp = _round_up(wc, _LANE)
    Coutp = _round_up(Cout, _LANE)

    # Fold BN (eval mode) into per-channel scale/bias, then fold the scales
    # into the conv weights so the kernel epilogues are bias + relu only.
    s1, b1 = _fold_bn(p["b1"], p["g1"], p["be1"], p["rm1"], p["rv1"])
    s2, b2 = _fold_bn(p["b2"], p["g2"], p["be2"], p["rm2"], p["rv2"])
    s3, b3 = _fold_bn(p["b3"], p["g3"], p["be3"], p["rm3"], p["rv3"])

    w1 = jnp.transpose(p["w1"][:, :, 0, 0], (1, 0)) * s1[None, :]          # (Cin, wc)
    w1p = jnp.pad(w1, ((0, Cp - Cin), (0, wcp - wc))).astype(jnp.bfloat16)

    w2 = jnp.transpose(p["w2"], (2, 3, 1, 0)) * s2[None, None, None, :]    # (kh,kw,ci,co)
    w2p = jnp.pad(w2, ((0, 0), (0, 0), (0, wcp - wc), (0, wcp - wc)))
    w2p = w2p.reshape(3, 3 * wcp, wcp).astype(jnp.bfloat16)                # K=(kw,ci)

    w3 = jnp.transpose(p["w3"][:, :, 0, 0], (1, 0)) * s3[None, :]          # (wc, Cout)
    w3p = jnp.pad(w3, ((0, wcp - wc), (0, Coutp - Cout))).astype(jnp.bfloat16)

    def padvec(v, n):
        return jnp.pad(v, (0, n - v.shape[0])).reshape(1, n).astype(jnp.float32)

    b1p, b2p, b3p = padvec(b1, wcp), padvec(b2, wcp), padvec(b3, Coutp)

    # Batch blocking: NB images per grid step (budget-bounded), pad N to fit.
    NB = _pick_nb(N, H, W, Cp, wcp, Coutp)
    Npad = _round_up(N, NB)
    xp = jnp.pad(x, ((0, Npad - N), (0, 0), (0, 0), (0, Cp - Cin))).astype(jnp.bfloat16)

    # Explicit VMEM limit derived from the actual per-step footprint.
    est = (2 * NB * H * W * (Cp + Coutp) * 2
           + NB * (H + 2) * W * 3 * wcp * 2
           + NB * H * W * (6 * wcp + 2 * Coutp) * 4
           + 2 * (Cp * wcp + 9 * wcp * wcp + wcp * Coutp) * 2)
    vmem_limit = int(min(100 << 20, max(32 << 20, 2 * est)))

    img_spec = pl.BlockSpec((NB, H, W, Cp), lambda n: (n, 0, 0, 0))
    out_spec = pl.BlockSpec((NB, H, W, Coutp), lambda n: (n, 0, 0, 0))
    w1_spec = pl.BlockSpec((Cp, wcp), lambda n: (0, 0))
    w2_spec = pl.BlockSpec((3, 3 * wcp, wcp), lambda n: (0, 0, 0))
    w3_spec = pl.BlockSpec((wcp, Coutp), lambda n: (0, 0))
    b_wc = pl.BlockSpec((1, wcp), lambda n: (0, 0))
    b_co = pl.BlockSpec((1, Coutp), lambda n: (0, 0))

    out = pl.pallas_call(
        _bottleneck_kernel,
        out_shape=jax.ShapeDtypeStruct((Npad, H, W, Coutp), jnp.bfloat16),
        grid_spec=pltpu.PrefetchScalarGridSpec(
            num_scalar_prefetch=0,
            grid=(Npad // NB,),
            in_specs=[img_spec, w1_spec, w2_spec, w3_spec, b_wc, b_wc, b_co],
            out_specs=out_spec,
            scratch_shapes=[pltpu.VMEM((NB, H + 2, W, 3 * wcp), jnp.bfloat16)],
        ),
        compiler_params=pltpu.CompilerParams(
            dimension_semantics=("parallel",),
            vmem_limit_bytes=vmem_limit,
        ),
    )(xp, w1p, w2p, w3p, b1p, b2p, b3p)

    out = out[:N, :, :, :Cout].astype(jnp.float32)
    return jnp.transpose(out, (0, 3, 1, 2))                       # -> NCHW


# --------------------------- pure-JAX reference ----------------------------- #

def _ref_forward(x_nchw, p, stride=1):
    x = jnp.transpose(x_nchw, (0, 2, 3, 1))

    def conv(z, w, b, s, pad):
        w_hwio = jnp.transpose(w, (2, 3, 1, 0))
        y = jax.lax.conv_general_dilated(
            z, w_hwio, (s, s), [(pad, pad), (pad, pad)],
            dimension_numbers=("NHWC", "HWIO", "NHWC"),
            precision=jax.lax.Precision.HIGHEST)
        return y + b

    def bn(z, g, be, rm, rv):
        return (z - rm) / jnp.sqrt(rv + _BN_EPS) * g + be

    identity = x
    h = jax.nn.relu(bn(conv(x, p["w1"], p["b1"], 1, 0),
                       p["g1"], p["be1"], p["rm1"], p["rv1"]))
    h = jax.nn.relu(bn(conv(h, p["w2"], p["b2"], stride, 1),
                       p["g2"], p["be2"], p["rm2"], p["rv2"]))
    h = bn(conv(h, p["w3"], p["b3"], 1, 0),
           p["g3"], p["be3"], p["rm3"], p["rv3"])
    h = jax.nn.relu(h + identity)
    return jnp.transpose(h, (0, 3, 1, 2))


# --------------------------------- main ------------------------------------ #

def _init_params(key, in_channels, out_channels):
    wc = out_channels // 4
    ks = jax.random.split(key, 20)
    f32 = jnp.float32

    def nrm(k, shape, s=0.1):
        return s * jax.random.normal(k, shape, f32)

    params = {
        # conv weights: PyTorch layout (Cout, Cin, kh, kw)
        "w1": nrm(ks[0], (wc, in_channels, 1, 1)),
        "b1": nrm(ks[1], (wc,)),
        "w2": nrm(ks[2], (wc, wc, 3, 3)),
        "b2": nrm(ks[3], (wc,)),
        "w3": nrm(ks[4], (out_channels, wc, 1, 1)),
        "b3": nrm(ks[5], (out_channels,)),
        # BN params / running stats
        "g1": 1.0 + nrm(ks[6], (wc,)), "be1": nrm(ks[7], (wc,)),
        "rm1": nrm(ks[8], (wc,)), "rv1": 0.5 + jnp.abs(nrm(ks[9], (wc,))),
        "g2": 1.0 + nrm(ks[10], (wc,)), "be2": nrm(ks[11], (wc,)),
        "rm2": nrm(ks[12], (wc,)), "rv2": 0.5 + jnp.abs(nrm(ks[13], (wc,))),
        "g3": 1.0 + nrm(ks[14], (out_channels,)), "be3": nrm(ks[15], (out_channels,)),
        "rm3": nrm(ks[16], (out_channels,)), "rv3": 0.5 + jnp.abs(nrm(ks[17], (out_channels,))),
    }
    return params


if __name__ == "__main__":
    key = jax.random.PRNGKey(0)
    kx, kp = jax.random.split(key)

    # Small shapes: batch=2, in_channels=out_channels=32 (working=8), spatial=16.
    N, C, H, W = 2, 32, 16, 16
    x = jax.random.normal(kx, (N, C, H, W), jnp.float32)
    params = _init_params(kp, in_channels=C, out_channels=C)

    fwd = jax.jit(functools.partial(bottleneck_forward, stride=1))
    out = jax.block_until_ready(fwd(x, params))

    ref = jax.block_until_ready(_ref_forward(x, params, stride=1))
    assert out.shape == (N, C, H, W)
    max_err = float(jnp.max(jnp.abs(out - ref)))
    assert jnp.allclose(out, ref, rtol=2e-2, atol=2e-2), max_err

    print("KERNEL_OK")
</pallas_src>

<mosaic_0001>
module attributes {stable_mosaic.version = 11 : i64} {
  func.func @_bottleneck_kernel(%arg0: i32, %arg1: memref<2x16x16x128xbf16, #tpu.memory_space<vmem>>, %arg2: memref<128x128xbf16, #tpu.memory_space<vmem>>, %arg3: memref<3x384x128xbf16, #tpu.memory_space<vmem>>, %arg4: memref<128x128xbf16, #tpu.memory_space<vmem>>, %arg5: memref<1x128xf32, #tpu.memory_space<vmem>>, %arg6: memref<1x128xf32, #tpu.memory_space<vmem>>, %arg7: memref<1x128xf32, #tpu.memory_space<vmem>>, %arg8: memref<2x16x16x128xbf16, #tpu.memory_space<vmem>>, %arg9: memref<2x18x16x384xbf16, #tpu.memory_space<vmem>>) attributes {dimension_semantics = [#tpu.dimension_semantics<parallel>], iteration_bounds = array<i64: 1>, scalar_prefetch = 0 : i64, scratch_operands = 1 : i64, tpu.core_type = #tpu.core_type<tc>, window_params = [{transform_indices = @transform_0, window_bounds = array<i64: 2, 16, 16, 128>}, {pipeline_mode = #tpu.pipeline_mode<synchronous>, transform_indices = @transform_1, window_bounds = array<i64: 128, 128>}, {pipeline_mode = #tpu.pipeline_mode<synchronous>, transform_indices = @transform_2, window_bounds = array<i64: 3, 384, 128>}, {pipeline_mode = #tpu.pipeline_mode<synchronous>, transform_indices = @transform_3, window_bounds = array<i64: 128, 128>}, {pipeline_mode = #tpu.pipeline_mode<synchronous>, transform_indices = @transform_4, window_bounds = array<i64: 1, 128>}, {pipeline_mode = #tpu.pipeline_mode<synchronous>, transform_indices = @transform_5, window_bounds = array<i64: 1, 128>}, {pipeline_mode = #tpu.pipeline_mode<synchronous>, transform_indices = @transform_6, window_bounds = array<i64: 1, 128>}, {transform_indices = @transform_7, window_bounds = array<i64: 2, 16, 16, 128>}]} {
    %c0 = arith.constant 0 : index
    %c0_0 = arith.constant 0 : index
    %c0_1 = arith.constant 0 : index
    %c0_2 = arith.constant 0 : index
    %0 = vector.load %arg1[%c0, %c0_0, %c0_1, %c0_2] : memref<2x16x16x128xbf16, #tpu.memory_space<vmem>>, vector<2x16x16x128xbf16>
    %1 = vector.shape_cast %0 : vector<2x16x16x128xbf16> to vector<512x128xbf16>
    %c0_3 = arith.constant 0 : index
    %c0_4 = arith.constant 0 : index
    %2 = vector.load %arg2[%c0_3, %c0_4] : memref<128x128xbf16, #tpu.memory_space<vmem>>, vector<128x128xbf16>
    %cst = arith.constant dense<0.000000e+00> : vector<512x128xf32>
    %3 = tpu.matmul %1, %2, %cst {dimension_numbers = #tpu.dot_dimension_numbers<[1], [0], [0], [1], [0, 0, 1, 1], [], []>} : vector<512x128xbf16>, vector<128x128xbf16>, vector<512x128xf32> -> vector<512x128xf32>
    %c0_5 = arith.constant 0 : index
    %c0_6 = arith.constant 0 : index
    %4 = vector.load %arg5[%c0_5, %c0_6] : memref<1x128xf32, #tpu.memory_space<vmem>>, vector<1x128xf32>
    %5 = vector.broadcast %4 : vector<1x128xf32> to vector<512x128xf32>
    %6 = arith.addf %3, %5 : vector<512x128xf32>
    %cst_7 = arith.constant 0.000000e+00 : f32
    %7 = vector.broadcast %cst_7 : f32 to vector<512x128xf32>
    %8 = arith.maximumf %6, %7 : vector<512x128xf32>
    %9 = vector.shape_cast %8 : vector<512x128xf32> to vector<2x16x16x128xf32>
    %10 = tpu.iota {dimensions = array<i32: 2>} : vector<2x16x16x128xi32>
    %c0_i32 = arith.constant 0 : i32
    %11 = vector.broadcast %c0_i32 : i32 to vector<2x16x16x128xi32>
    %12 = arith.cmpi eq, %10, %11 : vector<2x16x16x128xi32>
    %c1_i32 = arith.constant 1 : i32
    %13 = tpu.dynamic_rotate %9 by %c1_i32 dim 2 : vector<2x16x16x128xf32>, i32 -> vector<2x16x16x128xf32>
    %cst_8 = arith.constant 0.000000e+00 : f32
    %14 = vector.broadcast %cst_8 : f32 to vector<2x16x16x128xf32>
    %15 = arith.select %12, %14, %13 : vector<2x16x16x128xi1>, vector<2x16x16x128xf32>
    %c15_i32 = arith.constant 15 : i32
    %16 = vector.broadcast %c15_i32 : i32 to vector<2x16x16x128xi32>
    %17 = arith.cmpi eq, %10, %16 : vector<2x16x16x128xi32>
    %c15_i32_9 = arith.constant 15 : i32
    %18 = tpu.dynamic_rotate %9 by %c15_i32_9 dim 2 : vector<2x16x16x128xf32>, i32 -> vector<2x16x16x128xf32>
    %cst_10 = arith.constant 0.000000e+00 : f32
    %19 = vector.broadcast %cst_10 : f32 to vector<2x16x16x128xf32>
    %20 = arith.select %17, %19, %18 : vector<2x16x16x128xi1>, vector<2x16x16x128xf32>
    %cst_11 = arith.constant 0.000000e+00 : bf16
    %21 = vector.broadcast %cst_11 : bf16 to vector<2x1x16x384xbf16>
    %c0_12 = arith.constant 0 : index
    %c0_13 = arith.constant 0 : index
    %c0_14 = arith.constant 0 : index
    %c0_15 = arith.constant 0 : index
    %22 = vector.load %arg9[%c0_12, %c0_13, %c0_14, %c0_15] : memref<2x18x16x384xbf16, #tpu.memory_space<vmem>>, vector<2x1x16x384xbf16>
    tpu.vector_store %arg9[%c0_12, %c0_13, %c0_14, %c0_15], %21 {strides = array<i32>} : memref<2x18x16x384xbf16, #tpu.memory_space<vmem>>, vector<2x1x16x384xbf16>,
    %c0_16 = arith.constant 0 : index
    %c17 = arith.constant 17 : index
    %c0_17 = arith.constant 0 : index
    %c0_18 = arith.constant 0 : index
    %23 = vector.load %arg9[%c0_16, %c17, %c0_17, %c0_18] : memref<2x18x16x384xbf16, #tpu.memory_space<vmem>>, vector<2x1x16x384xbf16>
    tpu.vector_store %arg9[%c0_16, %c17, %c0_17, %c0_18], %21 {strides = array<i32>} : memref<2x18x16x384xbf16, #tpu.memory_space<vmem>>, vector<2x1x16x384xbf16>,
    %24 = arith.truncf %15 : vector<2x16x16x128xf32> to vector<2x16x16x128xbf16>
    %c0_19 = arith.constant 0 : index
    %c1 = arith.constant 1 : index
    %c0_20 = arith.constant 0 : index
    %c0_21 = arith.constant 0 : index
    %25 = vector.load %arg9[%c0_19, %c1, %c0_20, %c0_21] : memref<2x18x16x384xbf16, #tpu.memory_space<vmem>>, vector<2x16x16x128xbf16>
    tpu.vector_store %arg9[%c0_19, %c1, %c0_20, %c0_21], %24 {strides = array<i32>} : memref<2x18x16x384xbf16, #tpu.memory_space<vmem>>, vector<2x16x16x128xbf16>,
    %26 = arith.truncf %9 : vector<2x16x16x128xf32> to vector<2x16x16x128xbf16>
    %c0_22 = arith.constant 0 : index
    %c1_23 = arith.constant 1 : index
    %c0_24 = arith.constant 0 : index
    %c128 = arith.constant 128 : index
    %27 = vector.load %arg9[%c0_22, %c1_23, %c0_24, %c128] : memref<2x18x16x384xbf16, #tpu.memory_space<vmem>>, vector<2x16x16x128xbf16>
    tpu.vector_store %arg9[%c0_22, %c1_23, %c0_24, %c128], %26 {strides = array<i32>} : memref<2x18x16x384xbf16, #tpu.memory_space<vmem>>, vector<2x16x16x128xbf16>,
    %28 = arith.truncf %20 : vector<2x16x16x128xf32> to vector<2x16x16x128xbf16>
    %c0_25 = arith.constant 0 : index
    %c1_26 = arith.constant 1 : index
    %c0_27 = arith.constant 0 : index
    %c256 = arith.constant 256 : index
    %29 = vector.load %arg9[%c0_25, %c1_26, %c0_27, %c256] : memref<2x18x16x384xbf16, #tpu.memory_space<vmem>>, vector<2x16x16x128xbf16>
    tpu.vector_store %arg9[%c0_25, %c1_26, %c0_27, %c256], %28 {strides = array<i32>} : memref<2x18x16x384xbf16, #tpu.memory_space<vmem>>, vector<2x16x16x128xbf16>,
    %c0_28 = arith.constant 0 : index
    %c0_29 = arith.constant 0 : index
    %c0_30 = arith.constant 0 : index
    %c0_31 = arith.constant 0 : index
    %30 = vector.load %arg9[%c0_28, %c0_29, %c0_30, %c0_31] : memref<2x18x16x384xbf16, #tpu.memory_space<vmem>>, vector<2x16x16x384xbf16>
    %31 = vector.shape_cast %30 : vector<2x16x16x384xbf16> to vector<512x384xbf16>
    %c0_32 = arith.constant 0 : index
    %c1_33 = arith.constant 1 : index
    %c0_34 = arith.constant 0 : index
    %c0_35 = arith.constant 0 : index
    %32 = vector.load %arg9[%c0_32, %c1_33, %c0_34, %c0_35] : memref<2x18x16x384xbf16, #tpu.memory_space<vmem>>, vector<2x16x16x384xbf16>
    %33 = vector.shape_cast %32 : vector<2x16x16x384xbf16> to vector<512x384xbf16>
    %c0_36 = arith.constant 0 : index
    %c2 = arith.constant 2 : index
    %c0_37 = arith.constant 0 : index
    %c0_38 = arith.constant 0 : index
    %34 = vector.load %arg9[%c0_36, %c2, %c0_37, %c0_38] : memref<2x18x16x384xbf16, #tpu.memory_space<vmem>>, vector<2x16x16x384xbf16>
    %35 = vector.shape_cast %34 : vector<2x16x16x384xbf16> to vector<512x384xbf16>
    %c0_39 = arith.constant 0 : index
    %c0_40 = arith.constant 0 : index
    %c0_41 = arith.constant 0 : index
    %36 = vector.load %arg3[%c0_39, %c0_40, %c0_41] : memref<3x384x128xbf16, #tpu.memory_space<vmem>>, vector<1x384x128xbf16>
    %37 = vector.shape_cast %36 : vector<1x384x128xbf16> to vector<384x128xbf16>
    %cst_42 = arith.constant dense<0.000000e+00> : vector<512x128xf32>
    %38 = tpu.matmul %31, %37, %cst_42 {dimension_numbers = #tpu.dot_dimension_numbers<[1], [0], [0], [1], [0, 0, 1, 1], [], []>} : vector<512x384xbf16>, vector<384x128xbf16>, vector<512x128xf32> -> vector<512x128xf32>
    %c1_43 = arith.constant 1 : index
    %c0_44 = arith.constant 0 : index
    %c0_45 = arith.constant 0 : index
    %39 = vector.load %arg3[%c1_43, %c0_44, %c0_45] : memref<3x384x128xbf16, #tpu.memory_space<vmem>>, vector<1x384x128xbf16>
    %40 = vector.shape_cast %39 : vector<1x384x128xbf16> to vector<384x128xbf16>
    %cst_46 = arith.constant dense<0.000000e+00> : vector<512x128xf32>
    %41 = tpu.matmul %33, %40, %cst_46 {dimension_numbers = #tpu.dot_dimension_numbers<[1], [0], [0], [1], [0, 0, 1, 1], [], []>} : vector<512x384xbf16>, vector<384x128xbf16>, vector<512x128xf32> -> vector<512x128xf32>
    %42 = arith.addf %38, %41 : vector<512x128xf32>
    %c2_47 = arith.constant 2 : index
    %c0_48 = arith.constant 0 : index
    %c0_49 = arith.constant 0 : index
    %43 = vector.load %arg3[%c2_47, %c0_48, %c0_49] : memref<3x384x128xbf16, #tpu.memory_space<vmem>>, vector<1x384x128xbf16>
    %44 = vector.shape_cast %43 : vector<1x384x128xbf16> to vector<384x128xbf16>
    %cst_50 = arith.constant dense<0.000000e+00> : vector<512x128xf32>
    %45 = tpu.matmul %35, %44, %cst_50 {dimension_numbers = #tpu.dot_dimension_numbers<[1], [0], [0], [1], [0, 0, 1, 1], [], []>} : vector<512x384xbf16>, vector<384x128xbf16>, vector<512x128xf32> -> vector<512x128xf32>
    %46 = arith.addf %42, %45 : vector<512x128xf32>
    %c0_51 = arith.constant 0 : index
    %c0_52 = arith.constant 0 : index
    %47 = vector.load %arg6[%c0_51, %c0_52] : memref<1x128xf32, #tpu.memory_space<vmem>>, vector<1x128xf32>
    %48 = vector.broadcast %47 : vector<1x128xf32> to vector<512x128xf32>
    %49 = arith.addf %46, %48 : vector<512x128xf32>
    %cst_53 = arith.constant 0.000000e+00 : f32
    %50 = vector.broadcast %cst_53 : f32 to vector<512x128xf32>
    %51 = arith.maximumf %49, %50 : vector<512x128xf32>
    %52 = arith.truncf %51 : vector<512x128xf32> to vector<512x128xbf16>
    %c0_54 = arith.constant 0 : index
    %c0_55 = arith.constant 0 : index
    %53 = vector.load %arg4[%c0_54, %c0_55] : memref<128x128xbf16, #tpu.memory_space<vmem>>, vector<128x128xbf16>
    %cst_56 = arith.constant dense<0.000000e+00> : vector<512x128xf32>
    %54 = tpu.matmul %52, %53, %cst_56 {dimension_numbers = #tpu.dot_dimension_numbers<[1], [0], [0], [1], [0, 0, 1, 1], [], []>} : vector<512x128xbf16>, vector<128x128xbf16>, vector<512x128xf32> -> vector<512x128xf32>
    %c0_57 = arith.constant 0 : index
    %c0_58 = arith.constant 0 : index
    %c0_59 = arith.constant 0 : index
    %c0_60 = arith.constant 0 : index
    %55 = vector.load %arg1[%c0_57, %c0_58, %c0_59, %c0_60] : memref<2x16x16x128xbf16, #tpu.memory_space<vmem>>, vector<2x16x16x128xbf16>
    %56 = vector.shape_cast %55 : vector<2x16x16x128xbf16> to vector<512x128xbf16>
    %57 = arith.extf %56 : vector<512x128xbf16> to vector<512x128xf32>
    %c0_61 = arith.constant 0 : index
    %c0_62 = arith.constant 0 : index
    %58 = vector.load %arg7[%c0_61, %c0_62] : memref<1x128xf32, #tpu.memory_space<vmem>>, vector<1x128xf32>
    %59 = vector.broadcast %58 : vector<1x128xf32> to vector<512x128xf32>
    %60 = arith.addf %54, %59 : vector<512x128xf32>
    %61 = arith.addf %60, %57 : vector<512x128xf32>
    %cst_63 = arith.constant 0.000000e+00 : f32
    %62 = vector.broadcast %cst_63 : f32 to vector<512x128xf32>
    %63 = arith.maximumf %61, %62 : vector<512x128xf32>
    %64 = vector.shape_cast %63 : vector<512x128xf32> to vector<2x16x16x128xf32>
    %65 = arith.truncf %64 : vector<2x16x16x128xf32> to vector<2x16x16x128xbf16>
    %c0_64 = arith.constant 0 : index
    %c0_65 = arith.constant 0 : index
    %c0_66 = arith.constant 0 : index
    %c0_67 = arith.constant 0 : index
    %66 = vector.load %arg8[%c0_64, %c0_65, %c0_66, %c0_67] : memref<2x16x16x128xbf16, #tpu.memory_space<vmem>>, vector<2x16x16x128xbf16>
    tpu.vector_store %arg8[%c0_64, %c0_65, %c0_66, %c0_67], %65 {strides = array<i32>} : memref<2x16x16x128xbf16, #tpu.memory_space<vmem>>, vector<2x16x16x128xbf16>,
    return
  }
  func.func @transform_0(%arg0: i32) -> (i32, i32, i32, i32) {
    %c0_i32 = arith.constant 0 : i32
    %c0_i32_0 = arith.constant 0 : i32
    %c0_i32_1 = arith.constant 0 : i32
    %c0_i32_2 = arith.constant 0 : i32
    return %arg0, %c0_i32, %c0_i32_0, %c0_i32_1 : i32, i32, i32, i32
  }
  func.func @transform_1(%arg0: i32) -> (i32, i32) {
    %c0_i32 = arith.constant 0 : i32
    %c0_i32_0 = arith.constant 0 : i32
    %c0_i32_1 = arith.constant 0 : i32
    return %c0_i32, %c0_i32_0 : i32, i32
  }
  func.func @transform_2(%arg0: i32) -> (i32, i32, i32) {
    %c0_i32 = arith.constant 0 : i32
    %c0_i32_0 = arith.constant 0 : i32
    %c0_i32_1 = arith.constant 0 : i32
    %c0_i32_2 = arith.constant 0 : i32
    return %c0_i32, %c0_i32_0, %c0_i32_1 : i32, i32, i32
  }
  func.func @transform_3(%arg0: i32) -> (i32, i32) {
    %c0_i32 = arith.constant 0 : i32
    %c0_i32_0 = arith.constant 0 : i32
    %c0_i32_1 = arith.constant 0 : i32
    return %c0_i32, %c0_i32_0 : i32, i32
  }
  func.func @transform_4(%arg0: i32) -> (i32, i32) {
    %c0_i32 = arith.constant 0 : i32
    %c0_i32_0 = arith.constant 0 : i32
    %c0_i32_1 = arith.constant 0 : i32
    return %c0_i32, %c0_i32_0 : i32, i32
  }
  func.func @transform_5(%arg0: i32) -> (i32, i32) {
    %c0_i32 = arith.constant 0 : i32
    %c0_i32_0 = arith.constant 0 : i32
    %c0_i32_1 = arith.constant 0 : i32
    return %c0_i32, %c0_i32_0 : i32, i32
  }
  func.func @transform_6(%arg0: i32) -> (i32, i32) {
    %c0_i32 = arith.constant 0 : i32
    %c0_i32_0 = arith.constant 0 : i32
    %c0_i32_1 = arith.constant 0 : i32
    return %c0_i32, %c0_i32_0 : i32, i32
  }
  func.func @transform_7(%arg0: i32) -> (i32, i32, i32, i32) {
    %c0_i32 = arith.constant 0 : i32
    %c0_i32_0 = arith.constant 0 : i32
    %c0_i32_1 = arith.constant 0 : i32
    %c0_i32_2 = arith.constant 0 : i32
    return %arg0, %c0_i32, %c0_i32_0, %c0_i32_1 : i32, i32, i32, i32
  }
}

</mosaic_0001>

<bundles_post_ra>
// kernel: bottleneck_forward.1
= control target key start
LH: loop header
LB: loop body
LE: loop exit
PB: predicated region body
PF: predicated region fallthrough
CT: control target
= control target key end

     0   :  { %v584_v43 = vlaneseq  ;;  %s11130_s1 = inlined_call_operand.vmem [shape: bf16[128,128], index: 1, kind: input, shape index: {}]   ;;  %s11131_s4 = inlined_call_operand.vmem [shape: f32[1,128], index: 4, kind: input, shape index: {}]   ;;  %s11132_s0 = inlined_call_operand.vmem [shape: bf16[2,16,16,128], index: 0, kind: input, shape index: {}]   ;;  %s11133_s2 = inlined_call_operand.vmem [shape: bf16[3,384,128], index: 2, kind: input, shape index: {}]   ;;  %s11134_s3 = inlined_call_operand.vmem [shape: bf16[128,128], index: 3, kind: input, shape index: {}]   ;;  %s11135_s5 = inlined_call_operand.vmem [shape: f32[1,128], index: 5, kind: input, shape index: {}]   ;;  %s11136_s6 = inlined_call_operand.vmem [shape: f32[1,128], index: 6, kind: input, shape index: {}]   ;;  %s11137_s7 = inlined_call_operand.vmem [shape: bf16[2,16,16,128], index: 7, kind: output, shape index: {}]  }
   0x1   :  { %v8019_v0 = vld [vmem:[%s11130_s1 + $0x38] sm:$0xff]  ;;  %v8018_v1 = vld [vmem:[%s11130_s1 + $0x30] sm:$0xff]  ;;  %v8017_v2 = vld [vmem:[%s11130_s1 + $0x28] sm:$0xff] }
   0x2   :  { %351 = vmatpush.bf16.msra.mxu0 %v8019_v0  ;;  %8738 = vmatpush.bf16.msra.mxu3 %v8019_v0  ;;  %v8016_v3 = vld [vmem:[%s11130_s1 + $0x20] sm:$0xff]  ;;  %v8015_v4 = vld [vmem:[%s11130_s1 + $0x18] sm:$0xff]  ;;  %v8014_v5 = vld [vmem:[%s11130_s1 + $0x10] sm:$0xff]  ;;  %v8949_v46 = vshrl.u32 %v584_v43, 7 }
   0x3   :  { %v8013_v6 = vld [vmem:[%s11130_s1 + $0x8] sm:$0xff]  ;;  %v8012_v7 = vld [vmem:[%s11130_s1] sm:$0xff]  ;;  %v7982_v12 = vld [vmem:[%s11132_s0 + $0x10] sm:$0xff] }
   0x4   :  { %v7980_v8 = vld [vmem:[%s11132_s0] sm:$0xff]  ;;  %v7981_v10 = vld [vmem:[%s11132_s0 + $0x8] sm:$0xff]  ;;  %v8006_v13 = vld [vmem:[%s11132_s0 + $0xd0] sm:$0xff]  ;;  %v8959_v53 = vadd.s32 8, %v8949_v46  ;;  %vm587_vm0 = vcmp.eq.s32.totalorder %v8949_v46, 0  ;;  %vm653_vm1 = vcmp.lt.s32.totalorder %v8949_v46, 1 }
   0x5   :  { %v8004_v9 = vld [vmem:[%s11132_s0 + $0xc0] sm:$0xff]  ;;  %v8005_v11 = vld [vmem:[%s11132_s0 + $0xc8] sm:$0xff]  ;;  %v7983_v14 = vld [vmem:[%s11132_s0 + $0x18] sm:$0xff]  ;;  %vm848_vm3 = vcmp.lt.s32.totalorder %v8949_v46, 7 }
   0x6   :  { %352 = vmatpush.bf16.msra.mxu0 %v8018_v1  ;;  %8739 = vmatpush.bf16.msra.mxu3 %v8018_v1  ;;  %v8007_v15 = vld [vmem:[%s11132_s0 + $0xd8] sm:$0xff]  ;;  %v7984_v16 = vld [vmem:[%s11132_s0 + $0x20] sm:$0xff]  ;;  %v7985_v18 = vld [vmem:[%s11132_s0 + $0x28] sm:$0xff]  ;;  %vm783_vm2 = vcmp.eq.s32.totalorder %v8959_v53, 15 }
   0x7   :  { %v8008_v17 = vld [vmem:[%s11132_s0 + $0xe0] sm:$0xff]  ;;  %v8009_v19 = vld [vmem:[%s11132_s0 + $0xe8] sm:$0xff]  ;;  %v8347_v20 = vld [vmem:[%s11133_s2 + $0x138] sm:$0xff] }
   0x8   :  { %v8339_v21 = vld [vmem:[%s11133_s2 + $0xf8] sm:$0xff]  ;;  %2686 = vmatpush.bf16.msra.mxu2 %v8347_v20  ;;  %v8346_v22 = vld [vmem:[%s11133_s2 + $0x130] sm:$0xff]  ;;  %v8345_v26 = vld [vmem:[%s11133_s2 + $0x128] sm:$0xff] }
   0x9   :  { %2517 = vmatpush.bf16.msra.mxu1 %v8339_v21  ;;  %v7986_v23 = vld [vmem:[%s11132_s0 + $0x30] sm:$0xff]  ;;  %v8337_v27 = vld [vmem:[%s11133_s2 + $0xe8] sm:$0xff]  ;;  %v8344_v28 = vld [vmem:[%s11133_s2 + $0x120] sm:$0xff] }
   0xa   :  { %353 = vmatpush.bf16.msra.mxu0 %v8017_v2  ;;  %8740 = vmatpush.bf16.msra.mxu3 %v8017_v2  ;;  %v8010_v24 = vld [vmem:[%s11132_s0 + $0xf0] sm:$0xff]  ;;  %v8336_v29 = vld [vmem:[%s11133_s2 + $0xe0] sm:$0xff]  ;;  %v8343_v30 = vld [vmem:[%s11133_s2 + $0x118] sm:$0xff] }
   0xb   :  { %v8338_v25 = vld [vmem:[%s11133_s2 + $0xf0] sm:$0xff]  ;;  %v8335_v31 = vld [vmem:[%s11133_s2 + $0xd8] sm:$0xff]  ;;  %v8925_v36 = vld [vmem:[%s11133_s2 + $0x108] sm:$0xff] }
   0xc   :  { %2687 = vmatpush.bf16.msra.mxu2 %v8346_v22  ;;  %v8910_v32 = vld [vmem:[%s11133_s2 + $0x110] sm:$0xff]  ;;  %v7987_v33 = vld [vmem:[%s11132_s0 + $0x38] sm:$0xff]  ;;  %v8333_v37 = vld [vmem:[%s11133_s2 + $0xc8] sm:$0xff] }
   0xd   :  { %2518 = vmatpush.bf16.msra.mxu1 %v8338_v25  ;;  %v8011_v34 = vld [vmem:[%s11132_s0 + $0xf8] sm:$0xff]  ;;  %v8334_v35 = vld [vmem:[%s11133_s2 + $0xd0] sm:$0xff]  ;;  %v8934_v38 = vld [vmem:[%s11133_s2 + $0x100] sm:$0xff] }
   0xe   :  { %354 = vmatpush.bf16.msra.mxu0 %v8016_v3  ;;  %8741 = vmatpush.bf16.msra.mxu3 %v8016_v3  ;;  %v8332_v39 = vld [vmem:[%s11133_s2 + $0xc0] sm:$0xff]  ;;  %v8315_v48 = vld [vmem:[%s11133_s2 + $0x38] sm:$0xff] }
   0xf   :  { %v8943_v40 = vld [vmem:[%s11131_s4] ss:$0 sm:$0xff]  ;;  %v8323_v49 = vld [vmem:[%s11133_s2 + $0x78] sm:$0xff] }
  0x10   :  { %2688 = vmatpush.bf16.msra.mxu2 %v8345_v26  ;;  %v7988_v41 = vld [vmem:[%s11132_s0 + $0x40] sm:$0xff]  ;;  %v8379_v46 = vld [vmem:[%s11133_s2 + $0x238] sm:$0xff] }
  0x11   :  { %2519 = vmatpush.bf16.msra.mxu1 %v8337_v27 }
  0x12   :  { %355 = vmatpush.bf16.msra.mxu0 %v8015_v4  ;;  %8742 = vmatpush.bf16.msra.mxu3 %v8015_v4  ;;  %v7989_v4 = vld [vmem:[%s11132_s0 + $0x48] sm:$0xff] }
  0x14   :  { %2689 = vmatpush.bf16.msra.mxu2 %v8344_v28 }
  0x15   :  { %2520 = vmatpush.bf16.msra.mxu1 %v8336_v29 }
  0x16   :  { %356 = vmatpush.bf16.msra.mxu0 %v8014_v5  ;;  %8743 = vmatpush.bf16.msra.mxu3 %v8014_v5 }
  0x18   :  { %2690 = vmatpush.bf16.msra.mxu2 %v8343_v30 }
  0x19   :  { %2521 = vmatpush.bf16.msra.mxu1 %v8335_v31 }
  0x1a   :  { %357 = vmatpush.bf16.msra.mxu0 %v8013_v6  ;;  %8744 = vmatpush.bf16.msra.mxu3 %v8013_v6 }
  0x1c   :  { %2691 = vmatpush.bf16.msra.mxu2 %v8910_v32 }
  0x1d   :  { %2522 = vmatpush.bf16.msra.mxu1 %v8334_v35 }
  0x1e   :  { %358 = vmatpush.bf16.msra.mxu0 %v8012_v7  ;;  %8745 = vmatpush.bf16.msra.mxu3 %v8012_v7 }
  0x20   :  { %2692 = vmatpush.bf16.msra.mxu2 %v8925_v36 }
  0x21   :  { %359 = vmatmul.bf16.vlgmr.msra.gmra.mxu0 %v7980_v8  ;;  %479 = vmatmul.bf16.vlgmr.msra.gmra.mxu3 %v8004_v9 }
  0x22   :  { %8746 = vmatpush.bf16.msrb.mxu3 %v8339_v21  ;;  %2523 = vmatpush.bf16.msra.mxu1 %v8333_v37 }
  0x23   :  { %3680 = vmatpush.bf16.msrb.mxu0 %v8315_v48 }
  0x24   :  { %2693 = vmatpush.bf16.msra.mxu2 %v8934_v38 }
  0x26   :  { %8747 = vmatpush.bf16.msrb.mxu3 %v8338_v25  ;;  %2524 = vmatpush.bf16.msra.mxu1 %v8332_v39 }
  0x2a   :  { %8748 = vmatpush.bf16.msrb.mxu3 %v8337_v27  ;;  %3849 = vmatpush.bf16.msrb.mxu1 %v8323_v49 }
  0x2e   :  { %8749 = vmatpush.bf16.msrb.mxu3 %v8336_v29 }
  0x31   :  { %364 = vmatmul.bf16.gmra.mxu0 %v7981_v10  ;;  %484 = vmatmul.bf16.gmra.mxu3 %v8005_v11 }
  0x32   :  { %8750 = vmatpush.bf16.msrb.mxu3 %v8335_v31 }
  0x36   :  { %8751 = vmatpush.bf16.msrb.mxu3 %v8334_v35 }
  0x3a   :  { %8752 = vmatpush.bf16.msrb.mxu3 %v8333_v37 }
  0x3e   :  { %8753 = vmatpush.bf16.msrb.mxu3 %v8332_v39 }
  0x41   :  { %369 = vmatmul.bf16.gmra.mxu0 %v7982_v12  ;;  %489 = vmatmul.bf16.gmra.mxu3 %v8006_v13 }
  0x42   :  { %8754 = vmatpush.bf16.msra.mxu3 %v8347_v20 }
  0x46   :  { %8755 = vmatpush.bf16.msra.mxu3 %v8346_v22 }
  0x4a   :  { %8756 = vmatpush.bf16.msra.mxu3 %v8345_v26 }
  0x4e   :  { %8757 = vmatpush.bf16.msra.mxu3 %v8344_v28 }
  0x51   :  { %374 = vmatmul.bf16.gmra.mxu0 %v7983_v14  ;;  %494 = vmatmul.bf16.gmra.mxu3 %v8007_v15 }
  0x52   :  { %8758 = vmatpush.bf16.msra.mxu3 %v8343_v30 }
  0x56   :  { %8759 = vmatpush.bf16.msra.mxu3 %v8910_v32 }
  0x5a   :  { %8760 = vmatpush.bf16.msra.mxu3 %v8925_v36 }
  0x5e   :  { %8761 = vmatpush.bf16.msra.mxu3 %v8934_v38 }
  0x61   :  { %379 = vmatmul.bf16.gmra.mxu0 %v7984_v16  ;;  %499 = vmatmul.bf16.gmra.mxu3 %v8008_v17 }
  0x71   :  { %384 = vmatmul.bf16.gmra.mxu0 %v7985_v18  ;;  %504 = vmatmul.bf16.gmra.mxu3 %v8009_v19 }
  0x81   :  { %389 = vmatmul.bf16.gmra.mxu0 %v7986_v23  ;;  %509 = vmatmul.bf16.gmra.mxu3 %v8010_v24 }
  0x91   :  { %394 = vmatmul.bf16.gmra.mxu0 %v7987_v33  ;;  %514 = vmatmul.bf16.gmra.mxu3 %v8011_v34 }
  0x9e   :  { %v360_v42 = vpop.f32.mrf.mxu0 }
  0x9f   :  { %v361_v44 = vadd.f32 %v8943_v40, %v360_v42 }
  0xa1   :  { %v520_v45 = vmax.f32 %v361_v44, 0.0  ;;  %399 = vmatmul.bf16.gmra.mxu0 %v7988_v41 }
  0xa3   :  { %v1123_v47 = vpack.c.bf16 %v520_v45, %v520_v45  ;;  %v589_v58 = vrot.slane %v520_v45, 7  ;;  %v784_v59 = vrot.slane %v520_v45, 1 }
  0xa4   :  { %v480_v50 = vpop.f32.mrf.mxu3 }
  0xa5   :  { %1187 = vst [vmem:[#allocation2 + $0x1c] sm:$0xf] %v1123_v47  ;;  %v481_v51 = vadd.f32 %v8943_v40, %v480_v50 }
  0xa6   :  { %v362_v52 = vpop.f32.mrf.mxu0 }
  0xa7   :  { %v568_v54 = vmax.f32 %v481_v51, 0.0  ;;  %v363_v55 = vadd.f32 %v8943_v40, %v362_v52 }
  0xa9   :  { %v1171_v56 = vpack.c.bf16 %v568_v54, %v568_v54  ;;  %v521_v57 = vmax.f32 %v363_v55, 0.0  ;;  %v613_v14 = vrot.slane %v568_v54, 7  ;;  %v808_v15 = vrot.slane %v568_v54, 1 }
  0xab   :  { %1235 = vst [vmem:[#allocation2 + $0x28c] sm:$0xf] %v1171_v56  ;;  %v621_v60 = vrot.slane %v521_v57, 7  ;;  %v816_v61 = vrot.slane %v521_v57, 1  ;;  %v1124_v62 = vpack.c.bf16 %v521_v57, %v521_v57 }
  0xac   :  { %v482_v63 = vpop.f32.mrf.mxu3  ;;  %v8116_v37 = vld [vmem:[#allocation2 + $0x1c] sm:$0xf] }
  0xad   :  { %v654_v0 = vsel %vm653_vm1, %v589_v58, %v621_v60  ;;  %v686_v1 = vsel %vm653_vm1, %v621_v60, %v589_v58  ;;  %v849_v2 = vsel %vm848_vm3, %v784_v59, %v816_v61  ;;  %v881_v3 = vsel %vm848_vm3, %v816_v61, %v784_v59  ;;  %1188 = vst [vmem:[#allocation2 + $0x28] sm:$0xf] %v1124_v62  ;;  %v7990_v59 = vld [vmem:[%s11132_s0 + $0x50] sm:$0xff] }
  0xae   :  { %v718_v5 = vsel %vm587_vm0, 0.0, %v686_v1  ;;  %v914_v6 = vsel %vm783_vm2, 0.0, %v881_v3  ;;  %v995_v7 = vpack.c.bf16 %v654_v0, %v654_v0  ;;  %v1251_v8 = vpack.c.bf16 %v849_v2, %v849_v2  ;;  %v365_v9 = vpop.f32.mrf.mxu0 }
  0xaf   :  { %v994_v10 = vpack.c.bf16 %v718_v5, %v718_v5  ;;  %v1252_v11 = vpack.c.bf16 %v914_v6, %v914_v6  ;;  %v483_v12 = vadd.f32 %v8943_v40, %v482_v63  ;;  %v366_v13 = vadd.f32 %v8943_v40, %v365_v9 }
  0xb0   :  { %1060 = vst [vmem:[#allocation2 + $0x24] sm:$0xf] %v995_v7 }
  0xb1   :  { %1059 = vst [vmem:[#allocation2 + $0x18] sm:$0xf] %v994_v10  ;;  %v569_v16 = vmax.f32 %v483_v12, 0.0  ;;  %v522_v17 = vmax.f32 %v366_v13, 0.0  ;;  %404 = vmatmul.bf16.gmra.mxu0 %v7989_v4 }
  0xb2   :  { %1315 = vst [vmem:[#allocation2 + $0x20] sm:$0xf] %v1251_v8 }
  0xb3   :  { %1316 = vst [vmem:[#allocation2 + $0x2c] sm:$0xf] %v1252_v11  ;;  %v645_v18 = vrot.slane %v569_v16, 7  ;;  %v840_v19 = vrot.slane %v569_v16, 1  ;;  %v1172_v20 = vpack.c.bf16 %v569_v16, %v569_v16  ;;  %v1125_v21 = vpack.c.bf16 %v522_v17, %v522_v17 }
  0xb4   :  { %v485_v22 = vpop.f32.mrf.mxu3  ;;  %v6464_v27 = vld [vmem:[#allocation2 + $0x24] sm:$0xf0]  ;;  %v590_v47 = vrot.slane %v522_v17, 7  ;;  %v785_v50 = vrot.slane %v522_v17, 1 }
  0xb5   :  { %v678_v23 = vsel %vm653_vm1, %v613_v14, %v645_v18  ;;  %v710_v24 = vsel %vm653_vm1, %v645_v18, %v613_v14  ;;  %v873_v25 = vsel %vm848_vm3, %v808_v15, %v840_v19  ;;  %v905_v26 = vsel %vm848_vm3, %v840_v19, %v808_v15  ;;  %1236 = vst [vmem:[#allocation2 + $0x298] sm:$0xf] %v1172_v20 }
  0xb6   :  { %v766_v28 = vsel %vm587_vm0, 0.0, %v710_v24  ;;  %v962_v29 = vsel %vm783_vm2, 0.0, %v905_v26  ;;  %v1043_v30 = vpack.c.bf16 %v678_v23, %v678_v23  ;;  %v1299_v31 = vpack.c.bf16 %v873_v25, %v873_v25  ;;  %1189 = vst [vmem:[#allocation2 + $0x34] sm:$0xf] %v1125_v21  ;;  %v367_v32 = vpop.f32.mrf.mxu0 }
  0xb7   :  { %v1042_v33 = vpack.c.bf16 %v766_v28, %v766_v28  ;;  %v1300_v34 = vpack.c.bf16 %v962_v29, %v962_v29  ;;  %v486_v35 = vadd.f32 %v8943_v40, %v485_v22  ;;  %v368_v36 = vadd.f32 %v8943_v40, %v367_v32  ;;  %v8117_v39 = vld [vmem:[#allocation2 + $0x20] sm:$0xf0] }
  0xb8   :  { %1108 = vst [vmem:[#allocation2 + $0x294] sm:$0xf] %v1043_v30  ;;  %v6467_v41 = vor.u32 %v8116_v37, %v6464_v27  ;;  %v6462_v42 = vld [vmem:[#allocation2 + $0x18] sm:$0xf] }
  0xb9   :  { %1107 = vst [vmem:[#allocation2 + $0x288] sm:$0xf] %v1042_v33  ;;  %v570_v43 = vmax.f32 %v486_v35, 0.0  ;;  %v523_v44 = vmax.f32 %v368_v36, 0.0  ;;  %v6463_v45 = vor.u32 %v8117_v39, %v6462_v42 }
  0xba   :  { %1363 = vst [vmem:[#allocation2 + $0x290] sm:$0xf] %v1299_v31  ;;  %2694 = vmatmul.bf16.vlgmr.msra.gmra.mxu2 %v6467_v41 }
  0xbb   :  { %1364 = vst [vmem:[#allocation2 + $0x29c] sm:$0xf] %v1300_v34  ;;  %v1173_v48 = vpack.c.bf16 %v570_v43, %v570_v43  ;;  %v622_v49 = vrot.slane %v523_v44, 7  ;;  %2525 = vmatmul.bf16.vlgmr.msra.gmra.mxu1 %v6463_v45  ;;  %v614_v51 = vrot.slane %v570_v43, 7  ;;  %v817_v52 = vrot.slane %v523_v44, 1 }
  0xbc   :  { %v1126_v54 = vpack.c.bf16 %v523_v44, %v523_v44  ;;  %v487_v55 = vpop.f32.mrf.mxu3  ;;  %v809_v56 = vrot.slane %v570_v43, 1 }
  0xbd   :  { %1237 = vst [vmem:[#allocation2 + $0x2a4] sm:$0xf] %v1173_v48  ;;  %v655_v38 = vsel %vm653_vm1, %v590_v47, %v622_v49  ;;  %v687_v57 = vsel %vm653_vm1, %v622_v49, %v590_v47  ;;  %v488_v58 = vadd.f32 %v8943_v40, %v487_v55  ;;  %v850_v61 = vsel %vm848_vm3, %v785_v50, %v817_v52  ;;  %v8119_v25 = vld [vmem:[#allocation2 + $0x34] sm:$0xf] }
  0xbe   :  { %v720_v60 = vsel %vm587_vm0, 0.0, %v687_v57  ;;  %v882_v62 = vsel %vm848_vm3, %v817_v52, %v785_v50  ;;  %v997_v63 = vpack.c.bf16 %v655_v38, %v655_v38  ;;  %1190 = vst [vmem:[#allocation2 + $0x40] sm:$0xf] %v1126_v54  ;;  %v370_v0 = vpop.f32.mrf.mxu0  ;;  %v1253_v3 = vpack.c.bf16 %v850_v61, %v850_v61 }
  0xbf   :  { %v916_v1 = vsel %vm783_vm2, 0.0, %v882_v62  ;;  %v996_v2 = vpack.c.bf16 %v720_v60, %v720_v60  ;;  %v571_v4 = vmax.f32 %v488_v58, 0.0  ;;  %v8189_v5 = vld [vmem:[#allocation2 + $0x290] sm:$0xf0]  ;;  %v371_v7 = vadd.f32 %v8943_v40, %v370_v0 }
  0xc0   :  { %1062 = vst [vmem:[#allocation2 + $0x3c] sm:$0xf] %v997_v63  ;;  %v1254_v6 = vpack.c.bf16 %v916_v1, %v916_v1  ;;  %v6750_v8 = vld [vmem:[#allocation2 + $0x288] sm:$0xf] }
  0xc1   :  { %1061 = vst [vmem:[#allocation2 + $0x30] sm:$0xf] %v996_v2  ;;  %v646_v9 = vrot.slane %v571_v4, 7  ;;  %v841_v10 = vrot.slane %v571_v4, 1  ;;  %v1174_v11 = vpack.c.bf16 %v571_v4, %v571_v4  ;;  %409 = vmatmul.bf16.gmra.mxu0 %v7990_v59  ;;  %v6751_v12 = vor.u32 %v8189_v5, %v6750_v8 }
  0xc2   :  { %1317 = vst [vmem:[#allocation2 + $0x38] sm:$0xf] %v1253_v3  ;;  %v524_v13 = vmax.f32 %v371_v7, 0.0  ;;  %v8314_v7 = vld [vmem:[%s11133_s2 + $0x30] sm:$0xff] }
  0xc3   :  { %1318 = vst [vmem:[#allocation2 + $0x44] sm:$0xf] %v1254_v6  ;;  %v679_v14 = vsel %vm653_vm1, %v614_v51, %v646_v9  ;;  %v711_v15 = vsel %vm653_vm1, %v646_v9, %v614_v51  ;;  %v874_v16 = vsel %vm848_vm3, %v809_v56, %v841_v10  ;;  %v906_v17 = vsel %vm848_vm3, %v841_v10, %v809_v56  ;;  %v7991_v51 = vld [vmem:[%s11132_s0 + $0x58] sm:$0xff]  ;;  %v8322_v10 = vld [vmem:[%s11133_s2 + $0x70] sm:$0xff] }
  0xc4   :  { %v768_v18 = vsel %vm587_vm0, 0.0, %v711_v15  ;;  %v964_v19 = vsel %vm783_vm2, 0.0, %v906_v17  ;;  %v1045_v20 = vpack.c.bf16 %v679_v14, %v679_v14  ;;  %1238 = vst [vmem:[#allocation2 + $0x2b0] sm:$0xf] %v1174_v11  ;;  %v1301_v21 = vpack.c.bf16 %v874_v16, %v874_v16  ;;  %2645 = vmatmul.bf16.vlgmr.msrb.gmra.mxu3 %v6751_v12  ;;  %v490_v22 = vpop.f32.mrf.mxu3  ;;  %3681 = vmatpush.bf16.msrb.mxu0 %v8314_v7 }
  0xc5   :  { %v1044_v23 = vpack.c.bf16 %v768_v18, %v768_v18  ;;  %v1302_v24 = vpack.c.bf16 %v964_v19, %v964_v19  ;;  %v6476_v26 = vld [vmem:[#allocation2 + $0x3c] sm:$0xf0]  ;;  %v1127_v27 = vpack.c.bf16 %v524_v13, %v524_v13  ;;  %v491_v28 = vadd.f32 %v8943_v40, %v490_v22  ;;  %3850 = vmatpush.bf16.msrb.mxu1 %v8322_v10 }
  0xc6   :  { %1110 = vst [vmem:[#allocation2 + $0x2ac] sm:$0xf] %v1045_v20  ;;  %v372_v29 = vpop.f32.mrf.mxu0  ;;  %v6479_v30 = vor.u32 %v8119_v25, %v6476_v26  ;;  %v591_v37 = vrot.slane %v524_v13, 7  ;;  %v786_v41 = vrot.slane %v524_v13, 1 }
  0xc7   :  { %1109 = vst [vmem:[#allocation2 + $0x2a0] sm:$0xf] %v1044_v23  ;;  %v373_v31 = vadd.f32 %v8943_v40, %v372_v29  ;;  %v8120_v32 = vld [vmem:[#allocation2 + $0x38] sm:$0xf0]  ;;  %v572_v33 = vmax.f32 %v491_v28, 0.0 }
  0xc8   :  { %1365 = vst [vmem:[#allocation2 + $0x2a8] sm:$0xf] %v1301_v21  ;;  %v6474_v34 = vld [vmem:[#allocation2 + $0x30] sm:$0xf] }
  0xc9   :  { %1366 = vst [vmem:[#allocation2 + $0x2b4] sm:$0xf] %v1302_v24  ;;  %v525_v35 = vmax.f32 %v373_v31, 0.0  ;;  %v6475_v36 = vor.u32 %v8120_v32, %v6474_v34  ;;  %v1175_v39 = vpack.c.bf16 %v572_v33, %v572_v33  ;;  %v615_v0 = vrot.slane %v572_v33, 7 }
  0xca   :  { %1191 = vst [vmem:[#allocation2 + $0x4c] sm:$0xf] %v1127_v27  ;;  %2699 = vmatmul.bf16.gmra.mxu2 %v6479_v30  ;;  %v810_v1 = vrot.slane %v572_v33, 1 }
  0xcb   :  { %v623_v42 = vrot.slane %v525_v35, 7  ;;  %v818_v43 = vrot.slane %v525_v35, 1  ;;  %v1128_v44 = vpack.c.bf16 %v525_v35, %v525_v35  ;;  %2530 = vmatmul.bf16.gmra.mxu1 %v6475_v36  ;;  %1239 = vst [vmem:[#allocation2 + $0x2bc] sm:$0xf] %v1175_v39 }
  0xcc   :  { %v492_v45 = vpop.f32.mrf.mxu3 }
  0xcd   :  { %v656_v47 = vsel %vm653_vm1, %v591_v37, %v623_v42  ;;  %v688_v48 = vsel %vm653_vm1, %v623_v42, %v591_v37  ;;  %v851_v49 = vsel %vm848_vm3, %v786_v41, %v818_v43  ;;  %v883_v50 = vsel %vm848_vm3, %v818_v43, %v786_v41  ;;  %1192 = vst [vmem:[#allocation2 + $0x58] sm:$0xf] %v1128_v44  ;;  %v8192_v52 = vld [vmem:[#allocation2 + $0x2a8] sm:$0xf0] }
  0xce   :  { %v722_v54 = vsel %vm587_vm0, 0.0, %v688_v48  ;;  %v918_v55 = vsel %vm783_vm2, 0.0, %v883_v50  ;;  %v999_v56 = vpack.c.bf16 %v656_v47, %v656_v47  ;;  %v1255_v38 = vpack.c.bf16 %v851_v49, %v851_v49  ;;  %v375_v57 = vpop.f32.mrf.mxu0  ;;  %v6762_v58 = vld [vmem:[#allocation2 + $0x2a0] sm:$0xf] }
  0xcf   :  { %v998_v59 = vpack.c.bf16 %v722_v54, %v722_v54  ;;  %v1256_v60 = vpack.c.bf16 %v918_v55, %v918_v55  ;;  %v493_v61 = vadd.f32 %v8943_v40, %v492_v45  ;;  %v376_v62 = vadd.f32 %v8943_v40, %v375_v57  ;;  %v7992_v47 = vld [vmem:[%s11132_s0 + $0x60] sm:$0xff] }
  0xd0   :  { %1064 = vst [vmem:[#allocation2 + $0x54] sm:$0xf] %v999_v56  ;;  %v6763_v63 = vor.u32 %v8192_v52, %v6762_v58 }
  0xd1   :  { %1063 = vst [vmem:[#allocation2 + $0x48] sm:$0xf] %v998_v59  ;;  %v573_v2 = vmax.f32 %v493_v61, 0.0  ;;  %v526_v3 = vmax.f32 %v376_v62, 0.0  ;;  %414 = vmatmul.bf16.gmra.mxu0 %v7991_v51  ;;  %v8122_v25 = vld [vmem:[#allocation2 + $0x4c] sm:$0xf] }
  0xd2   :  { %1319 = vst [vmem:[#allocation2 + $0x50] sm:$0xf] %v1255_v38 }
  0xd3   :  { %1320 = vst [vmem:[#allocation2 + $0x5c] sm:$0xf] %v1256_v60  ;;  %v647_v4 = vrot.slane %v573_v2, 7  ;;  %v842_v5 = vrot.slane %v573_v2, 1  ;;  %v1176_v6 = vpack.c.bf16 %v573_v2, %v573_v2  ;;  %v1129_v8 = vpack.c.bf16 %v526_v3, %v526_v3 }
  0xd4   :  { %2650 = vmatmul.bf16.gmra.mxu3 %v6763_v63  ;;  %v495_v9 = vpop.f32.mrf.mxu3  ;;  %v6488_v15 = vld [vmem:[#allocation2 + $0x54] sm:$0xf0]  ;;  %v592_v32 = vrot.slane %v526_v3, 7  ;;  %v787_v35 = vrot.slane %v526_v3, 1 }
  0xd5   :  { %v680_v11 = vsel %vm653_vm1, %v615_v0, %v647_v4  ;;  %v712_v12 = vsel %vm653_vm1, %v647_v4, %v615_v0  ;;  %v875_v13 = vsel %vm848_vm3, %v810_v1, %v842_v5  ;;  %v907_v14 = vsel %vm848_vm3, %v842_v5, %v810_v1  ;;  %1240 = vst [vmem:[#allocation2 + $0x2c8] sm:$0xf] %v1176_v6 }
  0xd6   :  { %v770_v16 = vsel %vm587_vm0, 0.0, %v712_v12  ;;  %v966_v17 = vsel %vm783_vm2, 0.0, %v907_v14  ;;  %v1047_v18 = vpack.c.bf16 %v680_v11, %v680_v11  ;;  %v1303_v19 = vpack.c.bf16 %v875_v13, %v875_v13  ;;  %1193 = vst [vmem:[#allocation2 + $0x64] sm:$0xf] %v1129_v8  ;;  %v377_v20 = vpop.f32.mrf.mxu0 }
  0xd7   :  { %v1046_v21 = vpack.c.bf16 %v770_v16, %v770_v16  ;;  %v1304_v22 = vpack.c.bf16 %v966_v17, %v966_v17  ;;  %v496_v23 = vadd.f32 %v8943_v40, %v495_v9  ;;  %v378_v24 = vadd.f32 %v8943_v40, %v377_v20  ;;  %v8123_v26 = vld [vmem:[#allocation2 + $0x50] sm:$0xf0] }
  0xd8   :  { %1112 = vst [vmem:[#allocation2 + $0x2c4] sm:$0xf] %v1047_v18  ;;  %v6491_v27 = vor.u32 %v8122_v25, %v6488_v15  ;;  %v6486_v28 = vld [vmem:[#allocation2 + $0x48] sm:$0xf] }
  0xd9   :  { %1111 = vst [vmem:[#allocation2 + $0x2b8] sm:$0xf] %v1046_v21  ;;  %v574_v29 = vmax.f32 %v496_v23, 0.0  ;;  %v527_v30 = vmax.f32 %v378_v24, 0.0  ;;  %v6487_v31 = vor.u32 %v8123_v26, %v6486_v28 }
  0xda   :  { %1367 = vst [vmem:[#allocation2 + $0x2c0] sm:$0xf] %v1303_v19  ;;  %2704 = vmatmul.bf16.gmra.mxu2 %v6491_v27 }
  0xdb   :  { %1368 = vst [vmem:[#allocation2 + $0x2cc] sm:$0xf] %v1304_v22  ;;  %v1177_v33 = vpack.c.bf16 %v574_v29, %v574_v29  ;;  %v624_v34 = vrot.slane %v527_v30, 7  ;;  %2535 = vmatmul.bf16.gmra.mxu1 %v6487_v31  ;;  %v616_v36 = vrot.slane %v574_v29, 7  ;;  %v819_v37 = vrot.slane %v527_v30, 1 }
  0xdc   :  { %v1130_v39 = vpack.c.bf16 %v527_v30, %v527_v30  ;;  %v497_v41 = vpop.f32.mrf.mxu3  ;;  %v811_v42 = vrot.slane %v574_v29, 1 }
  0xdd   :  { %1241 = vst [vmem:[#allocation2 + $0x2d4] sm:$0xf] %v1177_v33  ;;  %v657_v43 = vsel %vm653_vm1, %v592_v32, %v624_v34  ;;  %v689_v44 = vsel %vm653_vm1, %v624_v34, %v592_v32  ;;  %v498_v45 = vadd.f32 %v8943_v40, %v497_v41  ;;  %v852_v49 = vsel %vm848_vm3, %v787_v35, %v819_v37  ;;  %v8125_v13 = vld [vmem:[#allocation2 + $0x64] sm:$0xf] }
  0xde   :  { %v724_v48 = vsel %vm587_vm0, 0.0, %v689_v44  ;;  %v884_v50 = vsel %vm848_vm3, %v819_v37, %v787_v35  ;;  %v1001_v51 = vpack.c.bf16 %v657_v43, %v657_v43  ;;  %1194 = vst [vmem:[#allocation2 + $0x70] sm:$0xf] %v1130_v39  ;;  %v380_v52 = vpop.f32.mrf.mxu0  ;;  %v1257_v56 = vpack.c.bf16 %v852_v49, %v852_v49 }
  0xdf   :  { %v920_v54 = vsel %vm783_vm2, 0.0, %v884_v50  ;;  %v1000_v55 = vpack.c.bf16 %v724_v48, %v724_v48  ;;  %v575_v38 = vmax.f32 %v498_v45, 0.0  ;;  %v8195_v57 = vld [vmem:[#allocation2 + $0x2c0] sm:$0xf0]  ;;  %v381_v59 = vadd.f32 %v8943_v40, %v380_v52 }
  0xe0   :  { %1066 = vst [vmem:[#allocation2 + $0x6c] sm:$0xf] %v1001_v51  ;;  %v1258_v58 = vpack.c.bf16 %v920_v54, %v920_v54  ;;  %v6774_v60 = vld [vmem:[#allocation2 + $0x2b8] sm:$0xf] }
  0xe1   :  { %1065 = vst [vmem:[#allocation2 + $0x60] sm:$0xf] %v1000_v55  ;;  %v648_v61 = vrot.slane %v575_v38, 7  ;;  %v843_v62 = vrot.slane %v575_v38, 1  ;;  %v1178_v63 = vpack.c.bf16 %v575_v38, %v575_v38  ;;  %419 = vmatmul.bf16.gmra.mxu0 %v7992_v47  ;;  %v6775_v0 = vor.u32 %v8195_v57, %v6774_v60 }
  0xe2   :  { %1321 = vst [vmem:[#allocation2 + $0x68] sm:$0xf] %v1257_v56  ;;  %v528_v1 = vmax.f32 %v381_v59, 0.0 }
  0xe3   :  { %1322 = vst [vmem:[#allocation2 + $0x74] sm:$0xf] %v1258_v58  ;;  %v681_v2 = vsel %vm653_vm1, %v616_v36, %v648_v61  ;;  %v713_v3 = vsel %vm653_vm1, %v648_v61, %v616_v36  ;;  %v876_v4 = vsel %vm848_vm3, %v811_v42, %v843_v62  ;;  %v908_v5 = vsel %vm848_vm3, %v843_v62, %v811_v42  ;;  %v7993_v36 = vld [vmem:[%s11132_s0 + $0x68] sm:$0xff] }
  0xe4   :  { %v772_v6 = vsel %vm587_vm0, 0.0, %v713_v3  ;;  %v968_v7 = vsel %vm783_vm2, 0.0, %v908_v5  ;;  %v1049_v8 = vpack.c.bf16 %v681_v2, %v681_v2  ;;  %1242 = vst [vmem:[#allocation2 + $0x2e0] sm:$0xf] %v1178_v63  ;;  %v1305_v9 = vpack.c.bf16 %v876_v4, %v876_v4  ;;  %2655 = vmatmul.bf16.gmra.mxu3 %v6775_v0  ;;  %v500_v10 = vpop.f32.mrf.mxu3 }
  0xe5   :  { %v1048_v11 = vpack.c.bf16 %v772_v6, %v772_v6  ;;  %v1306_v12 = vpack.c.bf16 %v968_v7, %v968_v7  ;;  %v6500_v14 = vld [vmem:[#allocation2 + $0x6c] sm:$0xf0]  ;;  %v1131_v15 = vpack.c.bf16 %v528_v1, %v528_v1  ;;  %v501_v16 = vadd.f32 %v8943_v40, %v500_v10 }
  0xe6   :  { %1114 = vst [vmem:[#allocation2 + $0x2dc] sm:$0xf] %v1049_v8  ;;  %v382_v17 = vpop.f32.mrf.mxu0  ;;  %v6503_v18 = vor.u32 %v8125_v13, %v6500_v14  ;;  %v593_v25 = vrot.slane %v528_v1, 7  ;;  %v788_v27 = vrot.slane %v528_v1, 1 }
  0xe7   :  { %1113 = vst [vmem:[#allocation2 + $0x2d0] sm:$0xf] %v1048_v11  ;;  %v383_v19 = vadd.f32 %v8943_v40, %v382_v17  ;;  %v8126_v20 = vld [vmem:[#allocation2 + $0x68] sm:$0xf0]  ;;  %v576_v21 = vmax.f32 %v501_v16, 0.0 }
  0xe8   :  { %1369 = vst [vmem:[#allocation2 + $0x2d8] sm:$0xf] %v1305_v9  ;;  %v6498_v22 = vld [vmem:[#allocation2 + $0x60] sm:$0xf] }
  0xe9   :  { %1370 = vst [vmem:[#allocation2 + $0x2e4] sm:$0xf] %v1306_v12  ;;  %v529_v23 = vmax.f32 %v383_v19, 0.0  ;;  %v6499_v24 = vor.u32 %v8126_v20, %v6498_v22  ;;  %v1179_v26 = vpack.c.bf16 %v576_v21, %v576_v21  ;;  %v617_v52 = vrot.slane %v576_v21, 7 }
  0xea   :  { %1195 = vst [vmem:[#allocation2 + $0x7c] sm:$0xf] %v1131_v15  ;;  %2709 = vmatmul.bf16.gmra.mxu2 %v6503_v18  ;;  %v812_v54 = vrot.slane %v576_v21, 1 }
  0xeb   :  { %v625_v28 = vrot.slane %v529_v23, 7  ;;  %v820_v29 = vrot.slane %v529_v23, 1  ;;  %v1132_v30 = vpack.c.bf16 %v529_v23, %v529_v23  ;;  %2540 = vmatmul.bf16.gmra.mxu1 %v6499_v24  ;;  %1243 = vst [vmem:[#allocation2 + $0x2ec] sm:$0xf] %v1179_v26 }
  0xec   :  { %v502_v31 = vpop.f32.mrf.mxu3 }
  0xed   :  { %v658_v32 = vsel %vm653_vm1, %v593_v25, %v625_v28  ;;  %v690_v33 = vsel %vm653_vm1, %v625_v28, %v593_v25  ;;  %v853_v34 = vsel %vm848_vm3, %v788_v27, %v820_v29  ;;  %v885_v35 = vsel %vm848_vm3, %v820_v29, %v788_v27  ;;  %1196 = vst [vmem:[#allocation2 + $0x88] sm:$0xf] %v1132_v30  ;;  %v8198_v37 = vld [vmem:[#allocation2 + $0x2d8] sm:$0xf0]  ;;  %v7994_v30 = vld [vmem:[%s11132_s0 + $0x70] sm:$0xff] }
  0xee   :  { %v726_v39 = vsel %vm587_vm0, 0.0, %v690_v33  ;;  %v922_v41 = vsel %vm783_vm2, 0.0, %v885_v35  ;;  %v1003_v42 = vpack.c.bf16 %v658_v32, %v658_v32  ;;  %v1259_v43 = vpack.c.bf16 %v853_v34, %v853_v34  ;;  %v385_v44 = vpop.f32.mrf.mxu0  ;;  %v6786_v45 = vld [vmem:[#allocation2 + $0x2d0] sm:$0xf] }
  0xef   :  { %v1002_v47 = vpack.c.bf16 %v726_v39, %v726_v39  ;;  %v1260_v48 = vpack.c.bf16 %v922_v41, %v922_v41  ;;  %v503_v49 = vadd.f32 %v8943_v40, %v502_v31  ;;  %v386_v50 = vadd.f32 %v8943_v40, %v385_v44 }
  0xf0   :  { %1068 = vst [vmem:[#allocation2 + $0x84] sm:$0xf] %v1003_v42  ;;  %v6787_v51 = vor.u32 %v8198_v37, %v6786_v45 }
  0xf1   :  { %1067 = vst [vmem:[#allocation2 + $0x78] sm:$0xf] %v1002_v47  ;;  %v577_v55 = vmax.f32 %v503_v49, 0.0  ;;  %v530_v56 = vmax.f32 %v386_v50, 0.0  ;;  %424 = vmatmul.bf16.gmra.mxu0 %v7993_v36  ;;  %v8128_v11 = vld [vmem:[#allocation2 + $0x7c] sm:$0xf] }
  0xf2   :  { %1323 = vst [vmem:[#allocation2 + $0x80] sm:$0xf] %v1259_v43 }
  0xf3   :  { %1324 = vst [vmem:[#allocation2 + $0x8c] sm:$0xf] %v1260_v48  ;;  %v649_v38 = vrot.slane %v577_v55, 7  ;;  %v844_v57 = vrot.slane %v577_v55, 1  ;;  %v1180_v58 = vpack.c.bf16 %v577_v55, %v577_v55  ;;  %v1133_v59 = vpack.c.bf16 %v530_v56, %v530_v56 }
  0xf4   :  { %2660 = vmatmul.bf16.gmra.mxu3 %v6787_v51  ;;  %v505_v60 = vpop.f32.mrf.mxu3  ;;  %v6512_v1 = vld [vmem:[#allocation2 + $0x84] sm:$0xf0]  ;;  %v594_v18 = vrot.slane %v530_v56, 7  ;;  %v789_v21 = vrot.slane %v530_v56, 1 }
  0xf5   :  { %v682_v61 = vsel %vm653_vm1, %v617_v52, %v649_v38  ;;  %v714_v62 = vsel %vm653_vm1, %v649_v38, %v617_v52  ;;  %v877_v63 = vsel %vm848_vm3, %v812_v54, %v844_v57  ;;  %v909_v0 = vsel %vm848_vm3, %v844_v57, %v812_v54  ;;  %1244 = vst [vmem:[#allocation2 + $0x2f8] sm:$0xf] %v1180_v58  ;;  %v8313_v38 = vld [vmem:[%s11133_s2 + $0x28] sm:$0xff] }
  0xf6   :  { %v774_v2 = vsel %vm587_vm0, 0.0, %v714_v62  ;;  %v970_v3 = vsel %vm783_vm2, 0.0, %v909_v0  ;;  %v1051_v4 = vpack.c.bf16 %v682_v61, %v682_v61  ;;  %v1307_v5 = vpack.c.bf16 %v877_v63, %v877_v63  ;;  %1197 = vst [vmem:[#allocation2 + $0x94] sm:$0xf] %v1133_v59  ;;  %v387_v6 = vpop.f32.mrf.mxu0  ;;  %v8321_v57 = vld [vmem:[%s11133_s2 + $0x68] sm:$0xff]  ;;  %3682 = vmatpush.bf16.msrb.mxu0 %v8313_v38 }
  0xf7   :  { %v1050_v7 = vpack.c.bf16 %v774_v2, %v774_v2  ;;  %v1308_v8 = vpack.c.bf16 %v970_v3, %v970_v3  ;;  %v506_v9 = vadd.f32 %v8943_v40, %v505_v60  ;;  %v388_v10 = vadd.f32 %v8943_v40, %v387_v6  ;;  %v8129_v12 = vld [vmem:[#allocation2 + $0x80] sm:$0xf0]  ;;  %3851 = vmatpush.bf16.msrb.mxu1 %v8321_v57 }
  0xf8   :  { %1116 = vst [vmem:[#allocation2 + $0x2f4] sm:$0xf] %v1051_v4  ;;  %v6515_v13 = vor.u32 %v8128_v11, %v6512_v1  ;;  %v6510_v14 = vld [vmem:[#allocation2 + $0x78] sm:$0xf] }
  0xf9   :  { %1115 = vst [vmem:[#allocation2 + $0x2e8] sm:$0xf] %v1050_v7  ;;  %v578_v15 = vmax.f32 %v506_v9, 0.0  ;;  %v531_v16 = vmax.f32 %v388_v10, 0.0  ;;  %v6511_v17 = vor.u32 %v8129_v12, %v6510_v14 }
  0xfa   :  { %1371 = vst [vmem:[#allocation2 + $0x2f0] sm:$0xf] %v1307_v5  ;;  %2714 = vmatmul.bf16.gmra.mxu2 %v6515_v13 }
  0xfb   :  { %1372 = vst [vmem:[#allocation2 + $0x2fc] sm:$0xf] %v1308_v8  ;;  %v1181_v19 = vpack.c.bf16 %v578_v15, %v578_v15  ;;  %v626_v20 = vrot.slane %v531_v16, 7  ;;  %2545 = vmatmul.bf16.gmra.mxu1 %v6511_v17  ;;  %v618_v22 = vrot.slane %v578_v15, 7  ;;  %v821_v23 = vrot.slane %v531_v16, 1 }
  0xfc   :  { %v1134_v24 = vpack.c.bf16 %v531_v16, %v531_v16  ;;  %v507_v25 = vpop.f32.mrf.mxu3  ;;  %v813_v26 = vrot.slane %v578_v15, 1 }
  0xfd   :  { %1245 = vst [vmem:[#allocation2 + $0x304] sm:$0xf] %v1181_v19  ;;  %v659_v27 = vsel %vm653_vm1, %v594_v18, %v626_v20  ;;  %v691_v28 = vsel %vm653_vm1, %v626_v20, %v594_v18  ;;  %v508_v29 = vadd.f32 %v8943_v40, %v507_v25  ;;  %v854_v32 = vsel %vm848_vm3, %v789_v21, %v821_v23  ;;  %v8131_v1 = vld [vmem:[#allocation2 + $0x94] sm:$0xf] }
  0xfe   :  { %v728_v31 = vsel %vm587_vm0, 0.0, %v691_v28  ;;  %v886_v33 = vsel %vm848_vm3, %v821_v23, %v789_v21  ;;  %v1005_v34 = vpack.c.bf16 %v659_v27, %v659_v27  ;;  %1198 = vst [vmem:[#allocation2 + $0xa0] sm:$0xf] %v1134_v24  ;;  %v390_v35 = vpop.f32.mrf.mxu0  ;;  %v1261_v39 = vpack.c.bf16 %v854_v32, %v854_v32  ;;  %v7995_v24 = vld [vmem:[%s11132_s0 + $0x78] sm:$0xff] }
  0xff   :  { %v924_v36 = vsel %vm783_vm2, 0.0, %v886_v33  ;;  %v1004_v37 = vpack.c.bf16 %v728_v31, %v728_v31  ;;  %v579_v41 = vmax.f32 %v508_v29, 0.0  ;;  %v8201_v42 = vld [vmem:[#allocation2 + $0x2f0] sm:$0xf0]  ;;  %v391_v44 = vadd.f32 %v8943_v40, %v390_v35 }
 0x100   :  { %1070 = vst [vmem:[#allocation2 + $0x9c] sm:$0xf] %v1005_v34  ;;  %v1262_v43 = vpack.c.bf16 %v924_v36, %v924_v36  ;;  %v6798_v45 = vld [vmem:[#allocation2 + $0x2e8] sm:$0xf] }
 0x101   :  { %1069 = vst [vmem:[#allocation2 + $0x90] sm:$0xf] %v1004_v37  ;;  %v650_v47 = vrot.slane %v579_v41, 7  ;;  %v845_v48 = vrot.slane %v579_v41, 1  ;;  %v1182_v49 = vpack.c.bf16 %v579_v41, %v579_v41  ;;  %429 = vmatmul.bf16.gmra.mxu0 %v7994_v30  ;;  %v6799_v50 = vor.u32 %v8201_v42, %v6798_v45 }
 0x102   :  { %1325 = vst [vmem:[#allocation2 + $0x98] sm:$0xf] %v1261_v39  ;;  %v532_v51 = vmax.f32 %v391_v44, 0.0 }
 0x103   :  { %1326 = vst [vmem:[#allocation2 + $0xa4] sm:$0xf] %v1262_v43  ;;  %v683_v52 = vsel %vm653_vm1, %v618_v22, %v650_v47  ;;  %v715_v54 = vsel %vm653_vm1, %v650_v47, %v618_v22  ;;  %v878_v55 = vsel %vm848_vm3, %v813_v26, %v845_v48  ;;  %v910_v56 = vsel %vm848_vm3, %v845_v48, %v813_v26 }
 0x104   :  { %v776_v58 = vsel %vm587_vm0, 0.0, %v715_v54  ;;  %v972_v59 = vsel %vm783_vm2, 0.0, %v910_v56  ;;  %v1053_v60 = vpack.c.bf16 %v683_v52, %v683_v52  ;;  %1246 = vst [vmem:[#allocation2 + $0x310] sm:$0xf] %v1182_v49  ;;  %v1309_v61 = vpack.c.bf16 %v878_v55, %v878_v55  ;;  %2665 = vmatmul.bf16.gmra.mxu3 %v6799_v50  ;;  %v510_v62 = vpop.f32.mrf.mxu3 }
 0x105   :  { %v1052_v63 = vpack.c.bf16 %v776_v58, %v776_v58  ;;  %v1310_v0 = vpack.c.bf16 %v972_v59, %v972_v59  ;;  %v6524_v2 = vld [vmem:[#allocation2 + $0x9c] sm:$0xf0]  ;;  %v1135_v3 = vpack.c.bf16 %v532_v51, %v532_v51  ;;  %v511_v4 = vadd.f32 %v8943_v40, %v510_v62 }
 0x106   :  { %1118 = vst [vmem:[#allocation2 + $0x30c] sm:$0xf] %v1053_v60  ;;  %v392_v5 = vpop.f32.mrf.mxu0  ;;  %v6527_v6 = vor.u32 %v8131_v1, %v6524_v2  ;;  %v595_v13 = vrot.slane %v532_v51, 7  ;;  %v790_v15 = vrot.slane %v532_v51, 1  ;;  %v9199_v60 = vld [vmem:[%s11131_s4] ss:$0 sm:$0xff] }
 0x107   :  { %1117 = vst [vmem:[#allocation2 + $0x300] sm:$0xf] %v1052_v63  ;;  %v393_v7 = vadd.f32 %v8943_v40, %v392_v5  ;;  %v8132_v8 = vld [vmem:[#allocation2 + $0x98] sm:$0xf0]  ;;  %v580_v9 = vmax.f32 %v511_v4, 0.0 }
 0x108   :  { %1373 = vst [vmem:[#allocation2 + $0x308] sm:$0xf] %v1309_v61  ;;  %v6522_v10 = vld [vmem:[#allocation2 + $0x90] sm:$0xf] }
 0x109   :  { %1374 = vst [vmem:[#allocation2 + $0x314] sm:$0xf] %v1310_v0  ;;  %v533_v11 = vmax.f32 %v393_v7, 0.0  ;;  %v6523_v12 = vor.u32 %v8132_v8, %v6522_v10  ;;  %v1183_v14 = vpack.c.bf16 %v580_v9, %v580_v9  ;;  %v619_v37 = vrot.slane %v580_v9, 7 }
 0x10a   :  { %1199 = vst [vmem:[#allocation2 + $0xac] sm:$0xf] %v1135_v3  ;;  %2719 = vmatmul.bf16.gmra.mxu2 %v6527_v6  ;;  %v814_v39 = vrot.slane %v580_v9, 1 }
 0x10b   :  { %v627_v16 = vrot.slane %v533_v11, 7  ;;  %v822_v17 = vrot.slane %v533_v11, 1  ;;  %v1136_v18 = vpack.c.bf16 %v533_v11, %v533_v11  ;;  %2550 = vmatmul.bf16.gmra.mxu1 %v6523_v12  ;;  %1247 = vst [vmem:[#allocation2 + $0x31c] sm:$0xf] %v1183_v14 }
 0x10c   :  { %v512_v19 = vpop.f32.mrf.mxu3 }
 0x10d   :  { %v660_v20 = vsel %vm653_vm1, %v595_v13, %v627_v16  ;;  %v692_v21 = vsel %vm653_vm1, %v627_v16, %v595_v13  ;;  %v855_v22 = vsel %vm848_vm3, %v790_v15, %v822_v17  ;;  %v887_v23 = vsel %vm848_vm3, %v822_v17, %v790_v15  ;;  %1200 = vst [vmem:[#allocation2 + $0xb8] sm:$0xf] %v1136_v18  ;;  %v8204_v25 = vld [vmem:[#allocation2 + $0x308] sm:$0xf0]  ;;  %v7996_v18 = vld [vmem:[%s11132_s0 + $0x80] sm:$0xff] }
 0x10e   :  { %v730_v26 = vsel %vm587_vm0, 0.0, %v692_v21  ;;  %v926_v27 = vsel %vm783_vm2, 0.0, %v887_v23  ;;  %v1007_v28 = vpack.c.bf16 %v660_v20, %v660_v20  ;;  %v1263_v29 = vpack.c.bf16 %v855_v22, %v855_v22  ;;  %v395_v30 = vpop.f32.mrf.mxu0  ;;  %v6810_v31 = vld [vmem:[#allocation2 + $0x300] sm:$0xf] }
 0x10f   :  { %v1006_v32 = vpack.c.bf16 %v730_v26, %v730_v26  ;;  %v1264_v33 = vpack.c.bf16 %v926_v27, %v926_v27  ;;  %v513_v34 = vadd.f32 %v8943_v40, %v512_v19  ;;  %v396_v35 = vadd.f32 %v8943_v40, %v395_v30 }
 0x110   :  { %1072 = vst [vmem:[#allocation2 + $0xb4] sm:$0xf] %v1007_v28  ;;  %v6811_v36 = vor.u32 %v8204_v25, %v6810_v31 }
 0x111   :  { %1071 = vst [vmem:[#allocation2 + $0xa8] sm:$0xf] %v1006_v32  ;;  %v581_v41 = vmax.f32 %v513_v34, 0.0  ;;  %v534_v42 = vmax.f32 %v396_v35, 0.0  ;;  %434 = vmatmul.bf16.gmra.mxu0 %v7995_v24  ;;  %v8134_v63 = vld [vmem:[#allocation2 + $0xac] sm:$0xf] }
 0x112   :  { %1327 = vst [vmem:[#allocation2 + $0xb0] sm:$0xf] %v1263_v29 }
 0x113   :  { %1328 = vst [vmem:[#allocation2 + $0xbc] sm:$0xf] %v1264_v33  ;;  %v651_v43 = vrot.slane %v581_v41, 7  ;;  %v846_v44 = vrot.slane %v581_v41, 1  ;;  %v1184_v45 = vpack.c.bf16 %v581_v41, %v581_v41  ;;  %v1137_v47 = vpack.c.bf16 %v534_v42, %v534_v42 }
 0x114   :  { %2670 = vmatmul.bf16.gmra.mxu3 %v6811_v36  ;;  %v515_v48 = vpop.f32.mrf.mxu3  ;;  %v6536_v52 = vld [vmem:[#allocation2 + $0xb4] sm:$0xf0]  ;;  %v596_v6 = vrot.slane %v534_v42, 7  ;;  %v791_v9 = vrot.slane %v534_v42, 1 }
 0x115   :  { %v684_v49 = vsel %vm653_vm1, %v619_v37, %v651_v43  ;;  %v716_v40 = vsel %vm653_vm1, %v651_v43, %v619_v37  ;;  %v879_v50 = vsel %vm848_vm3, %v814_v39, %v846_v44  ;;  %v911_v51 = vsel %vm848_vm3, %v846_v44, %v814_v39  ;;  %1248 = vst [vmem:[#allocation2 + $0x328] sm:$0xf] %v1184_v45 }
 0x116   :  { %v778_v54 = vsel %vm587_vm0, 0.0, %v716_v40  ;;  %v974_v55 = vsel %vm783_vm2, 0.0, %v911_v51  ;;  %v1055_v56 = vpack.c.bf16 %v684_v49, %v684_v49  ;;  %v1311_v38 = vpack.c.bf16 %v879_v50, %v879_v50  ;;  %1201 = vst [vmem:[#allocation2 + $0xc4] sm:$0xf] %v1137_v47  ;;  %v397_v57 = vpop.f32.mrf.mxu0 }
 0x117   :  { %v1054_v58 = vpack.c.bf16 %v778_v54, %v778_v54  ;;  %v1312_v59 = vpack.c.bf16 %v974_v55, %v974_v55  ;;  %v516_v61 = vadd.f32 %v9199_v60, %v515_v48  ;;  %v398_v62 = vadd.f32 %v9199_v60, %v397_v57  ;;  %v8135_v0 = vld [vmem:[#allocation2 + $0xb0] sm:$0xf0] }
 0x118   :  { %1120 = vst [vmem:[#allocation2 + $0x324] sm:$0xf] %v1055_v56  ;;  %v6539_v1 = vor.u32 %v8134_v63, %v6536_v52  ;;  %v6534_v2 = vld [vmem:[#allocation2 + $0xa8] sm:$0xf] }
 0x119   :  { %1119 = vst [vmem:[#allocation2 + $0x318] sm:$0xf] %v1054_v58  ;;  %v582_v3 = vmax.f32 %v516_v61, 0.0  ;;  %v535_v4 = vmax.f32 %v398_v62, 0.0  ;;  %v6535_v5 = vor.u32 %v8135_v0, %v6534_v2 }
 0x11a   :  { %1375 = vst [vmem:[#allocation2 + $0x320] sm:$0xf] %v1311_v38  ;;  %2724 = vmatmul.bf16.gmra.mxu2 %v6539_v1 }
 0x11b   :  { %1376 = vst [vmem:[#allocation2 + $0x32c] sm:$0xf] %v1312_v59  ;;  %v1185_v7 = vpack.c.bf16 %v582_v3, %v582_v3  ;;  %v628_v8 = vrot.slane %v535_v4, 7  ;;  %2555 = vmatmul.bf16.gmra.mxu1 %v6535_v5  ;;  %v620_v10 = vrot.slane %v582_v3, 7  ;;  %v823_v11 = vrot.slane %v535_v4, 1  ;;  %v7997_v5 = vld [vmem:[%s11132_s0 + $0x88] sm:$0xff] }
 0x11c   :  { %v1138_v12 = vpack.c.bf16 %v535_v4, %v535_v4  ;;  %v517_v13 = vpop.f32.mrf.mxu3  ;;  %v815_v14 = vrot.slane %v582_v3, 1 }
 0x11d   :  { %1249 = vst [vmem:[#allocation2 + $0x334] sm:$0xf] %v1185_v7  ;;  %v661_v15 = vsel %vm653_vm1, %v596_v6, %v628_v8  ;;  %v693_v16 = vsel %vm653_vm1, %v628_v8, %v596_v6  ;;  %v518_v17 = vadd.f32 %v9199_v60, %v517_v13  ;;  %v856_v20 = vsel %vm848_vm3, %v791_v9, %v823_v11  ;;  %v8137_v40 = vld [vmem:[#allocation2 + $0xc4] sm:$0xf] }
 0x11e   :  { %v732_v19 = vsel %vm587_vm0, 0.0, %v693_v16  ;;  %v888_v21 = vsel %vm848_vm3, %v823_v11, %v791_v9  ;;  %v1009_v22 = vpack.c.bf16 %v661_v15, %v661_v15  ;;  %1202 = vst [vmem:[#allocation2 + $0xd0] sm:$0xf] %v1138_v12  ;;  %v400_v23 = vpop.f32.mrf.mxu0  ;;  %v1265_v26 = vpack.c.bf16 %v856_v20, %v856_v20  ;;  %v8320_v20 = vld [vmem:[%s11133_s2 + $0x60] sm:$0xff] }
 0x11f   :  { %v928_v24 = vsel %vm783_vm2, 0.0, %v888_v21  ;;  %v1008_v25 = vpack.c.bf16 %v732_v19, %v732_v19  ;;  %v583_v27 = vmax.f32 %v518_v17, 0.0  ;;  %v8207_v28 = vld [vmem:[#allocation2 + $0x320] sm:$0xf0]  ;;  %v401_v30 = vadd.f32 %v9199_v60, %v400_v23  ;;  %3852 = vmatpush.bf16.msrb.mxu1 %v8320_v20  ;;  %v7999_v20 = vld [vmem:[%s11132_s0 + $0x98] sm:$0xff] }
 0x120   :  { %1074 = vst [vmem:[#allocation2 + $0xcc] sm:$0xf] %v1009_v22  ;;  %v1266_v29 = vpack.c.bf16 %v928_v24, %v928_v24  ;;  %v6822_v31 = vld [vmem:[#allocation2 + $0x318] sm:$0xf]  ;;  %v8312_v19 = vld [vmem:[%s11133_s2 + $0x20] sm:$0xff] }
 0x121   :  { %1073 = vst [vmem:[#allocation2 + $0xc0] sm:$0xf] %v1008_v25  ;;  %v652_v32 = vrot.slane %v583_v27, 7  ;;  %v847_v33 = vrot.slane %v583_v27, 1  ;;  %v1186_v34 = vpack.c.bf16 %v583_v27, %v583_v27  ;;  %439 = vmatmul.bf16.gmra.mxu0 %v7996_v18  ;;  %v6823_v35 = vor.u32 %v8207_v28, %v6822_v31  ;;  %v8331_v22 = vld [vmem:[%s11133_s2 + $0xb8] sm:$0xff] }
 0x122   :  { %1329 = vst [vmem:[#allocation2 + $0xc8] sm:$0xf] %v1265_v26  ;;  %v536_v36 = vmax.f32 %v401_v30, 0.0  ;;  %3683 = vmatpush.bf16.msrb.mxu0 %v8312_v19  ;;  %4018 = vmatpush.bf16.msrb.mxu2 %v8331_v22 }
 0x123   :  { %1330 = vst [vmem:[#allocation2 + $0xd4] sm:$0xf] %v1266_v29  ;;  %v685_v37 = vsel %vm653_vm1, %v620_v10, %v652_v32  ;;  %v717_v39 = vsel %vm653_vm1, %v652_v32, %v620_v10  ;;  %v880_v41 = vsel %vm848_vm3, %v815_v14, %v847_v33  ;;  %v912_v42 = vsel %vm848_vm3, %v847_v33, %v815_v14 }
 0x124   :  { %v780_v43 = vsel %vm587_vm0, 0.0, %v717_v39  ;;  %v976_v44 = vsel %vm783_vm2, 0.0, %v912_v42  ;;  %v1057_v45 = vpack.c.bf16 %v685_v37, %v685_v37  ;;  %1250 = vst [vmem:[#allocation2 + $0x340] sm:$0xf] %v1186_v34  ;;  %v1313_v47 = vpack.c.bf16 %v880_v41, %v880_v41  ;;  %2675 = vmatmul.bf16.gmra.mxu3 %v6823_v35 }
 0x125   :  { %v1056_v48 = vpack.c.bf16 %v780_v43, %v780_v43  ;;  %v1314_v49 = vpack.c.bf16 %v976_v44, %v976_v44  ;;  %v6548_v50 = vld [vmem:[#allocation2 + $0xcc] sm:$0xf0]  ;;  %v1139_v51 = vpack.c.bf16 %v536_v36, %v536_v36  ;;  %v597_v59 = vrot.slane %v536_v36, 7 }
 0x126   :  { %1122 = vst [vmem:[#allocation2 + $0x33c] sm:$0xf] %v1057_v45  ;;  %v402_v52 = vpop.f32.mrf.mxu0  ;;  %v6551_v54 = vor.u32 %v8137_v40, %v6548_v50  ;;  %v792_v61 = vrot.slane %v536_v36, 1  ;;  %v7998_v44 = vld [vmem:[%s11132_s0 + $0x90] sm:$0xff] }
 0x127   :  { %1121 = vst [vmem:[#allocation2 + $0x330] sm:$0xf] %v1056_v48  ;;  %v403_v55 = vadd.f32 %v9199_v60, %v402_v52  ;;  %v8138_v56 = vld [vmem:[#allocation2 + $0xc8] sm:$0xf0] }
 0x128   :  { %1377 = vst [vmem:[#allocation2 + $0x338] sm:$0xf] %v1313_v47  ;;  %v6546_v38 = vld [vmem:[#allocation2 + $0xc0] sm:$0xf] }
 0x129   :  { %1378 = vst [vmem:[#allocation2 + $0x344] sm:$0xf] %v1314_v49  ;;  %v537_v57 = vmax.f32 %v403_v55, 0.0  ;;  %v6547_v58 = vor.u32 %v8138_v56, %v6546_v38  ;;  %v8188_v55 = vld [vmem:[#allocation2 + $0x28c] sm:$0xf] }
 0x12a   :  { %1203 = vst [vmem:[#allocation2 + $0xdc] sm:$0xf] %v1139_v51  ;;  %2729 = vmatmul.bf16.gmra.mxu2 %v6551_v54  ;;  %v6752_v56 = vld [vmem:[#allocation2 + $0x294] sm:$0xf0] }
 0x12b   :  { %v629_v62 = vrot.slane %v537_v57, 7  ;;  %v824_v63 = vrot.slane %v537_v57, 1  ;;  %v1140_v0 = vpack.c.bf16 %v537_v57, %v537_v57  ;;  %2560 = vmatmul.bf16.gmra.mxu1 %v6547_v58  ;;  %v6755_v58 = vor.u32 %v8188_v55, %v6752_v56 }
 0x12d   :  { %v662_v1 = vsel %vm653_vm1, %v597_v59, %v629_v62  ;;  %v694_v2 = vsel %vm653_vm1, %v629_v62, %v597_v59  ;;  %v857_v3 = vsel %vm848_vm3, %v792_v61, %v824_v63  ;;  %v889_v4 = vsel %vm848_vm3, %v824_v63, %v792_v61  ;;  %1204 = vst [vmem:[#allocation2 + $0xe8] sm:$0xf] %v1140_v0  ;;  %v8210_v6 = vld [vmem:[#allocation2 + $0x338] sm:$0xf0] }
 0x12e   :  { %v734_v7 = vsel %vm587_vm0, 0.0, %v694_v2  ;;  %v930_v8 = vsel %vm783_vm2, 0.0, %v889_v4  ;;  %v1011_v9 = vpack.c.bf16 %v662_v1, %v662_v1  ;;  %v1267_v10 = vpack.c.bf16 %v857_v3, %v857_v3  ;;  %v405_v11 = vpop.f32.mrf.mxu0  ;;  %v6834_v12 = vld [vmem:[#allocation2 + $0x330] sm:$0xf] }
 0x12f   :  { %v1010_v13 = vpack.c.bf16 %v734_v7, %v734_v7  ;;  %v1268_v14 = vpack.c.bf16 %v930_v8, %v930_v8  ;;  %v406_v15 = vadd.f32 %v9199_v60, %v405_v11  ;;  %v6835_v16 = vor.u32 %v8210_v6, %v6834_v12 }
 0x130   :  { %1076 = vst [vmem:[#allocation2 + $0xe4] sm:$0xf] %v1011_v9 }
 0x131   :  { %1075 = vst [vmem:[#allocation2 + $0xd8] sm:$0xf] %v1010_v13  ;;  %v538_v17 = vmax.f32 %v406_v15, 0.0  ;;  %444 = vmatmul.bf16.gmra.mxu0 %v7997_v5  ;;  %v8140_v23 = vld [vmem:[#allocation2 + $0xdc] sm:$0xf] }
 0x132   :  { %1331 = vst [vmem:[#allocation2 + $0xe0] sm:$0xf] %v1267_v10 }
 0x133   :  { %1332 = vst [vmem:[#allocation2 + $0xec] sm:$0xf] %v1268_v14  ;;  %v1141_v18 = vpack.c.bf16 %v538_v17, %v538_v17  ;;  %v598_v32 = vrot.slane %v538_v17, 7  ;;  %v793_v33 = vrot.slane %v538_v17, 1 }
 0x134   :  { %2680 = vmatmul.bf16.gmra.mxu3 %v6835_v16  ;;  %v6560_v21 = vld [vmem:[#allocation2 + $0xe4] sm:$0xf0] }
 0x135   :  { %1205 = vst [vmem:[#allocation2 + $0xf4] sm:$0xf] %v1141_v18  ;;  %v6563_v25 = vor.u32 %v8140_v23, %v6560_v21 }
 0x136   :  { %v407_v24 = vpop.f32.mrf.mxu0 }
 0x137   :  { %v408_v26 = vadd.f32 %v9199_v60, %v407_v24  ;;  %v8141_v27 = vld [vmem:[#allocation2 + $0xe0] sm:$0xf0] }
 0x138   :  { %v2526_v28 = vpop.f32.mrf.mxu1  ;;  %v6558_v29 = vld [vmem:[#allocation2 + $0xd8] sm:$0xf] }
 0x139   :  { %v539_v30 = vmax.f32 %v408_v26, 0.0  ;;  %v6559_v31 = vor.u32 %v8141_v27, %v6558_v29 }
 0x13a   :  { %2734 = vmatmul.bf16.gmra.mxu2 %v6563_v25 }
 0x13b   :  { %v630_v34 = vrot.slane %v539_v30, 7  ;;  %v825_v35 = vrot.slane %v539_v30, 1  ;;  %v1142_v36 = vpack.c.bf16 %v539_v30, %v539_v30  ;;  %2565 = vmatmul.bf16.gmra.mxu1 %v6559_v31  ;;  %v8191_v31 = vld [vmem:[#allocation2 + $0x2a4] sm:$0xf] }
 0x13c   :  { %v8143_v63 = vld [vmem:[#allocation2 + $0xf4] sm:$0xf] }
 0x13d   :  { %v663_v37 = vsel %vm653_vm1, %v598_v32, %v630_v34  ;;  %v695_v39 = vsel %vm653_vm1, %v630_v34, %v598_v32  ;;  %v858_v41 = vsel %vm848_vm3, %v793_v33, %v825_v35  ;;  %v890_v42 = vsel %vm848_vm3, %v825_v35, %v793_v33  ;;  %1206 = vst [vmem:[#allocation2 + $0x100] sm:$0xf] %v1142_v36  ;;  %v2695_v43 = vpop.f32.mrf.mxu2  ;;  %v6764_v32 = vld [vmem:[#allocation2 + $0x2ac] sm:$0xf0] }
 0x13e   :  { %v736_v45 = vsel %vm587_vm0, 0.0, %v695_v39  ;;  %v932_v47 = vsel %vm783_vm2, 0.0, %v890_v42  ;;  %v1013_v48 = vpack.c.bf16 %v663_v37, %v663_v37  ;;  %v1269_v49 = vpack.c.bf16 %v858_v41, %v858_v41  ;;  %v410_v40 = vpop.f32.mrf.mxu0 }
 0x13f   :  { %v1012_v50 = vpack.c.bf16 %v736_v45, %v736_v45  ;;  %v1270_v51 = vpack.c.bf16 %v932_v47, %v932_v47  ;;  %v9274_v52 = vadd.f32 %v2695_v43, %v2526_v28  ;;  %v411_v54 = vadd.f32 %v9199_v60, %v410_v40 }
 0x140   :  { %1078 = vst [vmem:[#allocation2 + $0xfc] sm:$0xf] %v1013_v48  ;;  %v2528_v38 = vpop.f32.mrf.mxu1  ;;  %v6767_v35 = vor.u32 %v8191_v31, %v6764_v32 }
 0x141   :  { %1077 = vst [vmem:[#allocation2 + $0xf0] sm:$0xf] %v1012_v50  ;;  %v540_v57 = vmax.f32 %v411_v54, 0.0  ;;  %449 = vmatmul.bf16.gmra.mxu0 %v7998_v44 }
 0x142   :  { %1333 = vst [vmem:[#allocation2 + $0xf8] sm:$0xf] %v1269_v49 }
 0x143   :  { %1334 = vst [vmem:[#allocation2 + $0x104] sm:$0xf] %v1270_v51  ;;  %v1143_v59 = vpack.c.bf16 %v540_v57, %v540_v57  ;;  %v599_v10 = vrot.slane %v540_v57, 7  ;;  %v794_v11 = vrot.slane %v540_v57, 1 }
 0x144   :  { %2814 = vmatmul.bf16.vlgmr.msra.gmra.mxu3 %v6755_v58  ;;  %v6572_v61 = vld [vmem:[#allocation2 + $0xfc] sm:$0xf0] }
 0x145   :  { %1207 = vst [vmem:[#allocation2 + $0x10c] sm:$0xf] %v1143_v59  ;;  %v2697_v62 = vpop.f32.mrf.mxu2  ;;  %v6575_v2 = vor.u32 %v8143_v63, %v6572_v61 }
 0x146   :  { %v9277_v0 = vadd.f32 %v2697_v62, %v2528_v38  ;;  %v412_v1 = vpop.f32.mrf.mxu0 }
 0x147   :  { %v9279_v3 = vpop.f32.mrf.mxu3  ;;  %v413_v4 = vadd.f32 %v9199_v60, %v412_v1  ;;  %v8144_v5 = vld [vmem:[#allocation2 + $0xf8] sm:$0xf0]  ;;  %v8000_v1 = vld [vmem:[%s11132_s0 + $0xa0] sm:$0xff] }
 0x148   :  { %11138 = vst [vmem:[#allocation3_spill] sm:$0xff] %v9279_v3  ;;  %v2531_v6 = vpop.f32.mrf.mxu1  ;;  %v6570_v7 = vld [vmem:[#allocation2 + $0xf0] sm:$0xf] }
 0x149   :  { %v541_v8 = vmax.f32 %v413_v4, 0.0  ;;  %v6571_v9 = vor.u32 %v8144_v5, %v6570_v7 }
 0x14a   :  { %2739 = vmatmul.bf16.gmra.mxu2 %v6575_v2 }
 0x14b   :  { %v631_v12 = vrot.slane %v541_v8, 7  ;;  %v826_v13 = vrot.slane %v541_v8, 1  ;;  %v1144_v14 = vpack.c.bf16 %v541_v8, %v541_v8  ;;  %2570 = vmatmul.bf16.gmra.mxu1 %v6571_v9 }
 0x14c   :  { %v8146_v41 = vld [vmem:[#allocation2 + $0x10c] sm:$0xf] }
 0x14d   :  { %v664_v15 = vsel %vm653_vm1, %v599_v10, %v631_v12  ;;  %v696_v16 = vsel %vm653_vm1, %v631_v12, %v599_v10  ;;  %v859_v17 = vsel %vm848_vm3, %v794_v11, %v826_v13  ;;  %v891_v18 = vsel %vm848_vm3, %v826_v13, %v794_v11  ;;  %1208 = vst [vmem:[#allocation2 + $0x118] sm:$0xf] %v1144_v14  ;;  %v2700_v19 = vpop.f32.mrf.mxu2  ;;  %v8194_v13 = vld [vmem:[#allocation2 + $0x2bc] sm:$0xf]  ;;  %v6776_v14 = vld [vmem:[#allocation2 + $0x2c4] sm:$0xf0] }
 0x14e   :  { %v738_v21 = vsel %vm587_vm0, 0.0, %v696_v16  ;;  %v934_v22 = vsel %vm783_vm2, 0.0, %v891_v18  ;;  %v1015_v23 = vpack.c.bf16 %v664_v15, %v664_v15  ;;  %v1271_v24 = vpack.c.bf16 %v859_v17, %v859_v17  ;;  %v415_v25 = vpop.f32.mrf.mxu0 }
 0x14f   :  { %v1014_v26 = vpack.c.bf16 %v738_v21, %v738_v21  ;;  %v1272_v27 = vpack.c.bf16 %v934_v22, %v934_v22  ;;  %v9297_v28 = vadd.f32 %v2700_v19, %v2531_v6  ;;  %v9299_v29 = vpop.f32.mrf.mxu3  ;;  %v416_v30 = vadd.f32 %v9199_v60, %v415_v25  ;;  %v8311_v19 = vld [vmem:[%s11133_s2 + $0x18] sm:$0xff]  ;;  %v8330_v22 = vld [vmem:[%s11133_s2 + $0xb0] sm:$0xff] }
 0x150   :  { %11139 = vst [vmem:[#allocation4_spill] sm:$0xff] %v9299_v29  ;;  %v2533_v33 = vpop.f32.mrf.mxu1  ;;  %v6779_v17 = vor.u32 %v8194_v13, %v6776_v14  ;;  %3684 = vmatpush.bf16.msrb.mxu0 %v8311_v19  ;;  %4019 = vmatpush.bf16.msrb.mxu2 %v8330_v22 }
 0x151   :  { %1080 = vst [vmem:[#allocation2 + $0x114] sm:$0xf] %v1015_v23  ;;  %v542_v34 = vmax.f32 %v416_v30, 0.0  ;;  %454 = vmatmul.bf16.gmra.mxu0 %v7999_v20  ;;  %v8319_v20 = vld [vmem:[%s11133_s2 + $0x58] sm:$0xff] }
 0x152   :  { %1079 = vst [vmem:[#allocation2 + $0x108] sm:$0xf] %v1014_v26  ;;  %3853 = vmatpush.bf16.msrb.mxu1 %v8319_v20 }
 0x153   :  { %1335 = vst [vmem:[#allocation2 + $0x110] sm:$0xf] %v1271_v24  ;;  %v1145_v36 = vpack.c.bf16 %v542_v34, %v542_v34  ;;  %v600_v54 = vrot.slane %v542_v34, 7  ;;  %v795_v55 = vrot.slane %v542_v34, 1 }
 0x154   :  { %1336 = vst [vmem:[#allocation2 + $0x11c] sm:$0xf] %v1272_v27  ;;  %2819 = vmatmul.bf16.gmra.mxu3 %v6767_v35  ;;  %v6584_v37 = vld [vmem:[#allocation2 + $0x114] sm:$0xf0] }
 0x155   :  { %1209 = vst [vmem:[#allocation2 + $0x124] sm:$0xf] %v1145_v36  ;;  %v2702_v39 = vpop.f32.mrf.mxu2  ;;  %v6587_v44 = vor.u32 %v8146_v41, %v6584_v37 }
 0x156   :  { %v9302_v42 = vadd.f32 %v2702_v39, %v2533_v33  ;;  %v417_v43 = vpop.f32.mrf.mxu0 }
 0x157   :  { %v9304_v45 = vpop.f32.mrf.mxu3  ;;  %v418_v47 = vadd.f32 %v9199_v60, %v417_v43 }
 0x158   :  { %11140 = vst [vmem:[#allocation5_spill] sm:$0xff] %v9304_v45  ;;  %v8147_v48 = vld [vmem:[#allocation2 + $0x110] sm:$0xf0]  ;;  %v2536_v49 = vpop.f32.mrf.mxu1  ;;  %v6980_v45 = vld [vmem:[#allocation2 + $0x54] sm:$0xf0] }
 0x159   :  { %v6582_v40 = vld [vmem:[#allocation2 + $0x108] sm:$0xf]  ;;  %v543_v50 = vmax.f32 %v418_v47, 0.0 }
 0x15a   :  { %v6583_v51 = vor.u32 %v8147_v48, %v6582_v40  ;;  %2744 = vmatmul.bf16.gmra.mxu2 %v6587_v44 }
 0x15b   :  { %v632_v56 = vrot.slane %v543_v50, 7  ;;  %v827_v38 = vrot.slane %v543_v50, 1  ;;  %v1146_v57 = vpack.c.bf16 %v543_v50, %v543_v50 }
 0x15c   :  { %2575 = vmatmul.bf16.gmra.mxu1 %v6583_v51  ;;  %v8149_v24 = vld [vmem:[#allocation2 + $0x124] sm:$0xf]  ;;  %v8001_v51 = vld [vmem:[%s11132_s0 + $0xa8] sm:$0xff] }
 0x15d   :  { %v665_v58 = vsel %vm653_vm1, %v600_v54, %v632_v56  ;;  %v697_v59 = vsel %vm653_vm1, %v632_v56, %v600_v54  ;;  %v860_v61 = vsel %vm848_vm3, %v795_v55, %v827_v38  ;;  %v892_v62 = vsel %vm848_vm3, %v827_v38, %v795_v55  ;;  %1210 = vst [vmem:[#allocation2 + $0x130] sm:$0xf] %v1146_v57  ;;  %v2705_v63 = vpop.f32.mrf.mxu2 }
 0x15e   :  { %v740_v2 = vsel %vm587_vm0, 0.0, %v697_v59  ;;  %v936_v4 = vsel %vm783_vm2, 0.0, %v892_v62  ;;  %v1017_v5 = vpack.c.bf16 %v665_v58, %v665_v58  ;;  %v1273_v6 = vpack.c.bf16 %v860_v61, %v860_v61  ;;  %v420_v7 = vpop.f32.mrf.mxu0 }
 0x15f   :  { %v1016_v8 = vpack.c.bf16 %v740_v2, %v740_v2  ;;  %v1274_v9 = vpack.c.bf16 %v936_v4, %v936_v4  ;;  %v9322_v10 = vadd.f32 %v2705_v63, %v2536_v49  ;;  %v9324_v11 = vpop.f32.mrf.mxu3  ;;  %v421_v12 = vadd.f32 %v9199_v60, %v420_v7  ;;  %v6788_v2 = vld [vmem:[#allocation2 + $0x2dc] sm:$0xf0] }
 0x160   :  { %11141 = vst [vmem:[#allocation6_spill] sm:$0xff] %v9324_v11  ;;  %v2538_v15 = vpop.f32.mrf.mxu1  ;;  %v8145_v11 = vld [vmem:[#allocation2 + $0x100] sm:$0xf0] }
 0x161   :  { %1082 = vst [vmem:[#allocation2 + $0x12c] sm:$0xf] %v1017_v5  ;;  %v544_v16 = vmax.f32 %v421_v12, 0.0  ;;  %459 = vmatmul.bf16.gmra.mxu0 %v8000_v1  ;;  %v8197_v1 = vld [vmem:[#allocation2 + $0x2d4] sm:$0xf] }
 0x162   :  { %1081 = vst [vmem:[#allocation2 + $0x120] sm:$0xf] %v1016_v8 }
 0x163   :  { %1337 = vst [vmem:[#allocation2 + $0x128] sm:$0xf] %v1273_v6  ;;  %v1147_v18 = vpack.c.bf16 %v544_v16, %v544_v16  ;;  %v601_v37 = vrot.slane %v544_v16, 7  ;;  %v796_v39 = vrot.slane %v544_v16, 1  ;;  %v6791_v6 = vor.u32 %v8197_v1, %v6788_v2 }
 0x164   :  { %1338 = vst [vmem:[#allocation2 + $0x134] sm:$0xf] %v1274_v9  ;;  %2824 = vmatmul.bf16.gmra.mxu3 %v6779_v17  ;;  %v6596_v21 = vld [vmem:[#allocation2 + $0x12c] sm:$0xf0] }
 0x165   :  { %1211 = vst [vmem:[#allocation2 + $0x13c] sm:$0xf] %v1147_v18  ;;  %v2707_v23 = vpop.f32.mrf.mxu2  ;;  %v6599_v27 = vor.u32 %v8149_v24, %v6596_v21 }
 0x166   :  { %v9336_v25 = vadd.f32 %v2707_v23, %v2538_v15  ;;  %v422_v26 = vpop.f32.mrf.mxu0  ;;  %v8310_v23 = vld [vmem:[%s11133_s2 + $0x10] sm:$0xff] }
 0x167   :  { %v9338_v30 = vpop.f32.mrf.mxu3  ;;  %v423_v31 = vadd.f32 %v9199_v60, %v422_v26  ;;  %3685 = vmatpush.bf16.msrb.mxu0 %v8310_v23 }
 0x168   :  { %11142 = vst [vmem:[#allocation7_spill] sm:$0xff] %v9338_v30  ;;  %v8150_v32 = vld [vmem:[#allocation2 + $0x128] sm:$0xf0]  ;;  %v2541_v33 = vpop.f32.mrf.mxu1  ;;  %v8023_v30 = vld [vmem:[#allocation2 + $0x1c] sm:$0xf] }
 0x169   :  { %v6594_v34 = vld [vmem:[#allocation2 + $0x120] sm:$0xf]  ;;  %v545_v35 = vmax.f32 %v423_v31, 0.0 }
 0x16a   :  { %v6595_v36 = vor.u32 %v8150_v32, %v6594_v34  ;;  %2749 = vmatmul.bf16.gmra.mxu2 %v6599_v27 }
 0x16b   :  { %v633_v41 = vrot.slane %v545_v35, 7  ;;  %v828_v43 = vrot.slane %v545_v35, 1  ;;  %v1148_v44 = vpack.c.bf16 %v545_v35, %v545_v35  ;;  %v8151_v29 = vld [vmem:[#allocation2 + $0x130] sm:$0xf0] }
 0x16c   :  { %2580 = vmatmul.bf16.gmra.mxu1 %v6595_v36  ;;  %v8152_v12 = vld [vmem:[#allocation2 + $0x13c] sm:$0xf] }
 0x16d   :  { %v666_v47 = vsel %vm653_vm1, %v601_v37, %v633_v41  ;;  %v698_v48 = vsel %vm653_vm1, %v633_v41, %v601_v37  ;;  %v861_v49 = vsel %vm848_vm3, %v796_v39, %v828_v43  ;;  %v893_v40 = vsel %vm848_vm3, %v828_v43, %v796_v39  ;;  %1212 = vst [vmem:[#allocation2 + $0x148] sm:$0xf] %v1148_v44  ;;  %v2710_v50 = vpop.f32.mrf.mxu2  ;;  %v8002_v41 = vld [vmem:[%s11132_s0 + $0xb0] sm:$0xff]  ;;  %v8309_v43 = vld [vmem:[%s11133_s2 + $0x8] sm:$0xff] }
 0x16e   :  { %v742_v54 = vsel %vm587_vm0, 0.0, %v698_v48  ;;  %v938_v55 = vsel %vm783_vm2, 0.0, %v893_v40  ;;  %v1019_v56 = vpack.c.bf16 %v666_v47, %v666_v47  ;;  %v1275_v38 = vpack.c.bf16 %v861_v49, %v861_v49  ;;  %v425_v57 = vpop.f32.mrf.mxu0  ;;  %3686 = vmatpush.bf16.msrb.mxu0 %v8309_v43 }
 0x16f   :  { %v1018_v58 = vpack.c.bf16 %v742_v54, %v742_v54  ;;  %v1276_v59 = vpack.c.bf16 %v938_v55, %v938_v55  ;;  %v9356_v61 = vadd.f32 %v2710_v50, %v2541_v33  ;;  %v9358_v62 = vpop.f32.mrf.mxu3  ;;  %v426_v63 = vadd.f32 %v9199_v60, %v425_v57  ;;  %v6800_v57 = vld [vmem:[#allocation2 + $0x2f4] sm:$0xf0] }
 0x170   :  { %11143 = vst [vmem:[#allocation8_spill] sm:$0xff] %v9358_v62  ;;  %v2543_v4 = vpop.f32.mrf.mxu1  ;;  %v8770_v33 = vmov 0  }
 0x171   :  { %1084 = vst [vmem:[#allocation2 + $0x144] sm:$0xf] %v1019_v56  ;;  %v546_v5 = vmax.f32 %v426_v63, 0.0  ;;  %464 = vmatmul.bf16.gmra.mxu0 %v8001_v51  ;;  %v8308_v63 = vld [vmem:[%s11133_s2] sm:$0xff] }
 0x172   :  { %1083 = vst [vmem:[#allocation2 + $0x138] sm:$0xf] %v1018_v58  ;;  %3687 = vmatpush.bf16.msrb.mxu0 %v8308_v63 }
 0x173   :  { %1339 = vst [vmem:[#allocation2 + $0x140] sm:$0xf] %v1275_v38  ;;  %v1149_v7 = vpack.c.bf16 %v546_v5, %v546_v5  ;;  %v602_v24 = vrot.slane %v546_v5, 7  ;;  %v797_v26 = vrot.slane %v546_v5, 1  ;;  %v8200_v38 = vld [vmem:[#allocation2 + $0x2ec] sm:$0xf] }
 0x174   :  { %1340 = vst [vmem:[#allocation2 + $0x14c] sm:$0xf] %v1276_v59  ;;  %2829 = vmatmul.bf16.gmra.mxu3 %v6791_v6  ;;  %v6608_v8 = vld [vmem:[#allocation2 + $0x144] sm:$0xf0]  ;;  %v6803_v1 = vor.u32 %v8200_v38, %v6800_v57  ;;  %v8203_v57 = vld [vmem:[#allocation2 + $0x304] sm:$0xf] }
 0x175   :  { %1213 = vst [vmem:[#allocation2 + $0x154] sm:$0xf] %v1149_v7  ;;  %v2712_v9 = vpop.f32.mrf.mxu2  ;;  %v6611_v15 = vor.u32 %v8152_v12, %v6608_v8  ;;  %v8355_v7 = vld [vmem:[%s11133_s2 + $0x178] sm:$0xff] }
 0x176   :  { %v9361_v13 = vadd.f32 %v2712_v9, %v2543_v4  ;;  %v427_v14 = vpop.f32.mrf.mxu0  ;;  %977 = vst [vmem:[#allocation2] sm:$0xff] %v8770_v33  ;;  %2855 = vmatpush.bf16.msrb.mxu3 %v8355_v7 }
 0x177   :  { %v9363_v16 = vpop.f32.mrf.mxu3  ;;  %v428_v17 = vadd.f32 %v9199_v60, %v427_v14  ;;  %979 = vst [vmem:[#allocation2 + $0xc] sm:$0xff] %v8770_v33 }
 0x178   :  { %11144 = vst [vmem:[#allocation9_spill] sm:$0xff] %v9363_v16  ;;  %v8153_v18 = vld [vmem:[#allocation2 + $0x140] sm:$0xf0]  ;;  %v2546_v19 = vpop.f32.mrf.mxu1 }
 0x179   :  { %v6606_v20 = vld [vmem:[#allocation2 + $0x138] sm:$0xf]  ;;  %v547_v21 = vmax.f32 %v428_v17, 0.0  ;;  %978 = vst [vmem:[#allocation2 + $0x8] sm:$0xf] %v8770_v33 }
 0x17a   :  { %v6607_v22 = vor.u32 %v8153_v18, %v6606_v20  ;;  %2754 = vmatmul.bf16.gmra.mxu2 %v6611_v15  ;;  %980 = vst [vmem:[#allocation2 + $0x14] sm:$0xf] %v8770_v33 }
 0x17b   :  { %v634_v27 = vrot.slane %v547_v21, 7  ;;  %v829_v31 = vrot.slane %v547_v21, 1  ;;  %v1150_v32 = vpack.c.bf16 %v547_v21, %v547_v21  ;;  %981 = vst [vmem:[#allocation2 + $0x1b0] sm:$0xff] %v8770_v33  ;;  %v8154_v3 = vld [vmem:[#allocation2 + $0x148] sm:$0xf0] }
 0x17c   :  { %2585 = vmatmul.bf16.gmra.mxu1 %v6607_v22  ;;  %v8155_v6 = vld [vmem:[#allocation2 + $0x154] sm:$0xf]  ;;  %982 = vst [vmem:[#allocation2 + $0x1b8] sm:$0xf] %v8770_v33 }
 0x17d   :  { %v667_v34 = vsel %vm653_vm1, %v602_v24, %v634_v27  ;;  %v699_v35 = vsel %vm653_vm1, %v634_v27, %v602_v24  ;;  %v862_v36 = vsel %vm848_vm3, %v797_v26, %v829_v31  ;;  %v894_v37 = vsel %vm848_vm3, %v829_v31, %v797_v26  ;;  %1214 = vst [vmem:[#allocation2 + $0x160] sm:$0xf] %v1150_v32  ;;  %v2715_v39 = vpop.f32.mrf.mxu2  ;;  %v8354_v22 = vld [vmem:[%s11133_s2 + $0x170] sm:$0xff] }
 0x17e   :  { %v744_v44 = vsel %vm587_vm0, 0.0, %v699_v35  ;;  %v940_v47 = vsel %vm783_vm2, 0.0, %v894_v37  ;;  %v1021_v48 = vpack.c.bf16 %v667_v34, %v667_v34  ;;  %v1277_v49 = vpack.c.bf16 %v862_v36, %v862_v36  ;;  %v430_v40 = vpop.f32.mrf.mxu0  ;;  %983 = vst [vmem:[#allocation2 + $0x1bc] sm:$0xff] %v8770_v33  ;;  %2856 = vmatpush.bf16.msrb.mxu3 %v8354_v22 }
 0x17f   :  { %v1020_v50 = vpack.c.bf16 %v744_v44, %v744_v44  ;;  %v1278_v51 = vpack.c.bf16 %v940_v47, %v940_v47  ;;  %v9389_v54 = vadd.f32 %v2715_v39, %v2546_v19  ;;  %v9391_v55 = vpop.f32.mrf.mxu3  ;;  %v431_v56 = vadd.f32 %v9199_v60, %v430_v40  ;;  %984 = vst [vmem:[#allocation2 + $0x1c4] sm:$0xf] %v8770_v33  ;;  %v8003_v39 = vld [vmem:[%s11132_s0 + $0xb8] sm:$0xff] }
 0x180   :  { %11145 = vst [vmem:[#allocation10_spill] sm:$0xff] %v9391_v55  ;;  %v2548_v58 = vpop.f32.mrf.mxu1 }
 0x181   :  { %1086 = vst [vmem:[#allocation2 + $0x15c] sm:$0xf] %v1021_v48  ;;  %v548_v59 = vmax.f32 %v431_v56, 0.0  ;;  %469 = vmatmul.bf16.gmra.mxu0 %v8002_v41  ;;  %v8353_v41 = vld [vmem:[%s11133_s2 + $0x168] sm:$0xff] }
 0x182   :  { %1085 = vst [vmem:[#allocation2 + $0x150] sm:$0xf] %v1020_v50  ;;  %2857 = vmatpush.bf16.msrb.mxu3 %v8353_v41 }
 0x183   :  { %1341 = vst [vmem:[#allocation2 + $0x158] sm:$0xf] %v1277_v49  ;;  %v1151_v2 = vpack.c.bf16 %v548_v59, %v548_v59  ;;  %v603_v23 = vrot.slane %v548_v59, 7  ;;  %v798_v24 = vrot.slane %v548_v59, 1 }
 0x184   :  { %1342 = vst [vmem:[#allocation2 + $0x164] sm:$0xf] %v1278_v51  ;;  %2834 = vmatmul.bf16.gmra.mxu3 %v6803_v1  ;;  %v6620_v4 = vld [vmem:[#allocation2 + $0x15c] sm:$0xf0] }
 0x185   :  { %1215 = vst [vmem:[#allocation2 + $0x16c] sm:$0xf] %v1151_v2  ;;  %v2717_v5 = vpop.f32.mrf.mxu2  ;;  %v6623_v12 = vor.u32 %v8155_v6, %v6620_v4  ;;  %v8352_v2 = vld [vmem:[%s11133_s2 + $0x160] sm:$0xff]  ;;  %v8329_v6 = vld [vmem:[%s11133_s2 + $0xa8] sm:$0xff] }
 0x186   :  { %v9401_v8 = vadd.f32 %v2717_v5, %v2548_v58  ;;  %v432_v9 = vpop.f32.mrf.mxu0  ;;  %986 = vst [vmem:[#allocation2 + $0x198] sm:$0xff] %v8770_v33  ;;  %v6812_v58 = vld [vmem:[#allocation2 + $0x30c] sm:$0xf0]  ;;  %4020 = vmatpush.bf16.msrb.mxu2 %v8329_v6  ;;  %2858 = vmatpush.bf16.msrb.mxu3 %v8352_v2  ;;  %v8206_v6 = vld [vmem:[#allocation2 + $0x31c] sm:$0xf] }
 0x187   :  { %v9404_v14 = vpop.f32.mrf.mxu3  ;;  %v433_v15 = vadd.f32 %v9199_v60, %v432_v9  ;;  %987 = vst [vmem:[#allocation2 + $0x1a0] sm:$0xf] %v8770_v33  ;;  %v6815_v1 = vor.u32 %v8203_v57, %v6812_v58  ;;  %v8318_v5 = vld [vmem:[%s11133_s2 + $0x50] sm:$0xff] }
 0x188   :  { %11146 = vst [vmem:[#allocation11_spill] sm:$0xff] %v9404_v14  ;;  %v8156_v17 = vld [vmem:[#allocation2 + $0x158] sm:$0xf0]  ;;  %v2551_v18 = vpop.f32.mrf.mxu1  ;;  %3854 = vmatpush.bf16.msrb.mxu1 %v8318_v5 }
 0x189   :  { %v6618_v19 = vld [vmem:[#allocation2 + $0x150] sm:$0xf]  ;;  %v549_v20 = vmax.f32 %v433_v15, 0.0  ;;  %988 = vst [vmem:[#allocation2 + $0x1a4] sm:$0xff] %v8770_v33 }
 0x18a   :  { %v6619_v21 = vor.u32 %v8156_v17, %v6618_v19  ;;  %2759 = vmatmul.bf16.gmra.mxu2 %v6623_v12  ;;  %989 = vst [vmem:[#allocation2 + $0x1ac] sm:$0xf] %v8770_v33  ;;  %v8351_v19 = vld [vmem:[%s11133_s2 + $0x158] sm:$0xff] }
 0x18b   :  { %v635_v26 = vrot.slane %v549_v20, 7  ;;  %v830_v27 = vrot.slane %v549_v20, 1  ;;  %v1152_v31 = vpack.c.bf16 %v549_v20, %v549_v20  ;;  %990 = vst [vmem:[#allocation2 + $0x348] sm:$0xff] %v8770_v33  ;;  %2859 = vmatpush.bf16.msrb.mxu3 %v8351_v19 }
 0x18c   :  { %2590 = vmatmul.bf16.gmra.mxu1 %v6619_v21  ;;  %v8158_v12 = vld [vmem:[#allocation2 + $0x16c] sm:$0xf]  ;;  %991 = vst [vmem:[#allocation2 + $0x350] sm:$0xf] %v8770_v33 }
 0x18d   :  { %v668_v32 = vsel %vm653_vm1, %v603_v23, %v635_v26  ;;  %v700_v34 = vsel %vm653_vm1, %v635_v26, %v603_v23  ;;  %v863_v35 = vsel %vm848_vm3, %v798_v24, %v830_v27  ;;  %v895_v36 = vsel %vm848_vm3, %v830_v27, %v798_v24  ;;  %1216 = vst [vmem:[#allocation2 + $0x178] sm:$0xf] %v1152_v31  ;;  %v2720_v37 = vpop.f32.mrf.mxu2  ;;  %v6942_v31 = vld [vmem:[#allocation2] sm:$0xf] }
 0x18e   :  { %v746_v43 = vsel %vm587_vm0, 0.0, %v700_v34  ;;  %v942_v44 = vsel %vm783_vm2, 0.0, %v895_v36  ;;  %v1023_v47 = vpack.c.bf16 %v668_v32, %v668_v32  ;;  %v1279_v48 = vpack.c.bf16 %v863_v35, %v863_v35  ;;  %v435_v49 = vpop.f32.mrf.mxu0  ;;  %992 = vst [vmem:[#allocation2 + $0x354] sm:$0xff] %v8770_v33  ;;  %v8021_v32 = vld [vmem:[#allocation2 + $0x8] sm:$0xf0]  ;;  %v8350_v35 = vld [vmem:[%s11133_s2 + $0x150] sm:$0xff] }
 0x18f   :  { %v1022_v40 = vpack.c.bf16 %v746_v43, %v746_v43  ;;  %v1280_v50 = vpack.c.bf16 %v942_v44, %v942_v44  ;;  %v9435_v51 = vadd.f32 %v2720_v37, %v2551_v18  ;;  %v9437_v56 = vpop.f32.mrf.mxu3  ;;  %v436_v38 = vadd.f32 %v9199_v60, %v435_v49  ;;  %993 = vst [vmem:[#allocation2 + $0x35c] sm:$0xf] %v8770_v33 }
 0x190   :  { %11147 = vst [vmem:[#allocation12_spill] sm:$0xff] %v9437_v56  ;;  %v2553_v59 = vpop.f32.mrf.mxu1  ;;  %v6943_v43 = vor.u32 %v8021_v32, %v6942_v31  ;;  %2860 = vmatpush.bf16.msrb.mxu3 %v8350_v35  ;;  %v9495_v31 = vld [vmem:[%s11131_s4] ss:$0 sm:$0xff] }
 0x191   :  { %1088 = vst [vmem:[#allocation2 + $0x174] sm:$0xf] %v1023_v47  ;;  %v550_v63 = vmax.f32 %v436_v38, 0.0  ;;  %474 = vmatmul.bf16.gmra.mxu0 %v8003_v39 }
 0x192   :  { %1087 = vst [vmem:[#allocation2 + $0x168] sm:$0xf] %v1022_v40 }
 0x193   :  { %1343 = vst [vmem:[#allocation2 + $0x170] sm:$0xf] %v1279_v48  ;;  %v1153_v4 = vpack.c.bf16 %v550_v63, %v550_v63  ;;  %v604_v34 = vrot.slane %v550_v63, 7  ;;  %v799_v36 = vrot.slane %v550_v63, 1 }
 0x194   :  { %1344 = vst [vmem:[#allocation2 + $0x17c] sm:$0xf] %v1280_v50  ;;  %2839 = vmatmul.bf16.gmra.mxu3 %v6815_v1  ;;  %v6632_v7 = vld [vmem:[#allocation2 + $0x174] sm:$0xf0] }
 0x195   :  { %1217 = vst [vmem:[#allocation2 + $0x184] sm:$0xf] %v1153_v4  ;;  %v2722_v9 = vpop.f32.mrf.mxu2  ;;  %v6635_v18 = vor.u32 %v8158_v12, %v6632_v7  ;;  %v6824_v7 = vld [vmem:[#allocation2 + $0x324] sm:$0xf0] }
 0x196   :  { %v9451_v15 = vadd.f32 %v2722_v9, %v2553_v59  ;;  %v437_v17 = vpop.f32.mrf.mxu0  ;;  %v8349_v59 = vld [vmem:[%s11133_s2 + $0x148] sm:$0xff] }
 0x197   :  { %v9457_v20 = vpop.f32.mrf.mxu3  ;;  %v438_v21 = vadd.f32 %v9199_v60, %v437_v17  ;;  %v6827_v17 = vor.u32 %v8206_v6, %v6824_v7  ;;  %2861 = vmatpush.bf16.msrb.mxu3 %v8349_v59 }
 0x198   :  { %11148 = vst [vmem:[#allocation13_spill] sm:$0xff] %v9457_v20  ;;  %v8159_v22 = vld [vmem:[#allocation2 + $0x170] sm:$0xf0]  ;;  %v2556_v23 = vpop.f32.mrf.mxu1 }
 0x199   :  { %v6630_v24 = vld [vmem:[#allocation2 + $0x168] sm:$0xf]  ;;  %v551_v26 = vmax.f32 %v438_v21, 0.0 }
 0x19a   :  { %v6631_v27 = vor.u32 %v8159_v22, %v6630_v24  ;;  %2764 = vmatmul.bf16.gmra.mxu2 %v6635_v18  ;;  %v8348_v18 = vld [vmem:[%s11133_s2 + $0x140] sm:$0xff] }
 0x19b   :  { %v636_v37 = vrot.slane %v551_v26, 7  ;;  %v831_v39 = vrot.slane %v551_v26, 1  ;;  %v1154_v41 = vpack.c.bf16 %v551_v26, %v551_v26  ;;  %2862 = vmatpush.bf16.msrb.mxu3 %v8348_v18 }
 0x19c   :  { %2595 = vmatmul.bf16.gmra.mxu1 %v6631_v27  ;;  %v8161_v22 = vld [vmem:[#allocation2 + $0x184] sm:$0xf] }
 0x19d   :  { %v669_v33 = vsel %vm653_vm1, %v604_v34, %v636_v37  ;;  %v701_v44 = vsel %vm653_vm1, %v636_v37, %v604_v34  ;;  %v864_v47 = vsel %vm848_vm3, %v799_v36, %v831_v39  ;;  %v896_v48 = vsel %vm848_vm3, %v831_v39, %v799_v36  ;;  %1218 = vst [vmem:[#allocation2 + $0x190] sm:$0xf] %v1154_v41  ;;  %v2725_v49 = vpop.f32.mrf.mxu2  ;;  %v6954_v41 = vld [vmem:[#allocation2 + $0x18] sm:$0xf] }
 0x19e   :  { %v748_v40 = vsel %vm587_vm0, 0.0, %v701_v44  ;;  %v944_v50 = vsel %vm783_vm2, 0.0, %v896_v48  ;;  %v1025_v38 = vpack.c.bf16 %v669_v33, %v669_v33  ;;  %v1281_v57 = vpack.c.bf16 %v864_v47, %v864_v47  ;;  %v440_v58 = vpop.f32.mrf.mxu0 }
 0x19f   :  { %v1024_v63 = vpack.c.bf16 %v748_v40, %v748_v40  ;;  %v1282_v1 = vpack.c.bf16 %v944_v50, %v944_v50  ;;  %v9480_v2 = vadd.f32 %v2725_v49, %v2556_v23  ;;  %v9482_v4 = vpop.f32.mrf.mxu3  ;;  %v441_v5 = vadd.f32 %v9199_v60, %v440_v58 }
 0x1a0   :  { %11149 = vst [vmem:[#allocation14_spill] sm:$0xff] %v9482_v4  ;;  %v2558_v9 = vpop.f32.mrf.mxu1 }
 0x1a1   :  { %1090 = vst [vmem:[#allocation2 + $0x18c] sm:$0xf] %v1025_v38  ;;  %v552_v12 = vmax.f32 %v441_v5, 0.0  ;;  %3688 = vmatmul.bf16.vlgmr.msrb.gmra.mxu0 %v6943_v43  ;;  %v8024_v43 = vld [vmem:[#allocation2 + $0x20] sm:$0xf0] }
 0x1a2   :  { %1089 = vst [vmem:[#allocation2 + $0x180] sm:$0xf] %v1024_v63  ;;  %v6955_v40 = vor.u32 %v8024_v43, %v6954_v41 }
 0x1a3   :  { %1345 = vst [vmem:[#allocation2 + $0x188] sm:$0xf] %v1281_v57  ;;  %v1155_v19 = vpack.c.bf16 %v552_v12, %v552_v12  ;;  %v605_v33 = vrot.slane %v552_v12, 7  ;;  %v800_v44 = vrot.slane %v552_v12, 1 }
 0x1a4   :  { %1346 = vst [vmem:[#allocation2 + $0x194] sm:$0xf] %v1282_v1  ;;  %2844 = vmatmul.bf16.gmra.mxu3 %v6827_v17  ;;  %v6644_v21 = vld [vmem:[#allocation2 + $0x18c] sm:$0xf0] }
 0x1a5   :  { %1219 = vst [vmem:[#allocation2 + $0x1cc] sm:$0xf] %v1155_v19  ;;  %v2727_v60 = vpop.f32.mrf.mxu2  ;;  %v6647_v26 = vor.u32 %v8161_v22, %v6644_v21  ;;  %v8209_v21 = vld [vmem:[#allocation2 + $0x334] sm:$0xf] }
 0x1a6   :  { %v9488_v23 = vadd.f32 %v2727_v60, %v2558_v9  ;;  %v442_v24 = vpop.f32.mrf.mxu0  ;;  %v6836_v60 = vld [vmem:[#allocation2 + $0x33c] sm:$0xf0] }
 0x1a7   :  { %v9490_v27 = vpop.f32.mrf.mxu3  ;;  %v443_v32 = vadd.f32 %v9495_v31, %v442_v24 }
 0x1a8   :  { %11150 = vst [vmem:[#allocation15_spill] sm:$0xff] %v9490_v27  ;;  %v8162_v34 = vld [vmem:[#allocation2 + $0x188] sm:$0xf0]  ;;  %v2561_v35 = vpop.f32.mrf.mxu1  ;;  %v8039_v27 = vld [vmem:[#allocation2 + $0x98] sm:$0xf0] }
 0x1a9   :  { %v6642_v36 = vld [vmem:[#allocation2 + $0x180] sm:$0xf]  ;;  %v553_v37 = vmax.f32 %v443_v32, 0.0 }
 0x1aa   :  { %v6643_v39 = vor.u32 %v8162_v34, %v6642_v36  ;;  %2769 = vmatmul.bf16.gmra.mxu2 %v6647_v26  ;;  %v6839_v26 = vor.u32 %v8209_v21, %v6836_v60 }
 0x1ab   :  { %v637_v47 = vrot.slane %v553_v37, 7  ;;  %v832_v48 = vrot.slane %v553_v37, 1  ;;  %v1156_v49 = vpack.c.bf16 %v553_v37, %v553_v37 }
 0x1ac   :  { %2600 = vmatmul.bf16.gmra.mxu1 %v6643_v39  ;;  %v8164_v36 = vld [vmem:[#allocation2 + $0x1cc] sm:$0xf] }
 0x1ad   :  { %v670_v50 = vsel %vm653_vm1, %v605_v33, %v637_v47  ;;  %v702_v38 = vsel %vm653_vm1, %v637_v47, %v605_v33  ;;  %v865_v57 = vsel %vm848_vm3, %v800_v44, %v832_v48  ;;  %v897_v58 = vsel %vm848_vm3, %v832_v48, %v800_v44  ;;  %1220 = vst [vmem:[#allocation2 + $0x1d8] sm:$0xf] %v1156_v49  ;;  %v2730_v59 = vpop.f32.mrf.mxu2 }
 0x1ae   :  { %v750_v63 = vsel %vm587_vm0, 0.0, %v702_v38  ;;  %v946_v1 = vsel %vm783_vm2, 0.0, %v897_v58  ;;  %v1027_v5 = vpack.c.bf16 %v670_v50, %v670_v50  ;;  %v1283_v6 = vpack.c.bf16 %v865_v57, %v865_v57  ;;  %v445_v7 = vpop.f32.mrf.mxu0  ;;  %v6966_v50 = vld [vmem:[#allocation2 + $0x30] sm:$0xf]  ;;  %v8027_v38 = vld [vmem:[#allocation2 + $0x38] sm:$0xf0] }
 0x1af   :  { %v1026_v9 = vpack.c.bf16 %v750_v63, %v750_v63  ;;  %v1284_v12 = vpack.c.bf16 %v946_v1, %v946_v1  ;;  %v9510_v17 = vadd.f32 %v2730_v59, %v2561_v35  ;;  %v9512_v18 = vpop.f32.mrf.mxu3  ;;  %v446_v19 = vadd.f32 %v9495_v31, %v445_v7 }
 0x1b0   :  { %11151 = vst [vmem:[#allocation16_spill] sm:$0xff] %v9512_v18  ;;  %v2563_v22 = vpop.f32.mrf.mxu1 }
 0x1b1   :  { %1092 = vst [vmem:[#allocation2 + $0x1d4] sm:$0xf] %v1027_v5  ;;  %v554_v24 = vmax.f32 %v446_v19, 0.0  ;;  %3693 = vmatmul.bf16.gmra.mxu0 %v6955_v40  ;;  %v6967_v5 = vor.u32 %v8027_v38, %v6966_v50  ;;  %v8328_v50 = vld [vmem:[%s11133_s2 + $0xa0] sm:$0xff] }
 0x1b2   :  { %1091 = vst [vmem:[#allocation2 + $0x1c8] sm:$0xf] %v1026_v9  ;;  %4021 = vmatpush.bf16.msrb.mxu2 %v8328_v50 }
 0x1b3   :  { %1347 = vst [vmem:[#allocation2 + $0x1d0] sm:$0xf] %v1283_v6  ;;  %v1157_v32 = vpack.c.bf16 %v554_v24, %v554_v24  ;;  %v606_v57 = vrot.slane %v554_v24, 7  ;;  %v801_v58 = vrot.slane %v554_v24, 1 }
 0x1b4   :  { %1348 = vst [vmem:[#allocation2 + $0x1dc] sm:$0xf] %v1284_v12  ;;  %2849 = vmatmul.bf16.gmra.mxu3 %v6839_v26  ;;  %v6656_v34 = vld [vmem:[#allocation2 + $0x1d4] sm:$0xf0] }
 0x1b5   :  { %1221 = vst [vmem:[#allocation2 + $0x1e4] sm:$0xf] %v1157_v32  ;;  %v2732_v35 = vpop.f32.mrf.mxu2  ;;  %v6659_v41 = vor.u32 %v8164_v36, %v6656_v34 }
 0x1b6   :  { %v9515_v37 = vadd.f32 %v2732_v35, %v2563_v22  ;;  %v447_v39 = vpop.f32.mrf.mxu0 }
 0x1b7   :  { %v9517_v43 = vpop.f32.mrf.mxu3  ;;  %v448_v33 = vadd.f32 %v9495_v31, %v447_v39 }
 0x1b8   :  { %11152 = vst [vmem:[#allocation17_spill] sm:$0xff] %v9517_v43  ;;  %v8165_v44 = vld [vmem:[#allocation2 + $0x1d0] sm:$0xf0]  ;;  %v2566_v47 = vpop.f32.mrf.mxu1 }
 0x1b9   :  { %v6654_v48 = vld [vmem:[#allocation2 + $0x1c8] sm:$0xf]  ;;  %v555_v49 = vmax.f32 %v448_v33, 0.0  ;;  %v8118_v33 = vld [vmem:[#allocation2 + $0x28] sm:$0xf0] }
 0x1ba   :  { %v6655_v40 = vor.u32 %v8165_v44, %v6654_v48  ;;  %2774 = vmatmul.bf16.gmra.mxu2 %v6659_v41  ;;  %v6470_v41 = vld [vmem:[#allocation2 + $0x20] sm:$0xf] }
 0x1bb   :  { %v638_v59 = vrot.slane %v555_v49, 7  ;;  %v833_v63 = vrot.slane %v555_v49, 1  ;;  %v1158_v1 = vpack.c.bf16 %v555_v49, %v555_v49  ;;  %v6471_v49 = vor.u32 %v8118_v33, %v6470_v41 }
 0x1bc   :  { %2605 = vmatmul.bf16.gmra.mxu1 %v6655_v40 }
 0x1bd   :  { %v671_v6 = vsel %vm653_vm1, %v606_v57, %v638_v59  ;;  %v703_v7 = vsel %vm653_vm1, %v638_v59, %v606_v57  ;;  %v866_v9 = vsel %vm848_vm3, %v801_v58, %v833_v63  ;;  %v898_v12 = vsel %vm848_vm3, %v833_v63, %v801_v58  ;;  %1222 = vst [vmem:[#allocation2 + $0x1f0] sm:$0xf] %v1158_v1  ;;  %v2735_v19 = vpop.f32.mrf.mxu2  ;;  %v8167_v58 = vld [vmem:[#allocation2 + $0x1e4] sm:$0xf] }
 0x1be   :  { %v752_v21 = vsel %vm587_vm0, 0.0, %v703_v7  ;;  %v948_v60 = vsel %vm783_vm2, 0.0, %v898_v12  ;;  %v1029_v22 = vpack.c.bf16 %v671_v6, %v671_v6  ;;  %v1285_v24 = vpack.c.bf16 %v866_v9, %v866_v9  ;;  %v450_v26 = vpop.f32.mrf.mxu0 }
 0x1bf   :  { %v1028_v32 = vpack.c.bf16 %v752_v21, %v752_v21  ;;  %v1286_v34 = vpack.c.bf16 %v948_v60, %v948_v60  ;;  %v9532_v35 = vadd.f32 %v2735_v19, %v2566_v47  ;;  %v9534_v36 = vpop.f32.mrf.mxu3  ;;  %v451_v39 = vadd.f32 %v9495_v31, %v450_v26  ;;  %v8317_v47 = vld [vmem:[%s11133_s2 + $0x48] sm:$0xff] }
 0x1c0   :  { %11153 = vst [vmem:[#allocation18_spill] sm:$0xff] %v9534_v36  ;;  %v2568_v44 = vpop.f32.mrf.mxu1  ;;  %3855 = vmatpush.bf16.msrb.mxu1 %v8317_v47  ;;  %v6978_v60 = vld [vmem:[#allocation2 + $0x48] sm:$0xf] }
 0x1c1   :  { %1094 = vst [vmem:[#allocation2 + $0x1ec] sm:$0xf] %v1029_v22  ;;  %v556_v48 = vmax.f32 %v451_v39, 0.0  ;;  %3698 = vmatmul.bf16.gmra.mxu0 %v6967_v5  ;;  %v8030_v22 = vld [vmem:[#allocation2 + $0x50] sm:$0xf0] }
 0x1c2   :  { %1093 = vst [vmem:[#allocation2 + $0x1e0] sm:$0xf] %v1028_v32  ;;  %v6979_v41 = vor.u32 %v8030_v22, %v6978_v60 }
 0x1c3   :  { %1349 = vst [vmem:[#allocation2 + $0x1e8] sm:$0xf] %v1285_v24  ;;  %v1159_v40 = vpack.c.bf16 %v556_v48, %v556_v48  ;;  %v607_v24 = vrot.slane %v556_v48, 7  ;;  %v802_v26 = vrot.slane %v556_v48, 1 }
 0x1c4   :  { %1350 = vst [vmem:[#allocation2 + $0x1f4] sm:$0xf] %v1286_v34  ;;  %2863 = vmatmul.bf16.vlgmr.msrb.gmra.mxu3 %v6471_v49  ;;  %v6668_v38 = vld [vmem:[#allocation2 + $0x1ec] sm:$0xf0] }
 0x1c5   :  { %1223 = vst [vmem:[#allocation2 + $0x1fc] sm:$0xf] %v1159_v40  ;;  %v2737_v57 = vpop.f32.mrf.mxu2  ;;  %v6671_v1 = vor.u32 %v8167_v58, %v6668_v38 }
 0x1c6   :  { %v9543_v59 = vadd.f32 %v2737_v57, %v2568_v44  ;;  %v452_v63 = vpop.f32.mrf.mxu0 }
 0x1c7   :  { %v9545_v5 = vpop.f32.mrf.mxu3  ;;  %v453_v6 = vadd.f32 %v9495_v31, %v452_v63 }
 0x1c8   :  { %11154 = vst [vmem:[#allocation19_spill] sm:$0xff] %v9545_v5  ;;  %v8168_v7 = vld [vmem:[#allocation2 + $0x1e8] sm:$0xf0]  ;;  %v2571_v9 = vpop.f32.mrf.mxu1  ;;  %v6614_v5 = vld [vmem:[#allocation2 + $0x140] sm:$0xf] }
 0x1c9   :  { %v6666_v12 = vld [vmem:[#allocation2 + $0x1e0] sm:$0xf]  ;;  %v557_v19 = vmax.f32 %v453_v6, 0.0 }
 0x1ca   :  { %v6667_v21 = vor.u32 %v8168_v7, %v6666_v12  ;;  %2779 = vmatmul.bf16.gmra.mxu2 %v6671_v1 }
 0x1cb   :  { %v639_v32 = vrot.slane %v557_v19, 7  ;;  %v834_v34 = vrot.slane %v557_v19, 1  ;;  %v1160_v39 = vpack.c.bf16 %v557_v19, %v557_v19  ;;  %v6482_v19 = vld [vmem:[#allocation2 + $0x38] sm:$0xf] }
 0x1cc   :  { %2610 = vmatmul.bf16.gmra.mxu1 %v6667_v21  ;;  %v8121_v21 = vld [vmem:[#allocation2 + $0x40] sm:$0xf0] }
 0x1cd   :  { %v672_v33 = vsel %vm653_vm1, %v607_v24, %v639_v32  ;;  %v704_v44 = vsel %vm653_vm1, %v639_v32, %v607_v24  ;;  %v867_v49 = vsel %vm848_vm3, %v802_v26, %v834_v34  ;;  %v899_v40 = vsel %vm848_vm3, %v834_v34, %v802_v26  ;;  %1224 = vst [vmem:[#allocation2 + $0x208] sm:$0xf] %v1160_v39  ;;  %v2740_v47 = vpop.f32.mrf.mxu2  ;;  %v8170_v34 = vld [vmem:[#allocation2 + $0x1fc] sm:$0xf] }
 0x1ce   :  { %v754_v48 = vsel %vm587_vm0, 0.0, %v704_v44  ;;  %v950_v50 = vsel %vm783_vm2, 0.0, %v899_v40  ;;  %v1031_v38 = vpack.c.bf16 %v672_v33, %v672_v33  ;;  %v1287_v57 = vpack.c.bf16 %v867_v49, %v867_v49  ;;  %v455_v58 = vpop.f32.mrf.mxu0 }
 0x1cf   :  { %v1030_v63 = vpack.c.bf16 %v754_v48, %v754_v48  ;;  %v1288_v1 = vpack.c.bf16 %v950_v50, %v950_v50  ;;  %v9560_v6 = vadd.f32 %v2740_v47, %v2571_v9  ;;  %v9562_v7 = vpop.f32.mrf.mxu3  ;;  %v456_v12 = vadd.f32 %v9495_v31, %v455_v58  ;;  %v8033_v58 = vld [vmem:[#allocation2 + $0x68] sm:$0xf0] }
 0x1d0   :  { %11155 = vst [vmem:[#allocation20_spill] sm:$0xff] %v9562_v7  ;;  %v2573_v60 = vpop.f32.mrf.mxu1  ;;  %v6483_v24 = vor.u32 %v8121_v21, %v6482_v19 }
 0x1d1   :  { %1096 = vst [vmem:[#allocation2 + $0x204] sm:$0xf] %v1031_v38  ;;  %v558_v22 = vmax.f32 %v456_v12, 0.0  ;;  %3703 = vmatmul.bf16.gmra.mxu0 %v6979_v41 }
 0x1d2   :  { %1095 = vst [vmem:[#allocation2 + $0x1f8] sm:$0xf] %v1030_v63 }
 0x1d3   :  { %1351 = vst [vmem:[#allocation2 + $0x200] sm:$0xf] %v1287_v57  ;;  %v1161_v26 = vpack.c.bf16 %v558_v22, %v558_v22  ;;  %v6990_v57 = vld [vmem:[#allocation2 + $0x60] sm:$0xf]  ;;  %v608_v63 = vrot.slane %v558_v22, 7 }
 0x1d4   :  { %1352 = vst [vmem:[#allocation2 + $0x20c] sm:$0xf] %v1288_v1  ;;  %2868 = vmatmul.bf16.gmra.mxu3 %v6483_v24  ;;  %v6680_v32 = vld [vmem:[#allocation2 + $0x204] sm:$0xf0]  ;;  %v803_v1 = vrot.slane %v558_v22, 1 }
 0x1d5   :  { %1225 = vst [vmem:[#allocation2 + $0x214] sm:$0xf] %v1161_v26  ;;  %v2742_v9 = vpop.f32.mrf.mxu2  ;;  %v6683_v44 = vor.u32 %v8170_v34, %v6680_v32 }
 0x1d6   :  { %v9565_v39 = vadd.f32 %v2742_v9, %v2573_v60  ;;  %v457_v33 = vpop.f32.mrf.mxu0  ;;  %v6991_v60 = vor.u32 %v8033_v58, %v6990_v57 }
 0x1d7   :  { %v9567_v49 = vpop.f32.mrf.mxu3  ;;  %v458_v40 = vadd.f32 %v9495_v31, %v457_v33 }
 0x1d8   :  { %11156 = vst [vmem:[#allocation21_spill] sm:$0xff] %v9567_v49  ;;  %v8171_v47 = vld [vmem:[#allocation2 + $0x200] sm:$0xf0] }
 0x1d9   :  { %v2576_v48 = vpop.f32.mrf.mxu1  ;;  %v6678_v41 = vld [vmem:[#allocation2 + $0x1f8] sm:$0xf]  ;;  %v559_v50 = vmax.f32 %v458_v40, 0.0 }
 0x1da   :  { %v6679_v38 = vor.u32 %v8171_v47, %v6678_v41  ;;  %2784 = vmatmul.bf16.gmra.mxu2 %v6683_v44 }
 0x1db   :  { %v640_v12 = vrot.slane %v559_v50, 7  ;;  %v835_v19 = vrot.slane %v559_v50, 1  ;;  %v1162_v21 = vpack.c.bf16 %v559_v50, %v559_v50 }
 0x1dc   :  { %2615 = vmatmul.bf16.gmra.mxu1 %v6679_v38 }
 0x1dd   :  { %v673_v24 = vsel %vm653_vm1, %v608_v63, %v640_v12  ;;  %v705_v26 = vsel %vm653_vm1, %v640_v12, %v608_v63  ;;  %v868_v32 = vsel %vm848_vm3, %v803_v1, %v835_v19  ;;  %v900_v9 = vsel %vm848_vm3, %v835_v19, %v803_v1  ;;  %1226 = vst [vmem:[#allocation2 + $0x220] sm:$0xf] %v1162_v21  ;;  %v2745_v34 = vpop.f32.mrf.mxu2  ;;  %v6494_v63 = vld [vmem:[#allocation2 + $0x50] sm:$0xf]  ;;  %v8124_v1 = vld [vmem:[#allocation2 + $0x58] sm:$0xf0] }
 0x1de   :  { %v756_v22 = vsel %vm587_vm0, 0.0, %v705_v26  ;;  %v952_v33 = vsel %vm783_vm2, 0.0, %v900_v9  ;;  %v1033_v44 = vpack.c.bf16 %v673_v24, %v673_v24  ;;  %v1289_v40 = vpack.c.bf16 %v868_v32, %v868_v32  ;;  %v460_v47 = vpop.f32.mrf.mxu0  ;;  %v8173_v32 = vld [vmem:[#allocation2 + $0x214] sm:$0xf] }
 0x1df   :  { %v1032_v41 = vpack.c.bf16 %v756_v22, %v756_v22  ;;  %v1290_v50 = vpack.c.bf16 %v952_v33, %v952_v33  ;;  %v9582_v38 = vadd.f32 %v2745_v34, %v2576_v48  ;;  %v9584_v57 = vpop.f32.mrf.mxu3  ;;  %v461_v58 = vadd.f32 %v9495_v31, %v460_v47 }
 0x1e0   :  { %11157 = vst [vmem:[#allocation22_spill] sm:$0xff] %v9584_v57  ;;  %v6495_v21 = vor.u32 %v8124_v1, %v6494_v63  ;;  %v8036_v63 = vld [vmem:[#allocation2 + $0x80] sm:$0xf0] }
 0x1e1   :  { %1098 = vst [vmem:[#allocation2 + $0x21c] sm:$0xf] %v1033_v44  ;;  %v2578_v12 = vpop.f32.mrf.mxu1  ;;  %v560_v19 = vmax.f32 %v461_v58, 0.0  ;;  %3708 = vmatmul.bf16.gmra.mxu0 %v6991_v60 }
 0x1e2   :  { %1097 = vst [vmem:[#allocation2 + $0x210] sm:$0xf] %v1032_v41 }
 0x1e3   :  { %1353 = vst [vmem:[#allocation2 + $0x218] sm:$0xf] %v1289_v40  ;;  %v1163_v24 = vpack.c.bf16 %v560_v19, %v560_v19  ;;  %v609_v1 = vrot.slane %v560_v19, 7 }
 0x1e4   :  { %1354 = vst [vmem:[#allocation2 + $0x224] sm:$0xf] %v1290_v50  ;;  %2873 = vmatmul.bf16.gmra.mxu3 %v6495_v21  ;;  %v6692_v26 = vld [vmem:[#allocation2 + $0x21c] sm:$0xf0]  ;;  %v7002_v50 = vld [vmem:[#allocation2 + $0x78] sm:$0xf] }
 0x1e5   :  { %1227 = vst [vmem:[#allocation2 + $0x22c] sm:$0xf] %v1163_v24  ;;  %v2747_v48 = vpop.f32.mrf.mxu2  ;;  %v6695_v22 = vor.u32 %v8173_v32, %v6692_v26  ;;  %v804_v21 = vrot.slane %v560_v19, 1 }
 0x1e6   :  { %v9587_v9 = vadd.f32 %v2747_v48, %v2578_v12  ;;  %v462_v34 = vpop.f32.mrf.mxu0  ;;  %v7003_v48 = vor.u32 %v8036_v63, %v7002_v50 }
 0x1e7   :  { %v9589_v33 = vpop.f32.mrf.mxu3  ;;  %v463_v44 = vadd.f32 %v9495_v31, %v462_v34 }
 0x1e8   :  { %11158 = vst [vmem:[#allocation23_spill] sm:$0xff] %v9589_v33  ;;  %v8174_v47 = vld [vmem:[#allocation2 + $0x218] sm:$0xf0] }
 0x1e9   :  { %v2581_v41 = vpop.f32.mrf.mxu1  ;;  %v6690_v60 = vld [vmem:[#allocation2 + $0x210] sm:$0xf]  ;;  %v561_v40 = vmax.f32 %v463_v44, 0.0 }
 0x1ea   :  { %v6691_v58 = vor.u32 %v8174_v47, %v6690_v60  ;;  %2789 = vmatmul.bf16.gmra.mxu2 %v6695_v22 }
 0x1eb   :  { %v641_v24 = vrot.slane %v561_v40, 7  ;;  %v836_v36 = vrot.slane %v561_v40, 1  ;;  %v1164_v12 = vpack.c.bf16 %v561_v40, %v561_v40 }
 0x1ec   :  { %2620 = vmatmul.bf16.gmra.mxu1 %v6691_v58 }
 0x1ed   :  { %v674_v26 = vsel %vm653_vm1, %v609_v1, %v641_v24  ;;  %v706_v32 = vsel %vm653_vm1, %v641_v24, %v609_v1  ;;  %v869_v34 = vsel %vm848_vm3, %v804_v21, %v836_v36  ;;  %v901_v44 = vsel %vm848_vm3, %v836_v36, %v804_v21  ;;  %1228 = vst [vmem:[#allocation2 + $0x238] sm:$0xf] %v1164_v12  ;;  %v2750_v22 = vpop.f32.mrf.mxu2  ;;  %v6506_v36 = vld [vmem:[#allocation2 + $0x68] sm:$0xf]  ;;  %v8127_v21 = vld [vmem:[#allocation2 + $0x70] sm:$0xf0] }
 0x1ee   :  { %v758_v19 = vsel %vm587_vm0, 0.0, %v706_v32  ;;  %v954_v47 = vsel %vm783_vm2, 0.0, %v901_v44  ;;  %v1035_v60 = vpack.c.bf16 %v674_v26, %v674_v26  ;;  %v1291_v40 = vpack.c.bf16 %v869_v34, %v869_v34  ;;  %v465_v58 = vpop.f32.mrf.mxu0  ;;  %v8327_v34 = vld [vmem:[%s11133_s2 + $0x98] sm:$0xff] }
 0x1ef   :  { %v1034_v50 = vpack.c.bf16 %v758_v19, %v758_v19  ;;  %v1292_v63 = vpack.c.bf16 %v954_v47, %v954_v47  ;;  %v9604_v1 = vadd.f32 %v2750_v22, %v2581_v41  ;;  %v9606_v24 = vpop.f32.mrf.mxu3  ;;  %v466_v43 = vadd.f32 %v9495_v31, %v465_v58  ;;  %v8316_v41 = vld [vmem:[%s11133_s2 + $0x40] sm:$0xff]  ;;  %v8176_v47 = vld [vmem:[#allocation2 + $0x22c] sm:$0xf]  ;;  %4022 = vmatpush.bf16.msrb.mxu2 %v8327_v34 }
 0x1f0   :  { %11159 = vst [vmem:[#allocation24_spill] sm:$0xff] %v9606_v24  ;;  %v6507_v44 = vor.u32 %v8127_v21, %v6506_v36  ;;  %3856 = vmatpush.bf16.msrb.mxu1 %v8316_v41 }
 0x1f1   :  { %1100 = vst [vmem:[#allocation2 + $0x234] sm:$0xf] %v1035_v60  ;;  %v2583_v12 = vpop.f32.mrf.mxu1  ;;  %v562_v32 = vmax.f32 %v466_v43, 0.0  ;;  %3713 = vmatmul.bf16.gmra.mxu0 %v7003_v48 }
 0x1f2   :  { %1099 = vst [vmem:[#allocation2 + $0x228] sm:$0xf] %v1034_v50 }
 0x1f3   :  { %1355 = vst [vmem:[#allocation2 + $0x230] sm:$0xf] %v1291_v40  ;;  %v1165_v26 = vpack.c.bf16 %v562_v32, %v562_v32  ;;  %v805_v4 = vrot.slane %v562_v32, 1 }
 0x1f4   :  { %1356 = vst [vmem:[#allocation2 + $0x23c] sm:$0xf] %v1292_v63  ;;  %2878 = vmatmul.bf16.gmra.mxu3 %v6507_v44  ;;  %v6704_v22 = vld [vmem:[#allocation2 + $0x234] sm:$0xf0]  ;;  %v7014_v44 = vld [vmem:[#allocation2 + $0x90] sm:$0xf]  ;;  %5230 = vmatpush.bf16.msra.mxu1 %v8379_v46 }
 0x1f5   :  { %1229 = vst [vmem:[#allocation2 + $0x244] sm:$0xf] %v1165_v26  ;;  %v2752_v19 = vpop.f32.mrf.mxu2  ;;  %v6707_v60 = vor.u32 %v8176_v47, %v6704_v22  ;;  %v610_v26 = vrot.slane %v562_v32, 7  ;;  %v6554_v46 = vld [vmem:[#allocation2 + $0xc8] sm:$0xf] }
 0x1f6   :  { %v9615_v43 = vadd.f32 %v2752_v19, %v2583_v12  ;;  %v467_v48 = vpop.f32.mrf.mxu0  ;;  %v7015_v19 = vor.u32 %v8039_v27, %v7014_v44 }
 0x1f7   :  { %v9617_v40 = vpop.f32.mrf.mxu3  ;;  %v468_v58 = vadd.f32 %v9495_v31, %v467_v48 }
 0x1f8   :  { %11160 = vst [vmem:[#allocation25_spill] sm:$0xff] %v9617_v40  ;;  %v8177_v50 = vld [vmem:[#allocation2 + $0x230] sm:$0xf0]  ;;  %v6542_v40 = vld [vmem:[#allocation2 + $0xb0] sm:$0xf] }
 0x1f9   :  { %v2586_v63 = vpop.f32.mrf.mxu1  ;;  %v6702_v36 = vld [vmem:[#allocation2 + $0x228] sm:$0xf]  ;;  %v563_v21 = vmax.f32 %v468_v58, 0.0 }
 0x1fa   :  { %v6703_v18 = vor.u32 %v8177_v50, %v6702_v36  ;;  %2794 = vmatmul.bf16.gmra.mxu2 %v6707_v60 }
 0x1fb   :  { %v642_v41 = vrot.slane %v563_v21, 7  ;;  %v837_v34 = vrot.slane %v563_v21, 1  ;;  %v1166_v12 = vpack.c.bf16 %v563_v21, %v563_v21 }
 0x1fc   :  { %2625 = vmatmul.bf16.gmra.mxu1 %v6703_v18 }
 0x1fd   :  { %v675_v22 = vsel %vm653_vm1, %v610_v26, %v642_v41  ;;  %v707_v47 = vsel %vm653_vm1, %v642_v41, %v610_v26  ;;  %v870_v48 = vsel %vm848_vm3, %v805_v4, %v837_v34  ;;  %v902_v58 = vsel %vm848_vm3, %v837_v34, %v805_v4  ;;  %1230 = vst [vmem:[#allocation2 + $0x250] sm:$0xf] %v1166_v12  ;;  %v2755_v60 = vpop.f32.mrf.mxu2  ;;  %v6518_v4 = vld [vmem:[#allocation2 + $0x80] sm:$0xf]  ;;  %v8130_v34 = vld [vmem:[#allocation2 + $0x88] sm:$0xf0] }
 0x1fe   :  { %v760_v32 = vsel %vm587_vm0, 0.0, %v707_v47  ;;  %v956_v27 = vsel %vm783_vm2, 0.0, %v902_v58  ;;  %v1037_v18 = vpack.c.bf16 %v675_v22, %v675_v22  ;;  %v1293_v50 = vpack.c.bf16 %v870_v48, %v870_v48  ;;  %v470_v36 = vpop.f32.mrf.mxu0 }
 0x1ff   :  { %v1036_v21 = vpack.c.bf16 %v760_v32, %v760_v32  ;;  %v1294_v44 = vpack.c.bf16 %v956_v27, %v956_v27  ;;  %v9632_v26 = vadd.f32 %v2755_v60, %v2586_v63  ;;  %v9634_v41 = vpop.f32.mrf.mxu3  ;;  %v471_v20 = vadd.f32 %v9495_v31, %v470_v36  ;;  %v8179_v60 = vld [vmem:[#allocation2 + $0x244] sm:$0xf] }
 0x200   :  { %11161 = vst [vmem:[#allocation26_spill] sm:$0xff] %v9634_v41  ;;  %v6519_v58 = vor.u32 %v8130_v34, %v6518_v4  ;;  %v8042_v34 = vld [vmem:[#allocation2 + $0xb0] sm:$0xf0] }
 0x201   :  { %1102 = vst [vmem:[#allocation2 + $0x24c] sm:$0xf] %v1037_v18  ;;  %v2588_v12 = vpop.f32.mrf.mxu1  ;;  %v564_v47 = vmax.f32 %v471_v20, 0.0  ;;  %3718 = vmatmul.bf16.gmra.mxu0 %v7015_v19 }
 0x202   :  { %1101 = vst [vmem:[#allocation2 + $0x240] sm:$0xf] %v1036_v21 }
 0x203   :  { %1357 = vst [vmem:[#allocation2 + $0x248] sm:$0xf] %v1293_v50  ;;  %v1167_v22 = vpack.c.bf16 %v564_v47, %v564_v47 }
 0x204   :  { %1358 = vst [vmem:[#allocation2 + $0x254] sm:$0xf] %v1294_v44  ;;  %2883 = vmatmul.bf16.gmra.mxu3 %v6519_v58  ;;  %v6716_v48 = vld [vmem:[#allocation2 + $0x24c] sm:$0xf0]  ;;  %v7026_v44 = vld [vmem:[#allocation2 + $0xa8] sm:$0xf] }
 0x205   :  { %1231 = vst [vmem:[#allocation2 + $0x25c] sm:$0xf] %v1167_v22  ;;  %v2757_v63 = vpop.f32.mrf.mxu2  ;;  %v6719_v36 = vor.u32 %v8179_v60, %v6716_v48  ;;  %v611_v58 = vrot.slane %v564_v47, 7  ;;  %v806_v22 = vrot.slane %v564_v47, 1 }
 0x206   :  { %v9637_v32 = vadd.f32 %v2757_v63, %v2588_v12  ;;  %v472_v27 = vpop.f32.mrf.mxu0  ;;  %v7027_v63 = vor.u32 %v8042_v34, %v7026_v44 }
 0x207   :  { %v9639_v56 = vpop.f32.mrf.mxu3  ;;  %v473_v18 = vadd.f32 %v9495_v31, %v472_v27 }
 0x208   :  { %11162 = vst [vmem:[#allocation27_spill] sm:$0xff] %v9639_v56  ;;  %v8180_v21 = vld [vmem:[#allocation2 + $0x248] sm:$0xf0] }
 0x209   :  { %v2591_v20 = vpop.f32.mrf.mxu1  ;;  %v6714_v19 = vld [vmem:[#allocation2 + $0x240] sm:$0xf]  ;;  %v565_v50 = vmax.f32 %v473_v18, 0.0 }
 0x20a   :  { %v6715_v4 = vor.u32 %v8180_v21, %v6714_v19  ;;  %2799 = vmatmul.bf16.gmra.mxu2 %v6719_v36 }
 0x20b   :  { %v643_v14 = vrot.slane %v565_v50, 7  ;;  %v838_v41 = vrot.slane %v565_v50, 1  ;;  %v1168_v12 = vpack.c.bf16 %v565_v50, %v565_v50 }
 0x20c   :  { %2630 = vmatmul.bf16.gmra.mxu1 %v6715_v4 }
 0x20d   :  { %v676_v48 = vsel %vm653_vm1, %v611_v58, %v643_v14  ;;  %v708_v60 = vsel %vm653_vm1, %v643_v14, %v611_v58  ;;  %v871_v27 = vsel %vm848_vm3, %v806_v22, %v838_v41  ;;  %v903_v18 = vsel %vm848_vm3, %v838_v41, %v806_v22  ;;  %1232 = vst [vmem:[#allocation2 + $0x268] sm:$0xf] %v1168_v12  ;;  %v2760_v36 = vpop.f32.mrf.mxu2  ;;  %v6530_v41 = vld [vmem:[#allocation2 + $0x98] sm:$0xf]  ;;  %v8133_v22 = vld [vmem:[#allocation2 + $0xa0] sm:$0xf0] }
 0x20e   :  { %v762_v47 = vsel %vm587_vm0, 0.0, %v708_v60  ;;  %v958_v21 = vsel %vm783_vm2, 0.0, %v903_v18  ;;  %v1039_v19 = vpack.c.bf16 %v676_v48, %v676_v48  ;;  %v1295_v50 = vpack.c.bf16 %v871_v27, %v871_v27  ;;  %v475_v4 = vpop.f32.mrf.mxu0  ;;  %v8326_v60 = vld [vmem:[%s11133_s2 + $0x90] sm:$0xff] }
 0x20f   :  { %v1038_v44 = vpack.c.bf16 %v762_v47, %v762_v47  ;;  %v1296_v34 = vpack.c.bf16 %v958_v21, %v958_v21  ;;  %v9654_v14 = vadd.f32 %v2760_v36, %v2591_v20  ;;  %v9656_v58 = vpop.f32.mrf.mxu3  ;;  %v476_v56 = vadd.f32 %v9495_v31, %v475_v4  ;;  %4023 = vmatpush.bf16.msrb.mxu2 %v8326_v60  ;;  %v8325_v20 = vld [vmem:[%s11133_s2 + $0x88] sm:$0xff]  ;;  %v8182_v21 = vld [vmem:[#allocation2 + $0x25c] sm:$0xf] }
 0x210   :  { %11163 = vst [vmem:[#allocation28_spill] sm:$0xff] %v9656_v58  ;;  %v6531_v27 = vor.u32 %v8133_v22, %v6530_v41 }
 0x211   :  { %1104 = vst [vmem:[#allocation2 + $0x264] sm:$0xf] %v1039_v19  ;;  %v2593_v12 = vpop.f32.mrf.mxu1  ;;  %v566_v48 = vmax.f32 %v476_v56, 0.0  ;;  %3723 = vmatmul.bf16.gmra.mxu0 %v7027_v63  ;;  %v8363_v56 = vld [vmem:[%s11133_s2 + $0x1b8] sm:$0xff] }
 0x212   :  { %1103 = vst [vmem:[#allocation2 + $0x258] sm:$0xf] %v1038_v44  ;;  %4892 = vmatpush.bf16.msra.mxu3 %v8363_v56  ;;  %v8045_v56 = vld [vmem:[#allocation2 + $0xc8] sm:$0xf0] }
 0x213   :  { %1359 = vst [vmem:[#allocation2 + $0x260] sm:$0xf] %v1295_v50  ;;  %v1169_v18 = vpack.c.bf16 %v566_v48, %v566_v48  ;;  %4024 = vmatpush.bf16.msrb.mxu2 %v8325_v20  ;;  %v8371_v20 = vld [vmem:[%s11133_s2 + $0x1f8] sm:$0xff] }
 0x214   :  { %1360 = vst [vmem:[#allocation2 + $0x26c] sm:$0xf] %v1296_v34  ;;  %2888 = vmatmul.bf16.gmra.mxu3 %v6531_v27  ;;  %v6728_v36 = vld [vmem:[#allocation2 + $0x264] sm:$0xf0]  ;;  %5061 = vmatpush.bf16.msra.mxu0 %v8371_v20 }
 0x215   :  { %1233 = vst [vmem:[#allocation2 + $0x274] sm:$0xf] %v1169_v18  ;;  %v2762_v47 = vpop.f32.mrf.mxu2  ;;  %v6731_v44 = vor.u32 %v8182_v21, %v6728_v36  ;;  %v612_v18 = vrot.slane %v566_v48, 7  ;;  %v807_v36 = vrot.slane %v566_v48, 1 }
 0x216   :  { %v9665_v19 = vadd.f32 %v2762_v47, %v2593_v12  ;;  %v477_v4 = vpop.f32.mrf.mxu0  ;;  %v8324_v12 = vld [vmem:[%s11133_s2 + $0x80] sm:$0xff] }
 0x217   :  { %v9670_v63 = vpop.f32.mrf.mxu3  ;;  %v478_v50 = vadd.f32 %v9495_v31, %v477_v4  ;;  %4025 = vmatpush.bf16.msrb.mxu2 %v8324_v12  ;;  %v7038_v4 = vld [vmem:[#allocation2 + $0xc0] sm:$0xf] }
 0x218   :  { %11164 = vst [vmem:[#allocation29_spill] sm:$0xff] %v9670_v63  ;;  %v8183_v34 = vld [vmem:[#allocation2 + $0x260] sm:$0xf0] }
 0x219   :  { %v2596_v41 = vpop.f32.mrf.mxu1  ;;  %v6726_v22 = vld [vmem:[#allocation2 + $0x258] sm:$0xf]  ;;  %v567_v60 = vmax.f32 %v478_v50, 0.0 }
 0x21a   :  { %v6727_v27 = vor.u32 %v8183_v34, %v6726_v22  ;;  %2804 = vmatmul.bf16.gmra.mxu2 %v6731_v44 }
 0x21b   :  { %v644_v47 = vrot.slane %v567_v60, 7  ;;  %v839_v21 = vrot.slane %v567_v60, 1  ;;  %v1170_v31 = vpack.c.bf16 %v567_v60, %v567_v60 }
 0x21c   :  { %2635 = vmatmul.bf16.gmra.mxu1 %v6727_v27 }
 0x21d   :  { %v677_v63 = vsel %vm653_vm1, %v612_v18, %v644_v47  ;;  %v709_v50 = vsel %vm653_vm1, %v644_v47, %v612_v18  ;;  %v872_v44 = vsel %vm848_vm3, %v807_v36, %v839_v21  ;;  %v904_v48 = vsel %vm848_vm3, %v839_v21, %v807_v36  ;;  %1234 = vst [vmem:[#allocation2 + $0x280] sm:$0xf] %v1170_v31  ;;  %v2765_v34 = vpop.f32.mrf.mxu2  ;;  %v8136_v36 = vld [vmem:[#allocation2 + $0xb8] sm:$0xf0] }
 0x21e   :  { %v764_v22 = vsel %vm587_vm0, 0.0, %v709_v50  ;;  %v960_v12 = vsel %vm783_vm2, 0.0, %v904_v48  ;;  %v1041_v60 = vpack.c.bf16 %v677_v63, %v677_v63  ;;  %v1297_v27 = vpack.c.bf16 %v872_v44, %v872_v44  ;;  %v9691_v20 = vpop.f32.mrf.mxu0  ;;  %v8185_v50 = vld [vmem:[#allocation2 + $0x274] sm:$0xf] }
 0x21f   :  { %v1040_v58 = vpack.c.bf16 %v764_v22, %v764_v22  ;;  %v1298_v18 = vpack.c.bf16 %v960_v12, %v960_v12  ;;  %v9693_v47 = vadd.f32 %v2765_v34, %v2596_v41  ;;  %v9695_v55 = vpop.f32.mrf.mxu3  ;;  %v7039_v21 = vor.u32 %v8045_v56, %v7038_v4 }
 0x220   :  { %11165 = vst [vmem:[#allocation30_spill] sm:$0xff] %v9695_v55  ;;  %v6543_v63 = vor.u32 %v8136_v36, %v6542_v40  ;;  %v8048_v40 = vld [vmem:[#allocation2 + $0xe0] sm:$0xf0] }
 0x221   :  { %1106 = vst [vmem:[#allocation2 + $0x27c] sm:$0xf] %v1041_v60  ;;  %v2598_v53 = vpop.f32.mrf.mxu1  ;;  %3728 = vmatmul.bf16.gmra.mxu0 %v7039_v21  ;;  %v7050_v60 = vld [vmem:[#allocation2 + $0xd8] sm:$0xf] }
 0x222   :  { %1105 = vst [vmem:[#allocation2 + $0x270] sm:$0xf] %v1040_v58 }
 0x223   :  { %1361 = vst [vmem:[#allocation2 + $0x278] sm:$0xf] %v1297_v27 }
 0x224   :  { %1362 = vst [vmem:[#allocation2 + $0x284] sm:$0xf] %v1298_v18  ;;  %2893 = vmatmul.bf16.gmra.mxu3 %v6543_v63  ;;  %v6740_v41 = vld [vmem:[#allocation2 + $0x27c] sm:$0xf0]  ;;  %v7051_v63 = vor.u32 %v8048_v40, %v7050_v60  ;;  %v7062_v60 = vld [vmem:[#allocation2 + $0xf0] sm:$0xf] }
 0x225   :  { %v2767_v31 = vpop.f32.mrf.mxu2  ;;  %v6743_v4 = vor.u32 %v8185_v50, %v6740_v41  ;;  %v6950_v50 = vld [vmem:[#allocation2 + $0x8] sm:$0xf]  ;;  %v8051_v40 = vld [vmem:[#allocation2 + $0xf8] sm:$0xf0] }
 0x226   :  { %v9700_v44 = vadd.f32 %v2767_v31, %v2598_v53  ;;  %v9702_v48 = vpop.f32.mrf.mxu0  ;;  %v8139_v53 = vld [vmem:[#allocation2 + $0xd0] sm:$0xf0]  ;;  %v7063_v24 = vor.u32 %v8051_v40, %v7062_v60  ;;  %v7074_v60 = vld [vmem:[#allocation2 + $0x108] sm:$0xf] }
 0x227   :  { %v9704_v56 = vpop.f32.mrf.mxu3  ;;  %v6555_v31 = vor.u32 %v8139_v53, %v6554_v46  ;;  %v8054_v40 = vld [vmem:[#allocation2 + $0x110] sm:$0xf0] }
 0x228   :  { %11166 = vst [vmem:[#allocation31_spill] sm:$0xff] %v9704_v56  ;;  %v8186_v34 = vld [vmem:[#allocation2 + $0x278] sm:$0xf0]  ;;  %v8022_v56 = vld [vmem:[#allocation2 + $0x10] sm:$0xf0] }
 0x229   :  { %v2601_v22 = vpop.f32.mrf.mxu1  ;;  %v6738_v12 = vld [vmem:[#allocation2 + $0x270] sm:$0xf] }
 0x22a   :  { %v6739_v58 = vor.u32 %v8186_v34, %v6738_v12  ;;  %2809 = vmatmul.bf16.gmra.mxu2 %v6743_v4  ;;  %v8020_v4 = vld [vmem:[#allocation2 + $0x4] sm:$0xf]  ;;  %v6944_v34 = vld [vmem:[#allocation2 + $0xc] sm:$0xf0] }
 0x22c   :  { %2640 = vmatmul.bf16.gmra.mxu1 %v6739_v58 }
 0x22d   :  { %v2770_v27 = vpop.f32.mrf.mxu2 }
 0x22e   :  { %v9706_v18 = vadd.f32 %v2770_v27, %v2601_v22  ;;  %v9708_v36 = vpop.f32.mrf.mxu0  ;;  %v6951_v27 = vor.u32 %v8022_v56, %v6950_v50 }
 0x22f   :  { %v9710_v21 = vpop.f32.mrf.mxu3 }
 0x230   :  { %11167 = vst [vmem:[#allocation32_spill] sm:$0xff] %v9710_v21  ;;  %v6947_v21 = vor.u32 %v8020_v4, %v6944_v34  ;;  %v6962_v4 = vld [vmem:[#allocation2 + $0x20] sm:$0xf]  ;;  %v8025_v34 = vld [vmem:[#allocation2 + $0x28] sm:$0xf0] }
 0x231   :  { %v2603_v41 = vpop.f32.mrf.mxu1  ;;  %3733 = vmatmul.bf16.gmra.mxu0 %v7051_v63  ;;  %v6963_v33 = vor.u32 %v8025_v34, %v6962_v4 }
 0x234   :  { %2898 = vmatmul.bf16.gmra.mxu3 %v6555_v31 }
 0x235   :  { %v2772_v12 = vpop.f32.mrf.mxu2 }
 0x236   :  { %v9712_v58 = vadd.f32 %v2772_v12, %v2603_v41  ;;  %v9714_v22 = vpop.f32.mrf.mxu0  ;;  %v6566_v41 = vld [vmem:[#allocation2 + $0xe0] sm:$0xf]  ;;  %v8142_v12 = vld [vmem:[#allocation2 + $0xe8] sm:$0xf0] }
 0x237   :  { %v9716_v55 = vpop.f32.mrf.mxu3  ;;  %v6567_v56 = vor.u32 %v8142_v12, %v6566_v41 }
 0x238   :  { %11168 = vst [vmem:[#allocation33_spill] sm:$0xff] %v9716_v55 }
 0x239   :  { %v2606_v16 = vpop.f32.mrf.mxu1 }
 0x23a   :  { %4026 = vmatmul.bf16.vlgmr.msrb.gmra.mxu2 %v6951_v27 }
 0x23c   :  { %3857 = vmatmul.bf16.vlgmr.msrb.gmra.mxu1 %v6947_v21 }
 0x23d   :  { %v2775_v46 = vpop.f32.mrf.mxu2 }
 0x23e   :  { %v9718_v53 = vadd.f32 %v2775_v46, %v2606_v16  ;;  %v9720_v63 = vpop.f32.mrf.mxu0  ;;  %v6956_v16 = vld [vmem:[#allocation2 + $0x24] sm:$0xf0] }
 0x23f   :  { %v9722_v31 = vpop.f32.mrf.mxu3  ;;  %v6959_v57 = vor.u32 %v8023_v30, %v6956_v16 }
 0x240   :  { %11169 = vst [vmem:[#allocation34_spill] sm:$0xff] %v9722_v31 }
 0x241   :  { %v2608_v62 = vpop.f32.mrf.mxu1  ;;  %3738 = vmatmul.bf16.gmra.mxu0 %v7063_v24 }
 0x244   :  { %2903 = vmatmul.bf16.gmra.mxu3 %v6567_v56 }
 0x245   :  { %v2777_v50 = vpop.f32.mrf.mxu2 }
 0x246   :  { %v9724_v21 = vadd.f32 %v2777_v50, %v2608_v62  ;;  %v9726_v27 = vpop.f32.mrf.mxu0  ;;  %v6578_v50 = vld [vmem:[#allocation2 + $0xf8] sm:$0xf] }
 0x247   :  { %v2864_v46 = vpop.f32.mrf.mxu3  ;;  %v6579_v30 = vor.u32 %v8145_v11, %v6578_v50  ;;  %v8370_v50 = vld [vmem:[%s11133_s2 + $0x1f0] sm:$0xff] }
 0x248   :  { %v2865_v55 = vadd.f32 %v2864_v46, %v9274_v52  ;;  %v7075_v52 = vor.u32 %v8054_v40, %v7074_v60  ;;  %v6968_v46 = vld [vmem:[#allocation2 + $0x3c] sm:$0xf0]  ;;  %v8362_v60 = vld [vmem:[%s11133_s2 + $0x1b0] sm:$0xff]  ;;  %5062 = vmatpush.bf16.msra.mxu0 %v8370_v50  ;;  %v8031_v50 = vld [vmem:[#allocation2 + $0x58] sm:$0xf0] }
 0x249   :  { %v2611_v31 = vpop.f32.mrf.mxu1  ;;  %4893 = vmatpush.bf16.msra.mxu3 %v8362_v60  ;;  %v8148_v60 = vld [vmem:[#allocation2 + $0x118] sm:$0xf0] }
 0x24a   :  { %4031 = vmatmul.bf16.gmra.mxu2 %v6963_v33  ;;  %v9730_v24 = vadd.f32 %v9691_v20, %v2865_v55  ;;  %v6974_v33 = vld [vmem:[#allocation2 + $0x38] sm:$0xf]  ;;  %v8028_v20 = vld [vmem:[#allocation2 + $0x40] sm:$0xf0] }
 0x24b   :  { %v6975_v11 = vor.u32 %v8028_v20, %v6974_v33  ;;  %v8378_v33 = vld [vmem:[%s11133_s2 + $0x230] sm:$0xff] }
 0x24c   :  { %3862 = vmatmul.bf16.gmra.mxu1 %v6959_v57 }
 0x24d   :  { %v2780_v41 = vpop.f32.mrf.mxu2  ;;  %5231 = vmatpush.bf16.msra.mxu1 %v8378_v33  ;;  %v8029_v33 = vld [vmem:[#allocation2 + $0x4c] sm:$0xf] }
 0x24e   :  { %v9732_v62 = vadd.f32 %v2780_v41, %v2611_v31  ;;  %v9734_v12 = vpop.f32.mrf.mxu0 }
 0x24f   :  { %v2866_v56 = vpop.f32.mrf.mxu3 }
 0x250   :  { %v2867_v4 = vadd.f32 %v2866_v56, %v9277_v0 }
 0x251   :  { %v2613_v34 = vpop.f32.mrf.mxu1  ;;  %3743 = vmatmul.bf16.gmra.mxu0 %v7075_v52 }
 0x252   :  { %v9738_v55 = vadd.f32 %v9702_v48, %v2867_v4  ;;  %v8026_v48 = vld [vmem:[#allocation2 + $0x34] sm:$0xf]  ;;  %v7086_v4 = vld [vmem:[#allocation2 + $0x120] sm:$0xf] }
 0x253   :  { %v6971_v56 = vor.u32 %v8026_v48, %v6968_v46  ;;  %v6590_v46 = vld [vmem:[#allocation2 + $0x110] sm:$0xf] }
 0x254   :  { %2908 = vmatmul.bf16.gmra.mxu3 %v6579_v30 }
 0x255   :  { %v2782_v57 = vpop.f32.mrf.mxu2 }
 0x256   :  { %v9740_v31 = vadd.f32 %v2782_v57, %v2613_v34  ;;  %v9742_v16 = vpop.f32.mrf.mxu0  ;;  %v8057_v34 = vld [vmem:[#allocation2 + $0x128] sm:$0xf0] }
 0x257   :  { %v2869_v0 = vpop.f32.mrf.mxu3 }
 0x258   :  { %v2870_v40 = vadd.f32 %v2869_v0, %v9297_v28  ;;  %v7087_v0 = vor.u32 %v8057_v34, %v7086_v4 }
 0x259   :  { %v2616_v41 = vpop.f32.mrf.mxu1 }
 0x25a   :  { %4036 = vmatmul.bf16.gmra.mxu2 %v6975_v11  ;;  %v9752_v52 = vadd.f32 %v9708_v36, %v2870_v40  ;;  %v6591_v11 = vor.u32 %v8148_v60, %v6590_v46  ;;  %v7098_v46 = vld [vmem:[#allocation2 + $0x138] sm:$0xf]  ;;  %v8060_v60 = vld [vmem:[#allocation2 + $0x140] sm:$0xf0] }
 0x25c   :  { %3867 = vmatmul.bf16.gmra.mxu1 %v6971_v56  ;;  %v6986_v56 = vld [vmem:[#allocation2 + $0x50] sm:$0xf] }
 0x25d   :  { %v2785_v30 = vpop.f32.mrf.mxu2 }
 0x25e   :  { %v9754_v57 = vadd.f32 %v2785_v30, %v2616_v41  ;;  %v9756_v28 = vpop.f32.mrf.mxu0 }
 0x25f   :  { %v2871_v20 = vpop.f32.mrf.mxu3 }
 0x260   :  { %v2872_v36 = vadd.f32 %v2871_v20, %v9302_v42  ;;  %v6987_v42 = vor.u32 %v8031_v50, %v6986_v56  ;;  %v6983_v20 = vor.u32 %v8029_v33, %v6980_v45 }
 0x261   :  { %v2618_v40 = vpop.f32.mrf.mxu1  ;;  %3748 = vmatmul.bf16.gmra.mxu0 %v7087_v0 }
 0x262   :  { %v9763_v48 = vadd.f32 %v9714_v22, %v2872_v36 }
 0x264   :  { %2913 = vmatmul.bf16.gmra.mxu3 %v6591_v11 }
 0x265   :  { %v2787_v41 = vpop.f32.mrf.mxu2 }
 0x266   :  { %v9765_v30 = vadd.f32 %v2787_v41, %v2618_v40  ;;  %v9767_v49 = vpop.f32.mrf.mxu0  ;;  %v6602_v41 = vld [vmem:[#allocation2 + $0x128] sm:$0xf] }
 0x267   :  { %v2874_v7 = vpop.f32.mrf.mxu3  ;;  %v6603_v45 = vor.u32 %v8151_v29, %v6602_v41  ;;  %v8063_v41 = vld [vmem:[#allocation2 + $0x158] sm:$0xf0] }
 0x268   :  { %v2875_v4 = vadd.f32 %v2874_v7, %v9322_v10  ;;  %v7099_v10 = vor.u32 %v8060_v60, %v7098_v46 }
 0x269   :  { %v2621_v34 = vpop.f32.mrf.mxu1 }
 0x26a   :  { %4041 = vmatmul.bf16.gmra.mxu2 %v6987_v42  ;;  %v9771_v22 = vadd.f32 %v9720_v63, %v2875_v4  ;;  %v6998_v4 = vld [vmem:[#allocation2 + $0x68] sm:$0xf]  ;;  %v8034_v42 = vld [vmem:[#allocation2 + $0x70] sm:$0xf0] }
 0x26b   :  { %v6999_v60 = vor.u32 %v8034_v42, %v6998_v4 }
 0x26c   :  { %3872 = vmatmul.bf16.gmra.mxu1 %v6983_v20  ;;  %v6992_v20 = vld [vmem:[#allocation2 + $0x6c] sm:$0xf0] }
 0x26d   :  { %v2790_v0 = vpop.f32.mrf.mxu2 }
 0x26e   :  { %v9773_v36 = vadd.f32 %v2790_v0, %v2621_v34  ;;  %v9775_v40 = vpop.f32.mrf.mxu0 }
 0x26f   :  { %v2876_v11 = vpop.f32.mrf.mxu3 }
 0x270   :  { %v2877_v7 = vadd.f32 %v2876_v11, %v9336_v25  ;;  %v8032_v11 = vld [vmem:[#allocation2 + $0x64] sm:$0xf] }
 0x271   :  { %v2623_v56 = vpop.f32.mrf.mxu1  ;;  %3753 = vmatmul.bf16.gmra.mxu0 %v7099_v10  ;;  %v6995_v10 = vor.u32 %v8032_v11, %v6992_v20  ;;  %v6615_v20 = vor.u32 %v8154_v3, %v6614_v5  ;;  %v7122_v5 = vld [vmem:[#allocation2 + $0x168] sm:$0xf] }
 0x272   :  { %v9779_v63 = vadd.f32 %v9726_v27, %v2877_v7  ;;  %v7110_v27 = vld [vmem:[#allocation2 + $0x150] sm:$0xf] }
 0x274   :  { %2918 = vmatmul.bf16.gmra.mxu3 %v6603_v45 }
 0x275   :  { %v2792_v50 = vpop.f32.mrf.mxu2 }
 0x276   :  { %v9781_v34 = vadd.f32 %v2792_v50, %v2623_v56  ;;  %v9783_v33 = vpop.f32.mrf.mxu0 }
 0x277   :  { %v2879_v0 = vpop.f32.mrf.mxu3 }
 0x278   :  { %v2880_v46 = vadd.f32 %v2879_v0, %v9356_v61  ;;  %v7111_v61 = vor.u32 %v8063_v41, %v7110_v27 }
 0x279   :  { %v2626_v25 = vpop.f32.mrf.mxu1 }
 0x27a   :  { %4046 = vmatmul.bf16.gmra.mxu2 %v6999_v60  ;;  %v9787_v29 = vadd.f32 %v9734_v12, %v2880_v46  ;;  %v7010_v46 = vld [vmem:[#allocation2 + $0x80] sm:$0xf]  ;;  %v8037_v60 = vld [vmem:[#allocation2 + $0x88] sm:$0xf0] }
 0x27b   :  { %v7011_v41 = vor.u32 %v8037_v60, %v7010_v46 }
 0x27c   :  { %3877 = vmatmul.bf16.gmra.mxu1 %v6995_v10  ;;  %v7004_v10 = vld [vmem:[#allocation2 + $0x84] sm:$0xf0] }
 0x27d   :  { %v2795_v7 = vpop.f32.mrf.mxu2 }
 0x27e   :  { %v9789_v56 = vadd.f32 %v2795_v7, %v2626_v25  ;;  %v9791_v45 = vpop.f32.mrf.mxu0 }
 0x27f   :  { %v2881_v50 = vpop.f32.mrf.mxu3 }
 0x280   :  { %11170 = vst [vmem:[#allocation35_spill] sm:$0xff] %v9789_v56  ;;  %v2882_v4 = vadd.f32 %v2881_v50, %v9361_v13  ;;  %v8035_v50 = vld [vmem:[#allocation2 + $0x7c] sm:$0xf]  ;;  %v8157_v56 = vld [vmem:[#allocation2 + $0x160] sm:$0xf0] }
 0x281   :  { %v2628_v42 = vpop.f32.mrf.mxu1  ;;  %3758 = vmatmul.bf16.gmra.mxu0 %v7111_v61  ;;  %v7007_v61 = vor.u32 %v8035_v50, %v7004_v10 }
 0x282   :  { %v9795_v12 = vadd.f32 %v9742_v16, %v2882_v4  ;;  %v8066_v16 = vld [vmem:[#allocation2 + $0x170] sm:$0xf0] }
 0x284   :  { %2923 = vmatmul.bf16.gmra.mxu3 %v6615_v20 }
 0x285   :  { %v2797_v0 = vpop.f32.mrf.mxu2 }
 0x286   :  { %v9797_v25 = vadd.f32 %v2797_v0, %v2628_v42  ;;  %v9799_v11 = vpop.f32.mrf.mxu0 }
 0x287   :  { %v2884_v7 = vpop.f32.mrf.mxu3 }
 0x288   :  { %11171 = vst [vmem:[#allocation36_spill] sm:$0xff] %v9797_v25  ;;  %v2885_v27 = vadd.f32 %v2884_v7, %v9389_v54  ;;  %v6626_v25 = vld [vmem:[#allocation2 + $0x158] sm:$0xf]  ;;  %v7123_v54 = vor.u32 %v8066_v16, %v7122_v5  ;;  %v8361_v5 = vld [vmem:[%s11133_s2 + $0x1a8] sm:$0xff] }
 0x289   :  { %v2631_v13 = vpop.f32.mrf.mxu1  ;;  %v6627_v10 = vor.u32 %v8157_v56, %v6626_v25  ;;  %4894 = vmatpush.bf16.msra.mxu3 %v8361_v5  ;;  %v6638_v5 = vld [vmem:[#allocation2 + $0x170] sm:$0xf] }
 0x28a   :  { %4051 = vmatmul.bf16.gmra.mxu2 %v7011_v41  ;;  %v9803_v3 = vadd.f32 %v9756_v28, %v2885_v27  ;;  %v7022_v27 = vld [vmem:[#allocation2 + $0x98] sm:$0xf]  ;;  %v8040_v41 = vld [vmem:[#allocation2 + $0xa0] sm:$0xf0] }
 0x28b   :  { %v7023_v56 = vor.u32 %v8040_v41, %v7022_v27  ;;  %v8377_v41 = vld [vmem:[%s11133_s2 + $0x228] sm:$0xff] }
 0x28c   :  { %3882 = vmatmul.bf16.gmra.mxu1 %v7007_v61  ;;  %v7016_v61 = vld [vmem:[#allocation2 + $0x9c] sm:$0xf0] }
 0x28d   :  { %v2800_v4 = vpop.f32.mrf.mxu2  ;;  %5232 = vmatpush.bf16.msra.mxu1 %v8377_v41  ;;  %v8041_v41 = vld [vmem:[#allocation2 + $0xac] sm:$0xf] }
 0x28e   :  { %v9805_v42 = vadd.f32 %v2800_v4, %v2631_v13  ;;  %v9807_v20 = vpop.f32.mrf.mxu0 }
 0x28f   :  { %v2886_v0 = vpop.f32.mrf.mxu3 }
 0x290   :  { %11172 = vst [vmem:[#allocation37_spill] sm:$0xff] %v9805_v42  ;;  %v2887_v46 = vadd.f32 %v2886_v0, %v9401_v8  ;;  %v7134_v0 = vld [vmem:[#allocation2 + $0x1b0] sm:$0xf] }
 0x291   :  { %v2633_v60 = vpop.f32.mrf.mxu1  ;;  %3763 = vmatmul.bf16.gmra.mxu0 %v7123_v54  ;;  %v8069_v54 = vld [vmem:[#allocation2 + $0x1b8] sm:$0xf0] }
 0x292   :  { %v9811_v28 = vadd.f32 %v9767_v49, %v2887_v46  ;;  %v8038_v49 = vld [vmem:[#allocation2 + $0x94] sm:$0xf]  ;;  %v8369_v46 = vld [vmem:[%s11133_s2 + $0x1e8] sm:$0xff] }
 0x293   :  { %v7019_v4 = vor.u32 %v8038_v49, %v7016_v61  ;;  %5063 = vmatpush.bf16.msra.mxu0 %v8369_v46 }
 0x294   :  { %2928 = vmatmul.bf16.gmra.mxu3 %v6627_v10 }
 0x295   :  { %v2802_v7 = vpop.f32.mrf.mxu2 }
 0x296   :  { %v9813_v13 = vadd.f32 %v2802_v7, %v2633_v60  ;;  %v9815_v50 = vpop.f32.mrf.mxu0  ;;  %v7135_v7 = vor.u32 %v8069_v54, %v7134_v0  ;;  %v8043_v0 = vld [vmem:[#allocation2 + $0xb8] sm:$0xf0] }
 0x297   :  { %v2889_v8 = vpop.f32.mrf.mxu3 }
 0x298   :  { %11173 = vst [vmem:[#allocation38_spill] sm:$0xff] %v9813_v13  ;;  %v2890_v16 = vadd.f32 %v2889_v8, %v9435_v51  ;;  %v8160_v8 = vld [vmem:[#allocation2 + $0x178] sm:$0xf0] }
 0x299   :  { %v2636_v25 = vpop.f32.mrf.mxu1 }
 0x29a   :  { %4056 = vmatmul.bf16.gmra.mxu2 %v7023_v56  ;;  %v9825_v60 = vadd.f32 %v9775_v40, %v2890_v16  ;;  %v6639_v40 = vor.u32 %v8160_v8, %v6638_v5  ;;  %v7146_v5 = vld [vmem:[#allocation2 + $0x1c8] sm:$0xf]  ;;  %v8072_v8 = vld [vmem:[#allocation2 + $0x1d0] sm:$0xf0] }
 0x29c   :  { %3887 = vmatmul.bf16.gmra.mxu1 %v7019_v4  ;;  %v7034_v4 = vld [vmem:[#allocation2 + $0xb0] sm:$0xf] }
 0x29d   :  { %v2805_v10 = vpop.f32.mrf.mxu2 }
 0x29e   :  { %v9827_v51 = vadd.f32 %v2805_v10, %v2636_v25  ;;  %v9829_v27 = vpop.f32.mrf.mxu0  ;;  %v7028_v10 = vld [vmem:[#allocation2 + $0xb4] sm:$0xf0] }
 0x29f   :  { %v2891_v61 = vpop.f32.mrf.mxu3 }
 0x2a0   :  { %11174 = vst [vmem:[#allocation39_spill] sm:$0xff] %v9827_v51  ;;  %v2892_v56 = vadd.f32 %v2891_v61, %v9451_v15  ;;  %v7035_v15 = vor.u32 %v8043_v0, %v7034_v4  ;;  %v8163_v4 = vld [vmem:[#allocation2 + $0x190] sm:$0xf0]  ;;  %v7147_v0 = vor.u32 %v8072_v8, %v7146_v5 }
 0x2a1   :  { %v2638_v49 = vpop.f32.mrf.mxu1  ;;  %3768 = vmatmul.bf16.gmra.mxu0 %v7135_v7  ;;  %v7031_v7 = vor.u32 %v8041_v41, %v7028_v10  ;;  %v7046_v41 = vld [vmem:[#allocation2 + $0xc8] sm:$0xf] }
 0x2a2   :  { %v9836_v16 = vadd.f32 %v9783_v33, %v2892_v56 }
 0x2a4   :  { %2933 = vmatmul.bf16.gmra.mxu3 %v6639_v40 }
 0x2a5   :  { %v2807_v25 = vpop.f32.mrf.mxu2 }
 0x2a6   :  { %v9838_v54 = vadd.f32 %v2807_v25, %v2638_v49  ;;  %v9840_v46 = vpop.f32.mrf.mxu0  ;;  %v6650_v25 = vld [vmem:[#allocation2 + $0x188] sm:$0xf] }
 0x2a7   :  { %v2894_v51 = vpop.f32.mrf.mxu3 }
 0x2a8   :  { %11175 = vst [vmem:[#allocation40_spill] sm:$0xff] %v9838_v54  ;;  %v2895_v13 = vadd.f32 %v2894_v51, %v9480_v2  ;;  %v8387_v2 = vld [vmem:[%s11134_s3 + $0x38] sm:$0xff]  ;;  %v7040_v54 = vld [vmem:[#allocation2 + $0xcc] sm:$0xf0] }
 0x2a9   :  { %v2641_v61 = vpop.f32.mrf.mxu1  ;;  %5823 = vmatpush.bf16.msra.mxu2 %v8387_v2  ;;  %v8044_v2 = vld [vmem:[#allocation2 + $0xc4] sm:$0xf] }
 0x2aa   :  { %4061 = vmatmul.bf16.gmra.mxu2 %v7035_v15  ;;  %v9844_v33 = vadd.f32 %v9791_v45, %v2895_v13  ;;  %v6651_v13 = vor.u32 %v8163_v4, %v6650_v25  ;;  %v7043_v25 = vor.u32 %v8044_v2, %v7040_v54  ;;  %v7158_v4 = vld [vmem:[#allocation2 + $0x1e0] sm:$0xf]  ;;  %v8049_v2 = vld [vmem:[#allocation2 + $0xe8] sm:$0xf0] }
 0x2ac   :  { %3892 = vmatmul.bf16.gmra.mxu1 %v7031_v7  ;;  %v8046_v7 = vld [vmem:[#allocation2 + $0xd0] sm:$0xf0] }
 0x2ad   :  { %v2810_v56 = vpop.f32.mrf.mxu2 }
 0x2ae   :  { %v9846_v49 = vadd.f32 %v2810_v56, %v2641_v61  ;;  %v9848_v40 = vpop.f32.mrf.mxu0 }
 0x2af   :  { %v2896_v51 = vpop.f32.mrf.mxu3 }
 0x2b0   :  { %11176 = vst [vmem:[#allocation41_spill] sm:$0xff] %v9846_v49  ;;  %v2897_v10 = vadd.f32 %v2896_v51, %v9488_v23  ;;  %v7047_v23 = vor.u32 %v8046_v7, %v7046_v41 }
 0x2b1   :  { %v2643_v45 = vpop.f32.mrf.mxu1  ;;  %3773 = vmatmul.bf16.gmra.mxu0 %v7147_v0  ;;  %v8075_v0 = vld [vmem:[#allocation2 + $0x1e8] sm:$0xf0] }
 0x2b2   :  { %v9855_v15 = vadd.f32 %v9799_v11, %v2897_v10  ;;  %v7159_v41 = vor.u32 %v8075_v0, %v7158_v4 }
 0x2b4   :  { %2938 = vmatmul.bf16.gmra.mxu3 %v6651_v13 }
 0x2b5   :  { %v2812_v61 = vpop.f32.mrf.mxu2 }
 0x2b6   :  { %v9857_v56 = vadd.f32 %v2812_v61, %v2643_v45  ;;  %v9859_v49 = vpop.f32.mrf.mxu0 }
 0x2b7   :  { %v2899_v42 = vpop.f32.mrf.mxu3 }
 0x2b8   :  { %v2900_v5 = vadd.f32 %v2899_v42, %v9510_v17  ;;  %v6662_v17 = vld [vmem:[#allocation2 + $0x1d0] sm:$0xf]  ;;  %v8166_v42 = vld [vmem:[#allocation2 + $0x1d8] sm:$0xf0] }
 0x2b9   :  { %v3858_v8 = vpop.f32.mrf.mxu1 }
 0x2ba   :  { %v3859_v51 = vadd.f32 %v3858_v8, %v9730_v24  ;;  %4066 = vmatmul.bf16.gmra.mxu2 %v7047_v23  ;;  %v9864_v11 = vadd.f32 %v9807_v20, %v2900_v5  ;;  %v6663_v20 = vor.u32 %v8166_v42, %v6662_v17  ;;  %v7058_v8 = vld [vmem:[#allocation2 + $0xe0] sm:$0xf] }
 0x2bb   :  { %v7059_v0 = vor.u32 %v8049_v2, %v7058_v8  ;;  %v8169_v8 = vld [vmem:[#allocation2 + $0x1f0] sm:$0xf0] }
 0x2bc   :  { %3897 = vmatmul.bf16.gmra.mxu1 %v7043_v25 }
 0x2bd   :  { %v4027_v10 = vpop.f32.mrf.mxu2 }
 0x2be   :  { %v9866_v45 = vadd.f32 %v4027_v10, %v3859_v51  ;;  %v9868_v13 = vpop.f32.mrf.mxu0  ;;  %v7052_v10 = vld [vmem:[#allocation2 + $0xe4] sm:$0xf0] }
 0x2bf   :  { %v2901_v61 = vpop.f32.mrf.mxu3 }
 0x2c0   :  { %v2902_v7 = vadd.f32 %v2901_v61, %v9515_v37 }
 0x2c1   :  { %v3860_v24 = vpop.f32.mrf.mxu1  ;;  %3778 = vmatmul.bf16.gmra.mxu0 %v7159_v41  ;;  %v7170_v41 = vld [vmem:[#allocation2 + $0x1f8] sm:$0xf] }
 0x2c2   :  { %v3861_v54 = vadd.f32 %v3860_v24, %v9738_v55  ;;  %v9873_v5 = vadd.f32 %v9815_v50, %v2902_v7  ;;  %v8047_v55 = vld [vmem:[#allocation2 + $0xdc] sm:$0xf]  ;;  %v8078_v7 = vld [vmem:[#allocation2 + $0x200] sm:$0xf0] }
 0x2c3   :  { %v7055_v42 = vor.u32 %v8047_v55, %v7052_v10  ;;  %v7171_v2 = vor.u32 %v8078_v7, %v7170_v41  ;;  %v8052_v55 = vld [vmem:[#allocation2 + $0x100] sm:$0xf0] }
 0x2c4   :  { %2943 = vmatmul.bf16.gmra.mxu3 %v6663_v20 }
 0x2c5   :  { %v4029_v23 = vpop.f32.mrf.mxu2 }
 0x2c6   :  { %v9875_v51 = vadd.f32 %v4029_v23, %v3861_v54  ;;  %v9877_v25 = vpop.f32.mrf.mxu0 }
 0x2c7   :  { %v2904_v4 = vpop.f32.mrf.mxu3 }
 0x2c8   :  { %v2905_v37 = vadd.f32 %v2904_v4, %v9532_v35  ;;  %v6674_v35 = vld [vmem:[#allocation2 + $0x1e8] sm:$0xf] }
 0x2c9   :  { %v3863_v61 = vpop.f32.mrf.mxu1 }
 0x2ca   :  { %v3864_v17 = vadd.f32 %v3863_v61, %v9752_v52  ;;  %4071 = vmatmul.bf16.gmra.mxu2 %v7059_v0  ;;  %v9882_v50 = vadd.f32 %v9829_v27, %v2905_v37  ;;  %v6675_v27 = vor.u32 %v8169_v8, %v6674_v35  ;;  %v7070_v61 = vld [vmem:[#allocation2 + $0xf8] sm:$0xf] }
 0x2cb   :  { %v7071_v7 = vor.u32 %v8052_v55, %v7070_v61  ;;  %v6686_v55 = vld [vmem:[#allocation2 + $0x200] sm:$0xf] }
 0x2cc   :  { %3902 = vmatmul.bf16.gmra.mxu1 %v7055_v42 }
 0x2cd   :  { %v4032_v24 = vpop.f32.mrf.mxu2 }
 0x2ce   :  { %v9884_v54 = vadd.f32 %v4032_v24, %v3864_v17  ;;  %v9886_v20 = vpop.f32.mrf.mxu0  ;;  %v7064_v24 = vld [vmem:[#allocation2 + $0xfc] sm:$0xf0] }
 0x2cf   :  { %v2906_v23 = vpop.f32.mrf.mxu3 }
 0x2d0   :  { %v2907_v4 = vadd.f32 %v2906_v23, %v9543_v59  ;;  %v8360_v59 = vld [vmem:[%s11133_s2 + $0x1a0] sm:$0xff] }
 0x2d1   :  { %v3865_v52 = vpop.f32.mrf.mxu1  ;;  %3783 = vmatmul.bf16.gmra.mxu0 %v7171_v2  ;;  %4895 = vmatpush.bf16.msra.mxu3 %v8360_v59  ;;  %v8368_v2 = vld [vmem:[%s11133_s2 + $0x1e0] sm:$0xff] }
 0x2d2   :  { %v3866_v10 = vadd.f32 %v3865_v52, %v9763_v48  ;;  %v9891_v37 = vadd.f32 %v9840_v46, %v2907_v4  ;;  %v8050_v46 = vld [vmem:[#allocation2 + $0xf4] sm:$0xf]  ;;  %v7182_v52 = vld [vmem:[#allocation2 + $0x210] sm:$0xf]  ;;  %5064 = vmatpush.bf16.msra.mxu0 %v8368_v2 }
 0x2d3   :  { %v7067_v8 = vor.u32 %v8050_v46, %v7064_v24  ;;  %v8172_v24 = vld [vmem:[#allocation2 + $0x208] sm:$0xf0] }
 0x2d4   :  { %2948 = vmatmul.bf16.gmra.mxu3 %v6675_v27 }
 0x2d5   :  { %v4034_v0 = vpop.f32.mrf.mxu2 }
 0x2d6   :  { %v9893_v17 = vadd.f32 %v4034_v0, %v3866_v10  ;;  %v9895_v42 = vpop.f32.mrf.mxu0  ;;  %v8081_v10 = vld [vmem:[#allocation2 + $0x218] sm:$0xf0] }
 0x2d7   :  { %v2909_v41 = vpop.f32.mrf.mxu3  ;;  %v7183_v59 = vor.u32 %v8081_v10, %v7182_v52  ;;  %v7076_v52 = vld [vmem:[#allocation2 + $0x114] sm:$0xf0] }
 0x2d8   :  { %v2910_v48 = vadd.f32 %v2909_v41, %v9560_v6 }
 0x2d9   :  { %v3868_v23 = vpop.f32.mrf.mxu1 }
 0x2da   :  { %v3869_v35 = vadd.f32 %v3868_v23, %v9771_v22  ;;  %4076 = vmatmul.bf16.gmra.mxu2 %v7071_v7  ;;  %v9906_v4 = vadd.f32 %v9848_v40, %v2910_v48  ;;  %v8376_v22 = vld [vmem:[%s11133_s2 + $0x220] sm:$0xff]  ;;  %v6687_v7 = vor.u32 %v8172_v24, %v6686_v55 }
 0x2db   :  { %5233 = vmatpush.bf16.msra.mxu1 %v8376_v22 }
 0x2dc   :  { %3907 = vmatmul.bf16.gmra.mxu1 %v7067_v8  ;;  %v8055_v8 = vld [vmem:[#allocation2 + $0x118] sm:$0xf0] }
 0x2dd   :  { %v4037_v6 = vpop.f32.mrf.mxu2 }
 0x2de   :  { %v9908_v27 = vadd.f32 %v4037_v6, %v3869_v35  ;;  %v9910_v0 = vpop.f32.mrf.mxu0  ;;  %v7082_v35 = vld [vmem:[#allocation2 + $0x110] sm:$0xf] }
 0x2df   :  { %v2911_v61 = vpop.f32.mrf.mxu3  ;;  %v7083_v22 = vor.u32 %v8055_v8, %v7082_v35  ;;  %v6698_v35 = vld [vmem:[#allocation2 + $0x218] sm:$0xf] }
 0x2e0   :  { %v2912_v40 = vadd.f32 %v2911_v61, %v9565_v39 }
 0x2e1   :  { %v3870_v41 = vpop.f32.mrf.mxu1  ;;  %3788 = vmatmul.bf16.gmra.mxu0 %v7183_v59  ;;  %v7194_v59 = vld [vmem:[#allocation2 + $0x228] sm:$0xf] }
 0x2e2   :  { %v3871_v48 = vadd.f32 %v3870_v41, %v9779_v63  ;;  %v9918_v23 = vadd.f32 %v9859_v49, %v2912_v40  ;;  %v8053_v63 = vld [vmem:[#allocation2 + $0x10c] sm:$0xf]  ;;  %v8084_v40 = vld [vmem:[#allocation2 + $0x230] sm:$0xf0] }
 0x2e3   :  { %v7079_v24 = vor.u32 %v8053_v63, %v7076_v52  ;;  %v7195_v8 = vor.u32 %v8084_v40, %v7194_v59  ;;  %v7094_v63 = vld [vmem:[#allocation2 + $0x128] sm:$0xf]  ;;  %v7088_v59 = vld [vmem:[#allocation2 + $0x12c] sm:$0xf0] }
 0x2e4   :  { %2953 = vmatmul.bf16.gmra.mxu3 %v6687_v7 }
 0x2e5   :  { %v4039_v46 = vpop.f32.mrf.mxu2 }
 0x2e6   :  { %v9920_v2 = vadd.f32 %v4039_v46, %v3871_v48  ;;  %v9922_v6 = vpop.f32.mrf.mxu0 }
 0x2e7   :  { %v2914_v10 = vpop.f32.mrf.mxu3 }
 0x2e8   :  { %v2915_v39 = vadd.f32 %v2914_v10, %v9582_v38  ;;  %v8386_v38 = vld [vmem:[%s11134_s3 + $0x30] sm:$0xff] }
 0x2e9   :  { %v3873_v61 = vpop.f32.mrf.mxu1  ;;  %5824 = vmatpush.bf16.msra.mxu2 %v8386_v38 }
 0x2ea   :  { %v3874_v55 = vadd.f32 %v3873_v61, %v9787_v29  ;;  %4081 = vmatmul.bf16.gmra.mxu2 %v7083_v22  ;;  %v9927_v49 = vadd.f32 %v9868_v13, %v2915_v39  ;;  %v8175_v29 = vld [vmem:[#allocation2 + $0x220] sm:$0xf0] }
 0x2eb   :  { %v6699_v39 = vor.u32 %v8175_v29, %v6698_v35 }
 0x2ec   :  { %3912 = vmatmul.bf16.gmra.mxu1 %v7079_v24 }
 0x2ed   :  { %v4042_v41 = vpop.f32.mrf.mxu2 }
 0x2ee   :  { %v9929_v48 = vadd.f32 %v4042_v41, %v3874_v55  ;;  %v9931_v7 = vpop.f32.mrf.mxu0  ;;  %v8058_v55 = vld [vmem:[#allocation2 + $0x130] sm:$0xf0] }
 0x2ef   :  { %v2916_v46 = vpop.f32.mrf.mxu3  ;;  %v7095_v38 = vor.u32 %v8058_v55, %v7094_v63  ;;  %v8178_v63 = vld [vmem:[#allocation2 + $0x238] sm:$0xf0] }
 0x2f0   :  { %v2917_v52 = vadd.f32 %v2916_v46, %v9587_v9 }
 0x2f1   :  { %v3875_v13 = vpop.f32.mrf.mxu1  ;;  %3793 = vmatmul.bf16.gmra.mxu0 %v7195_v8  ;;  %v7206_v8 = vld [vmem:[#allocation2 + $0x240] sm:$0xf] }
 0x2f2   :  { %v3876_v10 = vadd.f32 %v3875_v13, %v9795_v12  ;;  %v9939_v22 = vadd.f32 %v9877_v25, %v2917_v52  ;;  %v8056_v12 = vld [vmem:[#allocation2 + $0x124] sm:$0xf]  ;;  %v8087_v52 = vld [vmem:[#allocation2 + $0x248] sm:$0xf0] }
 0x2f3   :  { %v7091_v29 = vor.u32 %v8056_v12, %v7088_v59  ;;  %v7207_v55 = vor.u32 %v8087_v52, %v7206_v8  ;;  %v8061_v12 = vld [vmem:[#allocation2 + $0x148] sm:$0xf0] }
 0x2f4   :  { %2958 = vmatmul.bf16.gmra.mxu3 %v6699_v39 }
 0x2f5   :  { %v4044_v61 = vpop.f32.mrf.mxu2 }
 0x2f6   :  { %v9941_v24 = vadd.f32 %v4044_v61, %v3876_v10  ;;  %v9943_v41 = vpop.f32.mrf.mxu0 }
 0x2f7   :  { %v2919_v40 = vpop.f32.mrf.mxu3 }
 0x2f8   :  { %v2920_v9 = vadd.f32 %v2919_v40, %v9604_v1  ;;  %v6710_v1 = vld [vmem:[#allocation2 + $0x230] sm:$0xf] }
 0x2f9   :  { %v3878_v46 = vpop.f32.mrf.mxu1 }
 0x2fa   :  { %v3879_v35 = vadd.f32 %v3878_v46, %v9803_v3  ;;  %4086 = vmatmul.bf16.gmra.mxu2 %v7095_v38  ;;  %v9948_v25 = vadd.f32 %v9886_v20, %v2920_v9  ;;  %v6711_v20 = vor.u32 %v8178_v63, %v6710_v1  ;;  %v7106_v46 = vld [vmem:[#allocation2 + $0x140] sm:$0xf] }
 0x2fb   :  { %v7107_v52 = vor.u32 %v8061_v12, %v7106_v46  ;;  %v8181_v46 = vld [vmem:[#allocation2 + $0x250] sm:$0xf0] }
 0x2fc   :  { %3917 = vmatmul.bf16.gmra.mxu1 %v7091_v29 }
 0x2fd   :  { %v4047_v13 = vpop.f32.mrf.mxu2 }
 0x2fe   :  { %v9950_v10 = vadd.f32 %v4047_v13, %v3879_v35  ;;  %v9952_v39 = vpop.f32.mrf.mxu0  ;;  %v7100_v13 = vld [vmem:[#allocation2 + $0x144] sm:$0xf0] }
 0x2ff   :  { %v2921_v61 = vpop.f32.mrf.mxu3 }
 0x300   :  { %v2922_v40 = vadd.f32 %v2921_v61, %v9615_v43 }
 0x301   :  { %v3880_v3 = vpop.f32.mrf.mxu1  ;;  %3798 = vmatmul.bf16.gmra.mxu0 %v7207_v55  ;;  %v7218_v55 = vld [vmem:[#allocation2 + $0x258] sm:$0xf] }
 0x302   :  { %v3881_v59 = vadd.f32 %v3880_v3, %v9811_v28  ;;  %v9957_v9 = vadd.f32 %v9895_v42, %v2922_v40  ;;  %v8059_v28 = vld [vmem:[#allocation2 + $0x13c] sm:$0xf]  ;;  %v8090_v40 = vld [vmem:[#allocation2 + $0x260] sm:$0xf0] }
 0x303   :  { %v7103_v63 = vor.u32 %v8059_v28, %v7100_v13  ;;  %v7219_v12 = vor.u32 %v8090_v40, %v7218_v55  ;;  %v8064_v28 = vld [vmem:[#allocation2 + $0x160] sm:$0xf0] }
 0x304   :  { %2963 = vmatmul.bf16.gmra.mxu3 %v6711_v20 }
 0x305   :  { %v4049_v38 = vpop.f32.mrf.mxu2 }
 0x306   :  { %v9959_v35 = vadd.f32 %v4049_v38, %v3881_v59  ;;  %v9961_v29 = vpop.f32.mrf.mxu0 }
 0x307   :  { %v2924_v8 = vpop.f32.mrf.mxu3 }
 0x308   :  { %v2925_v43 = vadd.f32 %v2924_v8, %v9632_v26  ;;  %v6722_v26 = vld [vmem:[#allocation2 + $0x248] sm:$0xf] }
 0x309   :  { %v3883_v61 = vpop.f32.mrf.mxu1 }
 0x30a   :  { %v3884_v1 = vadd.f32 %v3883_v61, %v9825_v60  ;;  %4091 = vmatmul.bf16.gmra.mxu2 %v7107_v52  ;;  %v9966_v42 = vadd.f32 %v9910_v0, %v2925_v43  ;;  %v6723_v0 = vor.u32 %v8181_v46, %v6722_v26  ;;  %v7118_v61 = vld [vmem:[#allocation2 + $0x158] sm:$0xf] }
 0x30b   :  { %v7119_v40 = vor.u32 %v8064_v28, %v7118_v61  ;;  %v6734_v28 = vld [vmem:[#allocation2 + $0x260] sm:$0xf] }
 0x30c   :  { %3922 = vmatmul.bf16.gmra.mxu1 %v7103_v63 }
 0x30d   :  { %v4052_v3 = vpop.f32.mrf.mxu2 }
 0x30e   :  { %v9968_v59 = vadd.f32 %v4052_v3, %v3884_v1  ;;  %v9970_v20 = vpop.f32.mrf.mxu0  ;;  %v7112_v3 = vld [vmem:[#allocation2 + $0x15c] sm:$0xf0] }
 0x30f   :  { %v2926_v38 = vpop.f32.mrf.mxu3 }
 0x310   :  { %v2927_v8 = vadd.f32 %v2926_v38, %v9637_v32  ;;  %v8359_v32 = vld [vmem:[%s11133_s2 + $0x198] sm:$0xff] }
 0x311   :  { %v3885_v60 = vpop.f32.mrf.mxu1  ;;  %3803 = vmatmul.bf16.gmra.mxu0 %v7219_v12  ;;  %4896 = vmatpush.bf16.msra.mxu3 %v8359_v32  ;;  %v8367_v12 = vld [vmem:[%s11133_s2 + $0x1d8] sm:$0xff] }
 0x312   :  { %v3886_v13 = vadd.f32 %v3885_v60, %v9836_v16  ;;  %v9975_v43 = vadd.f32 %v9922_v6, %v2927_v8  ;;  %v8062_v6 = vld [vmem:[#allocation2 + $0x154] sm:$0xf]  ;;  %v7230_v60 = vld [vmem:[#allocation2 + $0x270] sm:$0xf]  ;;  %5065 = vmatpush.bf16.msra.mxu0 %v8367_v12 }
 0x313   :  { %v7115_v46 = vor.u32 %v8062_v6, %v7112_v3  ;;  %v8184_v3 = vld [vmem:[#allocation2 + $0x268] sm:$0xf0] }
 0x314   :  { %2968 = vmatmul.bf16.gmra.mxu3 %v6723_v0 }
 0x315   :  { %v4054_v52 = vpop.f32.mrf.mxu2 }
 0x316   :  { %v9977_v1 = vadd.f32 %v4054_v52, %v3886_v13  ;;  %v9979_v63 = vpop.f32.mrf.mxu0  ;;  %v8093_v13 = vld [vmem:[#allocation2 + $0x278] sm:$0xf0] }
 0x317   :  { %v2929_v55 = vpop.f32.mrf.mxu3  ;;  %v7231_v32 = vor.u32 %v8093_v13, %v7230_v60  ;;  %v7124_v60 = vld [vmem:[#allocation2 + $0x174] sm:$0xf0] }
 0x318   :  { %v2930_v16 = vadd.f32 %v2929_v55, %v9654_v14 }
 0x319   :  { %v3888_v38 = vpop.f32.mrf.mxu1 }
 0x31a   :  { %v3889_v26 = vadd.f32 %v3888_v38, %v9844_v33  ;;  %4096 = vmatmul.bf16.gmra.mxu2 %v7119_v40  ;;  %v9990_v8 = vadd.f32 %v9931_v7, %v2930_v16  ;;  %v8375_v33 = vld [vmem:[%s11133_s2 + $0x218] sm:$0xff]  ;;  %v6735_v40 = vor.u32 %v8184_v3, %v6734_v28 }
 0x31b   :  { %5234 = vmatpush.bf16.msra.mxu1 %v8375_v33 }
 0x31c   :  { %3927 = vmatmul.bf16.gmra.mxu1 %v7115_v46  ;;  %v8067_v46 = vld [vmem:[#allocation2 + $0x178] sm:$0xf0] }
 0x31d   :  { %v4057_v14 = vpop.f32.mrf.mxu2 }
 0x31e   :  { %v9992_v0 = vadd.f32 %v4057_v14, %v3889_v26  ;;  %v9994_v52 = vpop.f32.mrf.mxu0  ;;  %v7130_v26 = vld [vmem:[#allocation2 + $0x170] sm:$0xf] }
 0x31f   :  { %v2931_v61 = vpop.f32.mrf.mxu3  ;;  %v7131_v33 = vor.u32 %v8067_v46, %v7130_v26  ;;  %v6746_v26 = vld [vmem:[#allocation2 + $0x278] sm:$0xf] }
 0x320   :  { %v2932_v7 = vadd.f32 %v2931_v61, %v9665_v19 }
 0x321   :  { %v3890_v55 = vpop.f32.mrf.mxu1  ;;  %3808 = vmatmul.bf16.gmra.mxu0 %v7231_v32  ;;  %v7242_v32 = vld [vmem:[#allocation2 + $0x288] sm:$0xf] }
 0x322   :  { %v3891_v16 = vadd.f32 %v3890_v55, %v9855_v15  ;;  %v10002_v38 = vadd.f32 %v9943_v41, %v2932_v7  ;;  %v8065_v15 = vld [vmem:[#allocation2 + $0x16c] sm:$0xf]  ;;  %v8096_v7 = vld [vmem:[#allocation2 + $0x290] sm:$0xf0] }
 0x323   :  { %v7127_v3 = vor.u32 %v8065_v15, %v7124_v60  ;;  %v7243_v46 = vor.u32 %v8096_v7, %v7242_v32  ;;  %v8070_v15 = vld [vmem:[#allocation2 + $0x1c0] sm:$0xf0] }
 0x324   :  { %2973 = vmatmul.bf16.gmra.mxu3 %v6735_v40 }
 0x325   :  { %v4059_v6 = vpop.f32.mrf.mxu2 }
 0x326   :  { %v10004_v12 = vadd.f32 %v4059_v6, %v3891_v16  ;;  %v10006_v14 = vpop.f32.mrf.mxu0 }
 0x327   :  { %v2934_v13 = vpop.f32.mrf.mxu3 }
 0x328   :  { %v2935_v19 = vadd.f32 %v2934_v13, %v9693_v47  ;;  %v8385_v47 = vld [vmem:[%s11134_s3 + $0x28] sm:$0xff] }
 0x329   :  { %v3893_v61 = vpop.f32.mrf.mxu1  ;;  %5825 = vmatpush.bf16.msra.mxu2 %v8385_v47 }
 0x32a   :  { %v3894_v28 = vadd.f32 %v3893_v61, %v9864_v11  ;;  %4101 = vmatmul.bf16.gmra.mxu2 %v7131_v33  ;;  %v10011_v41 = vadd.f32 %v9952_v39, %v2935_v19  ;;  %v8187_v11 = vld [vmem:[#allocation2 + $0x280] sm:$0xf0]  ;;  %v7142_v61 = vld [vmem:[#allocation2 + $0x1b8] sm:$0xf] }
 0x32b   :  { %v6747_v19 = vor.u32 %v8187_v11, %v6746_v26  ;;  %v7254_v11 = vld [vmem:[#allocation2 + $0x2a0] sm:$0xf] }
 0x32c   :  { %3932 = vmatmul.bf16.gmra.mxu1 %v7127_v3  ;;  %v7136_v3 = vld [vmem:[#allocation2 + $0x1bc] sm:$0xf0] }
 0x32d   :  { %v4062_v55 = vpop.f32.mrf.mxu2 }
 0x32e   :  { %v10013_v16 = vadd.f32 %v4062_v55, %v3894_v28  ;;  %v10015_v40 = vpop.f32.mrf.mxu0  ;;  %v8068_v28 = vld [vmem:[#allocation2 + $0x1b4] sm:$0xf] }
 0x32f   :  { %v2936_v6 = vpop.f32.mrf.mxu3  ;;  %v7139_v47 = vor.u32 %v8068_v28, %v7136_v3 }
 0x330   :  { %11177 = vst [vmem:[#allocation42_spill] sm:$0xff] %v10013_v16  ;;  %v2937_v60 = vadd.f32 %v2936_v6, %v9700_v44  ;;  %v7143_v44 = vor.u32 %v8070_v15, %v7142_v61  ;;  %v6758_v61 = vld [vmem:[#allocation2 + $0x290] sm:$0xf]  ;;  %v8190_v15 = vld [vmem:[#allocation2 + $0x298] sm:$0xf0] }
 0x331   :  { %v3895_v39 = vpop.f32.mrf.mxu1  ;;  %3813 = vmatmul.bf16.gmra.mxu0 %v7243_v46  ;;  %v8099_v46 = vld [vmem:[#allocation2 + $0x2a8] sm:$0xf0] }
 0x332   :  { %v3896_v13 = vadd.f32 %v3895_v39, %v9873_v5  ;;  %v10023_v33 = vadd.f32 %v9961_v29, %v2937_v60  ;;  %v7255_v28 = vor.u32 %v8099_v46, %v7254_v11 }
 0x334   :  { %2978 = vmatmul.bf16.gmra.mxu3 %v6747_v19 }
 0x335   :  { %v4064_v55 = vpop.f32.mrf.mxu2 }
 0x336   :  { %v10025_v16 = vadd.f32 %v4064_v55, %v3896_v13  ;;  %v10027_v32 = vpop.f32.mrf.mxu0 }
 0x337   :  { %v2939_v7 = vpop.f32.mrf.mxu3 }
 0x338   :  { %v2940_v5 = vadd.f32 %v2939_v7, %v9706_v18  ;;  %v7154_v7 = vld [vmem:[#allocation2 + $0x1d0] sm:$0xf] }
 0x339   :  { %v3898_v6 = vpop.f32.mrf.mxu1 }
 0x33a   :  { %v3899_v26 = vadd.f32 %v3898_v6, %v9882_v50  ;;  %4106 = vmatmul.bf16.gmra.mxu2 %v7143_v44  ;;  %v10032_v29 = vadd.f32 %v9970_v20, %v2940_v5  ;;  %v6759_v20 = vor.u32 %v8190_v15, %v6758_v61  ;;  %v7266_v15 = vld [vmem:[#allocation2 + $0x2b8] sm:$0xf] }
 0x33c   :  { %3937 = vmatmul.bf16.gmra.mxu1 %v7139_v47  ;;  %v8073_v47 = vld [vmem:[#allocation2 + $0x1d8] sm:$0xf0] }
 0x33d   :  { %v4067_v60 = vpop.f32.mrf.mxu2  ;;  %v7155_v46 = vor.u32 %v8073_v47, %v7154_v7 }
 0x33e   :  { %v10034_v39 = vadd.f32 %v4067_v60, %v3899_v26  ;;  %v10036_v13 = vpop.f32.mrf.mxu0  ;;  %v7148_v26 = vld [vmem:[#allocation2 + $0x1d4] sm:$0xf0] }
 0x33f   :  { %v2941_v19 = vpop.f32.mrf.mxu3 }
 0x340   :  { %v2942_v18 = vadd.f32 %v2941_v19, %v9712_v58 }
 0x341   :  { %v3900_v3 = vpop.f32.mrf.mxu1  ;;  %3818 = vmatmul.bf16.gmra.mxu0 %v7255_v28  ;;  %v8102_v28 = vld [vmem:[#allocation2 + $0x2c0] sm:$0xf0] }
 0x342   :  { %v3901_v50 = vadd.f32 %v3900_v3, %v9891_v37  ;;  %v10041_v55 = vadd.f32 %v9979_v63, %v2942_v18  ;;  %v8071_v37 = vld [vmem:[#allocation2 + $0x1cc] sm:$0xf]  ;;  %v7267_v7 = vor.u32 %v8102_v28, %v7266_v15 }
 0x343   :  { %v7151_v61 = vor.u32 %v8071_v37, %v7148_v26 }
 0x344   :  { %2983 = vmatmul.bf16.gmra.mxu3 %v6759_v20 }
 0x345   :  { %v4069_v44 = vpop.f32.mrf.mxu2 }
 0x346   :  { %v10043_v5 = vadd.f32 %v4069_v44, %v3901_v50  ;;  %v10045_v6 = vpop.f32.mrf.mxu0  ;;  %v8193_v44 = vld [vmem:[#allocation2 + $0x2b0] sm:$0xf0] }
 0x347   :  { %v2944_v11 = vpop.f32.mrf.mxu3 }
 0x348   :  { %v2945_v58 = vadd.f32 %v2944_v11, %v9718_v53  ;;  %v6770_v53 = vld [vmem:[#allocation2 + $0x2a8] sm:$0xf] }
 0x349   :  { %v3903_v60 = vpop.f32.mrf.mxu1 }
 0x34a   :  { %v3904_v19 = vadd.f32 %v3903_v60, %v9906_v4  ;;  %4111 = vmatmul.bf16.gmra.mxu2 %v7155_v46  ;;  %v10050_v63 = vadd.f32 %v9994_v52, %v2945_v58  ;;  %v6771_v52 = vor.u32 %v8193_v44, %v6770_v53  ;;  %v7166_v46 = vld [vmem:[#allocation2 + $0x1e8] sm:$0xf]  ;;  %v8076_v60 = vld [vmem:[#allocation2 + $0x1f0] sm:$0xf0] }
 0x34b   :  { %v7167_v28 = vor.u32 %v8076_v60, %v7166_v46  ;;  %v8366_v44 = vld [vmem:[%s11133_s2 + $0x1d0] sm:$0xff]  ;;  %v6782_v46 = vld [vmem:[#allocation2 + $0x2c0] sm:$0xf]  ;;  %v8196_v60 = vld [vmem:[#allocation2 + $0x2c8] sm:$0xf0] }
 0x34c   :  { %3942 = vmatmul.bf16.gmra.mxu1 %v7151_v61  ;;  %v7160_v61 = vld [vmem:[#allocation2 + $0x1ec] sm:$0xf0]  ;;  %5066 = vmatpush.bf16.msra.mxu0 %v8366_v44 }
 0x34d   :  { %v4072_v18 = vpop.f32.mrf.mxu2 }
 0x34e   :  { %v10052_v3 = vadd.f32 %v4072_v18, %v3904_v19  ;;  %v10054_v50 = vpop.f32.mrf.mxu0 }
 0x34f   :  { %v2946_v20 = vpop.f32.mrf.mxu3 }
 0x350   :  { %v2947_v47 = vadd.f32 %v2946_v20, %v9724_v21  ;;  %v8358_v21 = vld [vmem:[%s11133_s2 + $0x190] sm:$0xff] }
 0x351   :  { %v3905_v4 = vpop.f32.mrf.mxu1  ;;  %3823 = vmatmul.bf16.gmra.mxu0 %v7267_v7  ;;  %4897 = vmatpush.bf16.msra.mxu3 %v8358_v21 }
 0x352   :  { %v3906_v26 = vadd.f32 %v3905_v4, %v9918_v23  ;;  %v10059_v11 = vadd.f32 %v10006_v14, %v2947_v47  ;;  %v8074_v14 = vld [vmem:[#allocation2 + $0x1e4] sm:$0xf]  ;;  %v7278_v47 = vld [vmem:[#allocation2 + $0x2d0] sm:$0xf]  ;;  %v8105_v4 = vld [vmem:[#allocation2 + $0x2d8] sm:$0xf0] }
 0x353   :  { %v7163_v53 = vor.u32 %v8074_v14, %v7160_v61  ;;  %v7279_v61 = vor.u32 %v8105_v4, %v7278_v47  ;;  %v7178_v14 = vld [vmem:[#allocation2 + $0x200] sm:$0xf]  ;;  %v7172_v47 = vld [vmem:[#allocation2 + $0x204] sm:$0xf0] }
 0x354   :  { %2988 = vmatmul.bf16.gmra.mxu3 %v6771_v52 }
 0x355   :  { %v4074_v58 = vpop.f32.mrf.mxu2 }
 0x356   :  { %v10061_v37 = vadd.f32 %v4074_v58, %v3906_v26  ;;  %v10063_v19 = vpop.f32.mrf.mxu0 }
 0x357   :  { %v2949_v15 = vpop.f32.mrf.mxu3 }
 0x358   :  { %v2950_v23 = vadd.f32 %v2949_v15, %v9732_v62 }
 0x359   :  { %v3908_v18 = vpop.f32.mrf.mxu1 }
 0x35a   :  { %v3909_v20 = vadd.f32 %v3908_v18, %v9927_v49  ;;  %4116 = vmatmul.bf16.gmra.mxu2 %v7167_v28  ;;  %v10074_v7 = vadd.f32 %v10015_v40, %v2950_v23  ;;  %v8374_v49 = vld [vmem:[%s11133_s2 + $0x210] sm:$0xff]  ;;  %v6783_v23 = vor.u32 %v8196_v60, %v6782_v46  ;;  %v7290_v60 = vld [vmem:[#allocation2 + $0x2e8] sm:$0xf] }
 0x35b   :  { %5235 = vmatpush.bf16.msra.mxu1 %v8374_v49 }
 0x35c   :  { %3947 = vmatmul.bf16.gmra.mxu1 %v7163_v53 }
 0x35d   :  { %v4077_v62 = vpop.f32.mrf.mxu2 }
 0x35e   :  { %v10076_v26 = vadd.f32 %v4077_v62, %v3909_v20  ;;  %v10078_v52 = vpop.f32.mrf.mxu0  ;;  %v8079_v20 = vld [vmem:[#allocation2 + $0x208] sm:$0xf0] }
 0x35f   :  { %v2951_v58 = vpop.f32.mrf.mxu3  ;;  %v7179_v62 = vor.u32 %v8079_v20, %v7178_v14 }
 0x360   :  { %v2952_v40 = vadd.f32 %v2951_v58, %v9740_v31 }
 0x361   :  { %v3910_v21 = vpop.f32.mrf.mxu1  ;;  %3828 = vmatmul.bf16.gmra.mxu0 %v7279_v61  ;;  %v8108_v61 = vld [vmem:[#allocation2 + $0x2f0] sm:$0xf0] }
 0x362   :  { %v3911_v15 = vadd.f32 %v3910_v21, %v9939_v22  ;;  %v10086_v28 = vadd.f32 %v10027_v32, %v2952_v40  ;;  %v8077_v22 = vld [vmem:[#allocation2 + $0x1fc] sm:$0xf]  ;;  %v7291_v14 = vor.u32 %v8108_v61, %v7290_v60  ;;  %v7184_v60 = vld [vmem:[#allocation2 + $0x21c] sm:$0xf0] }
 0x363   :  { %v7175_v46 = vor.u32 %v8077_v22, %v7172_v47  ;;  %v8082_v22 = vld [vmem:[#allocation2 + $0x220] sm:$0xf0] }
 0x364   :  { %2993 = vmatmul.bf16.gmra.mxu3 %v6783_v23 }
 0x365   :  { %v4079_v18 = vpop.f32.mrf.mxu2 }
 0x366   :  { %v10088_v53 = vadd.f32 %v4079_v18, %v3911_v15  ;;  %v10090_v44 = vpop.f32.mrf.mxu0  ;;  %v6794_v18 = vld [vmem:[#allocation2 + $0x2d8] sm:$0xf] }
 0x367   :  { %v2954_v4 = vpop.f32.mrf.mxu3 }
 0x368   :  { %11178 = vst [vmem:[#allocation43_spill] sm:$0xff] %v10088_v53  ;;  %v2955_v31 = vadd.f32 %v2954_v4, %v9754_v57  ;;  %v8384_v57 = vld [vmem:[%s11134_s3 + $0x20] sm:$0xff] }
 0x369   :  { %v3913_v49 = vpop.f32.mrf.mxu1  ;;  %5826 = vmatpush.bf16.msra.mxu2 %v8384_v57 }
 0x36a   :  { %v3914_v58 = vadd.f32 %v3913_v49, %v9948_v25  ;;  %4121 = vmatmul.bf16.gmra.mxu2 %v7179_v62  ;;  %v10095_v32 = vadd.f32 %v10036_v13, %v2955_v31  ;;  %v8199_v25 = vld [vmem:[#allocation2 + $0x2e0] sm:$0xf0]  ;;  %v7190_v49 = vld [vmem:[#allocation2 + $0x218] sm:$0xf] }
 0x36b   :  { %v6795_v4 = vor.u32 %v8199_v25, %v6794_v18  ;;  %v7302_v25 = vld [vmem:[#allocation2 + $0x300] sm:$0xf] }
 0x36c   :  { %3952 = vmatmul.bf16.gmra.mxu1 %v7175_v46 }
 0x36d   :  { %v4082_v40 = vpop.f32.mrf.mxu2 }
 0x36e   :  { %v10097_v21 = vadd.f32 %v4082_v40, %v3914_v58  ;;  %v10099_v15 = vpop.f32.mrf.mxu0  ;;  %v7191_v40 = vor.u32 %v8082_v22, %v7190_v49 }
 0x36f   :  { %v2956_v23 = vpop.f32.mrf.mxu3 }
 0x370   :  { %11179 = vst [vmem:[#allocation44_spill] sm:$0xff] %v10097_v21  ;;  %v2957_v20 = vadd.f32 %v2956_v23, %v9765_v30 }
 0x371   :  { %v3915_v13 = vpop.f32.mrf.mxu1  ;;  %3833 = vmatmul.bf16.gmra.mxu0 %v7291_v14  ;;  %v8111_v14 = vld [vmem:[#allocation2 + $0x308] sm:$0xf0] }
 0x372   :  { %v3916_v47 = vadd.f32 %v3915_v13, %v9957_v9  ;;  %v10107_v31 = vadd.f32 %v10045_v6, %v2957_v20  ;;  %v8080_v9 = vld [vmem:[#allocation2 + $0x214] sm:$0xf]  ;;  %v7303_v49 = vor.u32 %v8111_v14, %v7302_v25  ;;  %v7196_v25 = vld [vmem:[#allocation2 + $0x234] sm:$0xf0] }
 0x373   :  { %v7187_v18 = vor.u32 %v8080_v9, %v7184_v60  ;;  %v8364_v60 = vld [vmem:[%s11133_s2 + $0x1c0] sm:$0xff]  ;;  %v7202_v9 = vld [vmem:[#allocation2 + $0x230] sm:$0xf] }
 0x374   :  { %2998 = vmatmul.bf16.gmra.mxu3 %v6795_v4 }
 0x375   :  { %v4084_v62 = vpop.f32.mrf.mxu2 }
 0x376   :  { %v10109_v58 = vadd.f32 %v4084_v62, %v3916_v47  ;;  %v10111_v46 = vpop.f32.mrf.mxu0  ;;  %v6806_v62 = vld [vmem:[#allocation2 + $0x2f0] sm:$0xf] }
 0x377   :  { %v2959_v61 = vpop.f32.mrf.mxu3 }
 0x378   :  { %11180 = vst [vmem:[#allocation45_spill] sm:$0xff] %v10109_v58  ;;  %v2960_v30 = vadd.f32 %v2959_v61, %v9773_v36  ;;  %v8365_v36 = vld [vmem:[%s11133_s2 + $0x1c8] sm:$0xff]  ;;  %v7542_v58 = vld [vmem:[#allocation2 + $0xc0] sm:$0xf] }
 0x379   :  { %v3918_v57 = vpop.f32.mrf.mxu1  ;;  %5067 = vmatpush.bf16.msra.mxu0 %v8365_v36 }
 0x37a   :  { %v3919_v23 = vadd.f32 %v3918_v57, %v9966_v42  ;;  %4126 = vmatmul.bf16.gmra.mxu2 %v7191_v40  ;;  %v10116_v6 = vadd.f32 %v10054_v50, %v2960_v30  ;;  %v8202_v42 = vld [vmem:[#allocation2 + $0x2f8] sm:$0xf0] }
 0x37b   :  { %v6807_v30 = vor.u32 %v8202_v42, %v6806_v62 }
 0x37c   :  { %3957 = vmatmul.bf16.gmra.mxu1 %v7187_v18 }
 0x37d   :  { %v4087_v20 = vpop.f32.mrf.mxu2  ;;  %5068 = vmatpush.bf16.msra.mxu0 %v8364_v60 }
 0x37e   :  { %v10118_v13 = vadd.f32 %v4087_v20, %v3919_v23  ;;  %v10120_v47 = vpop.f32.mrf.mxu0  ;;  %v8085_v23 = vld [vmem:[#allocation2 + $0x238] sm:$0xf0]  ;;  %v11183_v20 = vld [vmem:[#allocation35_spill] sm:$0xff] }
 0x37f   :  { %v2961_v4 = vpop.f32.mrf.mxu3 }
 0x380   :  { %11181 = vst [vmem:[#allocation46_spill] sm:$0xff] %v10118_v13  ;;  %v2962_v22 = vadd.f32 %v2961_v4, %v9781_v34  ;;  %v7203_v4 = vor.u32 %v8085_v23, %v7202_v9  ;;  %v8205_v9 = vld [vmem:[#allocation2 + $0x310] sm:$0xf0] }
 0x381   :  { %v3920_v50 = vpop.f32.mrf.mxu1  ;;  %3838 = vmatmul.bf16.gmra.mxu0 %v7303_v49  ;;  %v8083_v49 = vld [vmem:[#allocation2 + $0x22c] sm:$0xf] }
 0x382   :  { %v3921_v61 = vadd.f32 %v3920_v50, %v9975_v43  ;;  %v10131_v40 = vadd.f32 %v10063_v19, %v2962_v22  ;;  %v7199_v19 = vor.u32 %v8083_v49, %v7196_v25  ;;  %v7314_v22 = vld [vmem:[#allocation2 + $0x318] sm:$0xf]  ;;  %v8114_v50 = vld [vmem:[#allocation2 + $0x320] sm:$0xf0]  ;;  %v8088_v49 = vld [vmem:[#allocation2 + $0x250] sm:$0xf0] }
 0x383   :  { %v7315_v23 = vor.u32 %v8114_v50, %v7314_v22  ;;  %v8357_v22 = vld [vmem:[%s11133_s2 + $0x188] sm:$0xff] }
 0x384   :  { %3003 = vmatmul.bf16.gmra.mxu3 %v6807_v30 }
 0x385   :  { %v4089_v57 = vpop.f32.mrf.mxu2  ;;  %4898 = vmatpush.bf16.msra.mxu3 %v8357_v22 }
 0x386   :  { %v10133_v18 = vadd.f32 %v4089_v57, %v3921_v61  ;;  %v10135_v34 = vpop.f32.mrf.mxu0 }
 0x387   :  { %v2964_v14 = vpop.f32.mrf.mxu3 }
 0x388   :  { %11182 = vst [vmem:[#allocation47_spill] sm:$0xff] %v10133_v18  ;;  %v2965_v36 = vadd.f32 %v2964_v14, %v11183_v20  ;;  %v6818_v14 = vld [vmem:[#allocation2 + $0x308] sm:$0xf] }
 0x389   :  { %v3923_v43 = vpop.f32.mrf.mxu1  ;;  %v11185_v20 = vld [vmem:[#allocation36_spill] sm:$0xff] }
 0x38a   :  { %v3924_v62 = vadd.f32 %v3923_v43, %v9990_v8  ;;  %4131 = vmatmul.bf16.gmra.mxu2 %v7203_v4  ;;  %v10140_v42 = vadd.f32 %v10078_v52, %v2965_v36  ;;  %v6819_v52 = vor.u32 %v8205_v9, %v6818_v14  ;;  %v7214_v43 = vld [vmem:[#allocation2 + $0x248] sm:$0xf] }
 0x38b   :  { %v7215_v14 = vor.u32 %v8088_v49, %v7214_v43  ;;  %v6830_v49 = vld [vmem:[#allocation2 + $0x320] sm:$0xf] }
 0x38c   :  { %3962 = vmatmul.bf16.gmra.mxu1 %v7199_v19 }
 0x38d   :  { %v4092_v60 = vpop.f32.mrf.mxu2 }
 0x38e   :  { %v10142_v61 = vadd.f32 %v4092_v60, %v3924_v62  ;;  %v10144_v30 = vpop.f32.mrf.mxu0  ;;  %v7208_v60 = vld [vmem:[#allocation2 + $0x24c] sm:$0xf0] }
 0x38f   :  { %v2966_v57 = vpop.f32.mrf.mxu3 }
 0x390   :  { %11184 = vst [vmem:[#allocation35_spill] sm:$0xff] %v10142_v61  ;;  %v2967_v18 = vadd.f32 %v2966_v57, %v11185_v20  ;;  %v7472_v20 = vld [vmem:[#allocation2 + $0x3c] sm:$0xf0] }
 0x391   :  { %v3925_v8 = vpop.f32.mrf.mxu1  ;;  %3843 = vmatmul.bf16.gmra.mxu0 %v7315_v23 }
 0x392   :  { %v3926_v25 = vadd.f32 %v3925_v8, %v10002_v38  ;;  %v10149_v36 = vadd.f32 %v10090_v44, %v2967_v18  ;;  %v11187_v38 = vld [vmem:[#allocation37_spill] sm:$0xff]  ;;  %v8086_v44 = vld [vmem:[#allocation2 + $0x244] sm:$0xf] }
 0x393   :  { %v7211_v23 = vor.u32 %v8086_v44, %v7208_v60  ;;  %v11189_v60 = vld [vmem:[#allocation38_spill] sm:$0xff]  ;;  %v8356_v44 = vld [vmem:[%s11133_s2 + $0x180] sm:$0xff] }
 0x394   :  { %3008 = vmatmul.bf16.gmra.mxu3 %v6819_v52 }
 0x395   :  { %v4094_v4 = vpop.f32.mrf.mxu2  ;;  %4899 = vmatpush.bf16.msra.mxu3 %v8356_v44 }
 0x396   :  { %v10151_v62 = vadd.f32 %v4094_v4, %v3926_v25  ;;  %v10153_v19 = vpop.f32.mrf.mxu0  ;;  %v8212_v4 = vld [vmem:[#allocation2 + $0x34] sm:$0xf] }
 0x397   :  { %v2969_v50 = vpop.f32.mrf.mxu3  ;;  %v7475_v22 = vor.u32 %v8212_v4, %v7472_v20  ;;  %v8091_v20 = vld [vmem:[#allocation2 + $0x268] sm:$0xf0] }
 0x398   :  { %11186 = vst [vmem:[#allocation36_spill] sm:$0xff] %v10151_v62  ;;  %v2970_v57 = vadd.f32 %v2969_v50, %v11187_v38  ;;  %v8373_v50 = vld [vmem:[%s11133_s2 + $0x208] sm:$0xff] }
 0x399   :  { %v3928_v9 = vpop.f32.mrf.mxu1  ;;  %v8208_v38 = vld [vmem:[#allocation2 + $0x328] sm:$0xf0]  ;;  %5236 = vmatpush.bf16.msra.mxu1 %v8373_v50 }
 0x39a   :  { %v3929_v18 = vadd.f32 %v3928_v9, %v10011_v41  ;;  %4136 = vmatmul.bf16.gmra.mxu2 %v7215_v14  ;;  %v10168_v41 = vadd.f32 %v10099_v15, %v2970_v57  ;;  %v7220_v57 = vld [vmem:[#allocation2 + $0x264] sm:$0xf0] }
 0x39c   :  { %3967 = vmatmul.bf16.gmra.mxu1 %v7211_v23  ;;  %v6831_v23 = vor.u32 %v8208_v38, %v6830_v49 }
 0x39d   :  { %v4097_v8 = vpop.f32.mrf.mxu2 }
 0x39e   :  { %v10160_v25 = vadd.f32 %v4097_v8, %v3929_v18  ;;  %v10162_v52 = vpop.f32.mrf.mxu0 }
 0x39f   :  { %v2971_v43 = vpop.f32.mrf.mxu3 }
 0x3a0   :  { %11188 = vst [vmem:[#allocation37_spill] sm:$0xff] %v10160_v25  ;;  %v2972_v14 = vadd.f32 %v2971_v43, %v11189_v60  ;;  %v7226_v25 = vld [vmem:[#allocation2 + $0x260] sm:$0xf] }
 0x3a1   :  { %v3930_v9 = vpop.f32.mrf.mxu1  ;;  %5069 = vmatmul.bf16.vlgmr.msra.gmra.mxu0 %v7475_v22  ;;  %v11191_v60 = vld [vmem:[#allocation39_spill] sm:$0xff]  ;;  %v7227_v61 = vor.u32 %v8091_v20, %v7226_v25  ;;  %v8089_v22 = vld [vmem:[#allocation2 + $0x25c] sm:$0xf]  ;;  %v6842_v25 = vld [vmem:[#allocation2 + $0x338] sm:$0xf] }
 0x3a2   :  { %v3931_v18 = vadd.f32 %v3930_v9, %v10023_v33  ;;  %v10180_v50 = vadd.f32 %v10111_v46, %v2972_v14  ;;  %v7223_v38 = vor.u32 %v8089_v22, %v7220_v57  ;;  %v7484_v9 = vld [vmem:[#allocation2 + $0x54] sm:$0xf0]  ;;  %v8211_v20 = vld [vmem:[#allocation2 + $0x340] sm:$0xf0] }
 0x3a3   :  { %v8383_v46 = vld [vmem:[%s11134_s3 + $0x18] sm:$0xff]  ;;  %v6843_v22 = vor.u32 %v8211_v20, %v6842_v25 }
 0x3a4   :  { %3013 = vmatmul.bf16.gmra.mxu3 %v6831_v23  ;;  %5827 = vmatpush.bf16.msra.mxu2 %v8383_v46 }
 0x3a5   :  { %v4099_v8 = vpop.f32.mrf.mxu2 }
 0x3a6   :  { %v10175_v4 = vadd.f32 %v4099_v8, %v3931_v18  ;;  %v10177_v15 = vpop.f32.mrf.mxu0  ;;  %v8215_v8 = vld [vmem:[#allocation2 + $0x4c] sm:$0xf] }
 0x3a7   :  { %v2974_v43 = vpop.f32.mrf.mxu3 }
 0x3a8   :  { %11190 = vst [vmem:[#allocation38_spill] sm:$0xff] %v10175_v4  ;;  %v2975_v62 = vadd.f32 %v2974_v43, %v11191_v60  ;;  %v7487_v43 = vor.u32 %v8215_v8, %v7484_v9  ;;  %v7232_v9 = vld [vmem:[#allocation2 + $0x27c] sm:$0xf0] }
 0x3a9   :  { %v3933_v33 = vpop.f32.mrf.mxu1 }
 0x3aa   :  { %v3934_v49 = vadd.f32 %v3933_v33, %v10032_v29  ;;  %4141 = vmatmul.bf16.gmra.mxu2 %v7227_v61  ;;  %v10192_v29 = vadd.f32 %v10120_v47, %v2975_v62  ;;  %v11193_v61 = vld [vmem:[#allocation40_spill] sm:$0xff]  ;;  %v11195_v62 = vld [vmem:[#allocation41_spill] sm:$0xff] }
 0x3ac   :  { %3972 = vmatmul.bf16.gmra.mxu1 %v7223_v38  ;;  %v7238_v38 = vld [vmem:[#allocation2 + $0x278] sm:$0xf] }
 0x3ad   :  { %v4102_v44 = vpop.f32.mrf.mxu2 }
 0x3ae   :  { %v10184_v18 = vadd.f32 %v4102_v44, %v3934_v49  ;;  %v10186_v23 = vpop.f32.mrf.mxu0  ;;  %v8094_v44 = vld [vmem:[#allocation2 + $0x280] sm:$0xf0] }
 0x3af   :  { %v2976_v14 = vpop.f32.mrf.mxu3  ;;  %v7239_v46 = vor.u32 %v8094_v44, %v7238_v38 }
 0x3b0   :  { %11192 = vst [vmem:[#allocation39_spill] sm:$0xff] %v10184_v18  ;;  %v2977_v57 = vadd.f32 %v2976_v14, %v11193_v61 }
 0x3b1   :  { %v3935_v60 = vpop.f32.mrf.mxu1  ;;  %5074 = vmatmul.bf16.gmra.mxu0 %v7487_v43  ;;  %v7496_v43 = vld [vmem:[#allocation2 + $0x6c] sm:$0xf0] }
 0x3b2   :  { %v3936_v33 = vadd.f32 %v3935_v60, %v10041_v55  ;;  %v10201_v47 = vadd.f32 %v10135_v34, %v2977_v57  ;;  %v8092_v55 = vld [vmem:[#allocation2 + $0x274] sm:$0xf]  ;;  %v7470_v34 = vld [vmem:[#allocation2 + $0x30] sm:$0xf]  ;;  %v8213_v57 = vld [vmem:[#allocation2 + $0x38] sm:$0xf0] }
 0x3b3   :  { %v7235_v20 = vor.u32 %v8092_v55, %v7232_v9  ;;  %v11197_v55 = vld [vmem:[#allocation3_spill] sm:$0xff] }
 0x3b4   :  { %3018 = vmatmul.bf16.gmra.mxu3 %v6843_v22 }
 0x3b5   :  { %v4104_v49 = vpop.f32.mrf.mxu2 }
 0x3b6   :  { %v10196_v18 = vadd.f32 %v4104_v49, %v3936_v33  ;;  %v10198_v4 = vpop.f32.mrf.mxu0  ;;  %v8218_v49 = vld [vmem:[#allocation2 + $0x64] sm:$0xf] }
 0x3b7   :  { %v2979_v8 = vpop.f32.mrf.mxu3  ;;  %v7499_v13 = vor.u32 %v8218_v49, %v7496_v43 }
 0x3b8   :  { %11194 = vst [vmem:[#allocation40_spill] sm:$0xff] %v10196_v18  ;;  %v2980_v14 = vadd.f32 %v2979_v8, %v11195_v62  ;;  %v7471_v8 = vor.u32 %v8213_v57, %v7470_v34 }
 0x3b9   :  { %v3938_v61 = vpop.f32.mrf.mxu1 }
 0x3ba   :  { %v3939_v25 = vadd.f32 %v3938_v61, %v10050_v63  ;;  %4146 = vmatmul.bf16.gmra.mxu2 %v7239_v46  ;;  %v10210_v38 = vadd.f32 %v10144_v30, %v2980_v14  ;;  %v7250_v46 = vld [vmem:[#allocation2 + $0x290] sm:$0xf]  ;;  %v8097_v61 = vld [vmem:[#allocation2 + $0x298] sm:$0xf0]  ;;  %v8095_v30 = vld [vmem:[#allocation2 + $0x28c] sm:$0xf] }
 0x3bb   :  { %v7244_v14 = vld [vmem:[#allocation2 + $0x294] sm:$0xf0] }
 0x3bc   :  { %3977 = vmatmul.bf16.gmra.mxu1 %v7235_v20  ;;  %v7247_v57 = vor.u32 %v8095_v30, %v7244_v14 }
 0x3bd   :  { %v4107_v60 = vpop.f32.mrf.mxu2 }
 0x3be   :  { %v10205_v33 = vadd.f32 %v4107_v60, %v3939_v25  ;;  %v10207_v22 = vpop.f32.mrf.mxu0  ;;  %v11198_v25 = vld [vmem:[#allocation19_spill] sm:$0xff] }
 0x3bf   :  { %v2981_v18 = vpop.f32.mrf.mxu3  ;;  %v2816_v20 = vadd.f32 %v11198_v25, %v11197_v55 }
 0x3c0   :  { %11196 = vst [vmem:[#allocation41_spill] sm:$0xff] %v10205_v33  ;;  %v2982_v44 = vadd.f32 %v2981_v18, %v9857_v56  ;;  %v8221_v33 = vld [vmem:[#allocation2 + $0x7c] sm:$0xf] }
 0x3c1   :  { %v3940_v63 = vpop.f32.mrf.mxu1  ;;  %5079 = vmatmul.bf16.gmra.mxu0 %v7499_v13  ;;  %v7251_v13 = vor.u32 %v8097_v61, %v7250_v46 }
 0x3c2   :  { %v3941_v9 = vadd.f32 %v3940_v63, %v10059_v11  ;;  %v10221_v56 = vadd.f32 %v10153_v19, %v2982_v44  ;;  %v7508_v63 = vld [vmem:[#allocation2 + $0x84] sm:$0xf0] }
 0x3c3   :  { %v7482_v44 = vld [vmem:[#allocation2 + $0x48] sm:$0xf]  ;;  %v7511_v46 = vor.u32 %v8221_v33, %v7508_v63  ;;  %v8098_v33 = vld [vmem:[#allocation2 + $0x2a4] sm:$0xf] }
 0x3c4   :  { %4900 = vmatmul.bf16.vlgmr.msra.gmra.mxu3 %v7471_v8 }
 0x3c5   :  { %v4109_v62 = vpop.f32.mrf.mxu2 }
 0x3c6   :  { %v10216_v60 = vadd.f32 %v4109_v62, %v3941_v9  ;;  %v10218_v43 = vpop.f32.mrf.mxu0  ;;  %v11200_v9 = vld [vmem:[#allocation4_spill] sm:$0xff] }
 0x3c7   :  { %v2984_v49 = vpop.f32.mrf.mxu3  ;;  %v11201_v62 = vld [vmem:[#allocation20_spill] sm:$0xff] }
 0x3c8   :  { %11199 = vst [vmem:[#allocation3_spill] sm:$0xff] %v10216_v60  ;;  %v2985_v11 = vadd.f32 %v2984_v49, %v2816_v20  ;;  %v2818_v55 = vadd.f32 %v11201_v62, %v11200_v9  ;;  %v8216_v20 = vld [vmem:[#allocation2 + $0x50] sm:$0xf0] }
 0x3c9   :  { %v3943_v18 = vpop.f32.mrf.mxu1  ;;  %v7483_v49 = vor.u32 %v8216_v20, %v7482_v44 }
 0x3ca   :  { %v3944_v34 = vadd.f32 %v3943_v18, %v10074_v7  ;;  %4151 = vmatmul.bf16.gmra.mxu2 %v7251_v13  ;;  %v10231_v61 = vadd.f32 %v10162_v52, %v2985_v11  ;;  %v7262_v18 = vld [vmem:[#allocation2 + $0x2a8] sm:$0xf]  ;;  %v7256_v52 = vld [vmem:[#allocation2 + $0x2ac] sm:$0xf0] }
 0x3cb   :  { %v7259_v20 = vor.u32 %v8098_v33, %v7256_v52 }
 0x3cc   :  { %3982 = vmatmul.bf16.gmra.mxu1 %v7247_v57  ;;  %v11203_v57 = vld [vmem:[#allocation5_spill] sm:$0xff] }
 0x3cd   :  { %v4112_v8 = vpop.f32.mrf.mxu2 }
 0x3ce   :  { %v10226_v25 = vadd.f32 %v4112_v8, %v3944_v34  ;;  %v10228_v60 = vpop.f32.mrf.mxu0  ;;  %v8100_v34 = vld [vmem:[#allocation2 + $0x2b0] sm:$0xf0] }
 0x3cf   :  { %v2986_v19 = vpop.f32.mrf.mxu3  ;;  %v11204_v8 = vld [vmem:[#allocation21_spill] sm:$0xff] }
 0x3d0   :  { %11202 = vst [vmem:[#allocation19_spill] sm:$0xff] %v10226_v25  ;;  %v2987_v7 = vadd.f32 %v2986_v19, %v2818_v55  ;;  %v2821_v9 = vadd.f32 %v11204_v8, %v11203_v57  ;;  %v7263_v55 = vor.u32 %v8100_v34, %v7262_v18  ;;  %v7494_v18 = vld [vmem:[#allocation2 + $0x60] sm:$0xf] }
 0x3d1   :  { %v3945_v30 = vpop.f32.mrf.mxu1  ;;  %5084 = vmatmul.bf16.gmra.mxu0 %v7511_v46  ;;  %v7520_v46 = vld [vmem:[#allocation2 + $0x9c] sm:$0xf0] }
 0x3d2   :  { %v3946_v14 = vadd.f32 %v3945_v30, %v10086_v28  ;;  %v10241_v63 = vadd.f32 %v10177_v15, %v2987_v7  ;;  %v8372_v15 = vld [vmem:[%s11133_s2 + $0x200] sm:$0xff] }
 0x3d3   :  { %5237 = vmatpush.bf16.msra.mxu1 %v8372_v15 }
 0x3d4   :  { %4905 = vmatmul.bf16.gmra.mxu3 %v7483_v49  ;;  %v11207_v49 = vld [vmem:[#allocation22_spill] sm:$0xff] }
 0x3d5   :  { %v4114_v13 = vpop.f32.mrf.mxu2 }
 0x3d6   :  { %v10236_v62 = vadd.f32 %v4114_v13, %v3946_v14  ;;  %v10238_v25 = vpop.f32.mrf.mxu0  ;;  %v11206_v14 = vld [vmem:[#allocation6_spill] sm:$0xff] }
 0x3d7   :  { %v2989_v11 = vpop.f32.mrf.mxu3  ;;  %v2823_v13 = vadd.f32 %v11207_v49, %v11206_v14  ;;  %v11210_v14 = vld [vmem:[#allocation23_spill] sm:$0xff] }
 0x3d8   :  { %11205 = vst [vmem:[#allocation4_spill] sm:$0xff] %v10236_v62  ;;  %v2990_v28 = vadd.f32 %v2989_v11, %v2821_v9  ;;  %v8224_v62 = vld [vmem:[#allocation2 + $0x94] sm:$0xf] }
 0x3d9   :  { %v3948_v19 = vpop.f32.mrf.mxu1  ;;  %v7523_v34 = vor.u32 %v8224_v62, %v7520_v46 }
 0x3da   :  { %v3949_v44 = vadd.f32 %v3948_v19, %v10095_v32  ;;  %4156 = vmatmul.bf16.gmra.mxu2 %v7263_v55  ;;  %v8219_v32 = vld [vmem:[#allocation2 + $0x68] sm:$0xf0]  ;;  %v10254_v9 = vadd.f32 %v10186_v23, %v2990_v28  ;;  %v8101_v23 = vld [vmem:[#allocation2 + $0x2bc] sm:$0xf]  ;;  %v7268_v28 = vld [vmem:[#allocation2 + $0x2c4] sm:$0xf0] }
 0x3db   :  { %v7495_v55 = vor.u32 %v8219_v32, %v7494_v18  ;;  %v7271_v32 = vor.u32 %v8101_v23, %v7268_v28 }
 0x3dc   :  { %3987 = vmatmul.bf16.gmra.mxu1 %v7259_v20  ;;  %v8103_v20 = vld [vmem:[#allocation2 + $0x2c8] sm:$0xf0] }
 0x3dd   :  { %v4117_v30 = vpop.f32.mrf.mxu2 }
 0x3de   :  { %v10246_v57 = vadd.f32 %v4117_v30, %v3949_v44  ;;  %v10248_v8 = vpop.f32.mrf.mxu0  ;;  %v7274_v44 = vld [vmem:[#allocation2 + $0x2c0] sm:$0xf] }
 0x3df   :  { %v2991_v7 = vpop.f32.mrf.mxu3  ;;  %v11209_v30 = vld [vmem:[#allocation7_spill] sm:$0xff]  ;;  %v7275_v15 = vor.u32 %v8103_v20, %v7274_v44  ;;  %v7506_v44 = vld [vmem:[#allocation2 + $0x78] sm:$0xf] }
 0x3e0   :  { %11208 = vst [vmem:[#allocation20_spill] sm:$0xff] %v10246_v57  ;;  %v2992_v33 = vadd.f32 %v2991_v7, %v2823_v13  ;;  %v2826_v49 = vadd.f32 %v11210_v14, %v11209_v30 }
 0x3e1   :  { %v3950_v52 = vpop.f32.mrf.mxu1  ;;  %5089 = vmatmul.bf16.gmra.mxu0 %v7523_v34  ;;  %v7532_v34 = vld [vmem:[#allocation2 + $0xb4] sm:$0xf0] }
 0x3e2   :  { %v3951_v11 = vadd.f32 %v3950_v52, %v10107_v31  ;;  %v10264_v13 = vadd.f32 %v10198_v4, %v2992_v33  ;;  %v8382_v4 = vld [vmem:[%s11134_s3 + $0x10] sm:$0xff] }
 0x3e3   :  { %5828 = vmatpush.bf16.msra.mxu2 %v8382_v4 }
 0x3e4   :  { %4910 = vmatmul.bf16.gmra.mxu3 %v7495_v55  ;;  %v11213_v55 = vld [vmem:[#allocation24_spill] sm:$0xff] }
 0x3e5   :  { %v4119_v19 = vpop.f32.mrf.mxu2 }
 0x3e6   :  { %v10259_v57 = vadd.f32 %v4119_v19, %v3951_v11  ;;  %v10261_v62 = vpop.f32.mrf.mxu0  ;;  %v11212_v11 = vld [vmem:[#allocation8_spill] sm:$0xff] }
 0x3e7   :  { %v2994_v46 = vpop.f32.mrf.mxu3  ;;  %v2828_v19 = vadd.f32 %v11213_v55, %v11212_v11  ;;  %v11216_v11 = vld [vmem:[#allocation25_spill] sm:$0xff] }
 0x3e8   :  { %11211 = vst [vmem:[#allocation5_spill] sm:$0xff] %v10259_v57  ;;  %v2995_v31 = vadd.f32 %v2994_v46, %v2826_v49  ;;  %v8227_v57 = vld [vmem:[#allocation2 + $0xac] sm:$0xf] }
 0x3e9   :  { %v3953_v7 = vpop.f32.mrf.mxu1  ;;  %v7535_v20 = vor.u32 %v8227_v57, %v7532_v34 }
 0x3ea   :  { %v3954_v18 = vadd.f32 %v3953_v7, %v10116_v6  ;;  %4161 = vmatmul.bf16.gmra.mxu2 %v7275_v15  ;;  %v8222_v6 = vld [vmem:[#allocation2 + $0x80] sm:$0xf0]  ;;  %v10277_v49 = vadd.f32 %v10207_v22, %v2995_v31  ;;  %v8104_v22 = vld [vmem:[#allocation2 + $0x2d4] sm:$0xf]  ;;  %v7280_v31 = vld [vmem:[#allocation2 + $0x2dc] sm:$0xf0] }
 0x3eb   :  { %v7507_v15 = vor.u32 %v8222_v6, %v7506_v44  ;;  %v7283_v6 = vor.u32 %v8104_v22, %v7280_v31 }
 0x3ec   :  { %3992 = vmatmul.bf16.gmra.mxu1 %v7271_v32  ;;  %v8106_v32 = vld [vmem:[#allocation2 + $0x2e0] sm:$0xf0] }
 0x3ed   :  { %v4122_v52 = vpop.f32.mrf.mxu2 }
 0x3ee   :  { %v10269_v30 = vadd.f32 %v4122_v52, %v3954_v18  ;;  %v10271_v14 = vpop.f32.mrf.mxu0  ;;  %v7286_v18 = vld [vmem:[#allocation2 + $0x2d8] sm:$0xf]  ;;  %v11215_v52 = vld [vmem:[#allocation9_spill] sm:$0xff] }
 0x3ef   :  { %v2996_v33 = vpop.f32.mrf.mxu3  ;;  %v2831_v55 = vadd.f32 %v11216_v11, %v11215_v52  ;;  %v7287_v4 = vor.u32 %v8106_v32, %v7286_v18 }
 0x3f0   :  { %11214 = vst [vmem:[#allocation21_spill] sm:$0xff] %v10269_v30  ;;  %v2997_v23 = vadd.f32 %v2996_v33, %v2828_v19 }
 0x3f1   :  { %v3955_v28 = vpop.f32.mrf.mxu1  ;;  %5094 = vmatmul.bf16.gmra.mxu0 %v7535_v20  ;;  %v7544_v20 = vld [vmem:[#allocation2 + $0xcc] sm:$0xf0] }
 0x3f2   :  { %v3956_v46 = vadd.f32 %v3955_v28, %v10131_v40  ;;  %v10287_v19 = vadd.f32 %v10218_v43, %v2997_v23  ;;  %v7518_v23 = vld [vmem:[#allocation2 + $0x90] sm:$0xf] }
 0x3f4   :  { %4915 = vmatmul.bf16.gmra.mxu3 %v7507_v15  ;;  %v11219_v15 = vld [vmem:[#allocation26_spill] sm:$0xff] }
 0x3f5   :  { %v4124_v7 = vpop.f32.mrf.mxu2 }
 0x3f6   :  { %v10282_v30 = vadd.f32 %v4124_v7, %v3956_v46  ;;  %v10284_v57 = vpop.f32.mrf.mxu0  ;;  %v11218_v46 = vld [vmem:[#allocation10_spill] sm:$0xff] }
 0x3f7   :  { %v2999_v34 = vpop.f32.mrf.mxu3  ;;  %v2833_v7 = vadd.f32 %v11219_v15, %v11218_v46 }
 0x3f8   :  { %11217 = vst [vmem:[#allocation6_spill] sm:$0xff] %v10282_v30  ;;  %v3000_v40 = vadd.f32 %v2999_v34, %v2831_v55  ;;  %v8230_v30 = vld [vmem:[#allocation2 + $0xc4] sm:$0xf]  ;;  %v8225_v55 = vld [vmem:[#allocation2 + $0x98] sm:$0xf0] }
 0x3f9   :  { %v3958_v33 = vpop.f32.mrf.mxu1  ;;  %v7547_v18 = vor.u32 %v8230_v30, %v7544_v20  ;;  %v7519_v34 = vor.u32 %v8225_v55, %v7518_v23  ;;  %v8107_v30 = vld [vmem:[#allocation2 + $0x2ec] sm:$0xf] }
 0x3fa   :  { %v3959_v44 = vadd.f32 %v3958_v33, %v10140_v42  ;;  %4166 = vmatmul.bf16.gmra.mxu2 %v7287_v4  ;;  %v10297_v32 = vadd.f32 %v10228_v60, %v3000_v40  ;;  %v7298_v33 = vld [vmem:[#allocation2 + $0x2f0] sm:$0xf]  ;;  %v7292_v60 = vld [vmem:[#allocation2 + $0x2f4] sm:$0xf0] }
 0x3fb   :  { %v7295_v55 = vor.u32 %v8107_v30, %v7292_v60 }
 0x3fc   :  { %3997 = vmatmul.bf16.gmra.mxu1 %v7283_v6  ;;  %v11223_v6 = vld [vmem:[#allocation11_spill] sm:$0xff] }
 0x3fd   :  { %v4127_v28 = vpop.f32.mrf.mxu2 }
 0x3fe   :  { %v10292_v52 = vadd.f32 %v4127_v28, %v3959_v44  ;;  %v10294_v11 = vpop.f32.mrf.mxu0  ;;  %v8109_v44 = vld [vmem:[#allocation2 + $0x2f8] sm:$0xf0]  ;;  %v11224_v28 = vld [vmem:[#allocation27_spill] sm:$0xff] }
 0x3ff   :  { %v3001_v43 = vpop.f32.mrf.mxu3  ;;  %v2836_v46 = vadd.f32 %v11224_v28, %v11223_v6  ;;  %v11226_v6 = vld [vmem:[#allocation28_spill] sm:$0xff] }
 0x400   :  { %11220 = vst [vmem:[#allocation22_spill] sm:$0xff] %v10292_v52  ;;  %v3002_v42 = vadd.f32 %v3001_v43, %v2833_v7  ;;  %v7299_v7 = vor.u32 %v8109_v44, %v7298_v33  ;;  %v8233_v52 = vld [vmem:[#allocation2 + $0xdc] sm:$0xf] }
 0x401   :  { %v3960_v22 = vpop.f32.mrf.mxu1  ;;  %5099 = vmatmul.bf16.gmra.mxu0 %v7547_v18  ;;  %v7556_v18 = vld [vmem:[#allocation2 + $0xe4] sm:$0xf0] }
 0x402   :  { %v10300_v31 = vadd.f32 %v3960_v22, %v10149_v36  ;;  %v10309_v20 = vadd.f32 %v10238_v25, %v3002_v42  ;;  %v7530_v42 = vld [vmem:[#allocation2 + $0xa8] sm:$0xf]  ;;  %v7559_v33 = vor.u32 %v8233_v52, %v7556_v18  ;;  %v8110_v52 = vld [vmem:[#allocation2 + $0x304] sm:$0xf] }
 0x404   :  { %11221 = vst [vmem:[#allocation7_spill] sm:$0xff] %v10300_v31  ;;  %4920 = vmatmul.bf16.gmra.mxu3 %v7519_v34  ;;  %v11225_v34 = vld [vmem:[#allocation12_spill] sm:$0xff] }
 0x405   :  { %v10302_v4 = vpop.f32.mrf.mxu2  ;;  %v2838_v28 = vadd.f32 %v11226_v6, %v11225_v34 }
 0x406   :  { %11222 = vst [vmem:[#allocation23_spill] sm:$0xff] %v10302_v4  ;;  %v10306_v15 = vpop.f32.mrf.mxu0 }
 0x407   :  { %v3004_v40 = vpop.f32.mrf.mxu3 }
 0x408   :  { %v3005_v36 = vadd.f32 %v3004_v40, %v2836_v46  ;;  %v8228_v46 = vld [vmem:[#allocation2 + $0xb0] sm:$0xf0] }
 0x409   :  { %v3963_v43 = vpop.f32.mrf.mxu1  ;;  %v7531_v40 = vor.u32 %v8228_v46, %v7530_v42  ;;  %v7568_v42 = vld [vmem:[#allocation2 + $0xfc] sm:$0xf0] }
 0x40a   :  { %v3964_v23 = vadd.f32 %v3963_v43, %v10168_v41  ;;  %4171 = vmatmul.bf16.gmra.mxu2 %v7299_v7  ;;  %v10319_v44 = vadd.f32 %v10248_v8, %v3005_v36  ;;  %v7310_v43 = vld [vmem:[#allocation2 + $0x308] sm:$0xf]  ;;  %v7304_v8 = vld [vmem:[#allocation2 + $0x30c] sm:$0xf0] }
 0x40c   :  { %4002 = vmatmul.bf16.gmra.mxu1 %v7295_v55  ;;  %v11230_v55 = vld [vmem:[#allocation13_spill] sm:$0xff] }
 0x40d   :  { %v4132_v22 = vpop.f32.mrf.mxu2 }
 0x40e   :  { %v10314_v4 = vadd.f32 %v4132_v22, %v3964_v23  ;;  %v10316_v31 = vpop.f32.mrf.mxu0  ;;  %v8112_v23 = vld [vmem:[#allocation2 + $0x310] sm:$0xf0] }
 0x40f   :  { %v3006_v25 = vpop.f32.mrf.mxu3  ;;  %v11231_v22 = vld [vmem:[#allocation29_spill] sm:$0xff] }
 0x410   :  { %11227 = vst [vmem:[#allocation8_spill] sm:$0xff] %v10314_v4  ;;  %v3007_v41 = vadd.f32 %v3006_v25, %v2838_v28  ;;  %v2841_v34 = vadd.f32 %v11231_v22, %v11230_v55  ;;  %v7311_v28 = vor.u32 %v8112_v23, %v7310_v43  ;;  %v8236_v22 = vld [vmem:[#allocation2 + $0xf4] sm:$0xf] }
 0x411   :  { %v3965_v30 = vpop.f32.mrf.mxu1  ;;  %5104 = vmatmul.bf16.gmra.mxu0 %v7559_v33  ;;  %v7307_v33 = vor.u32 %v8110_v52, %v7304_v8  ;;  %v7571_v43 = vor.u32 %v8236_v22, %v7568_v42 }
 0x412   :  { %v10322_v60 = vadd.f32 %v3965_v30, %v10180_v50  ;;  %v11232_v30 = vld [vmem:[#allocation14_spill] sm:$0xff] }
 0x414   :  { %11228 = vst [vmem:[#allocation24_spill] sm:$0xff] %v10322_v60  ;;  %4925 = vmatmul.bf16.gmra.mxu3 %v7531_v40  ;;  %v11233_v40 = vld [vmem:[#allocation30_spill] sm:$0xff] }
 0x415   :  { %v10324_v7 = vpop.f32.mrf.mxu2 }
 0x416   :  { %11229 = vst [vmem:[#allocation9_spill] sm:$0xff] %v10324_v7  ;;  %v10328_v6 = vpop.f32.mrf.mxu0  ;;  %v2843_v7 = vadd.f32 %v11233_v40, %v11232_v30  ;;  %v8113_v40 = vld [vmem:[#allocation2 + $0x31c] sm:$0xf] }
 0x417   :  { %v3009_v36 = vpop.f32.mrf.mxu3 }
 0x418   :  { %v3010_v18 = vadd.f32 %v3009_v36, %v2841_v34  ;;  %v8231_v34 = vld [vmem:[#allocation2 + $0xc8] sm:$0xf0] }
 0x419   :  { %v3968_v25 = vpop.f32.mrf.mxu1  ;;  %v7543_v52 = vor.u32 %v8231_v34, %v7542_v58  ;;  %v10348_v58 = vadd.f32 %v10261_v62, %v3007_v41  ;;  %v7580_v34 = vld [vmem:[#allocation2 + $0x114] sm:$0xf0]  ;;  %v8234_v62 = vld [vmem:[#allocation2 + $0xe0] sm:$0xf0] }
 0x41a   :  { %v3969_v50 = vadd.f32 %v3968_v25, %v10192_v29  ;;  %4176 = vmatmul.bf16.gmra.mxu2 %v7311_v28  ;;  %v7322_v28 = vld [vmem:[#allocation2 + $0x320] sm:$0xf]  ;;  %v8115_v25 = vld [vmem:[#allocation2 + $0x328] sm:$0xf0] }
 0x41c   :  { %4007 = vmatmul.bf16.gmra.mxu1 %v7307_v33  ;;  %v11238_v33 = vld [vmem:[#allocation31_spill] sm:$0xff] }
 0x41d   :  { %v4137_v46 = vpop.f32.mrf.mxu2 }
 0x41e   :  { %v10333_v60 = vadd.f32 %v4137_v46, %v3969_v50  ;;  %v10335_v55 = vpop.f32.mrf.mxu0  ;;  %v11237_v50 = vld [vmem:[#allocation15_spill] sm:$0xff] }
 0x41f   :  { %v3011_v4 = vpop.f32.mrf.mxu3  ;;  %v2846_v46 = vadd.f32 %v11238_v33, %v11237_v50  ;;  %v11240_v50 = vld [vmem:[#allocation32_spill] sm:$0xff] }
 0x420   :  { %11234 = vst [vmem:[#allocation25_spill] sm:$0xff] %v10333_v60  ;;  %v3012_v23 = vadd.f32 %v3011_v4, %v2843_v7  ;;  %v7316_v60 = vld [vmem:[#allocation2 + $0x324] sm:$0xf0]  ;;  %v7323_v7 = vor.u32 %v8115_v25, %v7322_v28  ;;  %v7554_v28 = vld [vmem:[#allocation2 + $0xd8] sm:$0xf] }
 0x421   :  { %v3970_v36 = vpop.f32.mrf.mxu1  ;;  %5109 = vmatmul.bf16.gmra.mxu0 %v7571_v43  ;;  %v7319_v43 = vor.u32 %v8113_v40, %v7316_v60 }
 0x422   :  { %v10338_v29 = vadd.f32 %v3970_v36, %v10201_v47 }
 0x424   :  { %11235 = vst [vmem:[#allocation10_spill] sm:$0xff] %v10338_v29  ;;  %4930 = vmatmul.bf16.gmra.mxu3 %v7543_v52  ;;  %v11239_v52 = vld [vmem:[#allocation16_spill] sm:$0xff] }
 0x425   :  { %v10340_v8 = vpop.f32.mrf.mxu2  ;;  %v2848_v33 = vadd.f32 %v11240_v50, %v11239_v52 }
 0x426   :  { %11236 = vst [vmem:[#allocation26_spill] sm:$0xff] %v10340_v8  ;;  %v10344_v30 = vpop.f32.mrf.mxu0 }
 0x427   :  { %v3014_v42 = vpop.f32.mrf.mxu3 }
 0x428   :  { %v3015_v4 = vadd.f32 %v3014_v42, %v2846_v46  ;;  %v8239_v46 = vld [vmem:[#allocation2 + $0x10c] sm:$0xf] }
 0x429   :  { %v3973_v22 = vpop.f32.mrf.mxu1  ;;  %v7583_v41 = vor.u32 %v8239_v46, %v7580_v34  ;;  %v7478_v34 = vld [vmem:[#allocation2 + $0x38] sm:$0xf] }
 0x42a   :  { %v3974_v47 = vadd.f32 %v3973_v22, %v10210_v38  ;;  %4181 = vmatmul.bf16.gmra.mxu2 %v7323_v7  ;;  %v8381_v38 = vld [vmem:[%s11134_s3 + $0x8] sm:$0xff]  ;;  %v10363_v7 = vadd.f32 %v10271_v14, %v3010_v18  ;;  %v7555_v22 = vor.u32 %v8234_v62, %v7554_v28  ;;  %v10373_v14 = vadd.f32 %v10284_v57, %v3012_v23  ;;  %v7592_v18 = vld [vmem:[#allocation2 + $0x12c] sm:$0xf0]  ;;  %v11246_v62 = vld [vmem:[#allocation18_spill] sm:$0xff] }
 0x42b   :  { %5829 = vmatpush.bf16.msra.mxu2 %v8381_v38  ;;  %v10385_v23 = vadd.f32 %v10294_v11, %v3015_v4  ;;  %v7604_v11 = vld [vmem:[#allocation2 + $0x144] sm:$0xf0] }
 0x42c   :  { %4012 = vmatmul.bf16.gmra.mxu1 %v7319_v43  ;;  %v11244_v43 = vld [vmem:[#allocation17_spill] sm:$0xff] }
 0x42d   :  { %v4142_v36 = vpop.f32.mrf.mxu2 }
 0x42e   :  { %v10352_v8 = vadd.f32 %v4142_v36, %v3974_v47  ;;  %v10354_v29 = vpop.f32.mrf.mxu0  ;;  %v11245_v36 = vld [vmem:[#allocation33_spill] sm:$0xff] }
 0x42f   :  { %v3016_v60 = vpop.f32.mrf.mxu3  ;;  %v2851_v52 = vadd.f32 %v11245_v36, %v11244_v43 }
 0x430   :  { %11241 = vst [vmem:[#allocation11_spill] sm:$0xff] %v10352_v8  ;;  %v3017_v25 = vadd.f32 %v3016_v60, %v2848_v33  ;;  %v8214_v33 = vld [vmem:[#allocation2 + $0x40] sm:$0xf0] }
 0x431   :  { %v3975_v40 = vpop.f32.mrf.mxu1  ;;  %5114 = vmatmul.bf16.gmra.mxu0 %v7583_v41  ;;  %v7479_v41 = vor.u32 %v8214_v33, %v7478_v34 }
 0x432   :  { %v10360_v42 = vadd.f32 %v3975_v40, %v10221_v56  ;;  %v11247_v40 = vld [vmem:[#allocation34_spill] sm:$0xff] }
 0x434   :  { %11242 = vst [vmem:[#allocation27_spill] sm:$0xff] %v10360_v42  ;;  %4935 = vmatmul.bf16.gmra.mxu3 %v7555_v22  ;;  %v2853_v22 = vadd.f32 %v11247_v40, %v11246_v62 }
 0x435   :  { %v10365_v47 = vpop.f32.mrf.mxu2 }
 0x436   :  { %11243 = vst [vmem:[#allocation12_spill] sm:$0xff] %v10365_v47  ;;  %v10369_v50 = vpop.f32.mrf.mxu0  ;;  %v8242_v47 = vld [vmem:[#allocation2 + $0x124] sm:$0xf] }
 0x437   :  { %v3019_v46 = vpop.f32.mrf.mxu3  ;;  %v7595_v8 = vor.u32 %v8242_v47, %v7592_v18 }
 0x438   :  { %v3020_v38 = vadd.f32 %v3019_v46, %v2851_v52  ;;  %v7566_v52 = vld [vmem:[#allocation2 + $0xf0] sm:$0xf]  ;;  %v8237_v46 = vld [vmem:[#allocation2 + $0xf8] sm:$0xf0] }
 0x439   :  { %v3978_v60 = vpop.f32.mrf.mxu1  ;;  %v7567_v33 = vor.u32 %v8237_v46, %v7566_v52  ;;  %v8245_v52 = vld [vmem:[#allocation2 + $0x13c] sm:$0xf] }
 0x43a   :  { %v3979_v56 = vadd.f32 %v3978_v60, %v10231_v61 }
 0x43c   :  { %5238 = vmatmul.bf16.vlgmr.msra.gmra.mxu1 %v7479_v41  ;;  %v7490_v41 = vld [vmem:[#allocation2 + $0x50] sm:$0xf] }
 0x43d   :  { %v4147_v28 = vpop.f32.mrf.mxu2 }
 0x43e   :  { %v10377_v43 = vadd.f32 %v4147_v28, %v3979_v56  ;;  %v10379_v36 = vpop.f32.mrf.mxu0  ;;  %v8217_v28 = vld [vmem:[#allocation2 + $0x58] sm:$0xf0] }
 0x43f   :  { %v3021_v42 = vpop.f32.mrf.mxu3  ;;  %v7491_v18 = vor.u32 %v8217_v28, %v7490_v41 }
 0x440   :  { %11248 = vst [vmem:[#allocation28_spill] sm:$0xff] %v10377_v43  ;;  %v3022_v61 = vadd.f32 %v3021_v42, %v2853_v22 }
 0x441   :  { %v3980_v34 = vpop.f32.mrf.mxu1  ;;  %5119 = vmatmul.bf16.gmra.mxu0 %v7595_v8  ;;  %v10396_v8 = vadd.f32 %v10306_v15, %v3017_v25  ;;  %v10408_v15 = vadd.f32 %v10316_v31, %v3020_v38  ;;  %v7616_v31 = vld [vmem:[#allocation2 + $0x15c] sm:$0xf0] }
 0x442   :  { %v10382_v57 = vadd.f32 %v3980_v34, %v10241_v63  ;;  %v7578_v34 = vld [vmem:[#allocation2 + $0x108] sm:$0xf] }
 0x444   :  { %11249 = vst [vmem:[#allocation13_spill] sm:$0xff] %v10382_v57  ;;  %4940 = vmatmul.bf16.gmra.mxu3 %v7567_v33  ;;  %v7607_v33 = vor.u32 %v8245_v52, %v7604_v11 }
 0x445   :  { %v10387_v60 = vpop.f32.mrf.mxu2 }
 0x446   :  { %11250 = vst [vmem:[#allocation29_spill] sm:$0xff] %v10387_v60  ;;  %v10389_v56 = vpop.f32.mrf.mxu0 }
 0x447   :  { %v4901_v62 = vpop.f32.mrf.mxu3 }
 0x448   :  { %v10392_v47 = vadd.f32 %v10335_v55, %v4901_v62  ;;  %v8240_v55 = vld [vmem:[#allocation2 + $0x110] sm:$0xf0] }
 0x449   :  { %v3983_v42 = vpop.f32.mrf.mxu1  ;;  %v7579_v25 = vor.u32 %v8240_v55, %v7578_v34 }
 0x44a   :  { %v3984_v63 = vadd.f32 %v3983_v42, %v10254_v9  ;;  %v7502_v42 = vld [vmem:[#allocation2 + $0x68] sm:$0xf] }
 0x44c   :  { %5243 = vmatmul.bf16.gmra.mxu1 %v7491_v18 }
 0x44d   :  { %v4152_v4 = vpop.f32.mrf.mxu2 }
 0x44e   :  { %v10398_v40 = vadd.f32 %v4152_v4, %v3984_v63  ;;  %v10400_v22 = vpop.f32.mrf.mxu0  ;;  %v8220_v63 = vld [vmem:[#allocation2 + $0x70] sm:$0xf0] }
 0x44f   :  { %v10402_v46 = vpop.f32.mrf.mxu3  ;;  %v7503_v52 = vor.u32 %v8220_v63, %v7502_v42  ;;  %v7514_v63 = vld [vmem:[#allocation2 + $0x80] sm:$0xf] }
 0x450   :  { %11251 = vst [vmem:[#allocation14_spill] sm:$0xff] %v10398_v40 }
 0x451   :  { %v3985_v62 = vpop.f32.mrf.mxu1  ;;  %5124 = vmatmul.bf16.gmra.mxu0 %v7607_v33  ;;  %v10419_v33 = vadd.f32 %v10328_v6, %v3022_v61 }
 0x452   :  { %v10405_v9 = vadd.f32 %v3985_v62, %v10264_v13  ;;  %v8248_v62 = vld [vmem:[#allocation2 + $0x154] sm:$0xf] }
 0x454   :  { %11252 = vst [vmem:[#allocation30_spill] sm:$0xff] %v10405_v9  ;;  %4945 = vmatmul.bf16.gmra.mxu3 %v7579_v25 }
 0x455   :  { %v10410_v41 = vpop.f32.mrf.mxu2 }
 0x456   :  { %11253 = vst [vmem:[#allocation15_spill] sm:$0xff] %v10410_v41  ;;  %v10412_v28 = vpop.f32.mrf.mxu0  ;;  %v7590_v41 = vld [vmem:[#allocation2 + $0x120] sm:$0xf] }
 0x457   :  { %v4906_v18 = vpop.f32.mrf.mxu3 }
 0x458   :  { %v10415_v4 = vadd.f32 %v10354_v29, %v4906_v18  ;;  %v8243_v29 = vld [vmem:[#allocation2 + $0x128] sm:$0xf0]  ;;  %v7619_v18 = vor.u32 %v8248_v62, %v7616_v31 }
 0x459   :  { %v3988_v11 = vpop.f32.mrf.mxu1  ;;  %v7591_v6 = vor.u32 %v8243_v29, %v7590_v41  ;;  %v8251_v29 = vld [vmem:[#allocation2 + $0x16c] sm:$0xf] }
 0x45a   :  { %v3989_v13 = vadd.f32 %v3988_v11, %v10277_v49  ;;  %v8223_v11 = vld [vmem:[#allocation2 + $0x88] sm:$0xf0] }
 0x45b   :  { %v7515_v62 = vor.u32 %v8223_v11, %v7514_v63 }
 0x45c   :  { %5248 = vmatmul.bf16.gmra.mxu1 %v7503_v52 }
 0x45d   :  { %v4157_v38 = vpop.f32.mrf.mxu2 }
 0x45e   :  { %v10421_v34 = vadd.f32 %v4157_v38, %v3989_v13  ;;  %v10423_v55 = vpop.f32.mrf.mxu0 }
 0x45f   :  { %v10425_v25 = vpop.f32.mrf.mxu3 }
 0x460   :  { %11254 = vst [vmem:[#allocation31_spill] sm:$0xff] %v10421_v34 }
 0x461   :  { %v3990_v9 = vpop.f32.mrf.mxu1  ;;  %5129 = vmatmul.bf16.gmra.mxu0 %v7619_v18 }
 0x462   :  { %v10428_v49 = vadd.f32 %v3990_v9, %v10287_v19  ;;  %v7628_v19 = vld [vmem:[#allocation2 + $0x174] sm:$0xf0] }
 0x464   :  { %11255 = vst [vmem:[#allocation16_spill] sm:$0xff] %v10428_v49  ;;  %4950 = vmatmul.bf16.gmra.mxu3 %v7591_v6  ;;  %v8380_v6 = vld [vmem:[%s11134_s3] sm:$0xff]  ;;  %v7631_v49 = vor.u32 %v8251_v29, %v7628_v19 }
 0x465   :  { %v10430_v61 = vpop.f32.mrf.mxu2  ;;  %5830 = vmatpush.bf16.msra.mxu2 %v8380_v6 }
 0x466   :  { %11256 = vst [vmem:[#allocation32_spill] sm:$0xff] %v10430_v61  ;;  %v10432_v42 = vpop.f32.mrf.mxu0 }
 0x467   :  { %v4911_v13 = vpop.f32.mrf.mxu3 }
 0x468   :  { %v10435_v52 = vadd.f32 %v10379_v36, %v4911_v13  ;;  %v7602_v36 = vld [vmem:[#allocation2 + $0x138] sm:$0xf]  ;;  %v8246_v13 = vld [vmem:[#allocation2 + $0x140] sm:$0xf0] }
 0x469   :  { %v3993_v38 = vpop.f32.mrf.mxu1  ;;  %v7603_v63 = vor.u32 %v8246_v13, %v7602_v36  ;;  %v8254_v36 = vld [vmem:[#allocation2 + $0x184] sm:$0xf] }
 0x46a   :  { %v3994_v31 = vadd.f32 %v3993_v38, %v10297_v32 }
 0x46c   :  { %5253 = vmatmul.bf16.gmra.mxu1 %v7515_v62  ;;  %v8226_v62 = vld [vmem:[#allocation2 + $0xa0] sm:$0xf0] }
 0x46d   :  { %v4162_v9 = vpop.f32.mrf.mxu2 }
 0x46e   :  { %v10438_v18 = vadd.f32 %v4162_v9, %v3994_v31  ;;  %v10440_v41 = vpop.f32.mrf.mxu0  ;;  %v7526_v31 = vld [vmem:[#allocation2 + $0x98] sm:$0xf] }
 0x46f   :  { %v10445_v61 = vpop.f32.mrf.mxu3  ;;  %v7527_v29 = vor.u32 %v8226_v62, %v7526_v31  ;;  %v7538_v62 = vld [vmem:[#allocation2 + $0xb0] sm:$0xf] }
 0x470   :  { %11257 = vst [vmem:[#allocation17_spill] sm:$0xff] %v10438_v18 }
 0x471   :  { %v3995_v34 = vpop.f32.mrf.mxu1  ;;  %5134 = vmatmul.bf16.gmra.mxu0 %v7631_v49 }
 0x472   :  { %v10448_v32 = vadd.f32 %v3995_v34, %v10309_v20  ;;  %v7640_v20 = vld [vmem:[#allocation2 + $0x18c] sm:$0xf0] }
 0x474   :  { %11258 = vst [vmem:[#allocation33_spill] sm:$0xff] %v10448_v32  ;;  %4955 = vmatmul.bf16.gmra.mxu3 %v7603_v63  ;;  %v7614_v63 = vld [vmem:[#allocation2 + $0x150] sm:$0xf]  ;;  %v7643_v32 = vor.u32 %v8254_v36, %v7640_v20 }
 0x475   :  { %v10450_v11 = vpop.f32.mrf.mxu2 }
 0x476   :  { %11259 = vst [vmem:[#allocation18_spill] sm:$0xff] %v10450_v11  ;;  %v10452_v38 = vpop.f32.mrf.mxu0  ;;  %v8249_v11 = vld [vmem:[#allocation2 + $0x158] sm:$0xf0] }
 0x477   :  { %v4916_v9 = vpop.f32.mrf.mxu3 }
 0x478   :  { %v10455_v18 = vadd.f32 %v10400_v22, %v4916_v9  ;;  %v8229_v9 = vld [vmem:[#allocation2 + $0xb8] sm:$0xf0] }
 0x479   :  { %v3998_v40 = vpop.f32.mrf.mxu1  ;;  %v7539_v36 = vor.u32 %v8229_v9, %v7538_v62  ;;  %v7550_v9 = vld [vmem:[#allocation2 + $0xc8] sm:$0xf] }
 0x47a   :  { %v3999_v19 = vadd.f32 %v3998_v40, %v10319_v44  ;;  %v7615_v44 = vor.u32 %v8249_v11, %v7614_v63 }
 0x47c   :  { %5258 = vmatmul.bf16.gmra.mxu1 %v7527_v29 }
 0x47d   :  { %v4167_v34 = vpop.f32.mrf.mxu2 }
 0x47e   :  { %v10458_v49 = vadd.f32 %v4167_v34, %v3999_v19  ;;  %v10460_v6 = vpop.f32.mrf.mxu0 }
 0x47f   :  { %v10462_v13 = vpop.f32.mrf.mxu3 }
 0x480   :  { %11260 = vst [vmem:[#allocation34_spill] sm:$0xff] %v10458_v49  ;;  %v8257_v49 = vld [vmem:[#allocation2 + $0x19c] sm:$0xf] }
 0x481   :  { %v4000_v60 = vpop.f32.mrf.mxu1  ;;  %5139 = vmatmul.bf16.gmra.mxu0 %v7643_v32 }
 0x482   :  { %v10465_v22 = vadd.f32 %v4000_v60, %v10348_v58  ;;  %v7652_v58 = vld [vmem:[#allocation2 + $0x1a4] sm:$0xf0] }
 0x483   :  { %v7655_v32 = vor.u32 %v8257_v49, %v7652_v58  ;;  %v8232_v49 = vld [vmem:[#allocation2 + $0xd0] sm:$0xf0] }
 0x484   :  { %11261 = vst [vmem:[#allocation48_spill] sm:$0xff] %v10465_v22  ;;  %4960 = vmatmul.bf16.gmra.mxu3 %v7615_v44  ;;  %v8252_v22 = vld [vmem:[#allocation2 + $0x170] sm:$0xf0] }
 0x485   :  { %v10467_v40 = vpop.f32.mrf.mxu2 }
 0x486   :  { %11262 = vst [vmem:[#allocation49_spill] sm:$0xff] %v10467_v40  ;;  %v10469_v31 = vpop.f32.mrf.mxu0  ;;  %v7626_v40 = vld [vmem:[#allocation2 + $0x168] sm:$0xf] }
 0x487   :  { %v4921_v19 = vpop.f32.mrf.mxu3 }
 0x488   :  { %v10472_v29 = vadd.f32 %v10423_v55, %v4921_v19  ;;  %v7627_v19 = vor.u32 %v8252_v22, %v7626_v40  ;;  %v8260_v22 = vld [vmem:[#allocation2 + $0x1e4] sm:$0xf] }
 0x489   :  { %v4003_v34 = vpop.f32.mrf.mxu1 }
 0x48a   :  { %v4004_v20 = vadd.f32 %v4003_v34, %v10363_v7 }
 0x48c   :  { %5263 = vmatmul.bf16.gmra.mxu1 %v7539_v36 }
 0x48d   :  { %v4172_v60 = vpop.f32.mrf.mxu2 }
 0x48e   :  { %v10475_v11 = vadd.f32 %v4172_v60, %v4004_v20  ;;  %v5105_v63 = vpop.f32.mrf.mxu0  ;;  %v7551_v60 = vor.u32 %v8232_v49, %v7550_v9  ;;  %v7562_v49 = vld [vmem:[#allocation2 + $0xe0] sm:$0xf] }
 0x48f   :  { %v10477_v44 = vpop.f32.mrf.mxu3 }
 0x490   :  { %11263 = vst [vmem:[#allocation50_spill] sm:$0xff] %v10475_v11 }
 0x491   :  { %v4005_v57 = vpop.f32.mrf.mxu1  ;;  %5144 = vmatmul.bf16.gmra.mxu0 %v7655_v32 }
 0x492   :  { %v10480_v55 = vadd.f32 %v4005_v57, %v10373_v14  ;;  %v7664_v14 = vld [vmem:[#allocation2 + $0x1ec] sm:$0xf0] }
 0x493   :  { %v7667_v11 = vor.u32 %v8260_v22, %v7664_v14 }
 0x494   :  { %11264 = vst [vmem:[#allocation51_spill] sm:$0xff] %v10480_v55  ;;  %4965 = vmatmul.bf16.gmra.mxu3 %v7627_v19  ;;  %v8255_v55 = vld [vmem:[#allocation2 + $0x188] sm:$0xf0] }
 0x495   :  { %v10482_v7 = vpop.f32.mrf.mxu2 }
 0x496   :  { %11265 = vst [vmem:[#allocation52_spill] sm:$0xff] %v10482_v7  ;;  %v10484_v62 = vpop.f32.mrf.mxu0  ;;  %v7638_v7 = vld [vmem:[#allocation2 + $0x180] sm:$0xf] }
 0x497   :  { %v4926_v34 = vpop.f32.mrf.mxu3 }
 0x498   :  { %v10487_v20 = vadd.f32 %v10440_v41, %v4926_v34  ;;  %v8235_v34 = vld [vmem:[#allocation2 + $0xe8] sm:$0xf0] }
 0x499   :  { %v4008_v36 = vpop.f32.mrf.mxu1  ;;  %v7563_v22 = vor.u32 %v8235_v34, %v7562_v49  ;;  %v8238_v49 = vld [vmem:[#allocation2 + $0x100] sm:$0xf0] }
 0x49a   :  { %v4009_v58 = vadd.f32 %v4008_v36, %v10385_v23  ;;  %v7639_v23 = vor.u32 %v8255_v55, %v7638_v7  ;;  %v8258_v55 = vld [vmem:[#allocation2 + $0x1a0] sm:$0xf0] }
 0x49c   :  { %5268 = vmatmul.bf16.gmra.mxu1 %v7551_v60 }
 0x49d   :  { %v4177_v57 = vpop.f32.mrf.mxu2 }
 0x49e   :  { %v10490_v32 = vadd.f32 %v4177_v57, %v4009_v58  ;;  %v10494_v19 = vpop.f32.mrf.mxu0 }
 0x49f   :  { %v10492_v40 = vpop.f32.mrf.mxu3 }
 0x4a0   :  { %11266 = vst [vmem:[#allocation53_spill] sm:$0xff] %v10490_v32 }
 0x4a1   :  { %v4010_v43 = vpop.f32.mrf.mxu1  ;;  %5149 = vmatmul.bf16.gmra.mxu0 %v7667_v11  ;;  %v7650_v11 = vld [vmem:[#allocation2 + $0x198] sm:$0xf] }
 0x4a2   :  { %v10497_v41 = vadd.f32 %v4010_v43, %v10396_v8  ;;  %v7676_v43 = vld [vmem:[#allocation2 + $0x204] sm:$0xf0] }
 0x4a4   :  { %11267 = vst [vmem:[#allocation54_spill] sm:$0xff] %v10497_v41  ;;  %4970 = vmatmul.bf16.gmra.mxu3 %v7639_v23  ;;  %v8263_v23 = vld [vmem:[#allocation2 + $0x1fc] sm:$0xf] }
 0x4a5   :  { %v10499_v9 = vpop.f32.mrf.mxu2  ;;  %v7679_v41 = vor.u32 %v8263_v23, %v7676_v43  ;;  %v7662_v23 = vld [vmem:[#allocation2 + $0x1e0] sm:$0xf] }
 0x4a6   :  { %11268 = vst [vmem:[#allocation55_spill] sm:$0xff] %v10499_v9  ;;  %v10504_v57 = vpop.f32.mrf.mxu0 }
 0x4a7   :  { %v4931_v36 = vpop.f32.mrf.mxu3 }
 0x4a8   :  { %v10502_v58 = vadd.f32 %v10460_v6, %v4931_v36  ;;  %v7651_v6 = vor.u32 %v8258_v55, %v7650_v11  ;;  %v7688_v11 = vld [vmem:[#allocation2 + $0x21c] sm:$0xf0] }
 0x4a9   :  { %v4013_v60 = vpop.f32.mrf.mxu1 }
 0x4aa   :  { %v4014_v14 = vadd.f32 %v4013_v60, %v10408_v15  ;;  %v7574_v15 = vld [vmem:[#allocation2 + $0xf8] sm:$0xf] }
 0x4ac   :  { %5273 = vmatmul.bf16.gmra.mxu1 %v7563_v22 }
 0x4ad   :  { %v4182_v8 = vpop.f32.mrf.mxu2 }
 0x4ae   :  { %v10507_v7 = vadd.f32 %v4182_v8, %v4014_v14  ;;  %v10514_v21 = vpop.f32.mrf.mxu0  ;;  %v7575_v8 = vor.u32 %v8238_v49, %v7574_v15 }
 0x4af   :  { %v10509_v9 = vpop.f32.mrf.mxu3 }
 0x4b0   :  { %11269 = vst [vmem:[#allocation56_spill] sm:$0xff] %v10507_v7 }
 0x4b1   :  { %v4015_v32 = vpop.f32.mrf.mxu1  ;;  %5154 = vmatmul.bf16.gmra.mxu0 %v7679_v41  ;;  %v10527_v41 = vld [vmem:[%s11135_s5] ss:$0 sm:$0xff] }
 0x4b2   :  { %v10512_v36 = vadd.f32 %v4015_v32, %v10419_v33  ;;  %v8266_v33 = vld [vmem:[#allocation2 + $0x214] sm:$0xf]  ;;  %v5073_v32 = vadd.f32 %v10344_v30, %v10402_v46  ;;  %v7586_v46 = vld [vmem:[#allocation2 + $0x110] sm:$0xf] }
 0x4b4   :  { %11270 = vst [vmem:[#allocation57_spill] sm:$0xff] %v10512_v36  ;;  %4975 = vmatmul.bf16.gmra.mxu3 %v7651_v6  ;;  %v7691_v6 = vor.u32 %v8266_v33, %v7688_v11 }
 0x4b6   :  { %v10520_v55 = vpop.f32.mrf.mxu0 }
 0x4b7   :  { %v4936_v34 = vpop.f32.mrf.mxu3 }
 0x4b8   :  { %v10516_v60 = vadd.f32 %v5105_v63, %v4936_v34 }
 0x4b9   :  { %v5239_v14 = vpop.f32.mrf.mxu1 }
 0x4ba   :  { %v5240_v22 = vadd.f32 %v5239_v14, %v10392_v47  ;;  %v8261_v47 = vld [vmem:[#allocation2 + $0x1e8] sm:$0xf0] }
 0x4bb   :  { %v7663_v49 = vor.u32 %v8261_v47, %v7662_v23  ;;  %v7700_v47 = vld [vmem:[#allocation2 + $0x234] sm:$0xf0] }
 0x4bc   :  { %v5399_v43 = vadd.f32 %v5240_v22, %v9866_v45  ;;  %5278 = vmatmul.bf16.gmra.mxu1 %v7575_v8  ;;  %v8241_v22 = vld [vmem:[#allocation2 + $0x118] sm:$0xf0] }
 0x4be   :  { %v5467_v34 = vadd.f32 %v10527_v41, %v5399_v43  ;;  %v10534_v36 = vpop.f32.mrf.mxu0  ;;  %v7587_v43 = vor.u32 %v8241_v22, %v7586_v46  ;;  %v7598_v22 = vld [vmem:[#allocation2 + $0x128] sm:$0xf] }
 0x4bf   :  { %v10529_v63 = vpop.f32.mrf.mxu3 }
 0x4c0   :  { %v5531_v8 = vmax.f32 %v5467_v34, 0.0  ;;  %v8264_v34 = vld [vmem:[#allocation2 + $0x200] sm:$0xf0] }
 0x4c1   :  { %v5241_v15 = vpop.f32.mrf.mxu1  ;;  %5159 = vmatmul.bf16.gmra.mxu0 %v7691_v6  ;;  %v8269_v6 = vld [vmem:[#allocation2 + $0x22c] sm:$0xf] }
 0x4c2   :  { %v5242_v45 = vadd.f32 %v5241_v15, %v5073_v32  ;;  %v5078_v15 = vadd.f32 %v10369_v50, %v10425_v25  ;;  %v8244_v50 = vld [vmem:[#allocation2 + $0x130] sm:$0xf0] }
 0x4c4   :  { %v5400_v14 = vadd.f32 %v5242_v45, %v9875_v51  ;;  %4980 = vmatmul.bf16.gmra.mxu3 %v7663_v49  ;;  %v7674_v49 = vld [vmem:[#allocation2 + $0x1f8] sm:$0xf] }
 0x4c6   :  { %v5468_v30 = vadd.f32 %v10527_v41, %v5400_v14  ;;  %v10545_v14 = vpop.f32.mrf.mxu0 }
 0x4c7   :  { %v4941_v53 = vpop.f32.mrf.mxu3 }
 0x4c8   :  { %v5532_v7 = vmax.f32 %v5468_v30, 0.0  ;;  %v10537_v11 = vadd.f32 %v10494_v19, %v4941_v53  ;;  %v7703_v53 = vor.u32 %v8269_v6, %v7700_v47  ;;  %v7599_v47 = vor.u32 %v8244_v50, %v7598_v22  ;;  %v7610_v50 = vld [vmem:[#allocation2 + $0x140] sm:$0xf] }
 0x4c9   :  { %v5244_v33 = vpop.f32.mrf.mxu1 }
 0x4ca   :  { %v5595_v32 = vpack.c.bf16 %v5532_v7, %v5531_v8  ;;  %v5245_v23 = vadd.f32 %v5244_v33, %v10415_v4  ;;  %v7675_v4 = vor.u32 %v8264_v34, %v7674_v49  ;;  %v8272_v49 = vld [vmem:[#allocation2 + $0x244] sm:$0xf]  ;;  %v5083_v34 = vadd.f32 %v10389_v56, %v10445_v61  ;;  %v8247_v56 = vld [vmem:[#allocation2 + $0x148] sm:$0xf0] }
 0x4cc   :  { %v5401_v51 = vadd.f32 %v5245_v23, %v9884_v54  ;;  %5283 = vmatmul.bf16.gmra.mxu1 %v7587_v43  ;;  %5831 = vmatmul.bf16.vlgmr.msra.gmra.mxu2 %v5595_v32 }
 0x4ce   :  { %v5469_v54 = vadd.f32 %v10527_v41, %v5401_v51 }
 0x4cf   :  { %v10543_v45 = vpop.f32.mrf.mxu3 }
 0x4d0   :  { %v5533_v25 = vmax.f32 %v5469_v54, 0.0 }
 0x4d1   :  { %v5246_v19 = vpop.f32.mrf.mxu1  ;;  %5164 = vmatmul.bf16.gmra.mxu0 %v7703_v53 }
 0x4d2   :  { %v5247_v7 = vadd.f32 %v5246_v19, %v5078_v15  ;;  %v5125_v15 = vpop.f32.mrf.mxu0  ;;  %v7686_v19 = vld [vmem:[#allocation2 + $0x210] sm:$0xf] }
 0x4d4   :  { %v5402_v30 = vadd.f32 %v5247_v7, %v9893_v17  ;;  %4985 = vmatmul.bf16.gmra.mxu3 %v7675_v4  ;;  %v7712_v17 = vld [vmem:[#allocation2 + $0x24c] sm:$0xf0] }
 0x4d5   :  { %v7715_v7 = vor.u32 %v8272_v49, %v7712_v17  ;;  %v8275_v17 = vld [vmem:[#allocation2 + $0x25c] sm:$0xf]  ;;  %v5088_v49 = vadd.f32 %v10412_v28, %v10462_v13 }
 0x4d6   :  { %v5470_v46 = vadd.f32 %v10527_v41, %v5402_v30 }
 0x4d7   :  { %v4946_v8 = vpop.f32.mrf.mxu3 }
 0x4d8   :  { %v5534_v33 = vmax.f32 %v5470_v46, 0.0  ;;  %v10551_v32 = vadd.f32 %v10514_v21, %v4946_v8  ;;  %v8267_v21 = vld [vmem:[#allocation2 + $0x218] sm:$0xf0] }
 0x4d9   :  { %v5249_v23 = vpop.f32.mrf.mxu1 }
 0x4da   :  { %v5250_v43 = vadd.f32 %v5249_v23, %v10435_v52  ;;  %v5596_v6 = vpack.c.bf16 %v5534_v33, %v5533_v25  ;;  %v7687_v52 = vor.u32 %v8267_v21, %v7686_v19  ;;  %v10561_v46 = vpop.f32.mrf.mxu0  ;;  %v7698_v21 = vld [vmem:[#allocation2 + $0x228] sm:$0xf] }
 0x4dc   :  { %v5403_v51 = vadd.f32 %v5250_v43, %v9908_v27  ;;  %5288 = vmatmul.bf16.gmra.mxu1 %v7599_v47  ;;  %5836 = vmatmul.bf16.gmra.mxu2 %v5596_v6  ;;  %v7611_v47 = vor.u32 %v8247_v56, %v7610_v50 }
 0x4de   :  { %v5471_v30 = vadd.f32 %v10527_v41, %v5403_v51  ;;  %v7724_v51 = vld [vmem:[#allocation2 + $0x264] sm:$0xf0] }
 0x4df   :  { %v10557_v53 = vpop.f32.mrf.mxu3 }
 0x4e0   :  { %v5535_v61 = vmax.f32 %v5471_v30, 0.0 }
 0x4e1   :  { %v5251_v4 = vpop.f32.mrf.mxu1  ;;  %5169 = vmatmul.bf16.gmra.mxu0 %v7715_v7  ;;  %v7727_v7 = vor.u32 %v8275_v17, %v7724_v51  ;;  %v8273_v17 = vld [vmem:[#allocation2 + $0x248] sm:$0xf0] }
 0x4e2   :  { %v5252_v54 = vadd.f32 %v5251_v4, %v5083_v34  ;;  %v5130_v34 = vpop.f32.mrf.mxu0 }
 0x4e4   :  { %v5404_v27 = vadd.f32 %v5252_v54, %v9920_v2  ;;  %4990 = vmatmul.bf16.gmra.mxu3 %v7687_v52 }
 0x4e6   :  { %v5472_v22 = vadd.f32 %v10527_v41, %v5404_v27  ;;  %v7622_v27 = vld [vmem:[#allocation2 + $0x158] sm:$0xf] }
 0x4e7   :  { %v4951_v25 = vpop.f32.mrf.mxu3 }
 0x4e8   :  { %v5536_v8 = vmax.f32 %v5472_v22, 0.0  ;;  %v10565_v33 = vadd.f32 %v10534_v36, %v4951_v25  ;;  %v8270_v36 = vld [vmem:[#allocation2 + $0x230] sm:$0xf0]  ;;  %v8250_v22 = vld [vmem:[#allocation2 + $0x160] sm:$0xf0] }
 0x4e9   :  { %v5254_v23 = vpop.f32.mrf.mxu1 }
 0x4ea   :  { %v5255_v43 = vadd.f32 %v5254_v23, %v10455_v18  ;;  %v5597_v6 = vpack.c.bf16 %v5536_v8, %v5535_v61  ;;  %v7699_v18 = vor.u32 %v8270_v36, %v7698_v21  ;;  %v10578_v25 = vpop.f32.mrf.mxu0  ;;  %v7623_v23 = vor.u32 %v8250_v22, %v7622_v27 }
 0x4ec   :  { %v5405_v2 = vadd.f32 %v5255_v43, %v9929_v48  ;;  %5293 = vmatmul.bf16.gmra.mxu1 %v7611_v47  ;;  %5841 = vmatmul.bf16.gmra.mxu2 %v5597_v6  ;;  %v8278_v6 = vld [vmem:[#allocation2 + $0x274] sm:$0xf] }
 0x4ee   :  { %v5473_v52 = vadd.f32 %v10527_v41, %v5405_v2  ;;  %v5093_v2 = vadd.f32 %v10432_v42, %v10477_v44 }
 0x4ef   :  { %v10571_v19 = vpop.f32.mrf.mxu3 }
 0x4f0   :  { %v5537_v28 = vmax.f32 %v5473_v52, 0.0  ;;  %v8253_v52 = vld [vmem:[#allocation2 + $0x178] sm:$0xf0] }
 0x4f1   :  { %v5256_v4 = vpop.f32.mrf.mxu1  ;;  %5174 = vmatmul.bf16.gmra.mxu0 %v7727_v7 }
 0x4f2   :  { %v5257_v54 = vadd.f32 %v5256_v4, %v5088_v49  ;;  %v5135_v7 = vpop.f32.mrf.mxu0 }
 0x4f4   :  { %v5406_v48 = vadd.f32 %v5257_v54, %v9941_v24  ;;  %4995 = vmatmul.bf16.gmra.mxu3 %v7699_v18  ;;  %v7736_v24 = vld [vmem:[#allocation2 + $0x27c] sm:$0xf0]  ;;  %v7634_v18 = vld [vmem:[#allocation2 + $0x170] sm:$0xf] }
 0x4f5   :  { %v7739_v49 = vor.u32 %v8278_v6, %v7736_v24 }
 0x4f6   :  { %v5474_v30 = vadd.f32 %v10527_v41, %v5406_v48 }
 0x4f7   :  { %v4956_v13 = vpop.f32.mrf.mxu3 }
 0x4f8   :  { %v5538_v50 = vmax.f32 %v5474_v30, 0.0  ;;  %v10576_v56 = vadd.f32 %v5125_v15, %v4956_v13  ;;  %v7710_v15 = vld [vmem:[#allocation2 + $0x240] sm:$0xf] }
 0x4f9   :  { %v5259_v61 = vpop.f32.mrf.mxu1 }
 0x4fa   :  { %v5260_v8 = vadd.f32 %v5259_v61, %v10472_v29  ;;  %v5598_v43 = vpack.c.bf16 %v5538_v50, %v5537_v28  ;;  %v7711_v29 = vor.u32 %v8273_v17, %v7710_v15  ;;  %v7635_v28 = vor.u32 %v8253_v52, %v7634_v18  ;;  %v7748_v61 = vld [vmem:[#allocation2 + $0x294] sm:$0xf0] }
 0x4fc   :  { %v5407_v47 = vadd.f32 %v5260_v8, %v9950_v10  ;;  %5298 = vmatmul.bf16.gmra.mxu1 %v7623_v23  ;;  %5846 = vmatmul.bf16.gmra.mxu2 %v5598_v43  ;;  %v10593_v8 = vpop.f32.mrf.mxu0  ;;  %v5098_v23 = vadd.f32 %v10452_v38, %v10492_v40 }
 0x4fe   :  { %v5475_v4 = vadd.f32 %v10527_v41, %v5407_v47  ;;  %v8276_v47 = vld [vmem:[#allocation2 + $0x260] sm:$0xf0] }
 0x4ff   :  { %v10584_v51 = vpop.f32.mrf.mxu3 }
 0x500   :  { %v5539_v42 = vmax.f32 %v5475_v4, 0.0 }
 0x501   :  { %v5261_v21 = vpop.f32.mrf.mxu1  ;;  %5179 = vmatmul.bf16.gmra.mxu0 %v7739_v49  ;;  %v7646_v49 = vld [vmem:[#allocation2 + $0x188] sm:$0xf] }
 0x502   :  { %v5262_v36 = vadd.f32 %v5261_v21, %v5093_v2  ;;  %v8256_v21 = vld [vmem:[#allocation2 + $0x190] sm:$0xf0] }
 0x503   :  { %v7647_v18 = vor.u32 %v8256_v21, %v7646_v49  ;;  %v11271_v49 = vld [vmem:[#allocation42_spill] sm:$0xff] }
 0x504   :  { %v5408_v10 = vadd.f32 %v5262_v36, %v9959_v35  ;;  %5000 = vmatmul.bf16.gmra.mxu3 %v7711_v29  ;;  %v8281_v35 = vld [vmem:[#allocation2 + $0x28c] sm:$0xf]  ;;  %v5140_v36 = vpop.f32.mrf.mxu0 }
 0x505   :  { %v7751_v24 = vor.u32 %v8281_v35, %v7748_v61 }
 0x506   :  { %v5476_v54 = vadd.f32 %v10527_v41, %v5408_v10 }
 0x507   :  { %v4961_v44 = vpop.f32.mrf.mxu3 }
 0x508   :  { %v5540_v48 = vmax.f32 %v5476_v54, 0.0  ;;  %v10589_v30 = vadd.f32 %v5130_v34, %v4961_v44  ;;  %v7722_v34 = vld [vmem:[#allocation2 + $0x258] sm:$0xf]  ;;  %v7760_v44 = vld [vmem:[#allocation2 + $0x2ac] sm:$0xf0] }
 0x509   :  { %v5264_v27 = vpop.f32.mrf.mxu1  ;;  %v7723_v2 = vor.u32 %v8276_v47, %v7722_v34  ;;  %v8259_v34 = vld [vmem:[#allocation2 + $0x1a8] sm:$0xf0] }
 0x50a   :  { %v5265_v22 = vadd.f32 %v5264_v27, %v10487_v20  ;;  %v5599_v13 = vpack.c.bf16 %v5540_v48, %v5539_v42  ;;  %v5103_v48 = vadd.f32 %v10469_v31, %v10509_v9 }
 0x50c   :  { %v5409_v50 = vadd.f32 %v5265_v22, %v9968_v59  ;;  %5303 = vmatmul.bf16.gmra.mxu1 %v7635_v28  ;;  %5851 = vmatmul.bf16.gmra.mxu2 %v5599_v13  ;;  %v7734_v22 = vld [vmem:[#allocation2 + $0x270] sm:$0xf]  ;;  %v8279_v28 = vld [vmem:[#allocation2 + $0x278] sm:$0xf0] }
 0x50d   :  { %v7735_v35 = vor.u32 %v8279_v28, %v7734_v22  ;;  %v7670_v22 = vld [vmem:[#allocation2 + $0x1e8] sm:$0xf] }
 0x50e   :  { %v5477_v59 = vadd.f32 %v10527_v41, %v5409_v50  ;;  %v10610_v50 = vpop.f32.mrf.mxu0 }
 0x50f   :  { %v10597_v43 = vpop.f32.mrf.mxu3 }
 0x510   :  { %v5541_v38 = vmax.f32 %v5477_v59, 0.0 }
 0x511   :  { %v5266_v6 = vpop.f32.mrf.mxu1  ;;  %5184 = vmatmul.bf16.gmra.mxu0 %v7751_v24 }
 0x512   :  { %v5267_v20 = vadd.f32 %v5266_v6, %v5098_v23  ;;  %v7658_v23 = vld [vmem:[#allocation2 + $0x1a0] sm:$0xf] }
 0x513   :  { %v7659_v24 = vor.u32 %v8259_v34, %v7658_v23  ;;  %v7784_v34 = vld [vmem:[#allocation2 + $0x2dc] sm:$0xf0] }
 0x514   :  { %v5410_v15 = vadd.f32 %v5267_v20, %v9977_v1  ;;  %5005 = vmatmul.bf16.gmra.mxu3 %v7723_v2  ;;  %v8284_v1 = vld [vmem:[#allocation2 + $0x2a4] sm:$0xf] }
 0x516   :  { %v5478_v17 = vadd.f32 %v10527_v41, %v5410_v15 }
 0x517   :  { %v4966_v40 = vpop.f32.mrf.mxu3 }
 0x518   :  { %v5542_v29 = vmax.f32 %v5478_v17, 0.0  ;;  %v10602_v4 = vadd.f32 %v5135_v7, %v4966_v40  ;;  %v7763_v7 = vor.u32 %v8284_v1, %v7760_v44  ;;  %v5145_v17 = vpop.f32.mrf.mxu0  ;;  %v5108_v40 = vadd.f32 %v10484_v62, %v10529_v63  ;;  %v8262_v62 = vld [vmem:[#allocation2 + $0x1f0] sm:$0xf0] }
 0x519   :  { %v5269_v10 = vpop.f32.mrf.mxu1 }
 0x51a   :  { %v5270_v54 = vadd.f32 %v5269_v10, %v10502_v58  ;;  %v5600_v52 = vpack.c.bf16 %v5542_v29, %v5541_v38  ;;  %v7772_v38 = vld [vmem:[#allocation2 + $0x2c4] sm:$0xf0] }
 0x51b   :  { %v7746_v10 = vld [vmem:[#allocation2 + $0x288] sm:$0xf] }
 0x51c   :  { %v5411_v42 = vadd.f32 %v5270_v54, %v9992_v0  ;;  %5308 = vmatmul.bf16.gmra.mxu1 %v7647_v18  ;;  %5856 = vmatmul.bf16.gmra.mxu2 %v5600_v52  ;;  %v8282_v54 = vld [vmem:[#allocation2 + $0x290] sm:$0xf0] }
 0x51e   :  { %v5479_v0 = vadd.f32 %v10527_v41, %v5411_v42 }
 0x51f   :  { %v10608_v27 = vpop.f32.mrf.mxu3 }
 0x520   :  { %v5543_v9 = vmax.f32 %v5479_v0, 0.0  ;;  %v10625_v44 = vpop.f32.mrf.mxu0  ;;  %v7671_v0 = vor.u32 %v8262_v62, %v7670_v22  ;;  %v5118_v22 = vadd.f32 %v10520_v55, %v10557_v53 }
 0x521   :  { %v5271_v13 = vpop.f32.mrf.mxu1  ;;  %5189 = vmatmul.bf16.gmra.mxu0 %v7763_v7 }
 0x522   :  { %v5272_v58 = vadd.f32 %v5271_v13, %v5103_v48 }
 0x524   :  { %v5412_v61 = vadd.f32 %v5272_v58, %v10004_v12  ;;  %5010 = vmatmul.bf16.gmra.mxu3 %v7735_v35  ;;  %v8287_v12 = vld [vmem:[#allocation2 + $0x2bc] sm:$0xf] }
 0x526   :  { %v5480_v31 = vadd.f32 %v10527_v41, %v5412_v61 }
 0x527   :  { %v4971_v47 = vpop.f32.mrf.mxu3 }
 0x528   :  { %v5544_v6 = vmax.f32 %v5480_v31, 0.0  ;;  %v10615_v20 = vadd.f32 %v5140_v36, %v4971_v47  ;;  %v7775_v36 = vor.u32 %v8287_v12, %v7772_v38  ;;  %v5113_v31 = vadd.f32 %v10504_v57, %v10543_v45  ;;  %v7682_v57 = vld [vmem:[#allocation2 + $0x200] sm:$0xf]  ;;  %v8265_v45 = vld [vmem:[#allocation2 + $0x208] sm:$0xf0] }
 0x529   :  { %v5274_v2 = vpop.f32.mrf.mxu1 }
 0x52a   :  { %v5275_v59 = vadd.f32 %v5274_v2, %v10516_v60  ;;  %v5601_v15 = vpack.c.bf16 %v5544_v6, %v5543_v9  ;;  %v7747_v60 = vor.u32 %v8282_v54, %v7746_v10  ;;  %v5150_v9 = vpop.f32.mrf.mxu0  ;;  %v8285_v6 = vld [vmem:[#allocation2 + $0x2a8] sm:$0xf0] }
 0x52c   :  { %v5413_v21 = vadd.f32 %v5275_v59, %v11271_v49  ;;  %5313 = vmatmul.bf16.gmra.mxu1 %v7659_v24  ;;  %5861 = vmatmul.bf16.gmra.mxu2 %v5601_v15  ;;  %v7758_v24 = vld [vmem:[#allocation2 + $0x2a0] sm:$0xf] }
 0x52e   :  { %v5481_v42 = vadd.f32 %v10527_v41, %v5413_v21  ;;  %v10639_v21 = vpop.f32.mrf.mxu2 }
 0x52f   :  { %v10621_v29 = vpop.f32.mrf.mxu3 }
 0x530   :  { %v5545_v63 = vmax.f32 %v5481_v42, 0.0  ;;  %v8293_v42 = vld [vmem:[#allocation2 + $0x2ec] sm:$0xf] }
 0x531   :  { %v5276_v18 = vpop.f32.mrf.mxu1  ;;  %5194 = vmatmul.bf16.gmra.mxu0 %v7775_v36 }
 0x532   :  { %v5277_v52 = vadd.f32 %v5276_v18, %v5108_v40  ;;  %v10643_v36 = vpop.f32.mrf.mxu0 }
 0x534   :  { %v5414_v1 = vadd.f32 %v5277_v52, %v10025_v16  ;;  %5015 = vmatmul.bf16.gmra.mxu3 %v7747_v60  ;;  %v8290_v16 = vld [vmem:[#allocation2 + $0x2d4] sm:$0xf]  ;;  %v7683_v52 = vor.u32 %v8265_v45, %v7682_v57 }
 0x535   :  { %v7787_v2 = vor.u32 %v8290_v16, %v7784_v34 }
 0x536   :  { %v5482_v48 = vadd.f32 %v10527_v41, %v5414_v1  ;;  %v7796_v1 = vld [vmem:[#allocation2 + $0x2f4] sm:$0xf0] }
 0x537   :  { %v4976_v28 = vpop.f32.mrf.mxu3 }
 0x538   :  { %v5546_v7 = vmax.f32 %v5482_v48, 0.0  ;;  %v10628_v13 = vadd.f32 %v5145_v17, %v4976_v28  ;;  %v8288_v28 = vld [vmem:[#allocation2 + $0x2c0] sm:$0xf0] }
 0x539   :  { %v5279_v58 = vpop.f32.mrf.mxu1 }
 0x53a   :  { %v5280_v35 = vadd.f32 %v5279_v58, %v10537_v11  ;;  %v5602_v61 = vpack.c.bf16 %v5546_v7, %v5545_v63  ;;  %v7759_v11 = vor.u32 %v8285_v6, %v7758_v24  ;;  %v10654_v63 = vld [vmem:[%s11136_s6] ss:$0 sm:$0xff]  ;;  %v7799_v7 = vor.u32 %v8293_v42, %v7796_v1  ;;  %v7694_v24 = vld [vmem:[#allocation2 + $0x218] sm:$0xf]  ;;  %v8268_v6 = vld [vmem:[#allocation2 + $0x220] sm:$0xf0] }
 0x53b   :  { %v5123_v1 = vadd.f32 %v10545_v14, %v10571_v19 }
 0x53c   :  { %v5415_v23 = vadd.f32 %v5280_v35, %v10034_v39  ;;  %5318 = vmatmul.bf16.gmra.mxu1 %v7671_v0  ;;  %5866 = vmatmul.bf16.gmra.mxu2 %v5602_v61  ;;  %v5155_v61 = vpop.f32.mrf.mxu0 }
 0x53e   :  { %v5483_v17 = vadd.f32 %v10527_v41, %v5415_v23 }
 0x53f   :  { %v10634_v47 = vpop.f32.mrf.mxu3 }
 0x540   :  { %v5547_v12 = vmax.f32 %v5483_v17, 0.0 }
 0x541   :  { %v5281_v59 = vpop.f32.mrf.mxu1  ;;  %5199 = vmatmul.bf16.gmra.mxu0 %v7787_v2 }
 0x542   :  { %v5282_v15 = vadd.f32 %v5281_v59, %v5113_v31 }
 0x544   :  { %v5416_v39 = vadd.f32 %v5282_v15, %v10043_v5  ;;  %5020 = vmatmul.bf16.gmra.mxu3 %v7759_v11 }
 0x546   :  { %v5484_v49 = vadd.f32 %v10527_v41, %v5416_v39 }
 0x547   :  { %v4981_v38 = vpop.f32.mrf.mxu3 }
 0x548   :  { %v5548_v40 = vmax.f32 %v5484_v49, 0.0  ;;  %v10641_v10 = vadd.f32 %v5150_v9, %v4981_v38 }
 0x549   :  { %v5284_v54 = vpop.f32.mrf.mxu1 }
 0x54a   :  { %v5285_v18 = vadd.f32 %v5284_v54, %v10551_v32  ;;  %v5603_v60 = vpack.c.bf16 %v5548_v40, %v5547_v12  ;;  %v7770_v32 = vld [vmem:[#allocation2 + $0x2b8] sm:$0xf] }
 0x54b   :  { %v7771_v0 = vor.u32 %v8288_v28, %v7770_v32  ;;  %v8676_v32 = vld [vmem:[%s11132_s0 + $0x8] sm:$0xff]  }
 0x54c   :  { %v5417_v5 = vadd.f32 %v5285_v18, %v10052_v3  ;;  %5323 = vmatmul.bf16.gmra.mxu1 %v7683_v52  ;;  %5871 = vmatmul.bf16.gmra.mxu2 %v5603_v60  ;;  %v8389_v3 = vld [vmem:[%s11132_s0] sm:$0xff]   ;;  %v7808_v52 = vld [vmem:[#allocation2 + $0x30c] sm:$0xf0]  ;;  %v10668_v60 = vpop.f32.mrf.mxu0  ;;  %v8394_v14 = vunpack.c.l.bf16 %v8676_v32 }
 0x54d   :  { %v8390_v53 = vunpack.c.l.bf16 %v8389_v3  ;;  %v8391_v31 = vunpack.c.h.bf16 %v8389_v3  ;;  %v8296_v18 = vld [vmem:[#allocation2 + $0x304] sm:$0xf] }
 0x54e   :  { %v5485_v55 = vadd.f32 %v10527_v41, %v5417_v5 }
 0x54f   :  { %v5832_v48 = vpop.f32.mrf.mxu2  ;;  %v10649_v62 = vpop.f32.mrf.mxu3 }
 0x550   :  { %v5833_v23 = vadd.f32 %v10654_v63, %v5832_v48  ;;  %v5549_v2 = vmax.f32 %v5485_v55, 0.0  ;;  %v7782_v48 = vld [vmem:[#allocation2 + $0x2d0] sm:$0xf]  ;;  %v8395_v55 = vunpack.c.h.bf16 %v8676_v32 }
 0x551   :  { %v5286_v58 = vpop.f32.mrf.mxu1  ;;  %5204 = vmatmul.bf16.gmra.mxu0 %v7799_v7 }
 0x552   :  { %v5287_v35 = vadd.f32 %v5286_v58, %v5118_v22  ;;  %v5992_v59 = vadd.f32 %v8390_v53, %v5833_v23  ;;  %v8291_v22 = vld [vmem:[#allocation2 + $0x2d8] sm:$0xf0]  ;;  %v7706_v23 = vld [vmem:[#allocation2 + $0x230] sm:$0xf] }
 0x553   :  { %v7783_v3 = vor.u32 %v8291_v22, %v7782_v48  ;;  %v8677_v48 = vld [vmem:[%s11132_s0 + $0x10] sm:$0xff]  }
 0x554   :  { %v5418_v16 = vadd.f32 %v5287_v35, %v10061_v37  ;;  %5025 = vmatmul.bf16.gmra.mxu3 %v7771_v0  ;;  %v7695_v37 = vor.u32 %v8268_v6, %v7694_v24  ;;  %v6056_v38 = vmax.f32 %v5992_v59, 0.0  ;;  %v11272_v35 = vld [vmem:[#allocation43_spill] sm:$0xff] }
 0x556   :  { %v5486_v34 = vadd.f32 %v10527_v41, %v5418_v16  ;;  %v8271_v16 = vld [vmem:[#allocation2 + $0x238] sm:$0xf0] }
 0x557   :  { %v5834_v9 = vpop.f32.mrf.mxu2  ;;  %v4986_v15 = vpop.f32.mrf.mxu3 }
 0x558   :  { %v5835_v11 = vadd.f32 %v10654_v63, %v5834_v9  ;;  %v5550_v17 = vmax.f32 %v5486_v34, 0.0  ;;  %v10664_v39 = vadd.f32 %v5155_v61, %v4986_v15  ;;  %v5160_v34 = vpop.f32.mrf.mxu0 }
 0x559   :  { %v5289_v49 = vpop.f32.mrf.mxu1 }
 0x55a   :  { %v5993_v57 = vadd.f32 %v8391_v31, %v5835_v11  ;;  %v5290_v45 = vadd.f32 %v5289_v49, %v10565_v33  ;;  %v5604_v12 = vpack.c.bf16 %v5550_v17, %v5549_v2  ;;  %v7707_v49 = vor.u32 %v8271_v16, %v7706_v23 }
 0x55c   :  { %v6057_v40 = vmax.f32 %v5993_v57, 0.0  ;;  %v5419_v54 = vadd.f32 %v5290_v45, %v10076_v26  ;;  %5328 = vmatmul.bf16.gmra.mxu1 %v7695_v37  ;;  %5876 = vmatmul.bf16.gmra.mxu2 %v5604_v12  ;;  %v7811_v26 = vor.u32 %v8296_v18, %v7808_v52  ;;  %v11273_v12 = vld [vmem:[#allocation44_spill] sm:$0xff] }
 0x55e   :  { %v8519_v5 = vpack.c.bf16 %v6057_v40, %v6056_v38  ;;  %v5487_v58 = vadd.f32 %v10527_v41, %v5419_v54  ;;  %v8299_v40 = vld [vmem:[#allocation2 + $0x31c] sm:$0xf]  ;;  %v7820_v54 = vld [vmem:[#allocation2 + $0x324] sm:$0xf0] }
 0x55f   :  { %v5837_v42 = vpop.f32.mrf.mxu2  ;;  %v10675_v33 = vpop.f32.mrf.mxu3 }
 0x560   :  { %8520 = vst [vmem:[%s11137_s7] sm:$0xff] %v8519_v5   ;;  %v5838_v19 = vadd.f32 %v10654_v63, %v5837_v42  ;;  %v5551_v31 = vmax.f32 %v5487_v58, 0.0  ;;  %v5128_v5 = vadd.f32 %v10561_v46, %v10584_v51  ;;  %v8294_v42 = vld [vmem:[#allocation2 + $0x2f0] sm:$0xf0] }
 0x561   :  { %v5291_v28 = vpop.f32.mrf.mxu1  ;;  %5209 = vmatmul.bf16.gmra.mxu0 %v7811_v26  ;;  %v11274_v51 = vld [vmem:[#allocation45_spill] sm:$0xff] }
 0x562   :  { %v5292_v7 = vadd.f32 %v5291_v28, %v5123_v1  ;;  %v5994_v9 = vadd.f32 %v8394_v14, %v5838_v19  ;;  %v7823_v1 = vor.u32 %v8299_v40, %v7820_v54  ;;  %v8399_v14 = vunpack.c.h.bf16 %v8677_v48  ;;  %v8678_v40 = vld [vmem:[%s11132_s0 + $0x18] sm:$0xff]  }
 0x564   :  { %v5420_v0 = vadd.f32 %v5292_v7, %v11272_v35  ;;  %5030 = vmatmul.bf16.gmra.mxu3 %v7783_v3  ;;  %v6058_v45 = vmax.f32 %v5994_v9, 0.0  ;;  %v8398_v7 = vunpack.c.l.bf16 %v8677_v48  ;;  %v7718_v35 = vld [vmem:[#allocation2 + $0x248] sm:$0xf] }
 0x566   :  { %v5488_v61 = vadd.f32 %v10527_v41, %v5420_v0  ;;  %v8274_v0 = vld [vmem:[#allocation2 + $0x250] sm:$0xf0] }
 0x567   :  { %v5839_v53 = vpop.f32.mrf.mxu2  ;;  %v4991_v24 = vpop.f32.mrf.mxu3  ;;  %v7719_v9 = vor.u32 %v8274_v0, %v7718_v35 }
 0x568   :  { %v5840_v6 = vadd.f32 %v10654_v63, %v5839_v53  ;;  %v5552_v2 = vmax.f32 %v5488_v61, 0.0  ;;  %v10685_v59 = vadd.f32 %v5160_v34, %v4991_v24 }
 0x569   :  { %v5294_v15 = vpop.f32.mrf.mxu1 }
 0x56a   :  { %v5995_v11 = vadd.f32 %v8395_v55, %v5840_v6  ;;  %v5295_v17 = vadd.f32 %v5294_v15, %v10576_v56  ;;  %v5605_v57 = vpack.c.bf16 %v5552_v2, %v5551_v31  ;;  %v7794_v56 = vld [vmem:[#allocation2 + $0x2e8] sm:$0xf]  ;;  %v11275_v15 = vld [vmem:[#allocation46_spill] sm:$0xff] }
 0x56b   :  { %v7795_v32 = vor.u32 %v8294_v42, %v7794_v56  ;;  %v11276_v42 = vld [vmem:[#allocation47_spill] sm:$0xff] }
 0x56c   :  { %v6059_v37 = vmax.f32 %v5995_v11, 0.0  ;;  %v5421_v38 = vadd.f32 %v5295_v17, %v11273_v12  ;;  %5333 = vmatmul.bf16.gmra.mxu1 %v7707_v49  ;;  %5881 = vmatmul.bf16.gmra.mxu2 %v5605_v57  ;;  %v8302_v17 = vld [vmem:[#allocation2 + $0x334] sm:$0xf]  ;;  %v7832_v49 = vld [vmem:[#allocation2 + $0x33c] sm:$0xf0] }
 0x56d   :  { %v8297_v12 = vld [vmem:[#allocation2 + $0x308] sm:$0xf0] }
 0x56e   :  { %v8524_v18 = vpack.c.bf16 %v6059_v37, %v6058_v45  ;;  %v5489_v28 = vadd.f32 %v10527_v41, %v5421_v38  ;;  %v5133_v37 = vadd.f32 %v10578_v25, %v10597_v43  ;;  %v7835_v38 = vor.u32 %v8302_v17, %v7832_v49 }
 0x56f   :  { %v5842_v52 = vpop.f32.mrf.mxu2  ;;  %v8402_v25 = vunpack.c.l.bf16 %v8678_v40 }
 0x570   :  { %8707 = vst [vmem:[%s11137_s7 + $0x8] sm:$0xff] %v8524_v18   ;;  %v5843_v46 = vadd.f32 %v10654_v63, %v5842_v52  ;;  %v5553_v61 = vmax.f32 %v5489_v28, 0.0  ;;  %v10712_v18 = vpop.f32.mrf.mxu0  ;;  %v8277_v28 = vld [vmem:[#allocation2 + $0x268] sm:$0xf0] }
 0x571   :  { %v5296_v22 = vpop.f32.mrf.mxu1  ;;  %5214 = vmatmul.bf16.gmra.mxu0 %v7823_v1 }
 0x572   :  { %v5297_v26 = vadd.f32 %v5296_v22, %v5128_v5  ;;  %v5996_v55 = vadd.f32 %v8398_v7, %v5843_v46  ;;  %v8403_v22 = vunpack.c.h.bf16 %v8678_v40 }
 0x574   :  { %v5422_v3 = vadd.f32 %v5297_v26, %v11274_v51  ;;  %5035 = vmatmul.bf16.gmra.mxu3 %v7795_v32  ;;  %v6060_v6 = vmax.f32 %v5996_v55, 0.0  ;;  %v7730_v32 = vld [vmem:[#allocation2 + $0x260] sm:$0xf] }
 0x575   :  { %v7731_v35 = vor.u32 %v8277_v28, %v7730_v32 }
 0x576   :  { %v5490_v58 = vadd.f32 %v10527_v41, %v5422_v3 }
 0x577   :  { %v5844_v19 = vpop.f32.mrf.mxu2 }
 0x578   :  { %v5845_v53 = vadd.f32 %v10654_v63, %v5844_v19  ;;  %v5554_v23 = vmax.f32 %v5490_v58, 0.0 }
 0x579   :  { %v5299_v16 = vpop.f32.mrf.mxu1 }
 0x57a   :  { %v5997_v34 = vadd.f32 %v8399_v14, %v5845_v53  ;;  %v5300_v31 = vadd.f32 %v5299_v16, %v10589_v30  ;;  %v5606_v24 = vpack.c.bf16 %v5554_v23, %v5553_v61  ;;  %v7806_v30 = vld [vmem:[#allocation2 + $0x300] sm:$0xf] }
 0x57b   :  { %v7807_v5 = vor.u32 %v8297_v12, %v7806_v30  ;;  %v11277_v53 = vld [vmem:[#allocation35_spill] sm:$0xff]  ;;  %v7742_v30 = vld [vmem:[#allocation2 + $0x278] sm:$0xf] }
 0x57c   :  { %v6061_v2 = vmax.f32 %v5997_v34, 0.0  ;;  %v5423_v11 = vadd.f32 %v5300_v31, %v11275_v15  ;;  %5338 = vmatmul.bf16.gmra.mxu1 %v7719_v9  ;;  %5886 = vmatmul.bf16.gmra.mxu2 %v5606_v24  ;;  %v5138_v31 = vadd.f32 %v10593_v8, %v10608_v27  ;;  %v7818_v9 = vld [vmem:[#allocation2 + $0x318] sm:$0xf]  ;;  %v8300_v24 = vld [vmem:[#allocation2 + $0x320] sm:$0xf0] }
 0x57d   :  { %v7819_v15 = vor.u32 %v8300_v24, %v7818_v9  ;;  %v8280_v12 = vld [vmem:[#allocation2 + $0x280] sm:$0xf0] }
 0x57e   :  { %v8529_v57 = vpack.c.bf16 %v6061_v2, %v6060_v6  ;;  %v5491_v56 = vadd.f32 %v10527_v41, %v5423_v11 }
 0x57f   :  { %v5847_v45 = vpop.f32.mrf.mxu2 }
 0x580   :  { %8708 = vst [vmem:[%s11137_s7 + $0x10] sm:$0xff] %v8529_v57   ;;  %v5848_v43 = vadd.f32 %v10654_v63, %v5847_v45  ;;  %v5555_v7 = vmax.f32 %v5491_v56, 0.0  ;;  %v11278_v57 = vld [vmem:[#allocation36_spill] sm:$0xff] }
 0x581   :  { %v5301_v54 = vpop.f32.mrf.mxu1  ;;  %5219 = vmatmul.bf16.gmra.mxu0 %v7835_v38 }
 0x582   :  { %v5302_v52 = vadd.f32 %v5301_v54, %v5133_v37  ;;  %v5998_v46 = vadd.f32 %v8402_v25, %v5848_v43  ;;  %v7743_v43 = vor.u32 %v8280_v12, %v7742_v30  ;;  %v5148_v30 = vadd.f32 %v10625_v44, %v10634_v47 }
 0x584   :  { %v5424_v1 = vadd.f32 %v5302_v52, %v11276_v42  ;;  %5040 = vmatmul.bf16.gmra.mxu3 %v7807_v5  ;;  %v6062_v61 = vmax.f32 %v5998_v46, 0.0  ;;  %v7830_v46 = vld [vmem:[#allocation2 + $0x330] sm:$0xf] }
 0x586   :  { %v5492_v48 = vadd.f32 %v10527_v41, %v5424_v1 }
 0x587   :  { %v5849_v26 = vpop.f32.mrf.mxu2 }
 0x588   :  { %v5850_v51 = vadd.f32 %v10654_v63, %v5849_v26  ;;  %v5556_v3 = vmax.f32 %v5492_v48, 0.0 }
 0x589   :  { %v5304_v58 = vpop.f32.mrf.mxu1 }
 0x58a   :  { %v5999_v14 = vadd.f32 %v8403_v22, %v5850_v51  ;;  %v5305_v19 = vadd.f32 %v5304_v58, %v10602_v4  ;;  %v5607_v0 = vpack.c.bf16 %v5556_v3, %v5555_v7  ;;  %v8679_v4 = vld [vmem:[%s11132_s0 + $0x20] sm:$0xff]   ;;  %v11279_v22 = vld [vmem:[#allocation37_spill] sm:$0xff]  ;;  %v5143_v7 = vadd.f32 %v10610_v50, %v10621_v29  ;;  %v8303_v51 = vld [vmem:[#allocation2 + $0x338] sm:$0xf0]  ;;  %v10747_v29 = vpop.f32.mrf.mxu3 }
 0x58b   :  { %v8406_v17 = vunpack.c.l.bf16 %v8679_v4  ;;  %v8407_v45 = vunpack.c.h.bf16 %v8679_v4 }
 0x58c   :  { %v6063_v55 = vmax.f32 %v5999_v14, 0.0  ;;  %v5425_v23 = vadd.f32 %v5305_v19, %v11277_v53  ;;  %5343 = vmatmul.bf16.gmra.mxu1 %v7731_v35  ;;  %5891 = vmatmul.bf16.gmra.mxu2 %v5607_v0  ;;  %v7831_v14 = vor.u32 %v8303_v51, %v7830_v46 }
 0x58e   :  { %v8534_v16 = vpack.c.bf16 %v6063_v55, %v6062_v61  ;;  %v5493_v11 = vadd.f32 %v10527_v41, %v5425_v23  ;;  %v11280_v61 = vld [vmem:[#allocation38_spill] sm:$0xff] }
 0x58f   :  { %v5852_v34 = vpop.f32.mrf.mxu2 }
 0x590   :  { %8709 = vst [vmem:[%s11137_s7 + $0x18] sm:$0xff] %v8534_v16   ;;  %v5853_v49 = vadd.f32 %v10654_v63, %v5852_v34  ;;  %v5557_v38 = vmax.f32 %v5493_v11, 0.0  ;;  %v7754_v16 = vld [vmem:[#allocation2 + $0x290] sm:$0xf]  ;;  %v8283_v34 = vld [vmem:[#allocation2 + $0x298] sm:$0xf0] }
 0x591   :  { %v5306_v6 = vpop.f32.mrf.mxu1  ;;  %v7755_v11 = vor.u32 %v8283_v34, %v7754_v16  ;;  %v10787_v16 = vld [vmem:[%s11135_s5] ss:$0 sm:$0xff] }
 0x592   :  { %v5307_v2 = vadd.f32 %v5306_v6, %v5138_v31  ;;  %v6000_v40 = vadd.f32 %v8406_v17, %v5853_v49  ;;  %v10766_v44 = vpop.f32.mrf.mxu3 }
 0x594   :  { %v5426_v8 = vadd.f32 %v5307_v2, %v11278_v57  ;;  %5045 = vmatmul.bf16.gmra.mxu3 %v7819_v15  ;;  %v6064_v1 = vmax.f32 %v6000_v40, 0.0  ;;  %v10761_v40 = vpop.f32.mrf.mxu0 }
 0x596   :  { %v5494_v27 = vadd.f32 %v10527_v41, %v5426_v8  ;;  %v11281_v8 = vld [vmem:[#allocation39_spill] sm:$0xff] }
 0x597   :  { %v5854_v37 = vpop.f32.mrf.mxu2 }
 0x598   :  { %v5855_v54 = vadd.f32 %v10654_v63, %v5854_v37  ;;  %v5558_v52 = vmax.f32 %v5494_v27, 0.0 }
 0x599   :  { %v5309_v5 = vpop.f32.mrf.mxu1 }
 0x59a   :  { %v6001_v56 = vadd.f32 %v8407_v45, %v5855_v54  ;;  %v5310_v25 = vadd.f32 %v5309_v5, %v10615_v20  ;;  %v5608_v42 = vpack.c.bf16 %v5558_v52, %v5557_v38  ;;  %v8680_v20 = vld [vmem:[%s11132_s0 + $0x28] sm:$0xff]  }
 0x59b   :  { %v8410_v35 = vunpack.c.l.bf16 %v8680_v20  ;;  %v8411_v53 = vunpack.c.h.bf16 %v8680_v20 }
 0x59c   :  { %v6065_v48 = vmax.f32 %v6001_v56, 0.0  ;;  %v5427_v26 = vadd.f32 %v5310_v25, %v11279_v22  ;;  %5348 = vmatmul.bf16.gmra.mxu1 %v7743_v43  ;;  %5896 = vmatmul.bf16.gmra.mxu2 %v5608_v42  ;;  %v11282_v56 = vld [vmem:[#allocation40_spill] sm:$0xff] }
 0x59e   :  { %v8539_v32 = vpack.c.bf16 %v6065_v48, %v6064_v1  ;;  %v5495_v19 = vadd.f32 %v10527_v41, %v5427_v26  ;;  %v7766_v1 = vld [vmem:[#allocation2 + $0x2a8] sm:$0xf]  ;;  %v8286_v48 = vld [vmem:[#allocation2 + $0x2b0] sm:$0xf0] }
 0x59f   :  { %v5857_v28 = vpop.f32.mrf.mxu2  ;;  %v7767_v20 = vor.u32 %v8286_v48, %v7766_v1 }
 0x5a0   :  { %8710 = vst [vmem:[%s11137_s7 + $0x20] sm:$0xff] %v8539_v32   ;;  %v5858_v0 = vadd.f32 %v10654_v63, %v5857_v28  ;;  %v5559_v31 = vmax.f32 %v5495_v19, 0.0  ;;  %v11283_v19 = vld [vmem:[#allocation41_spill] sm:$0xff] }
 0x5a1   :  { %v5311_v3 = vpop.f32.mrf.mxu1 }
 0x5a2   :  { %v5312_v58 = vadd.f32 %v5311_v3, %v5143_v7  ;;  %v6002_v9 = vadd.f32 %v8410_v35, %v5858_v0 }
 0x5a4   :  { %v5428_v50 = vadd.f32 %v5312_v58, %v11280_v61  ;;  %5050 = vmatmul.bf16.gmra.mxu3 %v7831_v14  ;;  %v6066_v49 = vmax.f32 %v6002_v9, 0.0  ;;  %v10774_v61 = vpop.f32.mrf.mxu3 }
 0x5a6   :  { %v5496_v55 = vadd.f32 %v10527_v41, %v5428_v50 }
 0x5a7   :  { %v5859_v23 = vpop.f32.mrf.mxu2 }
 0x5a8   :  { %v5860_v24 = vadd.f32 %v10654_v63, %v5859_v23  ;;  %v5560_v4 = vmax.f32 %v5496_v55, 0.0  ;;  %v5153_v55 = vadd.f32 %v10643_v36, %v10649_v62  ;;  %v11284_v62 = vld [vmem:[#allocation3_spill] sm:$0xff] }
 0x5a9   :  { %v5314_v6 = vpop.f32.mrf.mxu1 }
 0x5aa   :  { %v6003_v2 = vadd.f32 %v8411_v53, %v5860_v24  ;;  %v5315_v15 = vadd.f32 %v5314_v6, %v10628_v13  ;;  %v5609_v17 = vpack.c.bf16 %v5560_v4, %v5559_v31  ;;  %v8681_v13 = vld [vmem:[%s11132_s0 + $0x30] sm:$0xff]  }
 0x5ab   :  { %v8414_v52 = vunpack.c.l.bf16 %v8681_v13  ;;  %v8415_v43 = vunpack.c.h.bf16 %v8681_v13 }
 0x5ac   :  { %v6067_v57 = vmax.f32 %v6003_v2, 0.0  ;;  %v5429_v27 = vadd.f32 %v5315_v15, %v11281_v8  ;;  %5353 = vmatmul.bf16.gmra.mxu1 %v7755_v11  ;;  %5901 = vmatmul.bf16.gmra.mxu2 %v5609_v17  ;;  %v7778_v2 = vld [vmem:[#allocation2 + $0x2c0] sm:$0xf]  ;;  %v8289_v15 = vld [vmem:[#allocation2 + $0x2c8] sm:$0xf0] }
 0x5ad   :  { %v7779_v13 = vor.u32 %v8289_v15, %v7778_v2 }
 0x5ae   :  { %v8544_v45 = vpack.c.bf16 %v6067_v57, %v6066_v49  ;;  %v5497_v54 = vadd.f32 %v10527_v41, %v5429_v27  ;;  %v10796_v27 = vpop.f32.mrf.mxu3 }
 0x5af   :  { %v5862_v37 = vpop.f32.mrf.mxu2 }
 0x5b0   :  { %8711 = vst [vmem:[%s11137_s7 + $0x28] sm:$0xff] %v8544_v45   ;;  %v5863_v5 = vadd.f32 %v10654_v63, %v5862_v37  ;;  %v5561_v22 = vmax.f32 %v5497_v54, 0.0 }
 0x5b1   :  { %v5316_v12 = vpop.f32.mrf.mxu1 }
 0x5b2   :  { %v5317_v38 = vadd.f32 %v5316_v12, %v5148_v30  ;;  %v6004_v26 = vadd.f32 %v8414_v52, %v5863_v5  ;;  %v11285_v52 = vld [vmem:[#allocation19_spill] sm:$0xff] }
 0x5b4   :  { %v5430_v25 = vadd.f32 %v5317_v38, %v11282_v56  ;;  %v6068_v58 = vmax.f32 %v6004_v26, 0.0 }
 0x5b6   :  { %v5498_v47 = vadd.f32 %v10527_v41, %v5430_v25  ;;  %v10772_v41 = vpop.f32.mrf.mxu0  ;;  %v10810_v48 = vpop.f32.mrf.mxu3 }
 0x5b7   :  { %v5864_v42 = vpop.f32.mrf.mxu2 }
 0x5b8   :  { %v5865_v32 = vadd.f32 %v10654_v63, %v5864_v42  ;;  %v5562_v28 = vmax.f32 %v5498_v47, 0.0  ;;  %v5158_v47 = vadd.f32 %v10668_v60, %v10675_v33  ;;  %v11286_v60 = vld [vmem:[#allocation4_spill] sm:$0xff] }
 0x5b9   :  { %v5319_v7 = vpop.f32.mrf.mxu1 }
 0x5ba   :  { %v6005_v46 = vadd.f32 %v8415_v43, %v5865_v32  ;;  %v5320_v51 = vadd.f32 %v5319_v7, %v10641_v10  ;;  %v5610_v3 = vpack.c.bf16 %v5562_v28, %v5561_v22  ;;  %v8682_v10 = vld [vmem:[%s11132_s0 + $0x38] sm:$0xff]  }
 0x5bb   :  { %v8418_v31 = vunpack.c.l.bf16 %v8682_v10  ;;  %v8419_v4 = vunpack.c.h.bf16 %v8682_v10 }
 0x5bc   :  { %v6069_v14 = vmax.f32 %v6005_v46, 0.0  ;;  %v5431_v35 = vadd.f32 %v5320_v51, %v11283_v19  ;;  %5358 = vmatmul.bf16.gmra.mxu1 %v7767_v20  ;;  %5906 = vmatmul.bf16.gmra.mxu2 %v5610_v3  ;;  %v7790_v51 = vld [vmem:[#allocation2 + $0x2d8] sm:$0xf]  ;;  %v8292_v20 = vld [vmem:[#allocation2 + $0x2e0] sm:$0xf0] }
 0x5be   :  { %v8549_v0 = vpack.c.bf16 %v6069_v14, %v6068_v58  ;;  %v5499_v34 = vadd.f32 %v10787_v16, %v5431_v35  ;;  %v10793_v11 = vpop.f32.mrf.mxu0 }
 0x5bf   :  { %v5867_v50 = vpop.f32.mrf.mxu2 }
 0x5c0   :  { %8712 = vst [vmem:[%s11137_s7 + $0x30] sm:$0xff] %v8549_v0   ;;  %v5868_v36 = vadd.f32 %v10654_v63, %v5867_v50  ;;  %v5563_v17 = vmax.f32 %v5499_v34, 0.0 }
 0x5c1   :  { %v5321_v53 = vpop.f32.mrf.mxu1 }
 0x5c2   :  { %v5322_v23 = vadd.f32 %v5321_v53, %v5153_v55  ;;  %v6006_v49 = vadd.f32 %v8418_v31, %v5868_v36  ;;  %v7791_v55 = vor.u32 %v8292_v20, %v7790_v51  ;;  %v11287_v31 = vld [vmem:[#allocation20_spill] sm:$0xff] }
 0x5c4   :  { %v5432_v9 = vadd.f32 %v5322_v23, %v11284_v62  ;;  %v6070_v38 = vmax.f32 %v6006_v49, 0.0  ;;  %v10821_v62 = vpop.f32.mrf.mxu3 }
 0x5c6   :  { %v5500_v24 = vadd.f32 %v10787_v16, %v5432_v9  ;;  %v10808_v42 = vpop.f32.mrf.mxu0 }
 0x5c7   :  { %v5869_v6 = vpop.f32.mrf.mxu2 }
 0x5c8   :  { %v5870_v57 = vadd.f32 %v10654_v63, %v5869_v6  ;;  %v5564_v8 = vmax.f32 %v5500_v24, 0.0 }
 0x5c9   :  { %v5324_v45 = vpop.f32.mrf.mxu1 }
 0x5ca   :  { %v6007_v37 = vadd.f32 %v8419_v4, %v5870_v57  ;;  %v5325_v30 = vadd.f32 %v5324_v45, %v10664_v39  ;;  %v5611_v12 = vpack.c.bf16 %v5564_v8, %v5563_v17  ;;  %v8683_v39 = vld [vmem:[%s11132_s0 + $0x40] sm:$0xff]   ;;  %v5163_v4 = vadd.f32 %v10712_v18, %v10747_v29  ;;  %v11288_v57 = vld [vmem:[#allocation5_spill] sm:$0xff] }
 0x5cb   :  { %v8422_v26 = vunpack.c.l.bf16 %v8683_v39  ;;  %v8423_v7 = vunpack.c.h.bf16 %v8683_v39 }
 0x5cc   :  { %v6071_v54 = vmax.f32 %v6007_v37, 0.0  ;;  %v5433_v5 = vadd.f32 %v5325_v30, %v11285_v52  ;;  %5363 = vmatmul.bf16.gmra.mxu1 %v7779_v13  ;;  %5911 = vmatmul.bf16.gmra.mxu2 %v5611_v12  ;;  %v10837_v37 = vpop.f32.mrf.mxu3  ;;  %v7802_v13 = vld [vmem:[#allocation2 + $0x2f0] sm:$0xf]  ;;  %v8295_v12 = vld [vmem:[#allocation2 + $0x2f8] sm:$0xf0] }
 0x5cd   :  { %v7803_v39 = vor.u32 %v8295_v12, %v7802_v13  ;;  %v8686_v13 = vld [vmem:[%s11132_s0 + $0x58] sm:$0xff]  }
 0x5ce   :  { %v8554_v56 = vpack.c.bf16 %v6071_v54, %v6070_v38  ;;  %v5501_v22 = vadd.f32 %v10787_v16, %v5433_v5  ;;  %v10818_v53 = vpop.f32.mrf.mxu0 }
 0x5cf   :  { %v5872_v25 = vpop.f32.mrf.mxu2 }
 0x5d0   :  { %8713 = vst [vmem:[%s11137_s7 + $0x38] sm:$0xff] %v8554_v56   ;;  %v5873_v32 = vadd.f32 %v10654_v63, %v5872_v25  ;;  %v5565_v3 = vmax.f32 %v5501_v22, 0.0  ;;  %v5166_v25 = vadd.f32 %v10761_v40, %v10766_v44  ;;  %v11289_v40 = vld [vmem:[#allocation21_spill] sm:$0xff] }
 0x5d1   :  { %v5326_v43 = vpop.f32.mrf.mxu1 }
 0x5d2   :  { %v5327_v1 = vadd.f32 %v5326_v43, %v5158_v47  ;;  %v6008_v58 = vadd.f32 %v8422_v26, %v5873_v32 }
 0x5d4   :  { %v5434_v33 = vadd.f32 %v5327_v1, %v11286_v60  ;;  %v6072_v23 = vmax.f32 %v6008_v58, 0.0 }
 0x5d6   :  { %v5502_v28 = vadd.f32 %v10787_v16, %v5434_v33  ;;  %v10834_v45 = vpop.f32.mrf.mxu0  ;;  %v5168_v33 = vadd.f32 %v10772_v41, %v10774_v61  ;;  %v11290_v61 = vld [vmem:[#allocation6_spill] sm:$0xff] }
 0x5d7   :  { %v5874_v46 = vpop.f32.mrf.mxu2 }
 0x5d8   :  { %v5875_v14 = vadd.f32 %v10654_v63, %v5874_v46  ;;  %v5566_v19 = vmax.f32 %v5502_v28, 0.0  ;;  %v8685_v46 = vld [vmem:[%s11132_s0 + $0x50] sm:$0xff]  }
 0x5d9   :  { %v5329_v35 = vpop.f32.mrf.mxu1  ;;  %v8430_v58 = vunpack.c.l.bf16 %v8685_v46 }
 0x5da   :  { %v6009_v0 = vadd.f32 %v8423_v7, %v5875_v14  ;;  %v5330_v50 = vadd.f32 %v5329_v35, %v10685_v59  ;;  %v5612_v10 = vpack.c.bf16 %v5566_v19, %v5565_v3  ;;  %v8684_v59 = vld [vmem:[%s11132_s0 + $0x48] sm:$0xff]   ;;  %v10850_v7 = vpop.f32.mrf.mxu3  ;;  %v8431_v35 = vunpack.c.h.bf16 %v8685_v46 }
 0x5db   :  { %v8426_v17 = vunpack.c.l.bf16 %v8684_v59  ;;  %v8427_v29 = vunpack.c.h.bf16 %v8684_v59 }
 0x5dc   :  { %v6073_v34 = vmax.f32 %v6009_v0, 0.0  ;;  %v5435_v36 = vadd.f32 %v5330_v50, %v11287_v31  ;;  %5368 = vmatmul.bf16.gmra.mxu1 %v7791_v55  ;;  %5916 = vmatmul.bf16.gmra.mxu2 %v5612_v10  ;;  %v7814_v50 = vld [vmem:[#allocation2 + $0x308] sm:$0xf]  ;;  %v8298_v55 = vld [vmem:[#allocation2 + $0x310] sm:$0xf0] }
 0x5dd   :  { %v7815_v59 = vor.u32 %v8298_v55, %v7814_v50 }
 0x5de   :  { %v8559_v9 = vpack.c.bf16 %v6073_v34, %v6072_v23  ;;  %v5503_v15 = vadd.f32 %v10787_v16, %v5435_v36  ;;  %v10844_v28 = vpop.f32.mrf.mxu0 }
 0x5df   :  { %v5877_v24 = vpop.f32.mrf.mxu2 }
 0x5e0   :  { %8714 = vst [vmem:[%s11137_s7 + $0x40] sm:$0xff] %v8559_v9   ;;  %v5878_v49 = vadd.f32 %v10654_v63, %v5877_v24  ;;  %v5567_v38 = vmax.f32 %v5503_v15, 0.0  ;;  %v5171_v9 = vadd.f32 %v10793_v11, %v10796_v27  ;;  %v11291_v11 = vld [vmem:[#allocation22_spill] sm:$0xff] }
 0x5e1   :  { %v5331_v6 = vpop.f32.mrf.mxu1 }
 0x5e2   :  { %v5332_v2 = vadd.f32 %v5331_v6, %v5163_v4  ;;  %v6010_v54 = vadd.f32 %v8426_v17, %v5878_v49 }
 0x5e4   :  { %v5436_v8 = vadd.f32 %v5332_v2, %v11288_v57  ;;  %v6074_v1 = vmax.f32 %v6010_v54, 0.0  ;;  %v10864_v2 = vpop.f32.mrf.mxu3  ;;  %v11292_v54 = vld [vmem:[#allocation7_spill] sm:$0xff] }
 0x5e6   :  { %v5504_v18 = vadd.f32 %v10787_v16, %v5436_v8  ;;  %v10862_v24 = vpop.f32.mrf.mxu0 }
 0x5e7   :  { %v5879_v30 = vpop.f32.mrf.mxu2 }
 0x5e8   :  { %v5880_v52 = vadd.f32 %v10654_v63, %v5879_v30  ;;  %v5568_v5 = vmax.f32 %v5504_v18, 0.0  ;;  %v5173_v18 = vadd.f32 %v10808_v42, %v10810_v48  ;;  %v8306_v30 = vld [vmem:[#allocation2 + $0x350] sm:$0xf0] }
 0x5e9   :  { %v5334_v56 = vpop.f32.mrf.mxu1 }
 0x5ea   :  { %v6011_v47 = vadd.f32 %v8427_v29, %v5880_v52  ;;  %v5613_v43 = vpack.c.bf16 %v5568_v5, %v5567_v38  ;;  %v5335_v26 = vadd.f32 %v5334_v56, %v5166_v25  ;;  %v7842_v29 = vld [vmem:[#allocation2 + $0x348] sm:$0xf]  ;;  %v11293_v52 = vld [vmem:[#allocation23_spill] sm:$0xff]  ;;  %v8434_v25 = vunpack.c.l.bf16 %v8686_v13 }
 0x5eb   :  { %v7843_v38 = vor.u32 %v8306_v30, %v7842_v29  ;;  %v4130_v5 = vadd.f32 %v11293_v52, %v11292_v54 }
 0x5ec   :  { %v6075_v22 = vmax.f32 %v6011_v47, 0.0  ;;  %5373 = vmatmul.bf16.gmra.mxu1 %v7803_v39  ;;  %5921 = vmatmul.bf16.gmra.mxu2 %v5613_v43  ;;  %v5437_v44 = vadd.f32 %v5335_v26, %v11289_v40  ;;  %v10881_v43 = vpop.f32.mrf.mxu3 }
 0x5ed   :  { %5055 = vmatmul.bf16.gmra.mxu3 %v7843_v38 }
 0x5ee   :  { %v8564_v32 = vpack.c.bf16 %v6075_v22, %v6074_v1  ;;  %v5505_v3 = vadd.f32 %v10787_v16, %v5437_v44  ;;  %v10877_v42 = vpop.f32.mrf.mxu0  ;;  %v8435_v22 = vunpack.c.h.bf16 %v8686_v13 }
 0x5ef   :  { %v5882_v60 = vpop.f32.mrf.mxu2 }
 0x5f0   :  { %8715 = vst [vmem:[%s11137_s7 + $0x48] sm:$0xff] %v8564_v32   ;;  %v5883_v41 = vadd.f32 %v10654_v63, %v5882_v60  ;;  %v5569_v10 = vmax.f32 %v5505_v3, 0.0  ;;  %v7826_v32 = vld [vmem:[#allocation2 + $0x320] sm:$0xf]  ;;  %v8301_v60 = vld [vmem:[#allocation2 + $0x328] sm:$0xf0] }
 0x5f1   :  { %v5336_v51 = vpop.f32.mrf.mxu1 }
 0x5f2   :  { %v5337_v20 = vadd.f32 %v5336_v51, %v5168_v33  ;;  %v6012_v23 = vadd.f32 %v8430_v58, %v5883_v41  ;;  %v8305_v51 = vld [vmem:[#allocation2 + $0x34c] sm:$0xf]  ;;  %v5176_v41 = vadd.f32 %v10818_v53, %v10821_v62 }
 0x5f3   :  { %v11294_v53 = vld [vmem:[#allocation8_spill] sm:$0xff] }
 0x5f4   :  { %v5438_v14 = vadd.f32 %v5337_v20, %v11290_v61  ;;  %v6076_v15 = vmax.f32 %v6012_v23, 0.0  ;;  %v7844_v20 = vld [vmem:[#allocation2 + $0x354] sm:$0xf0]  ;;  %v10889_v23 = vpop.f32.mrf.mxu3 }
 0x5f5   :  { %v7847_v58 = vor.u32 %v8305_v51, %v7844_v20 }
 0x5f6   :  { %v5506_v19 = vadd.f32 %v10787_v16, %v5438_v14  ;;  %v7827_v14 = vor.u32 %v8301_v60, %v7826_v32  ;;  %v10887_v55 = vpop.f32.mrf.mxu0  ;;  %v5183_v32 = vadd.f32 %v10862_v24, %v10864_v2  ;;  %v11297_v60 = vld [vmem:[#allocation25_spill] sm:$0xff] }
 0x5f7   :  { %v5884_v0 = vpop.f32.mrf.mxu2  ;;  %5224 = vmatmul.bf16.gmra.mxu0 %v7847_v58 }
 0x5f8   :  { %v5885_v34 = vadd.f32 %v10654_v63, %v5884_v0  ;;  %v5570_v31 = vmax.f32 %v5506_v19, 0.0 }
 0x5f9   :  { %v5339_v36 = vpop.f32.mrf.mxu1 }
 0x5fa   :  { %v6013_v4 = vadd.f32 %v8431_v35, %v5885_v34  ;;  %v5614_v6 = vpack.c.bf16 %v5570_v31, %v5569_v10  ;;  %v5340_v49 = vadd.f32 %v5339_v36, %v5171_v9  ;;  %v5178_v31 = vadd.f32 %v10834_v45, %v10837_v37  ;;  %v8687_v36 = vld [vmem:[%s11132_s0 + $0x60] sm:$0xff]  }
 0x5fc   :  { %v6077_v17 = vmax.f32 %v6013_v4, 0.0  ;;  %5378 = vmatmul.bf16.gmra.mxu1 %v7815_v59  ;;  %5926 = vmatmul.bf16.gmra.mxu2 %v5614_v6  ;;  %v5439_v27 = vadd.f32 %v5340_v49, %v11291_v11  ;;  %v11295_v4 = vld [vmem:[#allocation24_spill] sm:$0xff]  ;;  %v11296_v59 = vld [vmem:[#allocation9_spill] sm:$0xff]  ;;  %v8438_v49 = vunpack.c.l.bf16 %v8687_v36  ;;  %v7838_v11 = vld [vmem:[#allocation2 + $0x338] sm:$0xf]  ;;  %v10908_v54 = vpop.f32.mrf.mxu3 }
 0x5fd   :  { %v4135_v6 = vadd.f32 %v11296_v59, %v11295_v4 }
 0x5fe   :  { %v8569_v57 = vpack.c.bf16 %v6077_v17, %v6076_v15  ;;  %v5507_v48 = vadd.f32 %v10787_v16, %v5439_v27  ;;  %v8304_v27 = vld [vmem:[#allocation2 + $0x340] sm:$0xf0]  ;;  %v10905_v29 = vpop.f32.mrf.mxu0 }
 0x5ff   :  { %v5887_v8 = vpop.f32.mrf.mxu2 }
 0x600   :  { %8716 = vst [vmem:[%s11137_s7 + $0x50] sm:$0xff] %v8569_v57   ;;  %v5888_v47 = vadd.f32 %v10654_v63, %v5887_v8  ;;  %v5571_v33 = vmax.f32 %v5507_v48, 0.0  ;;  %v8439_v8 = vunpack.c.h.bf16 %v8687_v36  ;;  %v7839_v48 = vor.u32 %v8304_v27, %v7838_v11  ;;  %v11302_v11 = vld [vmem:[#allocation12_spill] sm:$0xff] }
 0x601   :  { %v5341_v12 = vpop.f32.mrf.mxu1  ;;  %v5186_v36 = vadd.f32 %v10877_v42, %v10881_v43  ;;  %v8689_v43 = vld [vmem:[%s11132_s0 + $0x70] sm:$0xff]  }
 0x602   :  { %v5342_v56 = vadd.f32 %v5341_v12, %v5173_v18  ;;  %v6014_v40 = vadd.f32 %v8434_v25, %v5888_v47 }
 0x604   :  { %v5440_v39 = vadd.f32 %v5342_v56, %v4130_v5  ;;  %v6078_v35 = vmax.f32 %v6014_v40, 0.0  ;;  %v5181_v5 = vadd.f32 %v10844_v28, %v10850_v7  ;;  %v8688_v28 = vld [vmem:[%s11132_s0 + $0x68] sm:$0xff]   ;;  %v11298_v40 = vld [vmem:[#allocation10_spill] sm:$0xff] }
 0x605   :  { %v8442_v24 = vunpack.c.l.bf16 %v8688_v28 }
 0x606   :  { %v5508_v1 = vadd.f32 %v10787_v16, %v5440_v39  ;;  %v5192_v51 = vpop.f32.mrf.mxu0 }
 0x607   :  { %v5889_v26 = vpop.f32.mrf.mxu2 }
 0x608   :  { %v5572_v44 = vmax.f32 %v5508_v1, 0.0  ;;  %v5890_v46 = vadd.f32 %v10654_v63, %v5889_v26 }
 0x609   :  { %v5344_v3 = vpop.f32.mrf.mxu1 }
 0x60a   :  { %v6015_v61 = vadd.f32 %v8435_v22, %v5890_v46  ;;  %v5615_v19 = vpack.c.bf16 %v5572_v44, %v5571_v33  ;;  %v5345_v50 = vadd.f32 %v5344_v3, %v5176_v41  ;;  %v11299_v44 = vld [vmem:[#allocation26_spill] sm:$0xff]  ;;  %v5023_v3 = vpop.f32.mrf.mxu3 }
 0x60b   :  { %v4140_v46 = vadd.f32 %v11299_v44, %v11298_v40 }
 0x60c   :  { %v6079_v0 = vmax.f32 %v6015_v61, 0.0  ;;  %5383 = vmatmul.bf16.gmra.mxu1 %v7827_v14  ;;  %5931 = vmatmul.bf16.gmra.mxu2 %v5615_v19  ;;  %v5441_v62 = vadd.f32 %v5345_v50, %v11294_v53  ;;  %v7850_v61 = vld [vmem:[#allocation2 + $0x350] sm:$0xf]  ;;  %v8307_v14 = vld [vmem:[#allocation2 + $0x358] sm:$0xf0] }
 0x60d   :  { %v7851_v50 = vor.u32 %v8307_v14, %v7850_v61  ;;  %v11304_v61 = vld [vmem:[#allocation13_spill] sm:$0xff] }
 0x60e   :  { %v8574_v10 = vpack.c.bf16 %v6079_v0, %v6078_v35  ;;  %v5509_v17 = vadd.f32 %v10787_v16, %v5441_v62  ;;  %v8443_v35 = vunpack.c.h.bf16 %v8688_v28  ;;  %v5195_v59 = vpop.f32.mrf.mxu0  ;;  %v11305_v14 = vld [vmem:[#allocation29_spill] sm:$0xff] }
 0x60f   :  { %v5892_v34 = vpop.f32.mrf.mxu2 }
 0x610   :  { %8717 = vst [vmem:[%s11137_s7 + $0x58] sm:$0xff] %v8574_v10   ;;  %v5893_v45 = vadd.f32 %v10654_v63, %v5892_v34  ;;  %v5573_v30 = vmax.f32 %v5509_v17, 0.0 }
 0x611   :  { %v5346_v9 = vpop.f32.mrf.mxu1 }
 0x612   :  { %v5347_v15 = vadd.f32 %v5346_v9, %v5178_v31  ;;  %v6016_v13 = vadd.f32 %v8438_v49, %v5893_v45  ;;  %v5026_v49 = vpop.f32.mrf.mxu3 }
 0x614   :  { %v5442_v37 = vadd.f32 %v5347_v15, %v4135_v6  ;;  %v6080_v47 = vmax.f32 %v6016_v13, 0.0 }
 0x616   :  { %v5510_v57 = vadd.f32 %v10787_v16, %v5442_v37 }
 0x617   :  { %v5894_v18 = vpop.f32.mrf.mxu2 }
 0x618   :  { %v5574_v12 = vmax.f32 %v5510_v57, 0.0  ;;  %v5895_v38 = vadd.f32 %v10654_v63, %v5894_v18  ;;  %v5188_v57 = vadd.f32 %v10887_v55, %v10889_v23  ;;  %v11301_v18 = vld [vmem:[#allocation27_spill] sm:$0xff] }
 0x619   :  { %v5349_v52 = vpop.f32.mrf.mxu1  ;;  %v4145_v27 = vadd.f32 %v11302_v11, %v11301_v18  ;;  %v10944_v55 = vld [vmem:[%s11136_s6] ss:$0 sm:$0xff]  ;;  %v11306_v11 = vld [vmem:[#allocation14_spill] sm:$0xff] }
 0x61a   :  { %v6017_v56 = vadd.f32 %v8439_v8, %v5895_v38  ;;  %v5616_v25 = vpack.c.bf16 %v5574_v12, %v5573_v30  ;;  %v5350_v1 = vadd.f32 %v5349_v52, %v5181_v5  ;;  %v8446_v12 = vunpack.c.l.bf16 %v8689_v43  ;;  %v5197_v52 = vpop.f32.mrf.mxu0 }
 0x61c   :  { %v6081_v39 = vmax.f32 %v6017_v56, 0.0  ;;  %5388 = vmatmul.bf16.gmra.mxu1 %v7839_v48  ;;  %5936 = vmatmul.bf16.gmra.mxu2 %v5616_v25  ;;  %v5443_v33 = vadd.f32 %v5350_v1, %v11297_v60  ;;  %v8447_v56 = vunpack.c.h.bf16 %v8689_v43  ;;  %v5028_v48 = vpop.f32.mrf.mxu3 }
 0x61d   :  { %v5198_v18 = vadd.f32 %v5197_v52, %v5028_v48 }
 0x61e   :  { %v8579_v22 = vpack.c.bf16 %v6081_v39, %v6080_v47  ;;  %v5511_v58 = vadd.f32 %v10787_v16, %v5443_v33 }
 0x61f   :  { %v5897_v26 = vpop.f32.mrf.mxu2 }
 0x620   :  { %8718 = vst [vmem:[%s11137_s7 + $0x60] sm:$0xff] %v8579_v22   ;;  %v5898_v2 = vadd.f32 %v10654_v63, %v5897_v26  ;;  %v5575_v10 = vmax.f32 %v5511_v58, 0.0  ;;  %v5193_v58 = vadd.f32 %v5192_v51, %v5023_v3 }
 0x621   :  { %v5351_v7 = vpop.f32.mrf.mxu1 }
 0x622   :  { %v5352_v20 = vadd.f32 %v5351_v7, %v5183_v32  ;;  %v6018_v34 = vadd.f32 %v8442_v24, %v5898_v2  ;;  %v5191_v32 = vadd.f32 %v10905_v29, %v10908_v54  ;;  %v11303_v24 = vld [vmem:[#allocation28_spill] sm:$0xff]  ;;  %v8690_v29 = vld [vmem:[%s11132_s0 + $0x78] sm:$0xff]  }
 0x624   :  { %v5444_v41 = vadd.f32 %v5352_v20, %v4140_v46  ;;  %v6082_v6 = vmax.f32 %v6018_v34, 0.0  ;;  %v5200_v20 = vpop.f32.mrf.mxu0  ;;  %v8451_v34 = vunpack.c.h.bf16 %v8690_v29 }
 0x626   :  { %v5512_v19 = vadd.f32 %v10787_v16, %v5444_v41  ;;  %v5031_v41 = vpop.f32.mrf.mxu3 }
 0x627   :  { %v5899_v0 = vpop.f32.mrf.mxu2 }
 0x628   :  { %v5576_v31 = vmax.f32 %v5512_v19, 0.0  ;;  %v5900_v53 = vadd.f32 %v10654_v63, %v5899_v0  ;;  %v11300_v63 = vld [vmem:[#allocation11_spill] sm:$0xff]  ;;  %v4150_v19 = vadd.f32 %v11305_v14, %v11304_v61 }
 0x629   :  { %v5354_v62 = vpop.f32.mrf.mxu1  ;;  %v11309_v14 = vld [vmem:[#allocation31_spill] sm:$0xff] }
 0x62a   :  { %v6019_v9 = vadd.f32 %v8443_v35, %v5900_v53  ;;  %v5617_v4 = vpack.c.bf16 %v5576_v31, %v5575_v10  ;;  %v5355_v17 = vadd.f32 %v5354_v62, %v5186_v36 }
 0x62c   :  { %v6083_v15 = vmax.f32 %v6019_v9, 0.0  ;;  %5393 = vmatmul.bf16.gmra.mxu1 %v7851_v50  ;;  %5941 = vmatmul.bf16.gmra.mxu2 %v5617_v4  ;;  %v5445_v42 = vadd.f32 %v5355_v17, %v11300_v63  ;;  %v8450_v50 = vunpack.c.l.bf16 %v8690_v29 }
 0x62e   :  { %v8584_v45 = vpack.c.bf16 %v6083_v15, %v6082_v6  ;;  %v5513_v13 = vadd.f32 %v10787_v16, %v5445_v42  ;;  %v5202_v6 = vpop.f32.mrf.mxu0  ;;  %v5196_v15 = vadd.f32 %v5195_v59, %v5026_v49  ;;  %v8691_v59 = vld [vmem:[%s11132_s0 + $0x80] sm:$0xff]  }
 0x62f   :  { %v5902_v37 = vpop.f32.mrf.mxu2 }
 0x630   :  { %8719 = vst [vmem:[%s11137_s7 + $0x68] sm:$0xff] %v8584_v45   ;;  %v5903_v23 = vadd.f32 %v10944_v55, %v5902_v37  ;;  %v5577_v47 = vmax.f32 %v5513_v13, 0.0  ;;  %v5033_v37 = vpop.f32.mrf.mxu3  ;;  %v11308_v13 = vld [vmem:[#allocation15_spill] sm:$0xff] }
 0x631   :  { %v5356_v8 = vpop.f32.mrf.mxu1  ;;  %v5203_v61 = vadd.f32 %v5202_v6, %v5033_v37 }
 0x632   :  { %v5357_v30 = vadd.f32 %v5356_v8, %v5188_v57  ;;  %v6020_v39 = vadd.f32 %v8446_v12, %v5903_v23 }
 0x634   :  { %v5446_v38 = vadd.f32 %v5357_v30, %v4145_v27  ;;  %v6084_v28 = vmax.f32 %v6020_v39, 0.0  ;;  %v11307_v30 = vld [vmem:[#allocation30_spill] sm:$0xff]  ;;  %v8455_v39 = vunpack.c.h.bf16 %v8691_v59 }
 0x635   :  { %v4155_v12 = vadd.f32 %v11308_v13, %v11307_v30  ;;  %v8693_v13 = vld [vmem:[%s11132_s0 + $0x90] sm:$0xff]  }
 0x636   :  { %v5514_v5 = vadd.f32 %v10787_v16, %v5446_v38  ;;  %v5205_v38 = vpop.f32.mrf.mxu0 }
 0x637   :  { %v5904_v25 = vpop.f32.mrf.mxu2 }
 0x638   :  { %v5578_v1 = vmax.f32 %v5514_v5, 0.0  ;;  %v5905_v22 = vadd.f32 %v10944_v55, %v5904_v25  ;;  %v5036_v25 = vpop.f32.mrf.mxu3 }
 0x639   :  { %v5359_v26 = vpop.f32.mrf.mxu1 }
 0x63a   :  { %v6021_v60 = vadd.f32 %v8447_v56, %v5905_v22  ;;  %v5618_v33 = vpack.c.bf16 %v5578_v1, %v5577_v47  ;;  %v5360_v40 = vadd.f32 %v5359_v26, %v5191_v32  ;;  %v8454_v56 = vunpack.c.l.bf16 %v8691_v59 }
 0x63c   :  { %v6085_v7 = vmax.f32 %v6021_v60, 0.0  ;;  %5946 = vmatmul.bf16.gmra.mxu2 %v5618_v33  ;;  %v5447_v2 = vadd.f32 %v5360_v40, %v11303_v24 }
 0x63e   :  { %v8589_v44 = vpack.c.bf16 %v6085_v7, %v6084_v28  ;;  %v5515_v0 = vadd.f32 %v10787_v16, %v5447_v2  ;;  %v5201_v28 = vadd.f32 %v5200_v20, %v5031_v41  ;;  %v5207_v24 = vpop.f32.mrf.mxu0  ;;  %v8692_v20 = vld [vmem:[%s11132_s0 + $0x88] sm:$0xff]  }
 0x63f   :  { %v5907_v46 = vpop.f32.mrf.mxu2 }
 0x640   :  { %8720 = vst [vmem:[%s11137_s7 + $0x70] sm:$0xff] %v8589_v44   ;;  %v5908_v51 = vadd.f32 %v10944_v55, %v5907_v46  ;;  %v5579_v53 = vmax.f32 %v5515_v0, 0.0  ;;  %v5038_v29 = vpop.f32.mrf.mxu3  ;;  %v11311_v0 = vld [vmem:[#allocation32_spill] sm:$0xff] }
 0x641   :  { %v5361_v54 = vpop.f32.mrf.mxu1  ;;  %v5208_v59 = vadd.f32 %v5207_v24, %v5038_v29 }
 0x642   :  { %v5362_v35 = vadd.f32 %v5361_v54, %v5193_v58  ;;  %v6022_v62 = vadd.f32 %v8450_v50, %v5908_v51 }
 0x644   :  { %v5448_v3 = vadd.f32 %v5362_v35, %v4150_v19  ;;  %v6086_v57 = vmax.f32 %v6022_v62, 0.0  ;;  %v11310_v35 = vld [vmem:[#allocation16_spill] sm:$0xff]  ;;  %v8459_v62 = vunpack.c.h.bf16 %v8692_v20 }
 0x645   :  { %v4160_v50 = vadd.f32 %v11311_v0, %v11310_v35  ;;  %v8694_v0 = vld [vmem:[%s11132_s0 + $0x98] sm:$0xff]  }
 0x646   :  { %v5516_v10 = vadd.f32 %v10787_v16, %v5448_v3 }
 0x647   :  { %v5909_v31 = vpop.f32.mrf.mxu2 }
 0x648   :  { %v5580_v36 = vmax.f32 %v5516_v10, 0.0  ;;  %v5910_v9 = vadd.f32 %v10944_v55, %v5909_v31  ;;  %v8458_v10 = vunpack.c.l.bf16 %v8692_v20 }
 0x649   :  { %v5364_v4 = vpop.f32.mrf.mxu1 }
 0x64a   :  { %v6023_v17 = vadd.f32 %v8451_v34, %v5910_v9  ;;  %v5619_v45 = vpack.c.bf16 %v5580_v36, %v5579_v53  ;;  %v5365_v42 = vadd.f32 %v5364_v4, %v5196_v15  ;;  %v5210_v9 = vpop.f32.mrf.mxu0 }
 0x64c   :  { %v6087_v63 = vmax.f32 %v6023_v17, 0.0  ;;  %5951 = vmatmul.bf16.gmra.mxu2 %v5619_v45  ;;  %v5449_v27 = vadd.f32 %v5365_v42, %v11306_v11  ;;  %v5041_v45 = vpop.f32.mrf.mxu3 }
 0x64e   :  { %v8594_v43 = vpack.c.bf16 %v6087_v63, %v6086_v57  ;;  %v5517_v5 = vadd.f32 %v10787_v16, %v5449_v27  ;;  %v5206_v57 = vadd.f32 %v5205_v38, %v5036_v25  ;;  %v11314_v38 = vld [vmem:[#allocation18_spill] sm:$0xff] }
 0x64f   :  { %v5912_v8 = vpop.f32.mrf.mxu2 }
 0x650   :  { %8721 = vst [vmem:[%s11137_s7 + $0x78] sm:$0xff] %v8594_v43   ;;  %v5913_v52 = vadd.f32 %v10944_v55, %v5912_v8  ;;  %v5581_v22 = vmax.f32 %v5517_v5, 0.0 }
 0x651   :  { %v5366_v49 = vpop.f32.mrf.mxu1 }
 0x652   :  { %v5367_v23 = vadd.f32 %v5366_v49, %v5198_v18  ;;  %v6024_v26 = vadd.f32 %v8454_v56, %v5913_v52  ;;  %v11312_v49 = vld [vmem:[#allocation17_spill] sm:$0xff]  ;;  %v5212_v56 = vpop.f32.mrf.mxu0 }
 0x654   :  { %v5450_v48 = vadd.f32 %v5367_v23, %v4155_v12  ;;  %v6088_v44 = vmax.f32 %v6024_v26, 0.0  ;;  %v11313_v23 = vld [vmem:[#allocation33_spill] sm:$0xff]  ;;  %v8463_v26 = vunpack.c.h.bf16 %v8693_v13 }
 0x655   :  { %v4165_v5 = vadd.f32 %v11314_v38, %v11313_v23  ;;  %v11318_v23 = vld [vmem:[#allocation50_spill] sm:$0xff] }
 0x656   :  { %v5518_v47 = vadd.f32 %v10787_v16, %v5450_v48  ;;  %v5043_v48 = vpop.f32.mrf.mxu3 }
 0x657   :  { %v5914_v1 = vpop.f32.mrf.mxu2  ;;  %v5213_v20 = vadd.f32 %v5212_v56, %v5043_v48  ;;  %v8695_v56 = vld [vmem:[%s11132_s0 + $0xa0] sm:$0xff]  }
 0x658   :  { %v5582_v32 = vmax.f32 %v5518_v47, 0.0  ;;  %v5915_v60 = vadd.f32 %v10944_v55, %v5914_v1  ;;  %v8462_v47 = vunpack.c.l.bf16 %v8693_v13  ;;  %v11319_v48 = vld [vmem:[#allocation51_spill] sm:$0xff] }
 0x659   :  { %v5369_v33 = vpop.f32.mrf.mxu1 }
 0x65a   :  { %v6025_v7 = vadd.f32 %v8455_v39, %v5915_v60  ;;  %v5620_v40 = vpack.c.bf16 %v5582_v32, %v5581_v22  ;;  %v5370_v58 = vadd.f32 %v5369_v33, %v5201_v28  ;;  %v5215_v24 = vpop.f32.mrf.mxu0 }
 0x65c   :  { %v6089_v46 = vmax.f32 %v6025_v7, 0.0  ;;  %5956 = vmatmul.bf16.gmra.mxu2 %v5620_v40  ;;  %v5451_v19 = vadd.f32 %v5370_v58, %v11309_v14 }
 0x65e   :  { %v8599_v2 = vpack.c.bf16 %v6089_v46, %v6088_v44  ;;  %v5519_v3 = vadd.f32 %v10787_v16, %v5451_v19  ;;  %v5211_v44 = vadd.f32 %v5210_v9, %v5041_v45 }
 0x65f   :  { %v5917_v54 = vpop.f32.mrf.mxu2 }
 0x660   :  { %8722 = vst [vmem:[%s11137_s7 + $0x80] sm:$0xff] %v8599_v2   ;;  %v5918_v34 = vadd.f32 %v10944_v55, %v5917_v54  ;;  %v5583_v4 = vmax.f32 %v5519_v3, 0.0  ;;  %v11317_v3 = vld [vmem:[#allocation49_spill] sm:$0xff] }
 0x661   :  { %v5371_v41 = vpop.f32.mrf.mxu1 }
 0x662   :  { %v5372_v51 = vadd.f32 %v5371_v41, %v5203_v61  ;;  %v6026_v6 = vadd.f32 %v8458_v10, %v5918_v34  ;;  %v5046_v61 = vpop.f32.mrf.mxu3  ;;  %v11315_v41 = vld [vmem:[#allocation34_spill] sm:$0xff]  ;;  %v5217_v9 = vpop.f32.mrf.mxu0 }
 0x664   :  { %v5452_v31 = vadd.f32 %v5372_v51, %v4160_v50  ;;  %v6090_v43 = vmax.f32 %v6026_v6, 0.0  ;;  %v11316_v51 = vld [vmem:[#allocation48_spill] sm:$0xff]  ;;  %v8467_v6 = vunpack.c.h.bf16 %v8694_v0 }
 0x665   :  { %v4170_v10 = vadd.f32 %v11317_v3, %v11316_v51  ;;  %v8696_v3 = vld [vmem:[%s11132_s0 + $0xa8] sm:$0xff]  }
 0x666   :  { %v5520_v53 = vadd.f32 %v10787_v16, %v5452_v31 }
 0x667   :  { %v5919_v36 = vpop.f32.mrf.mxu2 }
 0x668   :  { %v5584_v15 = vmax.f32 %v5520_v53, 0.0  ;;  %v5920_v17 = vadd.f32 %v10944_v55, %v5919_v36  ;;  %v8466_v53 = vunpack.c.l.bf16 %v8694_v0 }
 0x669   :  { %v5374_v37 = vpop.f32.mrf.mxu1 }
 0x66a   :  { %v6027_v63 = vadd.f32 %v8459_v62, %v5920_v17  ;;  %v5621_v42 = vpack.c.bf16 %v5584_v15, %v5583_v4  ;;  %v5375_v18 = vadd.f32 %v5374_v37, %v5206_v57  ;;  %v5048_v15 = vpop.f32.mrf.mxu3  ;;  %v5220_v13 = vpop.f32.mrf.mxu0 }
 0x66c   :  { %v6091_v8 = vmax.f32 %v6027_v63, 0.0  ;;  %5961 = vmatmul.bf16.gmra.mxu2 %v5621_v42  ;;  %v5453_v30 = vadd.f32 %v5375_v18, %v11312_v49 }
 0x66e   :  { %v8604_v11 = vpack.c.bf16 %v6091_v8, %v6090_v43  ;;  %v5521_v25 = vadd.f32 %v10787_v16, %v5453_v30  ;;  %v5216_v43 = vadd.f32 %v5215_v24, %v5046_v61 }
 0x66f   :  { %v5922_v27 = vpop.f32.mrf.mxu2 }
 0x670   :  { %8723 = vst [vmem:[%s11137_s7 + $0x88] sm:$0xff] %v8604_v11   ;;  %v5923_v39 = vadd.f32 %v10944_v55, %v5922_v27  ;;  %v5585_v60 = vmax.f32 %v5521_v25, 0.0  ;;  %v11320_v25 = vld [vmem:[#allocation52_spill] sm:$0xff] }
 0x671   :  { %v5376_v12 = vpop.f32.mrf.mxu1 }
 0x672   :  { %v5377_v52 = vadd.f32 %v5376_v12, %v5208_v59  ;;  %v6028_v33 = vadd.f32 %v8462_v47, %v5923_v39  ;;  %v5218_v12 = vadd.f32 %v5217_v9, %v5048_v15  ;;  %v4175_v47 = vadd.f32 %v11320_v25, %v11319_v48  ;;  %v8697_v25 = vld [vmem:[%s11132_s0 + $0xb0] sm:$0xff]  }
 0x674   :  { %v5454_v1 = vadd.f32 %v5377_v52, %v4165_v5  ;;  %v6092_v2 = vmax.f32 %v6028_v33, 0.0  ;;  %v5051_v5 = vpop.f32.mrf.mxu3  ;;  %v8471_v33 = vunpack.c.h.bf16 %v8695_v56 }
 0x675   :  { %v5221_v24 = vadd.f32 %v5220_v13, %v5051_v5 }
 0x676   :  { %v5522_v22 = vadd.f32 %v10787_v16, %v5454_v1 }
 0x677   :  { %v5924_v32 = vpop.f32.mrf.mxu2 }
 0x678   :  { %v5586_v28 = vmax.f32 %v5522_v22, 0.0  ;;  %v5925_v7 = vadd.f32 %v10944_v55, %v5924_v32  ;;  %v8470_v22 = vunpack.c.l.bf16 %v8695_v56 }
 0x679   :  { %v5379_v40 = vpop.f32.mrf.mxu1 }
 0x67a   :  { %v6029_v46 = vadd.f32 %v8463_v26, %v5925_v7  ;;  %v5622_v58 = vpack.c.bf16 %v5586_v28, %v5585_v60  ;;  %v5380_v54 = vadd.f32 %v5379_v40, %v5211_v44 }
 0x67c   :  { %v6093_v29 = vmax.f32 %v6029_v46, 0.0  ;;  %5966 = vmatmul.bf16.gmra.mxu2 %v5622_v58  ;;  %v5455_v35 = vadd.f32 %v5380_v54, %v11315_v41  ;;  %v5222_v54 = vpop.f32.mrf.mxu0  ;;  %v5053_v61 = vpop.f32.mrf.mxu3 }
 0x67d   :  { %v5223_v0 = vadd.f32 %v5222_v54, %v5053_v61 }
 0x67e   :  { %v8609_v14 = vpack.c.bf16 %v6093_v29, %v6092_v2  ;;  %v5523_v31 = vadd.f32 %v10787_v16, %v5455_v35 }
 0x67f   :  { %v5927_v19 = vpop.f32.mrf.mxu2 }
 0x680   :  { %8724 = vst [vmem:[%s11137_s7 + $0x90] sm:$0xff] %v8609_v14   ;;  %v5928_v62 = vadd.f32 %v10944_v55, %v5927_v19  ;;  %v5587_v45 = vmax.f32 %v5523_v31, 0.0  ;;  %v11323_v31 = vld [vmem:[#allocation55_spill] sm:$0xff] }
 0x681   :  { %v5381_v50 = vpop.f32.mrf.mxu1 }
 0x682   :  { %v5382_v34 = vadd.f32 %v5381_v50, %v5213_v20  ;;  %v6030_v37 = vadd.f32 %v8466_v53, %v5928_v62  ;;  %v11321_v50 = vld [vmem:[#allocation53_spill] sm:$0xff] }
 0x684   :  { %v5456_v36 = vadd.f32 %v5382_v34, %v4170_v10  ;;  %v6094_v11 = vmax.f32 %v6030_v37, 0.0  ;;  %v11322_v34 = vld [vmem:[#allocation54_spill] sm:$0xff]  ;;  %v5225_v9 = vpop.f32.mrf.mxu0  ;;  %v8475_v37 = vunpack.c.h.bf16 %v8696_v3 }
 0x685   :  { %v4180_v53 = vadd.f32 %v11323_v31, %v11322_v34 }
 0x686   :  { %v5524_v4 = vadd.f32 %v10787_v16, %v5456_v36  ;;  %v5056_v36 = vpop.f32.mrf.mxu3 }
 0x687   :  { %v5929_v17 = vpop.f32.mrf.mxu2 }
 0x688   :  { %v5588_v57 = vmax.f32 %v5524_v4, 0.0  ;;  %v5930_v63 = vadd.f32 %v10944_v55, %v5929_v17 }
 0x689   :  { %v5384_v42 = vpop.f32.mrf.mxu1 }
 0x68a   :  { %v6031_v8 = vadd.f32 %v8467_v6, %v5930_v63  ;;  %v5623_v18 = vpack.c.bf16 %v5588_v57, %v5587_v45  ;;  %v5385_v59 = vadd.f32 %v5384_v42, %v5216_v43  ;;  %v8474_v6 = vunpack.c.l.bf16 %v8696_v3 }
 0x68b   :  { %v5226_v57 = vadd.f32 %v5225_v9, %v5056_v36 }
 0x68c   :  { %v6095_v27 = vmax.f32 %v6031_v8, 0.0  ;;  %5971 = vmatmul.bf16.gmra.mxu2 %v5623_v18  ;;  %v5457_v38 = vadd.f32 %v5385_v59, %v11318_v23  ;;  %v5227_v23 = vpop.f32.mrf.mxu0 }
 0x68e   :  { %v8614_v49 = vpack.c.bf16 %v6095_v27, %v6094_v11  ;;  %v5525_v1 = vadd.f32 %v10787_v16, %v5457_v38 }
 0x68f   :  { %v5932_v30 = vpop.f32.mrf.mxu2 }
 0x690   :  { %8725 = vst [vmem:[%s11137_s7 + $0x98] sm:$0xff] %v8614_v49   ;;  %v5933_v26 = vadd.f32 %v10944_v55, %v5932_v30  ;;  %v5589_v7 = vmax.f32 %v5525_v1, 0.0 }
 0x691   :  { %v5386_v52 = vpop.f32.mrf.mxu1 }
 0x692   :  { %v5387_v39 = vadd.f32 %v5386_v52, %v5218_v12  ;;  %v6032_v40 = vadd.f32 %v8470_v22, %v5933_v26  ;;  %v5058_v12 = vpop.f32.mrf.mxu3  ;;  %v11324_v52 = vld [vmem:[#allocation56_spill] sm:$0xff] }
 0x693   :  { %v5228_v56 = vadd.f32 %v5227_v23, %v5058_v12 }
 0x694   :  { %v5458_v32 = vadd.f32 %v5387_v39, %v4175_v47  ;;  %v6096_v14 = vmax.f32 %v6032_v40, 0.0  ;;  %v11325_v39 = vld [vmem:[#allocation57_spill] sm:$0xff] }
 0x695   :  { %v4185_v1 = vadd.f32 %v10639_v21, %v11325_v39 }
 0x696   :  { %v5526_v60 = vadd.f32 %v10787_v16, %v5458_v32  ;;  %v8478_v32 = vunpack.c.l.bf16 %v8697_v25 }
 0x697   :  { %v5934_v28 = vpop.f32.mrf.mxu2 }
 0x698   :  { %v5590_v44 = vmax.f32 %v5526_v60, 0.0  ;;  %v5935_v46 = vadd.f32 %v10944_v55, %v5934_v28 }
 0x699   :  { %v5389_v58 = vpop.f32.mrf.mxu1 }
 0x69a   :  { %v6033_v2 = vadd.f32 %v8471_v33, %v5935_v46  ;;  %v5624_v29 = vpack.c.bf16 %v5590_v44, %v5589_v7  ;;  %v5390_v20 = vadd.f32 %v5389_v58, %v5221_v24  ;;  %v8479_v7 = vunpack.c.h.bf16 %v8697_v25 }
 0x69c   :  { %v6097_v19 = vmax.f32 %v6033_v2, 0.0  ;;  %5976 = vmatmul.bf16.gmra.mxu2 %v5624_v29  ;;  %v5459_v51 = vadd.f32 %v5390_v20, %v11321_v50 }
 0x69e   :  { %v8619_v41 = vpack.c.bf16 %v6097_v19, %v6096_v14  ;;  %v5527_v4 = vadd.f32 %v10787_v16, %v5459_v51 }
 0x69f   :  { %v5937_v35 = vpop.f32.mrf.mxu2 }
 0x6a0   :  { %8726 = vst [vmem:[%s11137_s7 + $0xa0] sm:$0xff] %v8619_v41   ;;  %v5938_v15 = vadd.f32 %v10944_v55, %v5937_v35  ;;  %v5591_v42 = vmax.f32 %v5527_v4, 0.0 }
 0x6a1   :  { %v5391_v10 = vpop.f32.mrf.mxu1 }
 0x6a2   :  { %v5392_v62 = vadd.f32 %v5391_v10, %v5223_v0  ;;  %v6034_v43 = vadd.f32 %v8474_v6, %v5938_v15 }
 0x6a4   :  { %v5460_v17 = vadd.f32 %v5392_v62, %v4180_v53  ;;  %v6098_v49 = vmax.f32 %v6034_v43, 0.0  ;;  %v8699_v53 = vld [vmem:[%s11132_s0 + $0xc0] sm:$0xff]  }
 0x6a5   :  { %v8486_v62 = vunpack.c.l.bf16 %v8699_v53  ;;  %v8487_v9 = vunpack.c.h.bf16 %v8699_v53 }
 0x6a6   :  { %v5528_v45 = vadd.f32 %v10787_v16, %v5460_v17 }
 0x6a7   :  { %v5939_v63 = vpop.f32.mrf.mxu2 }
 0x6a8   :  { %v5592_v8 = vmax.f32 %v5528_v45, 0.0  ;;  %v5940_v18 = vadd.f32 %v10944_v55, %v5939_v63 }
 0x6a9   :  { %v5394_v11 = vpop.f32.mrf.mxu1 }
 0x6aa   :  { %v6035_v27 = vadd.f32 %v8475_v37, %v5940_v18  ;;  %v5625_v59 = vpack.c.bf16 %v5592_v8, %v5591_v42  ;;  %v5395_v13 = vadd.f32 %v5394_v11, %v5226_v57  ;;  %v8700_v42 = vld [vmem:[%s11132_s0 + $0xc8] sm:$0xff]  }
 0x6ab   :  { %v8490_v43 = vunpack.c.l.bf16 %v8700_v42  ;;  %v8491_v18 = vunpack.c.h.bf16 %v8700_v42 }
 0x6ac   :  { %v6099_v30 = vmax.f32 %v6035_v27, 0.0  ;;  %5981 = vmatmul.bf16.gmra.mxu2 %v5625_v59  ;;  %v5461_v48 = vadd.f32 %v5395_v13, %v11324_v52 }
 0x6ae   :  { %v8624_v38 = vpack.c.bf16 %v6099_v30, %v6098_v49  ;;  %v5529_v26 = vadd.f32 %v10787_v16, %v5461_v48 }
 0x6af   :  { %v5942_v5 = vpop.f32.mrf.mxu2 }
 0x6b0   :  { %8727 = vst [vmem:[%s11137_s7 + $0xa8] sm:$0xff] %v8624_v38   ;;  %v5943_v60 = vadd.f32 %v10944_v55, %v5942_v5  ;;  %v5593_v44 = vmax.f32 %v5529_v26, 0.0  ;;  %v8701_v38 = vld [vmem:[%s11132_s0 + $0xd0] sm:$0xff]  }
 0x6b1   :  { %v5396_v47 = vpop.f32.mrf.mxu1  ;;  %v8494_v5 = vunpack.c.l.bf16 %v8701_v38  ;;  %v8495_v52 = vunpack.c.h.bf16 %v8701_v38 }
 0x6b2   :  { %v5397_v22 = vadd.f32 %v5396_v47, %v5228_v56  ;;  %v6036_v46 = vadd.f32 %v8478_v32, %v5943_v60  ;;  %v8702_v60 = vld [vmem:[%s11132_s0 + $0xd8] sm:$0xff]  }
 0x6b4   :  { %v5462_v33 = vadd.f32 %v5397_v22, %v4185_v1  ;;  %v6100_v54 = vmax.f32 %v6036_v46, 0.0 }
 0x6b6   :  { %v5530_v28 = vadd.f32 %v10787_v16, %v5462_v33  ;;  %v8698_v16 = vld [vmem:[%s11132_s0 + $0xb8] sm:$0xff]   ;;  %v8498_v33 = vunpack.c.l.bf16 %v8702_v60 }
 0x6b7   :  { %v5944_v40 = vpop.f32.mrf.mxu2  ;;  %v8482_v19 = vunpack.c.l.bf16 %v8698_v16  ;;  %v8483_v41 = vunpack.c.h.bf16 %v8698_v16 }
 0x6b8   :  { %v5594_v58 = vmax.f32 %v5530_v28, 0.0  ;;  %v5945_v24 = vadd.f32 %v10944_v55, %v5944_v40 }
 0x6ba   :  { %v6037_v2 = vadd.f32 %v8479_v7, %v5945_v24  ;;  %v5626_v29 = vpack.c.bf16 %v5594_v58, %v5593_v44  ;;  %v8499_v7 = vunpack.c.h.bf16 %v8702_v60 }
 0x6bc   :  { %v6101_v21 = vmax.f32 %v6037_v2, 0.0  ;;  %5986 = vmatmul.bf16.gmra.mxu2 %v5626_v29 }
 0x6be   :  { %v8629_v61 = vpack.c.bf16 %v6101_v21, %v6100_v54  ;;  %v8703_v21 = vld [vmem:[%s11132_s0 + $0xe0] sm:$0xff]  }
 0x6bf   :  { %v5947_v14 = vpop.f32.mrf.mxu2  ;;  %v8503_v16 = vunpack.c.h.bf16 %v8703_v21 }
 0x6c0   :  { %8728 = vst [vmem:[%s11137_s7 + $0xb0] sm:$0xff] %v8629_v61   ;;  %v5948_v20 = vadd.f32 %v10944_v55, %v5947_v14  ;;  %v8502_v61 = vunpack.c.l.bf16 %v8703_v21 }
 0x6c2   :  { %v6038_v0 = vadd.f32 %v8482_v19, %v5948_v20 }
 0x6c4   :  { %v6102_v3 = vmax.f32 %v6038_v0, 0.0 }
 0x6c7   :  { %v5949_v35 = vpop.f32.mrf.mxu2 }
 0x6c8   :  { %v5950_v50 = vadd.f32 %v10944_v55, %v5949_v35 }
 0x6ca   :  { %v6039_v51 = vadd.f32 %v8483_v41, %v5950_v50 }
 0x6cc   :  { %v6103_v10 = vmax.f32 %v6039_v51, 0.0 }
 0x6ce   :  { %v8634_v34 = vpack.c.bf16 %v6103_v10, %v6102_v3  ;;  %v8704_v10 = vld [vmem:[%s11132_s0 + $0xe8] sm:$0xff]  }
 0x6cf   :  { %v5952_v31 = vpop.f32.mrf.mxu2  ;;  %v8507_v53 = vunpack.c.h.bf16 %v8704_v10 }
 0x6d0   :  { %8729 = vst [vmem:[%s11137_s7 + $0xb8] sm:$0xff] %v8634_v34   ;;  %v5953_v36 = vadd.f32 %v10944_v55, %v5952_v31  ;;  %v8506_v34 = vunpack.c.l.bf16 %v8704_v10 }
 0x6d2   :  { %v6040_v6 = vadd.f32 %v8486_v62, %v5953_v36 }
 0x6d4   :  { %v6104_v45 = vmax.f32 %v6040_v6, 0.0 }
 0x6d7   :  { %v5954_v4 = vpop.f32.mrf.mxu2 }
 0x6d8   :  { %v5955_v15 = vadd.f32 %v10944_v55, %v5954_v4 }
 0x6da   :  { %v6041_v17 = vadd.f32 %v8487_v9, %v5955_v15 }
 0x6dc   :  { %v6105_v37 = vmax.f32 %v6041_v17, 0.0 }
 0x6de   :  { %v8639_v57 = vpack.c.bf16 %v6105_v37, %v6104_v45  ;;  %v8705_v37 = vld [vmem:[%s11132_s0 + $0xf0] sm:$0xff]  }
 0x6df   :  { %v5957_v63 = vpop.f32.mrf.mxu2  ;;  %v8511_v42 = vunpack.c.h.bf16 %v8705_v37 }
 0x6e0   :  { %8730 = vst [vmem:[%s11137_s7 + $0xc0] sm:$0xff] %v8639_v57   ;;  %v5958_v8 = vadd.f32 %v10944_v55, %v5957_v63  ;;  %v8510_v57 = vunpack.c.l.bf16 %v8705_v37 }
 0x6e2   :  { %v6042_v27 = vadd.f32 %v8490_v43, %v5958_v8 }
 0x6e4   :  { %v6106_v30 = vmax.f32 %v6042_v27, 0.0 }
 0x6e7   :  { %v5959_v11 = vpop.f32.mrf.mxu2 }
 0x6e8   :  { %v5960_v59 = vadd.f32 %v10944_v55, %v5959_v11 }
 0x6ea   :  { %v6043_v49 = vadd.f32 %v8491_v18, %v5960_v59 }
 0x6ec   :  { %v6107_v13 = vmax.f32 %v6043_v49, 0.0 }
 0x6ee   :  { %v8644_v12 = vpack.c.bf16 %v6107_v13, %v6106_v30  ;;  %v8706_v13 = vld [vmem:[%s11132_s0 + $0xf8] sm:$0xff]  }
 0x6ef   :  { %v5962_v23 = vpop.f32.mrf.mxu2  ;;  %v8515_v38 = vunpack.c.h.bf16 %v8706_v13 }
 0x6f0   :  { %8731 = vst [vmem:[%s11137_s7 + $0xc8] sm:$0xff] %v8644_v12   ;;  %v5963_v56 = vadd.f32 %v10944_v55, %v5962_v23  ;;  %v8514_v12 = vunpack.c.l.bf16 %v8706_v13 }
 0x6f2   :  { %v6044_v25 = vadd.f32 %v8494_v5, %v5963_v56 }
 0x6f4   :  { %v6108_v1 = vmax.f32 %v6044_v25, 0.0 }
 0x6f7   :  { %v5964_v48 = vpop.f32.mrf.mxu2 }
 0x6f8   :  { %v5965_v47 = vadd.f32 %v10944_v55, %v5964_v48 }
 0x6fa   :  { %v6045_v39 = vadd.f32 %v8495_v52, %v5965_v47 }
 0x6fc   :  { %v6109_v22 = vmax.f32 %v6045_v39, 0.0 }
 0x6fe   :  { %v8649_v26 = vpack.c.bf16 %v6109_v22, %v6108_v1 }
 0x6ff   :  { %v5967_v32 = vpop.f32.mrf.mxu2 }
 0x700   :  { %8732 = vst [vmem:[%s11137_s7 + $0xd0] sm:$0xff] %v8649_v26   ;;  %v5968_v28 = vadd.f32 %v10944_v55, %v5967_v32 }
 0x702   :  { %v6046_v44 = vadd.f32 %v8498_v33, %v5968_v28 }
 0x704   :  { %v6110_v24 = vmax.f32 %v6046_v44, 0.0 }
 0x707   :  { %v5969_v40 = vpop.f32.mrf.mxu2 }
 0x708   :  { %v5970_v46 = vadd.f32 %v10944_v55, %v5969_v40 }
 0x70a   :  { %v6047_v58 = vadd.f32 %v8499_v7, %v5970_v46 }
 0x70c   :  { %v6111_v2 = vmax.f32 %v6047_v58, 0.0 }
 0x70e   :  { %v8654_v29 = vpack.c.bf16 %v6111_v2, %v6110_v24 }
 0x70f   :  { %v5972_v54 = vpop.f32.mrf.mxu2 }
 0x710   :  { %8733 = vst [vmem:[%s11137_s7 + $0xd8] sm:$0xff] %v8654_v29   ;;  %v5973_v14 = vadd.f32 %v10944_v55, %v5972_v54 }
 0x712   :  { %v6048_v20 = vadd.f32 %v8502_v61, %v5973_v14 }
 0x714   :  { %v6112_v0 = vmax.f32 %v6048_v20, 0.0 }
 0x717   :  { %v5974_v19 = vpop.f32.mrf.mxu2 }
 0x718   :  { %v5975_v41 = vadd.f32 %v10944_v55, %v5974_v19 }
 0x71a   :  { %v6049_v35 = vadd.f32 %v8503_v16, %v5975_v41 }
 0x71c   :  { %v6113_v50 = vmax.f32 %v6049_v35, 0.0 }
 0x71e   :  { %v8659_v51 = vpack.c.bf16 %v6113_v50, %v6112_v0 }
 0x71f   :  { %v5977_v3 = vpop.f32.mrf.mxu2 }
 0x720   :  { %8734 = vst [vmem:[%s11137_s7 + $0xe0] sm:$0xff] %v8659_v51   ;;  %v5978_v31 = vadd.f32 %v10944_v55, %v5977_v3 }
 0x722   :  { %v6050_v36 = vadd.f32 %v8506_v34, %v5978_v31 }
 0x724   :  { %v6114_v6 = vmax.f32 %v6050_v36, 0.0 }
 0x727   :  { %v5979_v62 = vpop.f32.mrf.mxu2 }
 0x728   :  { %v5980_v9 = vadd.f32 %v10944_v55, %v5979_v62 }
 0x72a   :  { %v6051_v4 = vadd.f32 %v8507_v53, %v5980_v9 }
 0x72c   :  { %v6115_v15 = vmax.f32 %v6051_v4, 0.0 }
 0x72e   :  { %v8664_v17 = vpack.c.bf16 %v6115_v15, %v6114_v6 }
 0x72f   :  { %v5982_v45 = vpop.f32.mrf.mxu2 }
 0x730   :  { %8735 = vst [vmem:[%s11137_s7 + $0xe8] sm:$0xff] %v8664_v17   ;;  %v5983_v63 = vadd.f32 %v10944_v55, %v5982_v45 }
 0x732   :  { %v6052_v8 = vadd.f32 %v8510_v57, %v5983_v63 }
 0x734   :  { %v6116_v27 = vmax.f32 %v6052_v8, 0.0 }
 0x737   :  { %v5984_v43 = vpop.f32.mrf.mxu2 }
 0x738   :  { %v5985_v18 = vadd.f32 %v10944_v55, %v5984_v43 }
 0x73a   :  { %v6053_v11 = vadd.f32 %v8511_v42, %v5985_v18 }
 0x73c   :  { %v6117_v59 = vmax.f32 %v6053_v11, 0.0 }
 0x73e   :  { %v8669_v49 = vpack.c.bf16 %v6117_v59, %v6116_v27 }
 0x73f   :  { %v5987_v30 = vpop.f32.mrf.mxu2 }
 0x740   :  { %8736 = vst [vmem:[%s11137_s7 + $0xf0] sm:$0xff] %v8669_v49   ;;  %v5988_v23 = vadd.f32 %v10944_v55, %v5987_v30 }
 0x742   :  { %v6054_v56 = vadd.f32 %v8514_v12, %v5988_v23 }
 0x744   :  { %v6118_v25 = vmax.f32 %v6054_v56, 0.0 }
 0x747   :  { %v5989_v5 = vpop.f32.mrf.mxu2 }
 0x748   :  { %v5990_v52 = vadd.f32 %v10944_v55, %v5989_v5 }
 0x74a   :  { %v6055_v48 = vadd.f32 %v8515_v38, %v5990_v52 }
 0x74c   :  { %v6119_v47 = vmax.f32 %v6055_v48, 0.0 }
 0x74e   :  { %v8674_v39 = vpack.c.bf16 %v6119_v47, %v6118_v25 }
 0x750   :  { %8737 = vst [vmem:[%s11137_s7 + $0xf8] sm:$0xff] %v8674_v39  }

</bundles_post_ra>
